<compile_context>
chip_gen: v5e
topology: v5e:2x2
jax: 0.10.0
libtpu: 0.0.40
codegen_flags: <defaults>
</compile_context>

<pallas_src>
import functools

import jax
import jax.numpy as jnp
from jax.experimental import pallas as pl
from jax.experimental.pallas import tpu as pltpu

LANES = 128


# ----------------------------- in-kernel helpers ----------------------------

def _layernorm(x, g, b, eps=1e-5):
    mu = jnp.mean(x, axis=-1, keepdims=True)
    d = x - mu
    var = jnp.mean(d * d, axis=-1, keepdims=True)
    return d * jax.lax.rsqrt(var + eps) * g + b


def _mha(q_src, kv_src, bias, wq3, bq3, wk3, bk3, wv3, bv3, wo3, bo, *,
         n_heads):
    """Multi-head attention with batch folded into the matmul M dimension.

    q_src : (B*Lq, D) bf16, kv_src : (B*Lk, D) bf16 (cast once by the caller).
    bias  : (B*Lq, B*Lk) f32 additive mask, 0 on the per-batch block diagonal
            and -1e30 elsewhere, so batches never attend to each other.
    wq3/wk3/wv3 : (H, D, dh) bf16 (scale folded into wq3/bq3),
    bq3/bk3/bv3 : (H, 1, dh) f32, wo3 : (H, dh, D) bf16, bo : (1, D) f32.
    The head loop is a compile-time unroll of plain 2D matmuls: no lane
    slicing, no masked partial stores, no VMEM scratch round-trip.
    """
    acc = None
    for h in range(n_heads):
        q = jnp.dot(q_src, wq3[h], preferred_element_type=jnp.float32) + bq3[h]
        k = jnp.dot(kv_src, wk3[h], preferred_element_type=jnp.float32) + bk3[h]
        v = jnp.dot(kv_src, wv3[h], preferred_element_type=jnp.float32) + bv3[h]
        s = jax.lax.dot_general(
            q.astype(jnp.bfloat16), k.astype(jnp.bfloat16),
            (((1,), (1,)), ((), ())),
            preferred_element_type=jnp.float32) + bias          # (B*Lq, B*Lk)
        s = s - jnp.max(s, axis=-1, keepdims=True)
        p = jnp.exp(s)
        p = p * pl.reciprocal(jnp.sum(p, axis=-1, keepdims=True), approx=True)
        o = jnp.dot(p.astype(jnp.bfloat16), v.astype(jnp.bfloat16),
                    preferred_element_type=jnp.float32)          # (B*Lq, dh)
        c = jnp.dot(o.astype(jnp.bfloat16), wo3[h],
                    preferred_element_type=jnp.float32)          # (B*Lq, D)
        acc = c if acc is None else acc + c
    return acc + bo


# ------------------------------- kernels -------------------------------------

def _linear_kernel(x_ref, w_ref, b_ref, o_ref):
    # x: (tm, K) f32, w: (K, N) bf16, b: (1, N) f32 -> (tm, N) f32
    o_ref[...] = (
        jnp.dot(x_ref[...].astype(jnp.bfloat16), w_ref[...],
                preferred_element_type=jnp.float32)
        + b_ref[...]
    )


_N_CROSS = 10   # wq3,bq3,wk3,bk3,wv3,bv3,wo3,bo,ln_g,ln_b
_N_LAYER = 16   # wq3,bq3,wk3,bk3,wv3,bv3,wo3,bo,ln1_g,ln1_b,w1,b1,w2,b2,ln2_g,ln2_b


def _block_kernel(lat_ref, x_ref, cbias_ref, sbias_ref, *rest,
                  n_heads, n_layers):
    """One fused Perceiver block: cross-attn + n_layers encoder layers."""
    out_ref = rest[-1]
    p = [r[...] for r in rest[:-1]]

    B, Ls, D = lat_ref.shape
    T = x_ref.shape[1]

    lat = lat_ref[...].reshape(B * Ls, D)                     # f32 residual path
    x2 = x_ref[...].reshape(B * T, D).astype(jnp.bfloat16)    # cast once
    cbias = cbias_ref[...]
    sbias = sbias_ref[...]

    # ---- cross attention (latents -> x), residual, LayerNorm ---------------
    cp = p[:_N_CROSS]
    attn = _mha(lat.astype(jnp.bfloat16), x2, cbias, *cp[:8], n_heads=n_heads)
    lat = _layernorm(lat + attn, cp[8], cp[9])

    # ---- self-attention encoder layers (post-LN, ReLU, eval mode) ----------
    for i in range(n_layers):
        lp = p[_N_CROSS + _N_LAYER * i: _N_CROSS + _N_LAYER * (i + 1)]
        lat_b = lat.astype(jnp.bfloat16)
        attn = _mha(lat_b, lat_b, sbias, *lp[:8], n_heads=n_heads)
        y = _layernorm(lat + attn, lp[8], lp[9])
        h = jnp.dot(y.astype(jnp.bfloat16), lp[10],
                    preferred_element_type=jnp.float32) + lp[11]
        h = jnp.maximum(h, 0.0)
        ff = jnp.dot(h.astype(jnp.bfloat16), lp[12],
                     preferred_element_type=jnp.float32) + lp[13]
        lat = _layernorm(y + ff, lp[14], lp[15])

    out_ref[...] = lat.reshape(B, Ls, D)


def _pool_classify_kernel(lat_ref, w_ref, b_ref, o_ref):
    # latents: (B, Ls, D) -> mean over Ls -> classifier (B, N_padded)
    pooled = jnp.mean(lat_ref[...], axis=1)                    # (B, D)
    o_ref[...] = (
        jnp.dot(pooled.astype(jnp.bfloat16), w_ref[...],
                preferred_element_type=jnp.float32)
        + b_ref[...]
    )


# ----------------------------- kernel wrappers -------------------------------

def pallas_linear(x2d, w_bf16, b_row, tile_m=512):
    """(M, K) @ (K, N) + b, M-tiled so large token counts pipeline DMA."""
    M, K = x2d.shape
    N = w_bf16.shape[1]
    tm = min(tile_m, M)
    Mp = pl.cdiv(M, tm) * tm
    xp = jnp.pad(x2d, ((0, Mp - M), (0, 0))) if Mp != M else x2d
    out = pl.pallas_call(
        _linear_kernel,
        out_shape=jax.ShapeDtypeStruct((Mp, N), jnp.float32),
        grid=(Mp // tm,),
        in_specs=[
            pl.BlockSpec((tm, K), lambda i: (i, 0)),
            pl.BlockSpec((K, N), lambda i: (0, 0)),
            pl.BlockSpec((1, N), lambda i: (0, 0)),
        ],
        out_specs=pl.BlockSpec((tm, N), lambda i: (i, 0)),
        compiler_params=pltpu.CompilerParams(
            dimension_semantics=("parallel",)),
    )(xp, w_bf16, b_row)
    return out[:M] if Mp != M else out


def perceiver_block(latents, x_proj, cross_bias, self_bias, bp, n_heads):
    B, Ls, D = latents.shape
    n_layers = len(bp["layers"])

    args = [latents, x_proj, cross_bias, self_bias]
    c = bp["cross"]
    args += [c["wq3"], c["bq3"], c["wk3"], c["bk3"], c["wv3"], c["bv3"],
             c["wo3"], c["bo"], c["ln_g"], c["ln_b"]]
    for lp in bp["layers"]:
        args += [lp["wq3"], lp["bq3"], lp["wk3"], lp["bk3"], lp["wv3"],
                 lp["bv3"], lp["wo3"], lp["bo"], lp["ln1_g"], lp["ln1_b"],
                 lp["w1"], lp["b1"], lp["w2"], lp["b2"],
                 lp["ln2_g"], lp["ln2_b"]]

    kern = functools.partial(_block_kernel, n_heads=n_heads, n_layers=n_layers)
    return pl.pallas_call(
        kern,
        out_shape=jax.ShapeDtypeStruct((B, Ls, D), jnp.float32),
        input_output_aliases={0: 0},     # reuse the latents buffer across blocks
    )(*args)


def pool_classify(latents, w_pad, b_pad, num_classes):
    B = latents.shape[0]
    Np = w_pad.shape[1]
    out = pl.pallas_call(
        _pool_classify_kernel,
        out_shape=jax.ShapeDtypeStruct((B, Np), jnp.float32),
    )(latents, w_pad, b_pad)
    return out[:, :num_classes]


# ------------------------------- forward pass --------------------------------

def _batch_bias(B, Lq, Lk):
    """Additive block-diagonal mask keeping per-batch attention separate."""
    rb = jnp.arange(B * Lq, dtype=jnp.int32) // Lq
    cb = jnp.arange(B * Lk, dtype=jnp.int32) // Lk
    return jnp.where(rb[:, None] == cb[None, :], 0.0, -1e30).astype(jnp.float32)


def perceiver_forward(prep, x, *, n_heads=8, num_classes=10):
    """x: (B, T, F) -> logits (B, num_classes)."""
    B, T, F = x.shape
    Ls, D = prep["latents"].shape

    x_proj = pallas_linear(x.reshape(B * T, F), prep["ip_w"], prep["ip_b"])
    x_proj = x_proj.reshape(B, T, D)

    latents = jnp.broadcast_to(prep["latents"][None], (B, Ls, D))

    cross_bias = _batch_bias(B, Ls, T)   # shape-static; folded at compile time
    self_bias = _batch_bias(B, Ls, Ls)

    for bp in prep["blocks"]:
        latents = perceiver_block(latents, x_proj, cross_bias, self_bias,
                                  bp, n_heads)

    return pool_classify(latents, prep["out_w"], prep["out_b"], num_classes)


# ----------------------- parameter init & preparation ------------------------

def _normal(kit, shape, scale=0.05):
    return scale * jax.random.normal(next(kit), shape, jnp.float32)


def _init_mha(kit, d):
    return {
        "in_proj_weight": _normal(kit, (3 * d, d)),
        "in_proj_bias": _normal(kit, (3 * d,)),
        "out_proj_weight": _normal(kit, (d, d)),
        "out_proj_bias": jnp.zeros((d,), jnp.float32),
    }


def init_params(key, input_dim, latent_dim, latent_size, num_classes,
                num_blocks, self_attn_layers_per_block, dim_feedforward=2048):
    """PyTorch-convention parameters (weights stored as (out, in))."""
    kit = iter(jax.random.split(key, 512))
    params = {
        "latents": jax.random.normal(next(kit), (latent_size, latent_dim),
                                     jnp.float32),
        "input_projection_weight": _normal(kit, (latent_dim, input_dim)),
        "input_projection_bias": _normal(kit, (latent_dim,)),
        "output_layer_weight": _normal(kit, (num_classes, latent_dim)),
        "output_layer_bias": jnp.zeros((num_classes,), jnp.float32),
        "blocks": [],
    }
    for _ in range(num_blocks):
        block = {
            "cross_attn": _init_mha(kit, latent_dim),
            "cross_ln_weight": jnp.ones((latent_dim,), jnp.float32),
            "cross_ln_bias": jnp.zeros((latent_dim,), jnp.float32),
            "self_attn_layers": [],
        }
        for _ in range(self_attn_layers_per_block):
            block["self_attn_layers"].append({
                "self_attn": _init_mha(kit, latent_dim),
                "linear1_weight": _normal(kit, (dim_feedforward, latent_dim)),
                "linear1_bias": jnp.zeros((dim_feedforward,), jnp.float32),
                "linear2_weight": _normal(kit, (latent_dim, dim_feedforward)),
                "linear2_bias": jnp.zeros((latent_dim,), jnp.float32),
                "norm1_weight": jnp.ones((latent_dim,), jnp.float32),
                "norm1_bias": jnp.zeros((latent_dim,), jnp.float32),
                "norm2_weight": jnp.ones((latent_dim,), jnp.float32),
                "norm2_bias": jnp.zeros((latent_dim,), jnp.float32),
            })
        params["blocks"].append(block)
    return params


def _split_heads_in(w_t, b, n_heads, scale=1.0):
    """(D_in, D_out) -> (H, D_in, dh) bf16 ; bias -> (H, 1, dh) f32."""
    d_in, d_out = w_t.shape
    dh = d_out // n_heads
    w3 = jnp.transpose((w_t * scale).reshape(d_in, n_heads, dh), (1, 0, 2))
    b3 = (b * scale).reshape(n_heads, 1, dh)
    return w3.astype(jnp.bfloat16), b3.astype(jnp.float32)


def _split_heads_out(w_t, n_heads):
    """(D_concat, D_out) -> (H, dh, D_out) bf16 (per-head rows)."""
    d_in, d_out = w_t.shape
    dh = d_in // n_heads
    return w_t.reshape(n_heads, dh, d_out).astype(jnp.bfloat16)


def _prep_mha(mha, n_heads):
    d = mha["out_proj_weight"].shape[0]
    dh = d // n_heads
    scale = 1.0 / float(dh) ** 0.5                 # folded into q proj
    w_in, b_in = mha["in_proj_weight"], mha["in_proj_bias"]
    wq3, bq3 = _split_heads_in(w_in[:d].T, b_in[:d], n_heads, scale)
    wk3, bk3 = _split_heads_in(w_in[d:2 * d].T, b_in[d:2 * d], n_heads)
    wv3, bv3 = _split_heads_in(w_in[2 * d:].T, b_in[2 * d:], n_heads)
    wo3 = _split_heads_out(mha["out_proj_weight"].T, n_heads)
    bo = mha["out_proj_bias"].reshape(1, d)
    return {"wq3": wq3, "bq3": bq3, "wk3": wk3, "bk3": bk3,
            "wv3": wv3, "bv3": bv3, "wo3": wo3, "bo": bo}


def _pad_lanes(a, n=LANES):
    pad = (-a.shape[-1]) % n
    if pad:
        a = jnp.pad(a, [(0, 0)] * (a.ndim - 1) + [(0, pad)])
    return a


def prepare_params(params, n_heads=8):
    """One-time prep: transpose to (in,out), split heads, fold scale, bf16."""
    d = params["latents"].shape[1]
    prep = {
        "latents": params["latents"],
        "ip_w": params["input_projection_weight"].T.astype(jnp.bfloat16),
        "ip_b": params["input_projection_bias"].reshape(1, -1),
        # classifier padded to a lane-dense 128-wide output, sliced in wrapper
        "out_w": _pad_lanes(params["output_layer_weight"].T).astype(jnp.bfloat16),
        "out_b": _pad_lanes(params["output_layer_bias"].reshape(1, -1)),
        "blocks": [],
    }
    for bp in params["blocks"]:
        cross = _prep_mha(bp["cross_attn"], n_heads)
        cross["ln_g"] = bp["cross_ln_weight"].reshape(1, d)
        cross["ln_b"] = bp["cross_ln_bias"].reshape(1, d)
        layers = []
        for sp in bp["self_attn_layers"]:
            lp = _prep_mha(sp["self_attn"], n_heads)
            lp.update({
                "ln1_g": sp["norm1_weight"].reshape(1, d),
                "ln1_b": sp["norm1_bias"].reshape(1, d),
                "w1": sp["linear1_weight"].T.astype(jnp.bfloat16),
                "b1": sp["linear1_bias"].reshape(1, -1),
                "w2": sp["linear2_weight"].T.astype(jnp.bfloat16),
                "b2": sp["linear2_bias"].reshape(1, d),
                "ln2_g": sp["norm2_weight"].reshape(1, d),
                "ln2_b": sp["norm2_bias"].reshape(1, d),
            })
            layers.append(lp)
        prep["blocks"].append({"cross": cross, "layers": layers})
    return prep


# ---------------------------------- main -------------------------------------

if __name__ == "__main__":
    key = jax.random.PRNGKey(0)
    k_params, k_x = jax.random.split(key)

    B, T, input_dim = 2, 16, 32
    latent_dim, latent_size = 64, 8
    num_classes, num_blocks = 10, 2
    self_attn_layers_per_block = 1
    n_heads = 8

    params = init_params(
        k_params, input_dim, latent_dim, latent_size,
        num_classes, num_blocks, self_attn_layers_per_block,
    )
    prep = prepare_params(params, n_heads=n_heads)   # one-time transpose/split
    x = jax.random.normal(k_x, (B, T, input_dim), jnp.float32)

    fwd = jax.jit(functools.partial(perceiver_forward, n_heads=n_heads,
                                    num_classes=num_classes))
    out = jax.block_until_ready(fwd(prep, x))

    assert out.shape == (B, num_classes), out.shape
    assert bool(jnp.all(jnp.isfinite(out)))
    print("KERNEL_OK")
</pallas_src>

<mosaic_0001>
module attributes {stable_mosaic.version = 11 : i64} {
  func.func @_linear_kernel(%arg0: i32, %arg1: memref<32x32xf32, #tpu.memory_space<vmem>>, %arg2: memref<32x64xbf16, #tpu.memory_space<vmem>>, %arg3: memref<1x64xf32, #tpu.memory_space<vmem>>, %arg4: memref<32x64xf32, #tpu.memory_space<vmem>>) attributes {dimension_semantics = [#tpu.dimension_semantics<parallel>], iteration_bounds = array<i64: 1>, scalar_prefetch = 0 : i64, scratch_operands = 0 : i64, tpu.core_type = #tpu.core_type<tc>, window_params = [{transform_indices = @transform_0, window_bounds = array<i64: 32, 32>}, {pipeline_mode = #tpu.pipeline_mode<synchronous>, transform_indices = @transform_1, window_bounds = array<i64: 32, 64>}, {pipeline_mode = #tpu.pipeline_mode<synchronous>, transform_indices = @transform_2, window_bounds = array<i64: 1, 64>}, {transform_indices = @transform_3, window_bounds = array<i64: 32, 64>}]} {
    %c0 = arith.constant 0 : index
    %c0_0 = arith.constant 0 : index
    %0 = vector.load %arg1[%c0, %c0_0] : memref<32x32xf32, #tpu.memory_space<vmem>>, vector<32x32xf32>
    %1 = arith.truncf %0 : vector<32x32xf32> to vector<32x32xbf16>
    %c0_1 = arith.constant 0 : index
    %c0_2 = arith.constant 0 : index
    %2 = vector.load %arg2[%c0_1, %c0_2] : memref<32x64xbf16, #tpu.memory_space<vmem>>, vector<32x64xbf16>
    %cst = arith.constant dense<0.000000e+00> : vector<32x64xf32>
    %3 = tpu.matmul %1, %2, %cst {dimension_numbers = #tpu.dot_dimension_numbers<[1], [0], [0], [1], [0, 0, 1, 1], [], []>} : vector<32x32xbf16>, vector<32x64xbf16>, vector<32x64xf32> -> vector<32x64xf32>
    %c0_3 = arith.constant 0 : index
    %c0_4 = arith.constant 0 : index
    %4 = vector.load %arg3[%c0_3, %c0_4] : memref<1x64xf32, #tpu.memory_space<vmem>>, vector<1x64xf32>
    %5 = vector.broadcast %4 : vector<1x64xf32> to vector<32x64xf32>
    %6 = arith.addf %3, %5 : vector<32x64xf32>
    %c0_5 = arith.constant 0 : index
    %c0_6 = arith.constant 0 : index
    %7 = vector.load %arg4[%c0_5, %c0_6] : memref<32x64xf32, #tpu.memory_space<vmem>>, vector<32x64xf32>
    tpu.vector_store %arg4[%c0_5, %c0_6], %6 {strides = array<i32>} : memref<32x64xf32, #tpu.memory_space<vmem>>, vector<32x64xf32>,
    return
  }
  func.func @transform_0(%arg0: i32) -> (i32, i32) {
    %c0_i32 = arith.constant 0 : i32
    %c0_i32_0 = arith.constant 0 : i32
    return %arg0, %c0_i32 : i32, i32
  }
  func.func @transform_1(%arg0: i32) -> (i32, i32) {
    %c0_i32 = arith.constant 0 : i32
    %c0_i32_0 = arith.constant 0 : i32
    %c0_i32_1 = arith.constant 0 : i32
    return %c0_i32, %c0_i32_0 : i32, i32
  }
  func.func @transform_2(%arg0: i32) -> (i32, i32) {
    %c0_i32 = arith.constant 0 : i32
    %c0_i32_0 = arith.constant 0 : i32
    %c0_i32_1 = arith.constant 0 : i32
    return %c0_i32, %c0_i32_0 : i32, i32
  }
  func.func @transform_3(%arg0: i32) -> (i32, i32) {
    %c0_i32 = arith.constant 0 : i32
    %c0_i32_0 = arith.constant 0 : i32
    return %arg0, %c0_i32 : i32, i32
  }
}

module attributes {stable_mosaic.version = 11 : i64} {
  func.func @_block_kernel(%arg0: memref<2x8x64xf32, #tpu.memory_space<vmem>>, %arg1: memref<2x16x64xf32, #tpu.memory_space<vmem>>, %arg2: memref<16x32xf32, #tpu.memory_space<vmem>>, %arg3: memref<16x16xf32, #tpu.memory_space<vmem>>, %arg4: memref<8x64x8xbf16, #tpu.memory_space<vmem>>, %arg5: memref<8x1x8xf32, #tpu.memory_space<vmem>>, %arg6: memref<8x64x8xbf16, #tpu.memory_space<vmem>>, %arg7: memref<8x1x8xf32, #tpu.memory_space<vmem>>, %arg8: memref<8x64x8xbf16, #tpu.memory_space<vmem>>, %arg9: memref<8x1x8xf32, #tpu.memory_space<vmem>>, %arg10: memref<8x8x64xbf16, #tpu.memory_space<vmem>>, %arg11: memref<1x64xf32, #tpu.memory_space<vmem>>, %arg12: memref<1x64xf32, #tpu.memory_space<vmem>>, %arg13: memref<1x64xf32, #tpu.memory_space<vmem>>, %arg14: memref<8x64x8xbf16, #tpu.memory_space<vmem>>, %arg15: memref<8x1x8xf32, #tpu.memory_space<vmem>>, %arg16: memref<8x64x8xbf16, #tpu.memory_space<vmem>>, %arg17: memref<8x1x8xf32, #tpu.memory_space<vmem>>, %arg18: memref<8x64x8xbf16, #tpu.memory_space<vmem>>, %arg19: memref<8x1x8xf32, #tpu.memory_space<vmem>>, %arg20: memref<8x8x64xbf16, #tpu.memory_space<vmem>>, %arg21: memref<1x64xf32, #tpu.memory_space<vmem>>, %arg22: memref<1x64xf32, #tpu.memory_space<vmem>>, %arg23: memref<1x64xf32, #tpu.memory_space<vmem>>, %arg24: memref<64x2048xbf16, #tpu.memory_space<vmem>>, %arg25: memref<1x2048xf32, #tpu.memory_space<vmem>>, %arg26: memref<2048x64xbf16, #tpu.memory_space<vmem>>, %arg27: memref<1x64xf32, #tpu.memory_space<vmem>>, %arg28: memref<1x64xf32, #tpu.memory_space<vmem>>, %arg29: memref<1x64xf32, #tpu.memory_space<vmem>>, %arg30: memref<2x8x64xf32, #tpu.memory_space<vmem>>) attributes {dimension_semantics = [], scalar_prefetch = 0 : i64, scratch_operands = 0 : i64, tpu.core_type = #tpu.core_type<tc>} {
    %c0 = arith.constant 0 : index
    %c0_0 = arith.constant 0 : index
    %c0_1 = arith.constant 0 : index
    %0 = vector.load %arg4[%c0, %c0_0, %c0_1] : memref<8x64x8xbf16, #tpu.memory_space<vmem>>, vector<8x64x8xbf16>
    %c0_2 = arith.constant 0 : index
    %c0_3 = arith.constant 0 : index
    %c0_4 = arith.constant 0 : index
    %1 = vector.load %arg5[%c0_2, %c0_3, %c0_4] : memref<8x1x8xf32, #tpu.memory_space<vmem>>, vector<8x1x8xf32>
    %c0_5 = arith.constant 0 : index
    %c0_6 = arith.constant 0 : index
    %c0_7 = arith.constant 0 : index
    %2 = vector.load %arg6[%c0_5, %c0_6, %c0_7] : memref<8x64x8xbf16, #tpu.memory_space<vmem>>, vector<8x64x8xbf16>
    %c0_8 = arith.constant 0 : index
    %c0_9 = arith.constant 0 : index
    %c0_10 = arith.constant 0 : index
    %3 = vector.load %arg7[%c0_8, %c0_9, %c0_10] : memref<8x1x8xf32, #tpu.memory_space<vmem>>, vector<8x1x8xf32>
    %c0_11 = arith.constant 0 : index
    %c0_12 = arith.constant 0 : index
    %c0_13 = arith.constant 0 : index
    %4 = vector.load %arg8[%c0_11, %c0_12, %c0_13] : memref<8x64x8xbf16, #tpu.memory_space<vmem>>, vector<8x64x8xbf16>
    %c0_14 = arith.constant 0 : index
    %c0_15 = arith.constant 0 : index
    %c0_16 = arith.constant 0 : index
    %5 = vector.load %arg9[%c0_14, %c0_15, %c0_16] : memref<8x1x8xf32, #tpu.memory_space<vmem>>, vector<8x1x8xf32>
    %c0_17 = arith.constant 0 : index
    %c0_18 = arith.constant 0 : index
    %c0_19 = arith.constant 0 : index
    %6 = vector.load %arg10[%c0_17, %c0_18, %c0_19] : memref<8x8x64xbf16, #tpu.memory_space<vmem>>, vector<8x8x64xbf16>
    %c0_20 = arith.constant 0 : index
    %c0_21 = arith.constant 0 : index
    %7 = vector.load %arg11[%c0_20, %c0_21] : memref<1x64xf32, #tpu.memory_space<vmem>>, vector<1x64xf32>
    %c0_22 = arith.constant 0 : index
    %c0_23 = arith.constant 0 : index
    %8 = vector.load %arg12[%c0_22, %c0_23] : memref<1x64xf32, #tpu.memory_space<vmem>>, vector<1x64xf32>
    %c0_24 = arith.constant 0 : index
    %c0_25 = arith.constant 0 : index
    %9 = vector.load %arg13[%c0_24, %c0_25] : memref<1x64xf32, #tpu.memory_space<vmem>>, vector<1x64xf32>
    %c0_26 = arith.constant 0 : index
    %c0_27 = arith.constant 0 : index
    %c0_28 = arith.constant 0 : index
    %10 = vector.load %arg14[%c0_26, %c0_27, %c0_28] : memref<8x64x8xbf16, #tpu.memory_space<vmem>>, vector<8x64x8xbf16>
    %c0_29 = arith.constant 0 : index
    %c0_30 = arith.constant 0 : index
    %c0_31 = arith.constant 0 : index
    %11 = vector.load %arg15[%c0_29, %c0_30, %c0_31] : memref<8x1x8xf32, #tpu.memory_space<vmem>>, vector<8x1x8xf32>
    %c0_32 = arith.constant 0 : index
    %c0_33 = arith.constant 0 : index
    %c0_34 = arith.constant 0 : index
    %12 = vector.load %arg16[%c0_32, %c0_33, %c0_34] : memref<8x64x8xbf16, #tpu.memory_space<vmem>>, vector<8x64x8xbf16>
    %c0_35 = arith.constant 0 : index
    %c0_36 = arith.constant 0 : index
    %c0_37 = arith.constant 0 : index
    %13 = vector.load %arg17[%c0_35, %c0_36, %c0_37] : memref<8x1x8xf32, #tpu.memory_space<vmem>>, vector<8x1x8xf32>
    %c0_38 = arith.constant 0 : index
    %c0_39 = arith.constant 0 : index
    %c0_40 = arith.constant 0 : index
    %14 = vector.load %arg18[%c0_38, %c0_39, %c0_40] : memref<8x64x8xbf16, #tpu.memory_space<vmem>>, vector<8x64x8xbf16>
    %c0_41 = arith.constant 0 : index
    %c0_42 = arith.constant 0 : index
    %c0_43 = arith.constant 0 : index
    %15 = vector.load %arg19[%c0_41, %c0_42, %c0_43] : memref<8x1x8xf32, #tpu.memory_space<vmem>>, vector<8x1x8xf32>
    %c0_44 = arith.constant 0 : index
    %c0_45 = arith.constant 0 : index
    %c0_46 = arith.constant 0 : index
    %16 = vector.load %arg20[%c0_44, %c0_45, %c0_46] : memref<8x8x64xbf16, #tpu.memory_space<vmem>>, vector<8x8x64xbf16>
    %c0_47 = arith.constant 0 : index
    %c0_48 = arith.constant 0 : index
    %17 = vector.load %arg21[%c0_47, %c0_48] : memref<1x64xf32, #tpu.memory_space<vmem>>, vector<1x64xf32>
    %c0_49 = arith.constant 0 : index
    %c0_50 = arith.constant 0 : index
    %18 = vector.load %arg22[%c0_49, %c0_50] : memref<1x64xf32, #tpu.memory_space<vmem>>, vector<1x64xf32>
    %c0_51 = arith.constant 0 : index
    %c0_52 = arith.constant 0 : index
    %19 = vector.load %arg23[%c0_51, %c0_52] : memref<1x64xf32, #tpu.memory_space<vmem>>, vector<1x64xf32>
    %c0_53 = arith.constant 0 : index
    %c0_54 = arith.constant 0 : index
    %20 = vector.load %arg24[%c0_53, %c0_54] : memref<64x2048xbf16, #tpu.memory_space<vmem>>, vector<64x2048xbf16>
    %c0_55 = arith.constant 0 : index
    %c0_56 = arith.constant 0 : index
    %21 = vector.load %arg25[%c0_55, %c0_56] : memref<1x2048xf32, #tpu.memory_space<vmem>>, vector<1x2048xf32>
    %c0_57 = arith.constant 0 : index
    %c0_58 = arith.constant 0 : index
    %22 = vector.load %arg26[%c0_57, %c0_58] : memref<2048x64xbf16, #tpu.memory_space<vmem>>, vector<2048x64xbf16>
    %c0_59 = arith.constant 0 : index
    %c0_60 = arith.constant 0 : index
    %23 = vector.load %arg27[%c0_59, %c0_60] : memref<1x64xf32, #tpu.memory_space<vmem>>, vector<1x64xf32>
    %c0_61 = arith.constant 0 : index
    %c0_62 = arith.constant 0 : index
    %24 = vector.load %arg28[%c0_61, %c0_62] : memref<1x64xf32, #tpu.memory_space<vmem>>, vector<1x64xf32>
    %c0_63 = arith.constant 0 : index
    %c0_64 = arith.constant 0 : index
    %25 = vector.load %arg29[%c0_63, %c0_64] : memref<1x64xf32, #tpu.memory_space<vmem>>, vector<1x64xf32>
    %c0_65 = arith.constant 0 : index
    %c0_66 = arith.constant 0 : index
    %c0_67 = arith.constant 0 : index
    %26 = vector.load %arg0[%c0_65, %c0_66, %c0_67] : memref<2x8x64xf32, #tpu.memory_space<vmem>>, vector<2x8x64xf32>
    %27 = vector.shape_cast %26 : vector<2x8x64xf32> to vector<16x64xf32>
    %c0_68 = arith.constant 0 : index
    %c0_69 = arith.constant 0 : index
    %c0_70 = arith.constant 0 : index
    %28 = vector.load %arg1[%c0_68, %c0_69, %c0_70] : memref<2x16x64xf32, #tpu.memory_space<vmem>>, vector<2x16x64xf32>
    %29 = vector.shape_cast %28 : vector<2x16x64xf32> to vector<32x64xf32>
    %30 = arith.truncf %29 : vector<32x64xf32> to vector<32x64xbf16>
    %c0_71 = arith.constant 0 : index
    %c0_72 = arith.constant 0 : index
    %31 = vector.load %arg2[%c0_71, %c0_72] : memref<16x32xf32, #tpu.memory_space<vmem>>, vector<16x32xf32>
    %c0_73 = arith.constant 0 : index
    %c0_74 = arith.constant 0 : index
    %32 = vector.load %arg3[%c0_73, %c0_74] : memref<16x16xf32, #tpu.memory_space<vmem>>, vector<16x16xf32>
    %33 = arith.truncf %27 : vector<16x64xf32> to vector<16x64xbf16>
    %34 = vector.extract_strided_slice %0 {offsets = [0, 0, 0], sizes = [1, 64, 8], strides = [1, 1, 1]} : vector<8x64x8xbf16> to vector<1x64x8xbf16>
    %35 = vector.shape_cast %34 : vector<1x64x8xbf16> to vector<64x8xbf16>
    %cst = arith.constant dense<0.000000e+00> : vector<16x8xf32>
    %36 = tpu.matmul %33, %35, %cst {dimension_numbers = #tpu.dot_dimension_numbers<[1], [0], [0], [1], [0, 0, 1, 1], [], []>} : vector<16x64xbf16>, vector<64x8xbf16>, vector<16x8xf32> -> vector<16x8xf32>
    %37 = vector.extract_strided_slice %1 {offsets = [0, 0, 0], sizes = [1, 1, 8], strides = [1, 1, 1]} : vector<8x1x8xf32> to vector<1x1x8xf32>
    %38 = vector.shape_cast %37 : vector<1x1x8xf32> to vector<1x8xf32>
    %39 = vector.broadcast %38 : vector<1x8xf32> to vector<16x8xf32>
    %40 = arith.addf %36, %39 : vector<16x8xf32>
    %41 = vector.extract_strided_slice %2 {offsets = [0, 0, 0], sizes = [1, 64, 8], strides = [1, 1, 1]} : vector<8x64x8xbf16> to vector<1x64x8xbf16>
    %42 = vector.shape_cast %41 : vector<1x64x8xbf16> to vector<64x8xbf16>
    %cst_75 = arith.constant dense<0.000000e+00> : vector<32x8xf32>
    %43 = tpu.matmul %30, %42, %cst_75 {dimension_numbers = #tpu.dot_dimension_numbers<[1], [0], [0], [1], [0, 0, 1, 1], [], []>} : vector<32x64xbf16>, vector<64x8xbf16>, vector<32x8xf32> -> vector<32x8xf32>
    %44 = vector.extract_strided_slice %3 {offsets = [0, 0, 0], sizes = [1, 1, 8], strides = [1, 1, 1]} : vector<8x1x8xf32> to vector<1x1x8xf32>
    %45 = vector.shape_cast %44 : vector<1x1x8xf32> to vector<1x8xf32>
    %46 = vector.broadcast %45 : vector<1x8xf32> to vector<32x8xf32>
    %47 = arith.addf %43, %46 : vector<32x8xf32>
    %48 = vector.extract_strided_slice %4 {offsets = [0, 0, 0], sizes = [1, 64, 8], strides = [1, 1, 1]} : vector<8x64x8xbf16> to vector<1x64x8xbf16>
    %49 = vector.shape_cast %48 : vector<1x64x8xbf16> to vector<64x8xbf16>
    %cst_76 = arith.constant dense<0.000000e+00> : vector<32x8xf32>
    %50 = tpu.matmul %30, %49, %cst_76 {dimension_numbers = #tpu.dot_dimension_numbers<[1], [0], [0], [1], [0, 0, 1, 1], [], []>} : vector<32x64xbf16>, vector<64x8xbf16>, vector<32x8xf32> -> vector<32x8xf32>
    %51 = vector.extract_strided_slice %5 {offsets = [0, 0, 0], sizes = [1, 1, 8], strides = [1, 1, 1]} : vector<8x1x8xf32> to vector<1x1x8xf32>
    %52 = vector.shape_cast %51 : vector<1x1x8xf32> to vector<1x8xf32>
    %53 = vector.broadcast %52 : vector<1x8xf32> to vector<32x8xf32>
    %54 = arith.addf %50, %53 : vector<32x8xf32>
    %55 = arith.truncf %40 : vector<16x8xf32> to vector<16x8xbf16>
    %56 = arith.truncf %47 : vector<32x8xf32> to vector<32x8xbf16>
    %cst_77 = arith.constant dense<0.000000e+00> : vector<16x32xf32>
    %57 = tpu.matmul %55, %56, %cst_77 {dimension_numbers = #tpu.dot_dimension_numbers<[1], [1], [0], [0], [0, 0, 1, 0], [], []>} : vector<16x8xbf16>, vector<32x8xbf16>, vector<16x32xf32> -> vector<16x32xf32>
    %58 = arith.addf %57, %31 : vector<16x32xf32>
    %cst_78 = arith.constant dense<0xFF800000> : vector<16xf32>
    %59 = vector.multi_reduction <maximumf>, %58, %cst_78 [1] : vector<16x32xf32> to vector<16xf32>
    %60 = vector.shape_cast %59 : vector<16xf32> to vector<16x1xf32>
    %61 = vector.broadcast %60 : vector<16x1xf32> to vector<16x32xf32>
    %62 = arith.subf %58, %61 : vector<16x32xf32>
    %63 = math.exp %62 : vector<16x32xf32>
    %cst_79 = arith.constant dense<0.000000e+00> : vector<16xf32>
    %64 = vector.multi_reduction <add>, %63, %cst_79 [1] : vector<16x32xf32> to vector<16xf32>
    %65 = vector.shape_cast %64 : vector<16xf32> to vector<16x1xf32>
    %66 = tpu.reciprocal %65 {approx = true} : vector<16x1xf32> -> vector<16x1xf32>
    %67 = vector.broadcast %66 : vector<16x1xf32> to vector<16x32xf32>
    %68 = arith.mulf %63, %67 : vector<16x32xf32>
    %69 = arith.truncf %68 : vector<16x32xf32> to vector<16x32xbf16>
    %70 = arith.truncf %54 : vector<32x8xf32> to vector<32x8xbf16>
    %cst_80 = arith.constant dense<0.000000e+00> : vector<16x8xf32>
    %71 = tpu.matmul %69, %70, %cst_80 {dimension_numbers = #tpu.dot_dimension_numbers<[1], [0], [0], [1], [0, 0, 1, 1], [], []>} : vector<16x32xbf16>, vector<32x8xbf16>, vector<16x8xf32> -> vector<16x8xf32>
    %72 = arith.truncf %71 : vector<16x8xf32> to vector<16x8xbf16>
    %73 = vector.extract_strided_slice %6 {offsets = [0, 0, 0], sizes = [1, 8, 64], strides = [1, 1, 1]} : vector<8x8x64xbf16> to vector<1x8x64xbf16>
    %74 = vector.shape_cast %73 : vector<1x8x64xbf16> to vector<8x64xbf16>
    %cst_81 = arith.constant dense<0.000000e+00> : vector<16x64xf32>
    %75 = tpu.matmul %72, %74, %cst_81 {dimension_numbers = #tpu.dot_dimension_numbers<[1], [0], [0], [1], [0, 0, 1, 1], [], []>} : vector<16x8xbf16>, vector<8x64xbf16>, vector<16x64xf32> -> vector<16x64xf32>
    %76 = vector.extract_strided_slice %0 {offsets = [1, 0, 0], sizes = [1, 64, 8], strides = [1, 1, 1]} : vector<8x64x8xbf16> to vector<1x64x8xbf16>
    %77 = vector.shape_cast %76 : vector<1x64x8xbf16> to vector<64x8xbf16>
    %cst_82 = arith.constant dense<0.000000e+00> : vector<16x8xf32>
    %78 = tpu.matmul %33, %77, %cst_82 {dimension_numbers = #tpu.dot_dimension_numbers<[1], [0], [0], [1], [0, 0, 1, 1], [], []>} : vector<16x64xbf16>, vector<64x8xbf16>, vector<16x8xf32> -> vector<16x8xf32>
    %79 = vector.extract_strided_slice %1 {offsets = [1, 0, 0], sizes = [1, 1, 8], strides = [1, 1, 1]} : vector<8x1x8xf32> to vector<1x1x8xf32>
    %80 = vector.shape_cast %79 : vector<1x1x8xf32> to vector<1x8xf32>
    %81 = vector.broadcast %80 : vector<1x8xf32> to vector<16x8xf32>
    %82 = arith.addf %78, %81 : vector<16x8xf32>
    %83 = vector.extract_strided_slice %2 {offsets = [1, 0, 0], sizes = [1, 64, 8], strides = [1, 1, 1]} : vector<8x64x8xbf16> to vector<1x64x8xbf16>
    %84 = vector.shape_cast %83 : vector<1x64x8xbf16> to vector<64x8xbf16>
    %cst_83 = arith.constant dense<0.000000e+00> : vector<32x8xf32>
    %85 = tpu.matmul %30, %84, %cst_83 {dimension_numbers = #tpu.dot_dimension_numbers<[1], [0], [0], [1], [0, 0, 1, 1], [], []>} : vector<32x64xbf16>, vector<64x8xbf16>, vector<32x8xf32> -> vector<32x8xf32>
    %86 = vector.extract_strided_slice %3 {offsets = [1, 0, 0], sizes = [1, 1, 8], strides = [1, 1, 1]} : vector<8x1x8xf32> to vector<1x1x8xf32>
    %87 = vector.shape_cast %86 : vector<1x1x8xf32> to vector<1x8xf32>
    %88 = vector.broadcast %87 : vector<1x8xf32> to vector<32x8xf32>
    %89 = arith.addf %85, %88 : vector<32x8xf32>
    %90 = vector.extract_strided_slice %4 {offsets = [1, 0, 0], sizes = [1, 64, 8], strides = [1, 1, 1]} : vector<8x64x8xbf16> to vector<1x64x8xbf16>
    %91 = vector.shape_cast %90 : vector<1x64x8xbf16> to vector<64x8xbf16>
    %cst_84 = arith.constant dense<0.000000e+00> : vector<32x8xf32>
    %92 = tpu.matmul %30, %91, %cst_84 {dimension_numbers = #tpu.dot_dimension_numbers<[1], [0], [0], [1], [0, 0, 1, 1], [], []>} : vector<32x64xbf16>, vector<64x8xbf16>, vector<32x8xf32> -> vector<32x8xf32>
    %93 = vector.extract_strided_slice %5 {offsets = [1, 0, 0], sizes = [1, 1, 8], strides = [1, 1, 1]} : vector<8x1x8xf32> to vector<1x1x8xf32>
    %94 = vector.shape_cast %93 : vector<1x1x8xf32> to vector<1x8xf32>
    %95 = vector.broadcast %94 : vector<1x8xf32> to vector<32x8xf32>
    %96 = arith.addf %92, %95 : vector<32x8xf32>
    %97 = arith.truncf %82 : vector<16x8xf32> to vector<16x8xbf16>
    %98 = arith.truncf %89 : vector<32x8xf32> to vector<32x8xbf16>
    %cst_85 = arith.constant dense<0.000000e+00> : vector<16x32xf32>
    %99 = tpu.matmul %97, %98, %cst_85 {dimension_numbers = #tpu.dot_dimension_numbers<[1], [1], [0], [0], [0, 0, 1, 0], [], []>} : vector<16x8xbf16>, vector<32x8xbf16>, vector<16x32xf32> -> vector<16x32xf32>
    %100 = arith.addf %99, %31 : vector<16x32xf32>
    %cst_86 = arith.constant dense<0xFF800000> : vector<16xf32>
    %101 = vector.multi_reduction <maximumf>, %100, %cst_86 [1] : vector<16x32xf32> to vector<16xf32>
    %102 = vector.shape_cast %101 : vector<16xf32> to vector<16x1xf32>
    %103 = vector.broadcast %102 : vector<16x1xf32> to vector<16x32xf32>
    %104 = arith.subf %100, %103 : vector<16x32xf32>
    %105 = math.exp %104 : vector<16x32xf32>
    %cst_87 = arith.constant dense<0.000000e+00> : vector<16xf32>
    %106 = vector.multi_reduction <add>, %105, %cst_87 [1] : vector<16x32xf32> to vector<16xf32>
    %107 = vector.shape_cast %106 : vector<16xf32> to vector<16x1xf32>
    %108 = tpu.reciprocal %107 {approx = true} : vector<16x1xf32> -> vector<16x1xf32>
    %109 = vector.broadcast %108 : vector<16x1xf32> to vector<16x32xf32>
    %110 = arith.mulf %105, %109 : vector<16x32xf32>
    %111 = arith.truncf %110 : vector<16x32xf32> to vector<16x32xbf16>
    %112 = arith.truncf %96 : vector<32x8xf32> to vector<32x8xbf16>
    %cst_88 = arith.constant dense<0.000000e+00> : vector<16x8xf32>
    %113 = tpu.matmul %111, %112, %cst_88 {dimension_numbers = #tpu.dot_dimension_numbers<[1], [0], [0], [1], [0, 0, 1, 1], [], []>} : vector<16x32xbf16>, vector<32x8xbf16>, vector<16x8xf32> -> vector<16x8xf32>
    %114 = arith.truncf %113 : vector<16x8xf32> to vector<16x8xbf16>
    %115 = vector.extract_strided_slice %6 {offsets = [1, 0, 0], sizes = [1, 8, 64], strides = [1, 1, 1]} : vector<8x8x64xbf16> to vector<1x8x64xbf16>
    %116 = vector.shape_cast %115 : vector<1x8x64xbf16> to vector<8x64xbf16>
    %cst_89 = arith.constant dense<0.000000e+00> : vector<16x64xf32>
    %117 = tpu.matmul %114, %116, %cst_89 {dimension_numbers = #tpu.dot_dimension_numbers<[1], [0], [0], [1], [0, 0, 1, 1], [], []>} : vector<16x8xbf16>, vector<8x64xbf16>, vector<16x64xf32> -> vector<16x64xf32>
    %118 = arith.addf %75, %117 : vector<16x64xf32>
    %119 = vector.extract_strided_slice %0 {offsets = [2, 0, 0], sizes = [1, 64, 8], strides = [1, 1, 1]} : vector<8x64x8xbf16> to vector<1x64x8xbf16>
    %120 = vector.shape_cast %119 : vector<1x64x8xbf16> to vector<64x8xbf16>
    %cst_90 = arith.constant dense<0.000000e+00> : vector<16x8xf32>
    %121 = tpu.matmul %33, %120, %cst_90 {dimension_numbers = #tpu.dot_dimension_numbers<[1], [0], [0], [1], [0, 0, 1, 1], [], []>} : vector<16x64xbf16>, vector<64x8xbf16>, vector<16x8xf32> -> vector<16x8xf32>
    %122 = vector.extract_strided_slice %1 {offsets = [2, 0, 0], sizes = [1, 1, 8], strides = [1, 1, 1]} : vector<8x1x8xf32> to vector<1x1x8xf32>
    %123 = vector.shape_cast %122 : vector<1x1x8xf32> to vector<1x8xf32>
    %124 = vector.broadcast %123 : vector<1x8xf32> to vector<16x8xf32>
    %125 = arith.addf %121, %124 : vector<16x8xf32>
    %126 = vector.extract_strided_slice %2 {offsets = [2, 0, 0], sizes = [1, 64, 8], strides = [1, 1, 1]} : vector<8x64x8xbf16> to vector<1x64x8xbf16>
    %127 = vector.shape_cast %126 : vector<1x64x8xbf16> to vector<64x8xbf16>
    %cst_91 = arith.constant dense<0.000000e+00> : vector<32x8xf32>
    %128 = tpu.matmul %30, %127, %cst_91 {dimension_numbers = #tpu.dot_dimension_numbers<[1], [0], [0], [1], [0, 0, 1, 1], [], []>} : vector<32x64xbf16>, vector<64x8xbf16>, vector<32x8xf32> -> vector<32x8xf32>
    %129 = vector.extract_strided_slice %3 {offsets = [2, 0, 0], sizes = [1, 1, 8], strides = [1, 1, 1]} : vector<8x1x8xf32> to vector<1x1x8xf32>
    %130 = vector.shape_cast %129 : vector<1x1x8xf32> to vector<1x8xf32>
    %131 = vector.broadcast %130 : vector<1x8xf32> to vector<32x8xf32>
    %132 = arith.addf %128, %131 : vector<32x8xf32>
    %133 = vector.extract_strided_slice %4 {offsets = [2, 0, 0], sizes = [1, 64, 8], strides = [1, 1, 1]} : vector<8x64x8xbf16> to vector<1x64x8xbf16>
    %134 = vector.shape_cast %133 : vector<1x64x8xbf16> to vector<64x8xbf16>
    %cst_92 = arith.constant dense<0.000000e+00> : vector<32x8xf32>
    %135 = tpu.matmul %30, %134, %cst_92 {dimension_numbers = #tpu.dot_dimension_numbers<[1], [0], [0], [1], [0, 0, 1, 1], [], []>} : vector<32x64xbf16>, vector<64x8xbf16>, vector<32x8xf32> -> vector<32x8xf32>
    %136 = vector.extract_strided_slice %5 {offsets = [2, 0, 0], sizes = [1, 1, 8], strides = [1, 1, 1]} : vector<8x1x8xf32> to vector<1x1x8xf32>
    %137 = vector.shape_cast %136 : vector<1x1x8xf32> to vector<1x8xf32>
    %138 = vector.broadcast %137 : vector<1x8xf32> to vector<32x8xf32>
    %139 = arith.addf %135, %138 : vector<32x8xf32>
    %140 = arith.truncf %125 : vector<16x8xf32> to vector<16x8xbf16>
    %141 = arith.truncf %132 : vector<32x8xf32> to vector<32x8xbf16>
    %cst_93 = arith.constant dense<0.000000e+00> : vector<16x32xf32>
    %142 = tpu.matmul %140, %141, %cst_93 {dimension_numbers = #tpu.dot_dimension_numbers<[1], [1], [0], [0], [0, 0, 1, 0], [], []>} : vector<16x8xbf16>, vector<32x8xbf16>, vector<16x32xf32> -> vector<16x32xf32>
    %143 = arith.addf %142, %31 : vector<16x32xf32>
    %cst_94 = arith.constant dense<0xFF800000> : vector<16xf32>
    %144 = vector.multi_reduction <maximumf>, %143, %cst_94 [1] : vector<16x32xf32> to vector<16xf32>
    %145 = vector.shape_cast %144 : vector<16xf32> to vector<16x1xf32>
    %146 = vector.broadcast %145 : vector<16x1xf32> to vector<16x32xf32>
    %147 = arith.subf %143, %146 : vector<16x32xf32>
    %148 = math.exp %147 : vector<16x32xf32>
    %cst_95 = arith.constant dense<0.000000e+00> : vector<16xf32>
    %149 = vector.multi_reduction <add>, %148, %cst_95 [1] : vector<16x32xf32> to vector<16xf32>
    %150 = vector.shape_cast %149 : vector<16xf32> to vector<16x1xf32>
    %151 = tpu.reciprocal %150 {approx = true} : vector<16x1xf32> -> vector<16x1xf32>
    %152 = vector.broadcast %151 : vector<16x1xf32> to vector<16x32xf32>
    %153 = arith.mulf %148, %152 : vector<16x32xf32>
    %154 = arith.truncf %153 : vector<16x32xf32> to vector<16x32xbf16>
    %155 = arith.truncf %139 : vector<32x8xf32> to vector<32x8xbf16>
    %cst_96 = arith.constant dense<0.000000e+00> : vector<16x8xf32>
    %156 = tpu.matmul %154, %155, %cst_96 {dimension_numbers = #tpu.dot_dimension_numbers<[1], [0], [0], [1], [0, 0, 1, 1], [], []>} : vector<16x32xbf16>, vector<32x8xbf16>, vector<16x8xf32> -> vector<16x8xf32>
    %157 = arith.truncf %156 : vector<16x8xf32> to vector<16x8xbf16>
    %158 = vector.extract_strided_slice %6 {offsets = [2, 0, 0], sizes = [1, 8, 64], strides = [1, 1, 1]} : vector<8x8x64xbf16> to vector<1x8x64xbf16>
    %159 = vector.shape_cast %158 : vector<1x8x64xbf16> to vector<8x64xbf16>
    %cst_97 = arith.constant dense<0.000000e+00> : vector<16x64xf32>
    %160 = tpu.matmul %157, %159, %cst_97 {dimension_numbers = #tpu.dot_dimension_numbers<[1], [0], [0], [1], [0, 0, 1, 1], [], []>} : vector<16x8xbf16>, vector<8x64xbf16>, vector<16x64xf32> -> vector<16x64xf32>
    %161 = arith.addf %118, %160 : vector<16x64xf32>
    %162 = vector.extract_strided_slice %0 {offsets = [3, 0, 0], sizes = [1, 64, 8], strides = [1, 1, 1]} : vector<8x64x8xbf16> to vector<1x64x8xbf16>
    %163 = vector.shape_cast %162 : vector<1x64x8xbf16> to vector<64x8xbf16>
    %cst_98 = arith.constant dense<0.000000e+00> : vector<16x8xf32>
    %164 = tpu.matmul %33, %163, %cst_98 {dimension_numbers = #tpu.dot_dimension_numbers<[1], [0], [0], [1], [0, 0, 1, 1], [], []>} : vector<16x64xbf16>, vector<64x8xbf16>, vector<16x8xf32> -> vector<16x8xf32>
    %165 = vector.extract_strided_slice %1 {offsets = [3, 0, 0], sizes = [1, 1, 8], strides = [1, 1, 1]} : vector<8x1x8xf32> to vector<1x1x8xf32>
    %166 = vector.shape_cast %165 : vector<1x1x8xf32> to vector<1x8xf32>
    %167 = vector.broadcast %166 : vector<1x8xf32> to vector<16x8xf32>
    %168 = arith.addf %164, %167 : vector<16x8xf32>
    %169 = vector.extract_strided_slice %2 {offsets = [3, 0, 0], sizes = [1, 64, 8], strides = [1, 1, 1]} : vector<8x64x8xbf16> to vector<1x64x8xbf16>
    %170 = vector.shape_cast %169 : vector<1x64x8xbf16> to vector<64x8xbf16>
    %cst_99 = arith.constant dense<0.000000e+00> : vector<32x8xf32>
    %171 = tpu.matmul %30, %170, %cst_99 {dimension_numbers = #tpu.dot_dimension_numbers<[1], [0], [0], [1], [0, 0, 1, 1], [], []>} : vector<32x64xbf16>, vector<64x8xbf16>, vector<32x8xf32> -> vector<32x8xf32>
    %172 = vector.extract_strided_slice %3 {offsets = [3, 0, 0], sizes = [1, 1, 8], strides = [1, 1, 1]} : vector<8x1x8xf32> to vector<1x1x8xf32>
    %173 = vector.shape_cast %172 : vector<1x1x8xf32> to vector<1x8xf32>
    %174 = vector.broadcast %173 : vector<1x8xf32> to vector<32x8xf32>
    %175 = arith.addf %171, %174 : vector<32x8xf32>
    %176 = vector.extract_strided_slice %4 {offsets = [3, 0, 0], sizes = [1, 64, 8], strides = [1, 1, 1]} : vector<8x64x8xbf16> to vector<1x64x8xbf16>
    %177 = vector.shape_cast %176 : vector<1x64x8xbf16> to vector<64x8xbf16>
    %cst_100 = arith.constant dense<0.000000e+00> : vector<32x8xf32>
    %178 = tpu.matmul %30, %177, %cst_100 {dimension_numbers = #tpu.dot_dimension_numbers<[1], [0], [0], [1], [0, 0, 1, 1], [], []>} : vector<32x64xbf16>, vector<64x8xbf16>, vector<32x8xf32> -> vector<32x8xf32>
    %179 = vector.extract_strided_slice %5 {offsets = [3, 0, 0], sizes = [1, 1, 8], strides = [1, 1, 1]} : vector<8x1x8xf32> to vector<1x1x8xf32>
    %180 = vector.shape_cast %179 : vector<1x1x8xf32> to vector<1x8xf32>
    %181 = vector.broadcast %180 : vector<1x8xf32> to vector<32x8xf32>
    %182 = arith.addf %178, %181 : vector<32x8xf32>
    %183 = arith.truncf %168 : vector<16x8xf32> to vector<16x8xbf16>
    %184 = arith.truncf %175 : vector<32x8xf32> to vector<32x8xbf16>
    %cst_101 = arith.constant dense<0.000000e+00> : vector<16x32xf32>
    %185 = tpu.matmul %183, %184, %cst_101 {dimension_numbers = #tpu.dot_dimension_numbers<[1], [1], [0], [0], [0, 0, 1, 0], [], []>} : vector<16x8xbf16>, vector<32x8xbf16>, vector<16x32xf32> -> vector<16x32xf32>
    %186 = arith.addf %185, %31 : vector<16x32xf32>
    %cst_102 = arith.constant dense<0xFF800000> : vector<16xf32>
    %187 = vector.multi_reduction <maximumf>, %186, %cst_102 [1] : vector<16x32xf32> to vector<16xf32>
    %188 = vector.shape_cast %187 : vector<16xf32> to vector<16x1xf32>
    %189 = vector.broadcast %188 : vector<16x1xf32> to vector<16x32xf32>
    %190 = arith.subf %186, %189 : vector<16x32xf32>
    %191 = math.exp %190 : vector<16x32xf32>
    %cst_103 = arith.constant dense<0.000000e+00> : vector<16xf32>
    %192 = vector.multi_reduction <add>, %191, %cst_103 [1] : vector<16x32xf32> to vector<16xf32>
    %193 = vector.shape_cast %192 : vector<16xf32> to vector<16x1xf32>
    %194 = tpu.reciprocal %193 {approx = true} : vector<16x1xf32> -> vector<16x1xf32>
    %195 = vector.broadcast %194 : vector<16x1xf32> to vector<16x32xf32>
    %196 = arith.mulf %191, %195 : vector<16x32xf32>
    %197 = arith.truncf %196 : vector<16x32xf32> to vector<16x32xbf16>
    %198 = arith.truncf %182 : vector<32x8xf32> to vector<32x8xbf16>
    %cst_104 = arith.constant dense<0.000000e+00> : vector<16x8xf32>
    %199 = tpu.matmul %197, %198, %cst_104 {dimension_numbers = #tpu.dot_dimension_numbers<[1], [0], [0], [1], [0, 0, 1, 1], [], []>} : vector<16x32xbf16>, vector<32x8xbf16>, vector<16x8xf32> -> vector<16x8xf32>
    %200 = arith.truncf %199 : vector<16x8xf32> to vector<16x8xbf16>
    %201 = vector.extract_strided_slice %6 {offsets = [3, 0, 0], sizes = [1, 8, 64], strides = [1, 1, 1]} : vector<8x8x64xbf16> to vector<1x8x64xbf16>
    %202 = vector.shape_cast %201 : vector<1x8x64xbf16> to vector<8x64xbf16>
    %cst_105 = arith.constant dense<0.000000e+00> : vector<16x64xf32>
    %203 = tpu.matmul %200, %202, %cst_105 {dimension_numbers = #tpu.dot_dimension_numbers<[1], [0], [0], [1], [0, 0, 1, 1], [], []>} : vector<16x8xbf16>, vector<8x64xbf16>, vector<16x64xf32> -> vector<16x64xf32>
    %204 = arith.addf %161, %203 : vector<16x64xf32>
    %205 = vector.extract_strided_slice %0 {offsets = [4, 0, 0], sizes = [1, 64, 8], strides = [1, 1, 1]} : vector<8x64x8xbf16> to vector<1x64x8xbf16>
    %206 = vector.shape_cast %205 : vector<1x64x8xbf16> to vector<64x8xbf16>
    %cst_106 = arith.constant dense<0.000000e+00> : vector<16x8xf32>
    %207 = tpu.matmul %33, %206, %cst_106 {dimension_numbers = #tpu.dot_dimension_numbers<[1], [0], [0], [1], [0, 0, 1, 1], [], []>} : vector<16x64xbf16>, vector<64x8xbf16>, vector<16x8xf32> -> vector<16x8xf32>
    %208 = vector.extract_strided_slice %1 {offsets = [4, 0, 0], sizes = [1, 1, 8], strides = [1, 1, 1]} : vector<8x1x8xf32> to vector<1x1x8xf32>
    %209 = vector.shape_cast %208 : vector<1x1x8xf32> to vector<1x8xf32>
    %210 = vector.broadcast %209 : vector<1x8xf32> to vector<16x8xf32>
    %211 = arith.addf %207, %210 : vector<16x8xf32>
    %212 = vector.extract_strided_slice %2 {offsets = [4, 0, 0], sizes = [1, 64, 8], strides = [1, 1, 1]} : vector<8x64x8xbf16> to vector<1x64x8xbf16>
    %213 = vector.shape_cast %212 : vector<1x64x8xbf16> to vector<64x8xbf16>
    %cst_107 = arith.constant dense<0.000000e+00> : vector<32x8xf32>
    %214 = tpu.matmul %30, %213, %cst_107 {dimension_numbers = #tpu.dot_dimension_numbers<[1], [0], [0], [1], [0, 0, 1, 1], [], []>} : vector<32x64xbf16>, vector<64x8xbf16>, vector<32x8xf32> -> vector<32x8xf32>
    %215 = vector.extract_strided_slice %3 {offsets = [4, 0, 0], sizes = [1, 1, 8], strides = [1, 1, 1]} : vector<8x1x8xf32> to vector<1x1x8xf32>
    %216 = vector.shape_cast %215 : vector<1x1x8xf32> to vector<1x8xf32>
    %217 = vector.broadcast %216 : vector<1x8xf32> to vector<32x8xf32>
    %218 = arith.addf %214, %217 : vector<32x8xf32>
    %219 = vector.extract_strided_slice %4 {offsets = [4, 0, 0], sizes = [1, 64, 8], strides = [1, 1, 1]} : vector<8x64x8xbf16> to vector<1x64x8xbf16>
    %220 = vector.shape_cast %219 : vector<1x64x8xbf16> to vector<64x8xbf16>
    %cst_108 = arith.constant dense<0.000000e+00> : vector<32x8xf32>
    %221 = tpu.matmul %30, %220, %cst_108 {dimension_numbers = #tpu.dot_dimension_numbers<[1], [0], [0], [1], [0, 0, 1, 1], [], []>} : vector<32x64xbf16>, vector<64x8xbf16>, vector<32x8xf32> -> vector<32x8xf32>
    %222 = vector.extract_strided_slice %5 {offsets = [4, 0, 0], sizes = [1, 1, 8], strides = [1, 1, 1]} : vector<8x1x8xf32> to vector<1x1x8xf32>
    %223 = vector.shape_cast %222 : vector<1x1x8xf32> to vector<1x8xf32>
    %224 = vector.broadcast %223 : vector<1x8xf32> to vector<32x8xf32>
    %225 = arith.addf %221, %224 : vector<32x8xf32>
    %226 = arith.truncf %211 : vector<16x8xf32> to vector<16x8xbf16>
    %227 = arith.truncf %218 : vector<32x8xf32> to vector<32x8xbf16>
    %cst_109 = arith.constant dense<0.000000e+00> : vector<16x32xf32>
    %228 = tpu.matmul %226, %227, %cst_109 {dimension_numbers = #tpu.dot_dimension_numbers<[1], [1], [0], [0], [0, 0, 1, 0], [], []>} : vector<16x8xbf16>, vector<32x8xbf16>, vector<16x32xf32> -> vector<16x32xf32>
    %229 = arith.addf %228, %31 : vector<16x32xf32>
    %cst_110 = arith.constant dense<0xFF800000> : vector<16xf32>
    %230 = vector.multi_reduction <maximumf>, %229, %cst_110 [1] : vector<16x32xf32> to vector<16xf32>
    %231 = vector.shape_cast %230 : vector<16xf32> to vector<16x1xf32>
    %232 = vector.broadcast %231 : vector<16x1xf32> to vector<16x32xf32>
    %233 = arith.subf %229, %232 : vector<16x32xf32>
    %234 = math.exp %233 : vector<16x32xf32>
    %cst_111 = arith.constant dense<0.000000e+00> : vector<16xf32>
    %235 = vector.multi_reduction <add>, %234, %cst_111 [1] : vector<16x32xf32> to vector<16xf32>
    %236 = vector.shape_cast %235 : vector<16xf32> to vector<16x1xf32>
    %237 = tpu.reciprocal %236 {approx = true} : vector<16x1xf32> -> vector<16x1xf32>
    %238 = vector.broadcast %237 : vector<16x1xf32> to vector<16x32xf32>
    %239 = arith.mulf %234, %238 : vector<16x32xf32>
    %240 = arith.truncf %239 : vector<16x32xf32> to vector<16x32xbf16>
    %241 = arith.truncf %225 : vector<32x8xf32> to vector<32x8xbf16>
    %cst_112 = arith.constant dense<0.000000e+00> : vector<16x8xf32>
    %242 = tpu.matmul %240, %241, %cst_112 {dimension_numbers = #tpu.dot_dimension_numbers<[1], [0], [0], [1], [0, 0, 1, 1], [], []>} : vector<16x32xbf16>, vector<32x8xbf16>, vector<16x8xf32> -> vector<16x8xf32>
    %243 = arith.truncf %242 : vector<16x8xf32> to vector<16x8xbf16>
    %244 = vector.extract_strided_slice %6 {offsets = [4, 0, 0], sizes = [1, 8, 64], strides = [1, 1, 1]} : vector<8x8x64xbf16> to vector<1x8x64xbf16>
    %245 = vector.shape_cast %244 : vector<1x8x64xbf16> to vector<8x64xbf16>
    %cst_113 = arith.constant dense<0.000000e+00> : vector<16x64xf32>
    %246 = tpu.matmul %243, %245, %cst_113 {dimension_numbers = #tpu.dot_dimension_numbers<[1], [0], [0], [1], [0, 0, 1, 1], [], []>} : vector<16x8xbf16>, vector<8x64xbf16>, vector<16x64xf32> -> vector<16x64xf32>
    %247 = arith.addf %204, %246 : vector<16x64xf32>
    %248 = vector.extract_strided_slice %0 {offsets = [5, 0, 0], sizes = [1, 64, 8], strides = [1, 1, 1]} : vector<8x64x8xbf16> to vector<1x64x8xbf16>
    %249 = vector.shape_cast %248 : vector<1x64x8xbf16> to vector<64x8xbf16>
    %cst_114 = arith.constant dense<0.000000e+00> : vector<16x8xf32>
    %250 = tpu.matmul %33, %249, %cst_114 {dimension_numbers = #tpu.dot_dimension_numbers<[1], [0], [0], [1], [0, 0, 1, 1], [], []>} : vector<16x64xbf16>, vector<64x8xbf16>, vector<16x8xf32> -> vector<16x8xf32>
    %251 = vector.extract_strided_slice %1 {offsets = [5, 0, 0], sizes = [1, 1, 8], strides = [1, 1, 1]} : vector<8x1x8xf32> to vector<1x1x8xf32>
    %252 = vector.shape_cast %251 : vector<1x1x8xf32> to vector<1x8xf32>
    %253 = vector.broadcast %252 : vector<1x8xf32> to vector<16x8xf32>
    %254 = arith.addf %250, %253 : vector<16x8xf32>
    %255 = vector.extract_strided_slice %2 {offsets = [5, 0, 0], sizes = [1, 64, 8], strides = [1, 1, 1]} : vector<8x64x8xbf16> to vector<1x64x8xbf16>
    %256 = vector.shape_cast %255 : vector<1x64x8xbf16> to vector<64x8xbf16>
    %cst_115 = arith.constant dense<0.000000e+00> : vector<32x8xf32>
    %257 = tpu.matmul %30, %256, %cst_115 {dimension_numbers = #tpu.dot_dimension_numbers<[1], [0], [0], [1], [0, 0, 1, 1], [], []>} : vector<32x64xbf16>, vector<64x8xbf16>, vector<32x8xf32> -> vector<32x8xf32>
    %258 = vector.extract_strided_slice %3 {offsets = [5, 0, 0], sizes = [1, 1, 8], strides = [1, 1, 1]} : vector<8x1x8xf32> to vector<1x1x8xf32>
    %259 = vector.shape_cast %258 : vector<1x1x8xf32> to vector<1x8xf32>
    %260 = vector.broadcast %259 : vector<1x8xf32> to vector<32x8xf32>
    %261 = arith.addf %257, %260 : vector<32x8xf32>
    %262 = vector.extract_strided_slice %4 {offsets = [5, 0, 0], sizes = [1, 64, 8], strides = [1, 1, 1]} : vector<8x64x8xbf16> to vector<1x64x8xbf16>
    %263 = vector.shape_cast %262 : vector<1x64x8xbf16> to vector<64x8xbf16>
    %cst_116 = arith.constant dense<0.000000e+00> : vector<32x8xf32>
    %264 = tpu.matmul %30, %263, %cst_116 {dimension_numbers = #tpu.dot_dimension_numbers<[1], [0], [0], [1], [0, 0, 1, 1], [], []>} : vector<32x64xbf16>, vector<64x8xbf16>, vector<32x8xf32> -> vector<32x8xf32>
    %265 = vector.extract_strided_slice %5 {offsets = [5, 0, 0], sizes = [1, 1, 8], strides = [1, 1, 1]} : vector<8x1x8xf32> to vector<1x1x8xf32>
    %266 = vector.shape_cast %265 : vector<1x1x8xf32> to vector<1x8xf32>
    %267 = vector.broadcast %266 : vector<1x8xf32> to vector<32x8xf32>
    %268 = arith.addf %264, %267 : vector<32x8xf32>
    %269 = arith.truncf %254 : vector<16x8xf32> to vector<16x8xbf16>
    %270 = arith.truncf %261 : vector<32x8xf32> to vector<32x8xbf16>
    %cst_117 = arith.constant dense<0.000000e+00> : vector<16x32xf32>
    %271 = tpu.matmul %269, %270, %cst_117 {dimension_numbers = #tpu.dot_dimension_numbers<[1], [1], [0], [0], [0, 0, 1, 0], [], []>} : vector<16x8xbf16>, vector<32x8xbf16>, vector<16x32xf32> -> vector<16x32xf32>
    %272 = arith.addf %271, %31 : vector<16x32xf32>
    %cst_118 = arith.constant dense<0xFF800000> : vector<16xf32>
    %273 = vector.multi_reduction <maximumf>, %272, %cst_118 [1] : vector<16x32xf32> to vector<16xf32>
    %274 = vector.shape_cast %273 : vector<16xf32> to vector<16x1xf32>
    %275 = vector.broadcast %274 : vector<16x1xf32> to vector<16x32xf32>
    %276 = arith.subf %272, %275 : vector<16x32xf32>
    %277 = math.exp %276 : vector<16x32xf32>
    %cst_119 = arith.constant dense<0.000000e+00> : vector<16xf32>
    %278 = vector.multi_reduction <add>, %277, %cst_119 [1] : vector<16x32xf32> to vector<16xf32>
    %279 = vector.shape_cast %278 : vector<16xf32> to vector<16x1xf32>
    %280 = tpu.reciprocal %279 {approx = true} : vector<16x1xf32> -> vector<16x1xf32>
    %281 = vector.broadcast %280 : vector<16x1xf32> to vector<16x32xf32>
    %282 = arith.mulf %277, %281 : vector<16x32xf32>
    %283 = arith.truncf %282 : vector<16x32xf32> to vector<16x32xbf16>
    %284 = arith.truncf %268 : vector<32x8xf32> to vector<32x8xbf16>
    %cst_120 = arith.constant dense<0.000000e+00> : vector<16x8xf32>
    %285 = tpu.matmul %283, %284, %cst_120 {dimension_numbers = #tpu.dot_dimension_numbers<[1], [0], [0], [1], [0, 0, 1, 1], [], []>} : vector<16x32xbf16>, vector<32x8xbf16>, vector<16x8xf32> -> vector<16x8xf32>
    %286 = arith.truncf %285 : vector<16x8xf32> to vector<16x8xbf16>
    %287 = vector.extract_strided_slice %6 {offsets = [5, 0, 0], sizes = [1, 8, 64], strides = [1, 1, 1]} : vector<8x8x64xbf16> to vector<1x8x64xbf16>
    %288 = vector.shape_cast %287 : vector<1x8x64xbf16> to vector<8x64xbf16>
    %cst_121 = arith.constant dense<0.000000e+00> : vector<16x64xf32>
    %289 = tpu.matmul %286, %288, %cst_121 {dimension_numbers = #tpu.dot_dimension_numbers<[1], [0], [0], [1], [0, 0, 1, 1], [], []>} : vector<16x8xbf16>, vector<8x64xbf16>, vector<16x64xf32> -> vector<16x64xf32>
    %290 = arith.addf %247, %289 : vector<16x64xf32>
    %291 = vector.extract_strided_slice %0 {offsets = [6, 0, 0], sizes = [1, 64, 8], strides = [1, 1, 1]} : vector<8x64x8xbf16> to vector<1x64x8xbf16>
    %292 = vector.shape_cast %291 : vector<1x64x8xbf16> to vector<64x8xbf16>
    %cst_122 = arith.constant dense<0.000000e+00> : vector<16x8xf32>
    %293 = tpu.matmul %33, %292, %cst_122 {dimension_numbers = #tpu.dot_dimension_numbers<[1], [0], [0], [1], [0, 0, 1, 1], [], []>} : vector<16x64xbf16>, vector<64x8xbf16>, vector<16x8xf32> -> vector<16x8xf32>
    %294 = vector.extract_strided_slice %1 {offsets = [6, 0, 0], sizes = [1, 1, 8], strides = [1, 1, 1]} : vector<8x1x8xf32> to vector<1x1x8xf32>
    %295 = vector.shape_cast %294 : vector<1x1x8xf32> to vector<1x8xf32>
    %296 = vector.broadcast %295 : vector<1x8xf32> to vector<16x8xf32>
    %297 = arith.addf %293, %296 : vector<16x8xf32>
    %298 = vector.extract_strided_slice %2 {offsets = [6, 0, 0], sizes = [1, 64, 8], strides = [1, 1, 1]} : vector<8x64x8xbf16> to vector<1x64x8xbf16>
    %299 = vector.shape_cast %298 : vector<1x64x8xbf16> to vector<64x8xbf16>
    %cst_123 = arith.constant dense<0.000000e+00> : vector<32x8xf32>
    %300 = tpu.matmul %30, %299, %cst_123 {dimension_numbers = #tpu.dot_dimension_numbers<[1], [0], [0], [1], [0, 0, 1, 1], [], []>} : vector<32x64xbf16>, vector<64x8xbf16>, vector<32x8xf32> -> vector<32x8xf32>
    %301 = vector.extract_strided_slice %3 {offsets = [6, 0, 0], sizes = [1, 1, 8], strides = [1, 1, 1]} : vector<8x1x8xf32> to vector<1x1x8xf32>
    %302 = vector.shape_cast %301 : vector<1x1x8xf32> to vector<1x8xf32>
    %303 = vector.broadcast %302 : vector<1x8xf32> to vector<32x8xf32>
    %304 = arith.addf %300, %303 : vector<32x8xf32>
    %305 = vector.extract_strided_slice %4 {offsets = [6, 0, 0], sizes = [1, 64, 8], strides = [1, 1, 1]} : vector<8x64x8xbf16> to vector<1x64x8xbf16>
    %306 = vector.shape_cast %305 : vector<1x64x8xbf16> to vector<64x8xbf16>
    %cst_124 = arith.constant dense<0.000000e+00> : vector<32x8xf32>
    %307 = tpu.matmul %30, %306, %cst_124 {dimension_numbers = #tpu.dot_dimension_numbers<[1], [0], [0], [1], [0, 0, 1, 1], [], []>} : vector<32x64xbf16>, vector<64x8xbf16>, vector<32x8xf32> -> vector<32x8xf32>
    %308 = vector.extract_strided_slice %5 {offsets = [6, 0, 0], sizes = [1, 1, 8], strides = [1, 1, 1]} : vector<8x1x8xf32> to vector<1x1x8xf32>
    %309 = vector.shape_cast %308 : vector<1x1x8xf32> to vector<1x8xf32>
    %310 = vector.broadcast %309 : vector<1x8xf32> to vector<32x8xf32>
    %311 = arith.addf %307, %310 : vector<32x8xf32>
    %312 = arith.truncf %297 : vector<16x8xf32> to vector<16x8xbf16>
    %313 = arith.truncf %304 : vector<32x8xf32> to vector<32x8xbf16>
    %cst_125 = arith.constant dense<0.000000e+00> : vector<16x32xf32>
    %314 = tpu.matmul %312, %313, %cst_125 {dimension_numbers = #tpu.dot_dimension_numbers<[1], [1], [0], [0], [0, 0, 1, 0], [], []>} : vector<16x8xbf16>, vector<32x8xbf16>, vector<16x32xf32> -> vector<16x32xf32>
    %315 = arith.addf %314, %31 : vector<16x32xf32>
    %cst_126 = arith.constant dense<0xFF800000> : vector<16xf32>
    %316 = vector.multi_reduction <maximumf>, %315, %cst_126 [1] : vector<16x32xf32> to vector<16xf32>
    %317 = vector.shape_cast %316 : vector<16xf32> to vector<16x1xf32>
    %318 = vector.broadcast %317 : vector<16x1xf32> to vector<16x32xf32>
    %319 = arith.subf %315, %318 : vector<16x32xf32>
    %320 = math.exp %319 : vector<16x32xf32>
    %cst_127 = arith.constant dense<0.000000e+00> : vector<16xf32>
    %321 = vector.multi_reduction <add>, %320, %cst_127 [1] : vector<16x32xf32> to vector<16xf32>
    %322 = vector.shape_cast %321 : vector<16xf32> to vector<16x1xf32>
    %323 = tpu.reciprocal %322 {approx = true} : vector<16x1xf32> -> vector<16x1xf32>
    %324 = vector.broadcast %323 : vector<16x1xf32> to vector<16x32xf32>
    %325 = arith.mulf %320, %324 : vector<16x32xf32>
    %326 = arith.truncf %325 : vector<16x32xf32> to vector<16x32xbf16>
    %327 = arith.truncf %311 : vector<32x8xf32> to vector<32x8xbf16>
    %cst_128 = arith.constant dense<0.000000e+00> : vector<16x8xf32>
    %328 = tpu.matmul %326, %327, %cst_128 {dimension_numbers = #tpu.dot_dimension_numbers<[1], [0], [0], [1], [0, 0, 1, 1], [], []>} : vector<16x32xbf16>, vector<32x8xbf16>, vector<16x8xf32> -> vector<16x8xf32>
    %329 = arith.truncf %328 : vector<16x8xf32> to vector<16x8xbf16>
    %330 = vector.extract_strided_slice %6 {offsets = [6, 0, 0], sizes = [1, 8, 64], strides = [1, 1, 1]} : vector<8x8x64xbf16> to vector<1x8x64xbf16>
    %331 = vector.shape_cast %330 : vector<1x8x64xbf16> to vector<8x64xbf16>
    %cst_129 = arith.constant dense<0.000000e+00> : vector<16x64xf32>
    %332 = tpu.matmul %329, %331, %cst_129 {dimension_numbers = #tpu.dot_dimension_numbers<[1], [0], [0], [1], [0, 0, 1, 1], [], []>} : vector<16x8xbf16>, vector<8x64xbf16>, vector<16x64xf32> -> vector<16x64xf32>
    %333 = arith.addf %290, %332 : vector<16x64xf32>
    %334 = vector.extract_strided_slice %0 {offsets = [7, 0, 0], sizes = [1, 64, 8], strides = [1, 1, 1]} : vector<8x64x8xbf16> to vector<1x64x8xbf16>
    %335 = vector.shape_cast %334 : vector<1x64x8xbf16> to vector<64x8xbf16>
    %cst_130 = arith.constant dense<0.000000e+00> : vector<16x8xf32>
    %336 = tpu.matmul %33, %335, %cst_130 {dimension_numbers = #tpu.dot_dimension_numbers<[1], [0], [0], [1], [0, 0, 1, 1], [], []>} : vector<16x64xbf16>, vector<64x8xbf16>, vector<16x8xf32> -> vector<16x8xf32>
    %337 = vector.extract_strided_slice %1 {offsets = [7, 0, 0], sizes = [1, 1, 8], strides = [1, 1, 1]} : vector<8x1x8xf32> to vector<1x1x8xf32>
    %338 = vector.shape_cast %337 : vector<1x1x8xf32> to vector<1x8xf32>
    %339 = vector.broadcast %338 : vector<1x8xf32> to vector<16x8xf32>
    %340 = arith.addf %336, %339 : vector<16x8xf32>
    %341 = vector.extract_strided_slice %2 {offsets = [7, 0, 0], sizes = [1, 64, 8], strides = [1, 1, 1]} : vector<8x64x8xbf16> to vector<1x64x8xbf16>
    %342 = vector.shape_cast %341 : vector<1x64x8xbf16> to vector<64x8xbf16>
    %cst_131 = arith.constant dense<0.000000e+00> : vector<32x8xf32>
    %343 = tpu.matmul %30, %342, %cst_131 {dimension_numbers = #tpu.dot_dimension_numbers<[1], [0], [0], [1], [0, 0, 1, 1], [], []>} : vector<32x64xbf16>, vector<64x8xbf16>, vector<32x8xf32> -> vector<32x8xf32>
    %344 = vector.extract_strided_slice %3 {offsets = [7, 0, 0], sizes = [1, 1, 8], strides = [1, 1, 1]} : vector<8x1x8xf32> to vector<1x1x8xf32>
    %345 = vector.shape_cast %344 : vector<1x1x8xf32> to vector<1x8xf32>
    %346 = vector.broadcast %345 : vector<1x8xf32> to vector<32x8xf32>
    %347 = arith.addf %343, %346 : vector<32x8xf32>
    %348 = vector.extract_strided_slice %4 {offsets = [7, 0, 0], sizes = [1, 64, 8], strides = [1, 1, 1]} : vector<8x64x8xbf16> to vector<1x64x8xbf16>
    %349 = vector.shape_cast %348 : vector<1x64x8xbf16> to vector<64x8xbf16>
    %cst_132 = arith.constant dense<0.000000e+00> : vector<32x8xf32>
    %350 = tpu.matmul %30, %349, %cst_132 {dimension_numbers = #tpu.dot_dimension_numbers<[1], [0], [0], [1], [0, 0, 1, 1], [], []>} : vector<32x64xbf16>, vector<64x8xbf16>, vector<32x8xf32> -> vector<32x8xf32>
    %351 = vector.extract_strided_slice %5 {offsets = [7, 0, 0], sizes = [1, 1, 8], strides = [1, 1, 1]} : vector<8x1x8xf32> to vector<1x1x8xf32>
    %352 = vector.shape_cast %351 : vector<1x1x8xf32> to vector<1x8xf32>
    %353 = vector.broadcast %352 : vector<1x8xf32> to vector<32x8xf32>
    %354 = arith.addf %350, %353 : vector<32x8xf32>
    %355 = arith.truncf %340 : vector<16x8xf32> to vector<16x8xbf16>
    %356 = arith.truncf %347 : vector<32x8xf32> to vector<32x8xbf16>
    %cst_133 = arith.constant dense<0.000000e+00> : vector<16x32xf32>
    %357 = tpu.matmul %355, %356, %cst_133 {dimension_numbers = #tpu.dot_dimension_numbers<[1], [1], [0], [0], [0, 0, 1, 0], [], []>} : vector<16x8xbf16>, vector<32x8xbf16>, vector<16x32xf32> -> vector<16x32xf32>
    %358 = arith.addf %357, %31 : vector<16x32xf32>
    %cst_134 = arith.constant dense<0xFF800000> : vector<16xf32>
    %359 = vector.multi_reduction <maximumf>, %358, %cst_134 [1] : vector<16x32xf32> to vector<16xf32>
    %360 = vector.shape_cast %359 : vector<16xf32> to vector<16x1xf32>
    %361 = vector.broadcast %360 : vector<16x1xf32> to vector<16x32xf32>
    %362 = arith.subf %358, %361 : vector<16x32xf32>
    %363 = math.exp %362 : vector<16x32xf32>
    %cst_135 = arith.constant dense<0.000000e+00> : vector<16xf32>
    %364 = vector.multi_reduction <add>, %363, %cst_135 [1] : vector<16x32xf32> to vector<16xf32>
    %365 = vector.shape_cast %364 : vector<16xf32> to vector<16x1xf32>
    %366 = tpu.reciprocal %365 {approx = true} : vector<16x1xf32> -> vector<16x1xf32>
    %367 = vector.broadcast %366 : vector<16x1xf32> to vector<16x32xf32>
    %368 = arith.mulf %363, %367 : vector<16x32xf32>
    %369 = arith.truncf %368 : vector<16x32xf32> to vector<16x32xbf16>
    %370 = arith.truncf %354 : vector<32x8xf32> to vector<32x8xbf16>
    %cst_136 = arith.constant dense<0.000000e+00> : vector<16x8xf32>
    %371 = tpu.matmul %369, %370, %cst_136 {dimension_numbers = #tpu.dot_dimension_numbers<[1], [0], [0], [1], [0, 0, 1, 1], [], []>} : vector<16x32xbf16>, vector<32x8xbf16>, vector<16x8xf32> -> vector<16x8xf32>
    %372 = arith.truncf %371 : vector<16x8xf32> to vector<16x8xbf16>
    %373 = vector.extract_strided_slice %6 {offsets = [7, 0, 0], sizes = [1, 8, 64], strides = [1, 1, 1]} : vector<8x8x64xbf16> to vector<1x8x64xbf16>
    %374 = vector.shape_cast %373 : vector<1x8x64xbf16> to vector<8x64xbf16>
    %cst_137 = arith.constant dense<0.000000e+00> : vector<16x64xf32>
    %375 = tpu.matmul %372, %374, %cst_137 {dimension_numbers = #tpu.dot_dimension_numbers<[1], [0], [0], [1], [0, 0, 1, 1], [], []>} : vector<16x8xbf16>, vector<8x64xbf16>, vector<16x64xf32> -> vector<16x64xf32>
    %376 = arith.addf %333, %375 : vector<16x64xf32>
    %377 = vector.broadcast %7 : vector<1x64xf32> to vector<16x64xf32>
    %378 = arith.addf %376, %377 : vector<16x64xf32>
    %379 = arith.addf %27, %378 : vector<16x64xf32>
    %cst_138 = arith.constant dense<0.000000e+00> : vector<16xf32>
    %380 = vector.multi_reduction <add>, %379, %cst_138 [1] : vector<16x64xf32> to vector<16xf32>
    %381 = vector.shape_cast %380 : vector<16xf32> to vector<16x1xf32>
    %cst_139 = arith.constant 6.400000e+01 : f32
    %382 = vector.broadcast %cst_139 : f32 to vector<16x1xf32>
    %383 = arith.divf %381, %382 : vector<16x1xf32>
    %384 = vector.broadcast %383 : vector<16x1xf32> to vector<16x64xf32>
    %385 = arith.subf %379, %384 : vector<16x64xf32>
    %386 = arith.mulf %385, %385 : vector<16x64xf32>
    %cst_140 = arith.constant dense<0.000000e+00> : vector<16xf32>
    %387 = vector.multi_reduction <add>, %386, %cst_140 [1] : vector<16x64xf32> to vector<16xf32>
    %388 = vector.shape_cast %387 : vector<16xf32> to vector<16x1xf32>
    %cst_141 = arith.constant 6.400000e+01 : f32
    %389 = vector.broadcast %cst_141 : f32 to vector<16x1xf32>
    %390 = arith.divf %388, %389 : vector<16x1xf32>
    %cst_142 = arith.constant 9.99999974E-6 : f32
    %391 = vector.broadcast %cst_142 : f32 to vector<16x1xf32>
    %392 = arith.addf %390, %391 : vector<16x1xf32>
    %393 = math.rsqrt %392 : vector<16x1xf32>
    %394 = vector.broadcast %393 : vector<16x1xf32> to vector<16x64xf32>
    %395 = arith.mulf %385, %394 : vector<16x64xf32>
    %396 = vector.broadcast %8 : vector<1x64xf32> to vector<16x64xf32>
    %397 = arith.mulf %395, %396 : vector<16x64xf32>
    %398 = vector.broadcast %9 : vector<1x64xf32> to vector<16x64xf32>
    %399 = arith.addf %397, %398 : vector<16x64xf32>
    %400 = arith.truncf %399 : vector<16x64xf32> to vector<16x64xbf16>
    %401 = vector.extract_strided_slice %10 {offsets = [0, 0, 0], sizes = [1, 64, 8], strides = [1, 1, 1]} : vector<8x64x8xbf16> to vector<1x64x8xbf16>
    %402 = vector.shape_cast %401 : vector<1x64x8xbf16> to vector<64x8xbf16>
    %cst_143 = arith.constant dense<0.000000e+00> : vector<16x8xf32>
    %403 = tpu.matmul %400, %402, %cst_143 {dimension_numbers = #tpu.dot_dimension_numbers<[1], [0], [0], [1], [0, 0, 1, 1], [], []>} : vector<16x64xbf16>, vector<64x8xbf16>, vector<16x8xf32> -> vector<16x8xf32>
    %404 = vector.extract_strided_slice %11 {offsets = [0, 0, 0], sizes = [1, 1, 8], strides = [1, 1, 1]} : vector<8x1x8xf32> to vector<1x1x8xf32>
    %405 = vector.shape_cast %404 : vector<1x1x8xf32> to vector<1x8xf32>
    %406 = vector.broadcast %405 : vector<1x8xf32> to vector<16x8xf32>
    %407 = arith.addf %403, %406 : vector<16x8xf32>
    %408 = vector.extract_strided_slice %12 {offsets = [0, 0, 0], sizes = [1, 64, 8], strides = [1, 1, 1]} : vector<8x64x8xbf16> to vector<1x64x8xbf16>
    %409 = vector.shape_cast %408 : vector<1x64x8xbf16> to vector<64x8xbf16>
    %cst_144 = arith.constant dense<0.000000e+00> : vector<16x8xf32>
    %410 = tpu.matmul %400, %409, %cst_144 {dimension_numbers = #tpu.dot_dimension_numbers<[1], [0], [0], [1], [0, 0, 1, 1], [], []>} : vector<16x64xbf16>, vector<64x8xbf16>, vector<16x8xf32> -> vector<16x8xf32>
    %411 = vector.extract_strided_slice %13 {offsets = [0, 0, 0], sizes = [1, 1, 8], strides = [1, 1, 1]} : vector<8x1x8xf32> to vector<1x1x8xf32>
    %412 = vector.shape_cast %411 : vector<1x1x8xf32> to vector<1x8xf32>
    %413 = vector.broadcast %412 : vector<1x8xf32> to vector<16x8xf32>
    %414 = arith.addf %410, %413 : vector<16x8xf32>
    %415 = vector.extract_strided_slice %14 {offsets = [0, 0, 0], sizes = [1, 64, 8], strides = [1, 1, 1]} : vector<8x64x8xbf16> to vector<1x64x8xbf16>
    %416 = vector.shape_cast %415 : vector<1x64x8xbf16> to vector<64x8xbf16>
    %cst_145 = arith.constant dense<0.000000e+00> : vector<16x8xf32>
    %417 = tpu.matmul %400, %416, %cst_145 {dimension_numbers = #tpu.dot_dimension_numbers<[1], [0], [0], [1], [0, 0, 1, 1], [], []>} : vector<16x64xbf16>, vector<64x8xbf16>, vector<16x8xf32> -> vector<16x8xf32>
    %418 = vector.extract_strided_slice %15 {offsets = [0, 0, 0], sizes = [1, 1, 8], strides = [1, 1, 1]} : vector<8x1x8xf32> to vector<1x1x8xf32>
    %419 = vector.shape_cast %418 : vector<1x1x8xf32> to vector<1x8xf32>
    %420 = vector.broadcast %419 : vector<1x8xf32> to vector<16x8xf32>
    %421 = arith.addf %417, %420 : vector<16x8xf32>
    %422 = arith.truncf %407 : vector<16x8xf32> to vector<16x8xbf16>
    %423 = arith.truncf %414 : vector<16x8xf32> to vector<16x8xbf16>
    %cst_146 = arith.constant dense<0.000000e+00> : vector<16x16xf32>
    %424 = tpu.matmul %422, %423, %cst_146 {dimension_numbers = #tpu.dot_dimension_numbers<[1], [1], [0], [0], [0, 0, 1, 0], [], []>} : vector<16x8xbf16>, vector<16x8xbf16>, vector<16x16xf32> -> vector<16x16xf32>
    %425 = arith.addf %424, %32 : vector<16x16xf32>
    %cst_147 = arith.constant dense<0xFF800000> : vector<16xf32>
    %426 = vector.multi_reduction <maximumf>, %425, %cst_147 [1] : vector<16x16xf32> to vector<16xf32>
    %427 = vector.shape_cast %426 : vector<16xf32> to vector<16x1xf32>
    %428 = vector.broadcast %427 : vector<16x1xf32> to vector<16x16xf32>
    %429 = arith.subf %425, %428 : vector<16x16xf32>
    %430 = math.exp %429 : vector<16x16xf32>
    %cst_148 = arith.constant dense<0.000000e+00> : vector<16xf32>
    %431 = vector.multi_reduction <add>, %430, %cst_148 [1] : vector<16x16xf32> to vector<16xf32>
    %432 = vector.shape_cast %431 : vector<16xf32> to vector<16x1xf32>
    %433 = tpu.reciprocal %432 {approx = true} : vector<16x1xf32> -> vector<16x1xf32>
    %434 = vector.broadcast %433 : vector<16x1xf32> to vector<16x16xf32>
    %435 = arith.mulf %430, %434 : vector<16x16xf32>
    %436 = arith.truncf %435 : vector<16x16xf32> to vector<16x16xbf16>
    %437 = arith.truncf %421 : vector<16x8xf32> to vector<16x8xbf16>
    %cst_149 = arith.constant dense<0.000000e+00> : vector<16x8xf32>
    %438 = tpu.matmul %436, %437, %cst_149 {dimension_numbers = #tpu.dot_dimension_numbers<[1], [0], [0], [1], [0, 0, 1, 1], [], []>} : vector<16x16xbf16>, vector<16x8xbf16>, vector<16x8xf32> -> vector<16x8xf32>
    %439 = arith.truncf %438 : vector<16x8xf32> to vector<16x8xbf16>
    %440 = vector.extract_strided_slice %16 {offsets = [0, 0, 0], sizes = [1, 8, 64], strides = [1, 1, 1]} : vector<8x8x64xbf16> to vector<1x8x64xbf16>
    %441 = vector.shape_cast %440 : vector<1x8x64xbf16> to vector<8x64xbf16>
    %cst_150 = arith.constant dense<0.000000e+00> : vector<16x64xf32>
    %442 = tpu.matmul %439, %441, %cst_150 {dimension_numbers = #tpu.dot_dimension_numbers<[1], [0], [0], [1], [0, 0, 1, 1], [], []>} : vector<16x8xbf16>, vector<8x64xbf16>, vector<16x64xf32> -> vector<16x64xf32>
    %443 = vector.extract_strided_slice %10 {offsets = [1, 0, 0], sizes = [1, 64, 8], strides = [1, 1, 1]} : vector<8x64x8xbf16> to vector<1x64x8xbf16>
    %444 = vector.shape_cast %443 : vector<1x64x8xbf16> to vector<64x8xbf16>
    %cst_151 = arith.constant dense<0.000000e+00> : vector<16x8xf32>
    %445 = tpu.matmul %400, %444, %cst_151 {dimension_numbers = #tpu.dot_dimension_numbers<[1], [0], [0], [1], [0, 0, 1, 1], [], []>} : vector<16x64xbf16>, vector<64x8xbf16>, vector<16x8xf32> -> vector<16x8xf32>
    %446 = vector.extract_strided_slice %11 {offsets = [1, 0, 0], sizes = [1, 1, 8], strides = [1, 1, 1]} : vector<8x1x8xf32> to vector<1x1x8xf32>
    %447 = vector.shape_cast %446 : vector<1x1x8xf32> to vector<1x8xf32>
    %448 = vector.broadcast %447 : vector<1x8xf32> to vector<16x8xf32>
    %449 = arith.addf %445, %448 : vector<16x8xf32>
    %450 = vector.extract_strided_slice %12 {offsets = [1, 0, 0], sizes = [1, 64, 8], strides = [1, 1, 1]} : vector<8x64x8xbf16> to vector<1x64x8xbf16>
    %451 = vector.shape_cast %450 : vector<1x64x8xbf16> to vector<64x8xbf16>
    %cst_152 = arith.constant dense<0.000000e+00> : vector<16x8xf32>
    %452 = tpu.matmul %400, %451, %cst_152 {dimension_numbers = #tpu.dot_dimension_numbers<[1], [0], [0], [1], [0, 0, 1, 1], [], []>} : vector<16x64xbf16>, vector<64x8xbf16>, vector<16x8xf32> -> vector<16x8xf32>
    %453 = vector.extract_strided_slice %13 {offsets = [1, 0, 0], sizes = [1, 1, 8], strides = [1, 1, 1]} : vector<8x1x8xf32> to vector<1x1x8xf32>
    %454 = vector.shape_cast %453 : vector<1x1x8xf32> to vector<1x8xf32>
    %455 = vector.broadcast %454 : vector<1x8xf32> to vector<16x8xf32>
    %456 = arith.addf %452, %455 : vector<16x8xf32>
    %457 = vector.extract_strided_slice %14 {offsets = [1, 0, 0], sizes = [1, 64, 8], strides = [1, 1, 1]} : vector<8x64x8xbf16> to vector<1x64x8xbf16>
    %458 = vector.shape_cast %457 : vector<1x64x8xbf16> to vector<64x8xbf16>
    %cst_153 = arith.constant dense<0.000000e+00> : vector<16x8xf32>
    %459 = tpu.matmul %400, %458, %cst_153 {dimension_numbers = #tpu.dot_dimension_numbers<[1], [0], [0], [1], [0, 0, 1, 1], [], []>} : vector<16x64xbf16>, vector<64x8xbf16>, vector<16x8xf32> -> vector<16x8xf32>
    %460 = vector.extract_strided_slice %15 {offsets = [1, 0, 0], sizes = [1, 1, 8], strides = [1, 1, 1]} : vector<8x1x8xf32> to vector<1x1x8xf32>
    %461 = vector.shape_cast %460 : vector<1x1x8xf32> to vector<1x8xf32>
    %462 = vector.broadcast %461 : vector<1x8xf32> to vector<16x8xf32>
    %463 = arith.addf %459, %462 : vector<16x8xf32>
    %464 = arith.truncf %449 : vector<16x8xf32> to vector<16x8xbf16>
    %465 = arith.truncf %456 : vector<16x8xf32> to vector<16x8xbf16>
    %cst_154 = arith.constant dense<0.000000e+00> : vector<16x16xf32>
    %466 = tpu.matmul %464, %465, %cst_154 {dimension_numbers = #tpu.dot_dimension_numbers<[1], [1], [0], [0], [0, 0, 1, 0], [], []>} : vector<16x8xbf16>, vector<16x8xbf16>, vector<16x16xf32> -> vector<16x16xf32>
    %467 = arith.addf %466, %32 : vector<16x16xf32>
    %cst_155 = arith.constant dense<0xFF800000> : vector<16xf32>
    %468 = vector.multi_reduction <maximumf>, %467, %cst_155 [1] : vector<16x16xf32> to vector<16xf32>
    %469 = vector.shape_cast %468 : vector<16xf32> to vector<16x1xf32>
    %470 = vector.broadcast %469 : vector<16x1xf32> to vector<16x16xf32>
    %471 = arith.subf %467, %470 : vector<16x16xf32>
    %472 = math.exp %471 : vector<16x16xf32>
    %cst_156 = arith.constant dense<0.000000e+00> : vector<16xf32>
    %473 = vector.multi_reduction <add>, %472, %cst_156 [1] : vector<16x16xf32> to vector<16xf32>
    %474 = vector.shape_cast %473 : vector<16xf32> to vector<16x1xf32>
    %475 = tpu.reciprocal %474 {approx = true} : vector<16x1xf32> -> vector<16x1xf32>
    %476 = vector.broadcast %475 : vector<16x1xf32> to vector<16x16xf32>
    %477 = arith.mulf %472, %476 : vector<16x16xf32>
    %478 = arith.truncf %477 : vector<16x16xf32> to vector<16x16xbf16>
    %479 = arith.truncf %463 : vector<16x8xf32> to vector<16x8xbf16>
    %cst_157 = arith.constant dense<0.000000e+00> : vector<16x8xf32>
    %480 = tpu.matmul %478, %479, %cst_157 {dimension_numbers = #tpu.dot_dimension_numbers<[1], [0], [0], [1], [0, 0, 1, 1], [], []>} : vector<16x16xbf16>, vector<16x8xbf16>, vector<16x8xf32> -> vector<16x8xf32>
    %481 = arith.truncf %480 : vector<16x8xf32> to vector<16x8xbf16>
    %482 = vector.extract_strided_slice %16 {offsets = [1, 0, 0], sizes = [1, 8, 64], strides = [1, 1, 1]} : vector<8x8x64xbf16> to vector<1x8x64xbf16>
    %483 = vector.shape_cast %482 : vector<1x8x64xbf16> to vector<8x64xbf16>
    %cst_158 = arith.constant dense<0.000000e+00> : vector<16x64xf32>
    %484 = tpu.matmul %481, %483, %cst_158 {dimension_numbers = #tpu.dot_dimension_numbers<[1], [0], [0], [1], [0, 0, 1, 1], [], []>} : vector<16x8xbf16>, vector<8x64xbf16>, vector<16x64xf32> -> vector<16x64xf32>
    %485 = arith.addf %442, %484 : vector<16x64xf32>
    %486 = vector.extract_strided_slice %10 {offsets = [2, 0, 0], sizes = [1, 64, 8], strides = [1, 1, 1]} : vector<8x64x8xbf16> to vector<1x64x8xbf16>
    %487 = vector.shape_cast %486 : vector<1x64x8xbf16> to vector<64x8xbf16>
    %cst_159 = arith.constant dense<0.000000e+00> : vector<16x8xf32>
    %488 = tpu.matmul %400, %487, %cst_159 {dimension_numbers = #tpu.dot_dimension_numbers<[1], [0], [0], [1], [0, 0, 1, 1], [], []>} : vector<16x64xbf16>, vector<64x8xbf16>, vector<16x8xf32> -> vector<16x8xf32>
    %489 = vector.extract_strided_slice %11 {offsets = [2, 0, 0], sizes = [1, 1, 8], strides = [1, 1, 1]} : vector<8x1x8xf32> to vector<1x1x8xf32>
    %490 = vector.shape_cast %489 : vector<1x1x8xf32> to vector<1x8xf32>
    %491 = vector.broadcast %490 : vector<1x8xf32> to vector<16x8xf32>
    %492 = arith.addf %488, %491 : vector<16x8xf32>
    %493 = vector.extract_strided_slice %12 {offsets = [2, 0, 0], sizes = [1, 64, 8], strides = [1, 1, 1]} : vector<8x64x8xbf16> to vector<1x64x8xbf16>
    %494 = vector.shape_cast %493 : vector<1x64x8xbf16> to vector<64x8xbf16>
    %cst_160 = arith.constant dense<0.000000e+00> : vector<16x8xf32>
    %495 = tpu.matmul %400, %494, %cst_160 {dimension_numbers = #tpu.dot_dimension_numbers<[1], [0], [0], [1], [0, 0, 1, 1], [], []>} : vector<16x64xbf16>, vector<64x8xbf16>, vector<16x8xf32> -> vector<16x8xf32>
    %496 = vector.extract_strided_slice %13 {offsets = [2, 0, 0], sizes = [1, 1, 8], strides = [1, 1, 1]} : vector<8x1x8xf32> to vector<1x1x8xf32>
    %497 = vector.shape_cast %496 : vector<1x1x8xf32> to vector<1x8xf32>
    %498 = vector.broadcast %497 : vector<1x8xf32> to vector<16x8xf32>
    %499 = arith.addf %495, %498 : vector<16x8xf32>
    %500 = vector.extract_strided_slice %14 {offsets = [2, 0, 0], sizes = [1, 64, 8], strides = [1, 1, 1]} : vector<8x64x8xbf16> to vector<1x64x8xbf16>
    %501 = vector.shape_cast %500 : vector<1x64x8xbf16> to vector<64x8xbf16>
    %cst_161 = arith.constant dense<0.000000e+00> : vector<16x8xf32>
    %502 = tpu.matmul %400, %501, %cst_161 {dimension_numbers = #tpu.dot_dimension_numbers<[1], [0], [0], [1], [0, 0, 1, 1], [], []>} : vector<16x64xbf16>, vector<64x8xbf16>, vector<16x8xf32> -> vector<16x8xf32>
    %503 = vector.extract_strided_slice %15 {offsets = [2, 0, 0], sizes = [1, 1, 8], strides = [1, 1, 1]} : vector<8x1x8xf32> to vector<1x1x8xf32>
    %504 = vector.shape_cast %503 : vector<1x1x8xf32> to vector<1x8xf32>
    %505 = vector.broadcast %504 : vector<1x8xf32> to vector<16x8xf32>
    %506 = arith.addf %502, %505 : vector<16x8xf32>
    %507 = arith.truncf %492 : vector<16x8xf32> to vector<16x8xbf16>
    %508 = arith.truncf %499 : vector<16x8xf32> to vector<16x8xbf16>
    %cst_162 = arith.constant dense<0.000000e+00> : vector<16x16xf32>
    %509 = tpu.matmul %507, %508, %cst_162 {dimension_numbers = #tpu.dot_dimension_numbers<[1], [1], [0], [0], [0, 0, 1, 0], [], []>} : vector<16x8xbf16>, vector<16x8xbf16>, vector<16x16xf32> -> vector<16x16xf32>
    %510 = arith.addf %509, %32 : vector<16x16xf32>
    %cst_163 = arith.constant dense<0xFF800000> : vector<16xf32>
    %511 = vector.multi_reduction <maximumf>, %510, %cst_163 [1] : vector<16x16xf32> to vector<16xf32>
    %512 = vector.shape_cast %511 : vector<16xf32> to vector<16x1xf32>
    %513 = vector.broadcast %512 : vector<16x1xf32> to vector<16x16xf32>
    %514 = arith.subf %510, %513 : vector<16x16xf32>
    %515 = math.exp %514 : vector<16x16xf32>
    %cst_164 = arith.constant dense<0.000000e+00> : vector<16xf32>
    %516 = vector.multi_reduction <add>, %515, %cst_164 [1] : vector<16x16xf32> to vector<16xf32>
    %517 = vector.shape_cast %516 : vector<16xf32> to vector<16x1xf32>
    %518 = tpu.reciprocal %517 {approx = true} : vector<16x1xf32> -> vector<16x1xf32>
    %519 = vector.broadcast %518 : vector<16x1xf32> to vector<16x16xf32>
    %520 = arith.mulf %515, %519 : vector<16x16xf32>
    %521 = arith.truncf %520 : vector<16x16xf32> to vector<16x16xbf16>
    %522 = arith.truncf %506 : vector<16x8xf32> to vector<16x8xbf16>
    %cst_165 = arith.constant dense<0.000000e+00> : vector<16x8xf32>
    %523 = tpu.matmul %521, %522, %cst_165 {dimension_numbers = #tpu.dot_dimension_numbers<[1], [0], [0], [1], [0, 0, 1, 1], [], []>} : vector<16x16xbf16>, vector<16x8xbf16>, vector<16x8xf32> -> vector<16x8xf32>
    %524 = arith.truncf %523 : vector<16x8xf32> to vector<16x8xbf16>
    %525 = vector.extract_strided_slice %16 {offsets = [2, 0, 0], sizes = [1, 8, 64], strides = [1, 1, 1]} : vector<8x8x64xbf16> to vector<1x8x64xbf16>
    %526 = vector.shape_cast %525 : vector<1x8x64xbf16> to vector<8x64xbf16>
    %cst_166 = arith.constant dense<0.000000e+00> : vector<16x64xf32>
    %527 = tpu.matmul %524, %526, %cst_166 {dimension_numbers = #tpu.dot_dimension_numbers<[1], [0], [0], [1], [0, 0, 1, 1], [], []>} : vector<16x8xbf16>, vector<8x64xbf16>, vector<16x64xf32> -> vector<16x64xf32>
    %528 = arith.addf %485, %527 : vector<16x64xf32>
    %529 = vector.extract_strided_slice %10 {offsets = [3, 0, 0], sizes = [1, 64, 8], strides = [1, 1, 1]} : vector<8x64x8xbf16> to vector<1x64x8xbf16>
    %530 = vector.shape_cast %529 : vector<1x64x8xbf16> to vector<64x8xbf16>
    %cst_167 = arith.constant dense<0.000000e+00> : vector<16x8xf32>
    %531 = tpu.matmul %400, %530, %cst_167 {dimension_numbers = #tpu.dot_dimension_numbers<[1], [0], [0], [1], [0, 0, 1, 1], [], []>} : vector<16x64xbf16>, vector<64x8xbf16>, vector<16x8xf32> -> vector<16x8xf32>
    %532 = vector.extract_strided_slice %11 {offsets = [3, 0, 0], sizes = [1, 1, 8], strides = [1, 1, 1]} : vector<8x1x8xf32> to vector<1x1x8xf32>
    %533 = vector.shape_cast %532 : vector<1x1x8xf32> to vector<1x8xf32>
    %534 = vector.broadcast %533 : vector<1x8xf32> to vector<16x8xf32>
    %535 = arith.addf %531, %534 : vector<16x8xf32>
    %536 = vector.extract_strided_slice %12 {offsets = [3, 0, 0], sizes = [1, 64, 8], strides = [1, 1, 1]} : vector<8x64x8xbf16> to vector<1x64x8xbf16>
    %537 = vector.shape_cast %536 : vector<1x64x8xbf16> to vector<64x8xbf16>
    %cst_168 = arith.constant dense<0.000000e+00> : vector<16x8xf32>
    %538 = tpu.matmul %400, %537, %cst_168 {dimension_numbers = #tpu.dot_dimension_numbers<[1], [0], [0], [1], [0, 0, 1, 1], [], []>} : vector<16x64xbf16>, vector<64x8xbf16>, vector<16x8xf32> -> vector<16x8xf32>
    %539 = vector.extract_strided_slice %13 {offsets = [3, 0, 0], sizes = [1, 1, 8], strides = [1, 1, 1]} : vector<8x1x8xf32> to vector<1x1x8xf32>
    %540 = vector.shape_cast %539 : vector<1x1x8xf32> to vector<1x8xf32>
    %541 = vector.broadcast %540 : vector<1x8xf32> to vector<16x8xf32>
    %542 = arith.addf %538, %541 : vector<16x8xf32>
    %543 = vector.extract_strided_slice %14 {offsets = [3, 0, 0], sizes = [1, 64, 8], strides = [1, 1, 1]} : vector<8x64x8xbf16> to vector<1x64x8xbf16>
    %544 = vector.shape_cast %543 : vector<1x64x8xbf16> to vector<64x8xbf16>
    %cst_169 = arith.constant dense<0.000000e+00> : vector<16x8xf32>
    %545 = tpu.matmul %400, %544, %cst_169 {dimension_numbers = #tpu.dot_dimension_numbers<[1], [0], [0], [1], [0, 0, 1, 1], [], []>} : vector<16x64xbf16>, vector<64x8xbf16>, vector<16x8xf32> -> vector<16x8xf32>
    %546 = vector.extract_strided_slice %15 {offsets = [3, 0, 0], sizes = [1, 1, 8], strides = [1, 1, 1]} : vector<8x1x8xf32> to vector<1x1x8xf32>
    %547 = vector.shape_cast %546 : vector<1x1x8xf32> to vector<1x8xf32>
    %548 = vector.broadcast %547 : vector<1x8xf32> to vector<16x8xf32>
    %549 = arith.addf %545, %548 : vector<16x8xf32>
    %550 = arith.truncf %535 : vector<16x8xf32> to vector<16x8xbf16>
    %551 = arith.truncf %542 : vector<16x8xf32> to vector<16x8xbf16>
    %cst_170 = arith.constant dense<0.000000e+00> : vector<16x16xf32>
    %552 = tpu.matmul %550, %551, %cst_170 {dimension_numbers = #tpu.dot_dimension_numbers<[1], [1], [0], [0], [0, 0, 1, 0], [], []>} : vector<16x8xbf16>, vector<16x8xbf16>, vector<16x16xf32> -> vector<16x16xf32>
    %553 = arith.addf %552, %32 : vector<16x16xf32>
    %cst_171 = arith.constant dense<0xFF800000> : vector<16xf32>
    %554 = vector.multi_reduction <maximumf>, %553, %cst_171 [1] : vector<16x16xf32> to vector<16xf32>
    %555 = vector.shape_cast %554 : vector<16xf32> to vector<16x1xf32>
    %556 = vector.broadcast %555 : vector<16x1xf32> to vector<16x16xf32>
    %557 = arith.subf %553, %556 : vector<16x16xf32>
    %558 = math.exp %557 : vector<16x16xf32>
    %cst_172 = arith.constant dense<0.000000e+00> : vector<16xf32>
    %559 = vector.multi_reduction <add>, %558, %cst_172 [1] : vector<16x16xf32> to vector<16xf32>
    %560 = vector.shape_cast %559 : vector<16xf32> to vector<16x1xf32>
    %561 = tpu.reciprocal %560 {approx = true} : vector<16x1xf32> -> vector<16x1xf32>
    %562 = vector.broadcast %561 : vector<16x1xf32> to vector<16x16xf32>
    %563 = arith.mulf %558, %562 : vector<16x16xf32>
    %564 = arith.truncf %563 : vector<16x16xf32> to vector<16x16xbf16>
    %565 = arith.truncf %549 : vector<16x8xf32> to vector<16x8xbf16>
    %cst_173 = arith.constant dense<0.000000e+00> : vector<16x8xf32>
    %566 = tpu.matmul %564, %565, %cst_173 {dimension_numbers = #tpu.dot_dimension_numbers<[1], [0], [0], [1], [0, 0, 1, 1], [], []>} : vector<16x16xbf16>, vector<16x8xbf16>, vector<16x8xf32> -> vector<16x8xf32>
    %567 = arith.truncf %566 : vector<16x8xf32> to vector<16x8xbf16>
    %568 = vector.extract_strided_slice %16 {offsets = [3, 0, 0], sizes = [1, 8, 64], strides = [1, 1, 1]} : vector<8x8x64xbf16> to vector<1x8x64xbf16>
    %569 = vector.shape_cast %568 : vector<1x8x64xbf16> to vector<8x64xbf16>
    %cst_174 = arith.constant dense<0.000000e+00> : vector<16x64xf32>
    %570 = tpu.matmul %567, %569, %cst_174 {dimension_numbers = #tpu.dot_dimension_numbers<[1], [0], [0], [1], [0, 0, 1, 1], [], []>} : vector<16x8xbf16>, vector<8x64xbf16>, vector<16x64xf32> -> vector<16x64xf32>
    %571 = arith.addf %528, %570 : vector<16x64xf32>
    %572 = vector.extract_strided_slice %10 {offsets = [4, 0, 0], sizes = [1, 64, 8], strides = [1, 1, 1]} : vector<8x64x8xbf16> to vector<1x64x8xbf16>
    %573 = vector.shape_cast %572 : vector<1x64x8xbf16> to vector<64x8xbf16>
    %cst_175 = arith.constant dense<0.000000e+00> : vector<16x8xf32>
    %574 = tpu.matmul %400, %573, %cst_175 {dimension_numbers = #tpu.dot_dimension_numbers<[1], [0], [0], [1], [0, 0, 1, 1], [], []>} : vector<16x64xbf16>, vector<64x8xbf16>, vector<16x8xf32> -> vector<16x8xf32>
    %575 = vector.extract_strided_slice %11 {offsets = [4, 0, 0], sizes = [1, 1, 8], strides = [1, 1, 1]} : vector<8x1x8xf32> to vector<1x1x8xf32>
    %576 = vector.shape_cast %575 : vector<1x1x8xf32> to vector<1x8xf32>
    %577 = vector.broadcast %576 : vector<1x8xf32> to vector<16x8xf32>
    %578 = arith.addf %574, %577 : vector<16x8xf32>
    %579 = vector.extract_strided_slice %12 {offsets = [4, 0, 0], sizes = [1, 64, 8], strides = [1, 1, 1]} : vector<8x64x8xbf16> to vector<1x64x8xbf16>
    %580 = vector.shape_cast %579 : vector<1x64x8xbf16> to vector<64x8xbf16>
    %cst_176 = arith.constant dense<0.000000e+00> : vector<16x8xf32>
    %581 = tpu.matmul %400, %580, %cst_176 {dimension_numbers = #tpu.dot_dimension_numbers<[1], [0], [0], [1], [0, 0, 1, 1], [], []>} : vector<16x64xbf16>, vector<64x8xbf16>, vector<16x8xf32> -> vector<16x8xf32>
    %582 = vector.extract_strided_slice %13 {offsets = [4, 0, 0], sizes = [1, 1, 8], strides = [1, 1, 1]} : vector<8x1x8xf32> to vector<1x1x8xf32>
    %583 = vector.shape_cast %582 : vector<1x1x8xf32> to vector<1x8xf32>
    %584 = vector.broadcast %583 : vector<1x8xf32> to vector<16x8xf32>
    %585 = arith.addf %581, %584 : vector<16x8xf32>
    %586 = vector.extract_strided_slice %14 {offsets = [4, 0, 0], sizes = [1, 64, 8], strides = [1, 1, 1]} : vector<8x64x8xbf16> to vector<1x64x8xbf16>
    %587 = vector.shape_cast %586 : vector<1x64x8xbf16> to vector<64x8xbf16>
    %cst_177 = arith.constant dense<0.000000e+00> : vector<16x8xf32>
    %588 = tpu.matmul %400, %587, %cst_177 {dimension_numbers = #tpu.dot_dimension_numbers<[1], [0], [0], [1], [0, 0, 1, 1], [], []>} : vector<16x64xbf16>, vector<64x8xbf16>, vector<16x8xf32> -> vector<16x8xf32>
    %589 = vector.extract_strided_slice %15 {offsets = [4, 0, 0], sizes = [1, 1, 8], strides = [1, 1, 1]} : vector<8x1x8xf32> to vector<1x1x8xf32>
    %590 = vector.shape_cast %589 : vector<1x1x8xf32> to vector<1x8xf32>
    %591 = vector.broadcast %590 : vector<1x8xf32> to vector<16x8xf32>
    %592 = arith.addf %588, %591 : vector<16x8xf32>
    %593 = arith.truncf %578 : vector<16x8xf32> to vector<16x8xbf16>
    %594 = arith.truncf %585 : vector<16x8xf32> to vector<16x8xbf16>
    %cst_178 = arith.constant dense<0.000000e+00> : vector<16x16xf32>
    %595 = tpu.matmul %593, %594, %cst_178 {dimension_numbers = #tpu.dot_dimension_numbers<[1], [1], [0], [0], [0, 0, 1, 0], [], []>} : vector<16x8xbf16>, vector<16x8xbf16>, vector<16x16xf32> -> vector<16x16xf32>
    %596 = arith.addf %595, %32 : vector<16x16xf32>
    %cst_179 = arith.constant dense<0xFF800000> : vector<16xf32>
    %597 = vector.multi_reduction <maximumf>, %596, %cst_179 [1] : vector<16x16xf32> to vector<16xf32>
    %598 = vector.shape_cast %597 : vector<16xf32> to vector<16x1xf32>
    %599 = vector.broadcast %598 : vector<16x1xf32> to vector<16x16xf32>
    %600 = arith.subf %596, %599 : vector<16x16xf32>
    %601 = math.exp %600 : vector<16x16xf32>
    %cst_180 = arith.constant dense<0.000000e+00> : vector<16xf32>
    %602 = vector.multi_reduction <add>, %601, %cst_180 [1] : vector<16x16xf32> to vector<16xf32>
    %603 = vector.shape_cast %602 : vector<16xf32> to vector<16x1xf32>
    %604 = tpu.reciprocal %603 {approx = true} : vector<16x1xf32> -> vector<16x1xf32>
    %605 = vector.broadcast %604 : vector<16x1xf32> to vector<16x16xf32>
    %606 = arith.mulf %601, %605 : vector<16x16xf32>
    %607 = arith.truncf %606 : vector<16x16xf32> to vector<16x16xbf16>
    %608 = arith.truncf %592 : vector<16x8xf32> to vector<16x8xbf16>
    %cst_181 = arith.constant dense<0.000000e+00> : vector<16x8xf32>
    %609 = tpu.matmul %607, %608, %cst_181 {dimension_numbers = #tpu.dot_dimension_numbers<[1], [0], [0], [1], [0, 0, 1, 1], [], []>} : vector<16x16xbf16>, vector<16x8xbf16>, vector<16x8xf32> -> vector<16x8xf32>
    %610 = arith.truncf %609 : vector<16x8xf32> to vector<16x8xbf16>
    %611 = vector.extract_strided_slice %16 {offsets = [4, 0, 0], sizes = [1, 8, 64], strides = [1, 1, 1]} : vector<8x8x64xbf16> to vector<1x8x64xbf16>
    %612 = vector.shape_cast %611 : vector<1x8x64xbf16> to vector<8x64xbf16>
    %cst_182 = arith.constant dense<0.000000e+00> : vector<16x64xf32>
    %613 = tpu.matmul %610, %612, %cst_182 {dimension_numbers = #tpu.dot_dimension_numbers<[1], [0], [0], [1], [0, 0, 1, 1], [], []>} : vector<16x8xbf16>, vector<8x64xbf16>, vector<16x64xf32> -> vector<16x64xf32>
    %614 = arith.addf %571, %613 : vector<16x64xf32>
    %615 = vector.extract_strided_slice %10 {offsets = [5, 0, 0], sizes = [1, 64, 8], strides = [1, 1, 1]} : vector<8x64x8xbf16> to vector<1x64x8xbf16>
    %616 = vector.shape_cast %615 : vector<1x64x8xbf16> to vector<64x8xbf16>
    %cst_183 = arith.constant dense<0.000000e+00> : vector<16x8xf32>
    %617 = tpu.matmul %400, %616, %cst_183 {dimension_numbers = #tpu.dot_dimension_numbers<[1], [0], [0], [1], [0, 0, 1, 1], [], []>} : vector<16x64xbf16>, vector<64x8xbf16>, vector<16x8xf32> -> vector<16x8xf32>
    %618 = vector.extract_strided_slice %11 {offsets = [5, 0, 0], sizes = [1, 1, 8], strides = [1, 1, 1]} : vector<8x1x8xf32> to vector<1x1x8xf32>
    %619 = vector.shape_cast %618 : vector<1x1x8xf32> to vector<1x8xf32>
    %620 = vector.broadcast %619 : vector<1x8xf32> to vector<16x8xf32>
    %621 = arith.addf %617, %620 : vector<16x8xf32>
    %622 = vector.extract_strided_slice %12 {offsets = [5, 0, 0], sizes = [1, 64, 8], strides = [1, 1, 1]} : vector<8x64x8xbf16> to vector<1x64x8xbf16>
    %623 = vector.shape_cast %622 : vector<1x64x8xbf16> to vector<64x8xbf16>
    %cst_184 = arith.constant dense<0.000000e+00> : vector<16x8xf32>
    %624 = tpu.matmul %400, %623, %cst_184 {dimension_numbers = #tpu.dot_dimension_numbers<[1], [0], [0], [1], [0, 0, 1, 1], [], []>} : vector<16x64xbf16>, vector<64x8xbf16>, vector<16x8xf32> -> vector<16x8xf32>
    %625 = vector.extract_strided_slice %13 {offsets = [5, 0, 0], sizes = [1, 1, 8], strides = [1, 1, 1]} : vector<8x1x8xf32> to vector<1x1x8xf32>
    %626 = vector.shape_cast %625 : vector<1x1x8xf32> to vector<1x8xf32>
    %627 = vector.broadcast %626 : vector<1x8xf32> to vector<16x8xf32>
    %628 = arith.addf %624, %627 : vector<16x8xf32>
    %629 = vector.extract_strided_slice %14 {offsets = [5, 0, 0], sizes = [1, 64, 8], strides = [1, 1, 1]} : vector<8x64x8xbf16> to vector<1x64x8xbf16>
    %630 = vector.shape_cast %629 : vector<1x64x8xbf16> to vector<64x8xbf16>
    %cst_185 = arith.constant dense<0.000000e+00> : vector<16x8xf32>
    %631 = tpu.matmul %400, %630, %cst_185 {dimension_numbers = #tpu.dot_dimension_numbers<[1], [0], [0], [1], [0, 0, 1, 1], [], []>} : vector<16x64xbf16>, vector<64x8xbf16>, vector<16x8xf32> -> vector<16x8xf32>
    %632 = vector.extract_strided_slice %15 {offsets = [5, 0, 0], sizes = [1, 1, 8], strides = [1, 1, 1]} : vector<8x1x8xf32> to vector<1x1x8xf32>
    %633 = vector.shape_cast %632 : vector<1x1x8xf32> to vector<1x8xf32>
    %634 = vector.broadcast %633 : vector<1x8xf32> to vector<16x8xf32>
    %635 = arith.addf %631, %634 : vector<16x8xf32>
    %636 = arith.truncf %621 : vector<16x8xf32> to vector<16x8xbf16>
    %637 = arith.truncf %628 : vector<16x8xf32> to vector<16x8xbf16>
    %cst_186 = arith.constant dense<0.000000e+00> : vector<16x16xf32>
    %638 = tpu.matmul %636, %637, %cst_186 {dimension_numbers = #tpu.dot_dimension_numbers<[1], [1], [0], [0], [0, 0, 1, 0], [], []>} : vector<16x8xbf16>, vector<16x8xbf16>, vector<16x16xf32> -> vector<16x16xf32>
    %639 = arith.addf %638, %32 : vector<16x16xf32>
    %cst_187 = arith.constant dense<0xFF800000> : vector<16xf32>
    %640 = vector.multi_reduction <maximumf>, %639, %cst_187 [1] : vector<16x16xf32> to vector<16xf32>
    %641 = vector.shape_cast %640 : vector<16xf32> to vector<16x1xf32>
    %642 = vector.broadcast %641 : vector<16x1xf32> to vector<16x16xf32>
    %643 = arith.subf %639, %642 : vector<16x16xf32>
    %644 = math.exp %643 : vector<16x16xf32>
    %cst_188 = arith.constant dense<0.000000e+00> : vector<16xf32>
    %645 = vector.multi_reduction <add>, %644, %cst_188 [1] : vector<16x16xf32> to vector<16xf32>
    %646 = vector.shape_cast %645 : vector<16xf32> to vector<16x1xf32>
    %647 = tpu.reciprocal %646 {approx = true} : vector<16x1xf32> -> vector<16x1xf32>
    %648 = vector.broadcast %647 : vector<16x1xf32> to vector<16x16xf32>
    %649 = arith.mulf %644, %648 : vector<16x16xf32>
    %650 = arith.truncf %649 : vector<16x16xf32> to vector<16x16xbf16>
    %651 = arith.truncf %635 : vector<16x8xf32> to vector<16x8xbf16>
    %cst_189 = arith.constant dense<0.000000e+00> : vector<16x8xf32>
    %652 = tpu.matmul %650, %651, %cst_189 {dimension_numbers = #tpu.dot_dimension_numbers<[1], [0], [0], [1], [0, 0, 1, 1], [], []>} : vector<16x16xbf16>, vector<16x8xbf16>, vector<16x8xf32> -> vector<16x8xf32>
    %653 = arith.truncf %652 : vector<16x8xf32> to vector<16x8xbf16>
    %654 = vector.extract_strided_slice %16 {offsets = [5, 0, 0], sizes = [1, 8, 64], strides = [1, 1, 1]} : vector<8x8x64xbf16> to vector<1x8x64xbf16>
    %655 = vector.shape_cast %654 : vector<1x8x64xbf16> to vector<8x64xbf16>
    %cst_190 = arith.constant dense<0.000000e+00> : vector<16x64xf32>
    %656 = tpu.matmul %653, %655, %cst_190 {dimension_numbers = #tpu.dot_dimension_numbers<[1], [0], [0], [1], [0, 0, 1, 1], [], []>} : vector<16x8xbf16>, vector<8x64xbf16>, vector<16x64xf32> -> vector<16x64xf32>
    %657 = arith.addf %614, %656 : vector<16x64xf32>
    %658 = vector.extract_strided_slice %10 {offsets = [6, 0, 0], sizes = [1, 64, 8], strides = [1, 1, 1]} : vector<8x64x8xbf16> to vector<1x64x8xbf16>
    %659 = vector.shape_cast %658 : vector<1x64x8xbf16> to vector<64x8xbf16>
    %cst_191 = arith.constant dense<0.000000e+00> : vector<16x8xf32>
    %660 = tpu.matmul %400, %659, %cst_191 {dimension_numbers = #tpu.dot_dimension_numbers<[1], [0], [0], [1], [0, 0, 1, 1], [], []>} : vector<16x64xbf16>, vector<64x8xbf16>, vector<16x8xf32> -> vector<16x8xf32>
    %661 = vector.extract_strided_slice %11 {offsets = [6, 0, 0], sizes = [1, 1, 8], strides = [1, 1, 1]} : vector<8x1x8xf32> to vector<1x1x8xf32>
    %662 = vector.shape_cast %661 : vector<1x1x8xf32> to vector<1x8xf32>
    %663 = vector.broadcast %662 : vector<1x8xf32> to vector<16x8xf32>
    %664 = arith.addf %660, %663 : vector<16x8xf32>
    %665 = vector.extract_strided_slice %12 {offsets = [6, 0, 0], sizes = [1, 64, 8], strides = [1, 1, 1]} : vector<8x64x8xbf16> to vector<1x64x8xbf16>
    %666 = vector.shape_cast %665 : vector<1x64x8xbf16> to vector<64x8xbf16>
    %cst_192 = arith.constant dense<0.000000e+00> : vector<16x8xf32>
    %667 = tpu.matmul %400, %666, %cst_192 {dimension_numbers = #tpu.dot_dimension_numbers<[1], [0], [0], [1], [0, 0, 1, 1], [], []>} : vector<16x64xbf16>, vector<64x8xbf16>, vector<16x8xf32> -> vector<16x8xf32>
    %668 = vector.extract_strided_slice %13 {offsets = [6, 0, 0], sizes = [1, 1, 8], strides = [1, 1, 1]} : vector<8x1x8xf32> to vector<1x1x8xf32>
    %669 = vector.shape_cast %668 : vector<1x1x8xf32> to vector<1x8xf32>
    %670 = vector.broadcast %669 : vector<1x8xf32> to vector<16x8xf32>
    %671 = arith.addf %667, %670 : vector<16x8xf32>
    %672 = vector.extract_strided_slice %14 {offsets = [6, 0, 0], sizes = [1, 64, 8], strides = [1, 1, 1]} : vector<8x64x8xbf16> to vector<1x64x8xbf16>
    %673 = vector.shape_cast %672 : vector<1x64x8xbf16> to vector<64x8xbf16>
    %cst_193 = arith.constant dense<0.000000e+00> : vector<16x8xf32>
    %674 = tpu.matmul %400, %673, %cst_193 {dimension_numbers = #tpu.dot_dimension_numbers<[1], [0], [0], [1], [0, 0, 1, 1], [], []>} : vector<16x64xbf16>, vector<64x8xbf16>, vector<16x8xf32> -> vector<16x8xf32>
    %675 = vector.extract_strided_slice %15 {offsets = [6, 0, 0], sizes = [1, 1, 8], strides = [1, 1, 1]} : vector<8x1x8xf32> to vector<1x1x8xf32>
    %676 = vector.shape_cast %675 : vector<1x1x8xf32> to vector<1x8xf32>
    %677 = vector.broadcast %676 : vector<1x8xf32> to vector<16x8xf32>
    %678 = arith.addf %674, %677 : vector<16x8xf32>
    %679 = arith.truncf %664 : vector<16x8xf32> to vector<16x8xbf16>
    %680 = arith.truncf %671 : vector<16x8xf32> to vector<16x8xbf16>
    %cst_194 = arith.constant dense<0.000000e+00> : vector<16x16xf32>
    %681 = tpu.matmul %679, %680, %cst_194 {dimension_numbers = #tpu.dot_dimension_numbers<[1], [1], [0], [0], [0, 0, 1, 0], [], []>} : vector<16x8xbf16>, vector<16x8xbf16>, vector<16x16xf32> -> vector<16x16xf32>
    %682 = arith.addf %681, %32 : vector<16x16xf32>
    %cst_195 = arith.constant dense<0xFF800000> : vector<16xf32>
    %683 = vector.multi_reduction <maximumf>, %682, %cst_195 [1] : vector<16x16xf32> to vector<16xf32>
    %684 = vector.shape_cast %683 : vector<16xf32> to vector<16x1xf32>
    %685 = vector.broadcast %684 : vector<16x1xf32> to vector<16x16xf32>
    %686 = arith.subf %682, %685 : vector<16x16xf32>
    %687 = math.exp %686 : vector<16x16xf32>
    %cst_196 = arith.constant dense<0.000000e+00> : vector<16xf32>
    %688 = vector.multi_reduction <add>, %687, %cst_196 [1] : vector<16x16xf32> to vector<16xf32>
    %689 = vector.shape_cast %688 : vector<16xf32> to vector<16x1xf32>
    %690 = tpu.reciprocal %689 {approx = true} : vector<16x1xf32> -> vector<16x1xf32>
    %691 = vector.broadcast %690 : vector<16x1xf32> to vector<16x16xf32>
    %692 = arith.mulf %687, %691 : vector<16x16xf32>
    %693 = arith.truncf %692 : vector<16x16xf32> to vector<16x16xbf16>
    %694 = arith.truncf %678 : vector<16x8xf32> to vector<16x8xbf16>
    %cst_197 = arith.constant dense<0.000000e+00> : vector<16x8xf32>
    %695 = tpu.matmul %693, %694, %cst_197 {dimension_numbers = #tpu.dot_dimension_numbers<[1], [0], [0], [1], [0, 0, 1, 1], [], []>} : vector<16x16xbf16>, vector<16x8xbf16>, vector<16x8xf32> -> vector<16x8xf32>
    %696 = arith.truncf %695 : vector<16x8xf32> to vector<16x8xbf16>
    %697 = vector.extract_strided_slice %16 {offsets = [6, 0, 0], sizes = [1, 8, 64], strides = [1, 1, 1]} : vector<8x8x64xbf16> to vector<1x8x64xbf16>
    %698 = vector.shape_cast %697 : vector<1x8x64xbf16> to vector<8x64xbf16>
    %cst_198 = arith.constant dense<0.000000e+00> : vector<16x64xf32>
    %699 = tpu.matmul %696, %698, %cst_198 {dimension_numbers = #tpu.dot_dimension_numbers<[1], [0], [0], [1], [0, 0, 1, 1], [], []>} : vector<16x8xbf16>, vector<8x64xbf16>, vector<16x64xf32> -> vector<16x64xf32>
    %700 = arith.addf %657, %699 : vector<16x64xf32>
    %701 = vector.extract_strided_slice %10 {offsets = [7, 0, 0], sizes = [1, 64, 8], strides = [1, 1, 1]} : vector<8x64x8xbf16> to vector<1x64x8xbf16>
    %702 = vector.shape_cast %701 : vector<1x64x8xbf16> to vector<64x8xbf16>
    %cst_199 = arith.constant dense<0.000000e+00> : vector<16x8xf32>
    %703 = tpu.matmul %400, %702, %cst_199 {dimension_numbers = #tpu.dot_dimension_numbers<[1], [0], [0], [1], [0, 0, 1, 1], [], []>} : vector<16x64xbf16>, vector<64x8xbf16>, vector<16x8xf32> -> vector<16x8xf32>
    %704 = vector.extract_strided_slice %11 {offsets = [7, 0, 0], sizes = [1, 1, 8], strides = [1, 1, 1]} : vector<8x1x8xf32> to vector<1x1x8xf32>
    %705 = vector.shape_cast %704 : vector<1x1x8xf32> to vector<1x8xf32>
    %706 = vector.broadcast %705 : vector<1x8xf32> to vector<16x8xf32>
    %707 = arith.addf %703, %706 : vector<16x8xf32>
    %708 = vector.extract_strided_slice %12 {offsets = [7, 0, 0], sizes = [1, 64, 8], strides = [1, 1, 1]} : vector<8x64x8xbf16> to vector<1x64x8xbf16>
    %709 = vector.shape_cast %708 : vector<1x64x8xbf16> to vector<64x8xbf16>
    %cst_200 = arith.constant dense<0.000000e+00> : vector<16x8xf32>
    %710 = tpu.matmul %400, %709, %cst_200 {dimension_numbers = #tpu.dot_dimension_numbers<[1], [0], [0], [1], [0, 0, 1, 1], [], []>} : vector<16x64xbf16>, vector<64x8xbf16>, vector<16x8xf32> -> vector<16x8xf32>
    %711 = vector.extract_strided_slice %13 {offsets = [7, 0, 0], sizes = [1, 1, 8], strides = [1, 1, 1]} : vector<8x1x8xf32> to vector<1x1x8xf32>
    %712 = vector.shape_cast %711 : vector<1x1x8xf32> to vector<1x8xf32>
    %713 = vector.broadcast %712 : vector<1x8xf32> to vector<16x8xf32>
    %714 = arith.addf %710, %713 : vector<16x8xf32>
    %715 = vector.extract_strided_slice %14 {offsets = [7, 0, 0], sizes = [1, 64, 8], strides = [1, 1, 1]} : vector<8x64x8xbf16> to vector<1x64x8xbf16>
    %716 = vector.shape_cast %715 : vector<1x64x8xbf16> to vector<64x8xbf16>
    %cst_201 = arith.constant dense<0.000000e+00> : vector<16x8xf32>
    %717 = tpu.matmul %400, %716, %cst_201 {dimension_numbers = #tpu.dot_dimension_numbers<[1], [0], [0], [1], [0, 0, 1, 1], [], []>} : vector<16x64xbf16>, vector<64x8xbf16>, vector<16x8xf32> -> vector<16x8xf32>
    %718 = vector.extract_strided_slice %15 {offsets = [7, 0, 0], sizes = [1, 1, 8], strides = [1, 1, 1]} : vector<8x1x8xf32> to vector<1x1x8xf32>
    %719 = vector.shape_cast %718 : vector<1x1x8xf32> to vector<1x8xf32>
    %720 = vector.broadcast %719 : vector<1x8xf32> to vector<16x8xf32>
    %721 = arith.addf %717, %720 : vector<16x8xf32>
    %722 = arith.truncf %707 : vector<16x8xf32> to vector<16x8xbf16>
    %723 = arith.truncf %714 : vector<16x8xf32> to vector<16x8xbf16>
    %cst_202 = arith.constant dense<0.000000e+00> : vector<16x16xf32>
    %724 = tpu.matmul %722, %723, %cst_202 {dimension_numbers = #tpu.dot_dimension_numbers<[1], [1], [0], [0], [0, 0, 1, 0], [], []>} : vector<16x8xbf16>, vector<16x8xbf16>, vector<16x16xf32> -> vector<16x16xf32>
    %725 = arith.addf %724, %32 : vector<16x16xf32>
    %cst_203 = arith.constant dense<0xFF800000> : vector<16xf32>
    %726 = vector.multi_reduction <maximumf>, %725, %cst_203 [1] : vector<16x16xf32> to vector<16xf32>
    %727 = vector.shape_cast %726 : vector<16xf32> to vector<16x1xf32>
    %728 = vector.broadcast %727 : vector<16x1xf32> to vector<16x16xf32>
    %729 = arith.subf %725, %728 : vector<16x16xf32>
    %730 = math.exp %729 : vector<16x16xf32>
    %cst_204 = arith.constant dense<0.000000e+00> : vector<16xf32>
    %731 = vector.multi_reduction <add>, %730, %cst_204 [1] : vector<16x16xf32> to vector<16xf32>
    %732 = vector.shape_cast %731 : vector<16xf32> to vector<16x1xf32>
    %733 = tpu.reciprocal %732 {approx = true} : vector<16x1xf32> -> vector<16x1xf32>
    %734 = vector.broadcast %733 : vector<16x1xf32> to vector<16x16xf32>
    %735 = arith.mulf %730, %734 : vector<16x16xf32>
    %736 = arith.truncf %735 : vector<16x16xf32> to vector<16x16xbf16>
    %737 = arith.truncf %721 : vector<16x8xf32> to vector<16x8xbf16>
    %cst_205 = arith.constant dense<0.000000e+00> : vector<16x8xf32>
    %738 = tpu.matmul %736, %737, %cst_205 {dimension_numbers = #tpu.dot_dimension_numbers<[1], [0], [0], [1], [0, 0, 1, 1], [], []>} : vector<16x16xbf16>, vector<16x8xbf16>, vector<16x8xf32> -> vector<16x8xf32>
    %739 = arith.truncf %738 : vector<16x8xf32> to vector<16x8xbf16>
    %740 = vector.extract_strided_slice %16 {offsets = [7, 0, 0], sizes = [1, 8, 64], strides = [1, 1, 1]} : vector<8x8x64xbf16> to vector<1x8x64xbf16>
    %741 = vector.shape_cast %740 : vector<1x8x64xbf16> to vector<8x64xbf16>
    %cst_206 = arith.constant dense<0.000000e+00> : vector<16x64xf32>
    %742 = tpu.matmul %739, %741, %cst_206 {dimension_numbers = #tpu.dot_dimension_numbers<[1], [0], [0], [1], [0, 0, 1, 1], [], []>} : vector<16x8xbf16>, vector<8x64xbf16>, vector<16x64xf32> -> vector<16x64xf32>
    %743 = arith.addf %700, %742 : vector<16x64xf32>
    %744 = vector.broadcast %17 : vector<1x64xf32> to vector<16x64xf32>
    %745 = arith.addf %743, %744 : vector<16x64xf32>
    %746 = arith.addf %399, %745 : vector<16x64xf32>
    %cst_207 = arith.constant dense<0.000000e+00> : vector<16xf32>
    %747 = vector.multi_reduction <add>, %746, %cst_207 [1] : vector<16x64xf32> to vector<16xf32>
    %748 = vector.shape_cast %747 : vector<16xf32> to vector<16x1xf32>
    %cst_208 = arith.constant 6.400000e+01 : f32
    %749 = vector.broadcast %cst_208 : f32 to vector<16x1xf32>
    %750 = arith.divf %748, %749 : vector<16x1xf32>
    %751 = vector.broadcast %750 : vector<16x1xf32> to vector<16x64xf32>
    %752 = arith.subf %746, %751 : vector<16x64xf32>
    %753 = arith.mulf %752, %752 : vector<16x64xf32>
    %cst_209 = arith.constant dense<0.000000e+00> : vector<16xf32>
    %754 = vector.multi_reduction <add>, %753, %cst_209 [1] : vector<16x64xf32> to vector<16xf32>
    %755 = vector.shape_cast %754 : vector<16xf32> to vector<16x1xf32>
    %cst_210 = arith.constant 6.400000e+01 : f32
    %756 = vector.broadcast %cst_210 : f32 to vector<16x1xf32>
    %757 = arith.divf %755, %756 : vector<16x1xf32>
    %cst_211 = arith.constant 9.99999974E-6 : f32
    %758 = vector.broadcast %cst_211 : f32 to vector<16x1xf32>
    %759 = arith.addf %757, %758 : vector<16x1xf32>
    %760 = math.rsqrt %759 : vector<16x1xf32>
    %761 = vector.broadcast %760 : vector<16x1xf32> to vector<16x64xf32>
    %762 = arith.mulf %752, %761 : vector<16x64xf32>
    %763 = vector.broadcast %18 : vector<1x64xf32> to vector<16x64xf32>
    %764 = arith.mulf %762, %763 : vector<16x64xf32>
    %765 = vector.broadcast %19 : vector<1x64xf32> to vector<16x64xf32>
    %766 = arith.addf %764, %765 : vector<16x64xf32>
    %767 = arith.truncf %766 : vector<16x64xf32> to vector<16x64xbf16>
    %cst_212 = arith.constant dense<0.000000e+00> : vector<16x2048xf32>
    %768 = tpu.matmul %767, %20, %cst_212 {dimension_numbers = #tpu.dot_dimension_numbers<[1], [0], [0], [1], [0, 0, 1, 1], [], []>} : vector<16x64xbf16>, vector<64x2048xbf16>, vector<16x2048xf32> -> vector<16x2048xf32>
    %769 = vector.broadcast %21 : vector<1x2048xf32> to vector<16x2048xf32>
    %770 = arith.addf %768, %769 : vector<16x2048xf32>
    %cst_213 = arith.constant 0.000000e+00 : f32
    %771 = vector.broadcast %cst_213 : f32 to vector<16x2048xf32>
    %772 = arith.maximumf %770, %771 : vector<16x2048xf32>
    %773 = arith.truncf %772 : vector<16x2048xf32> to vector<16x2048xbf16>
    %cst_214 = arith.constant dense<0.000000e+00> : vector<16x64xf32>
    %774 = tpu.matmul %773, %22, %cst_214 {dimension_numbers = #tpu.dot_dimension_numbers<[1], [0], [0], [1], [0, 0, 1, 1], [], []>} : vector<16x2048xbf16>, vector<2048x64xbf16>, vector<16x64xf32> -> vector<16x64xf32>
    %775 = vector.broadcast %23 : vector<1x64xf32> to vector<16x64xf32>
    %776 = arith.addf %774, %775 : vector<16x64xf32>
    %777 = arith.addf %766, %776 : vector<16x64xf32>
    %cst_215 = arith.constant dense<0.000000e+00> : vector<16xf32>
    %778 = vector.multi_reduction <add>, %777, %cst_215 [1] : vector<16x64xf32> to vector<16xf32>
    %779 = vector.shape_cast %778 : vector<16xf32> to vector<16x1xf32>
    %cst_216 = arith.constant 6.400000e+01 : f32
    %780 = vector.broadcast %cst_216 : f32 to vector<16x1xf32>
    %781 = arith.divf %779, %780 : vector<16x1xf32>
    %782 = vector.broadcast %781 : vector<16x1xf32> to vector<16x64xf32>
    %783 = arith.subf %777, %782 : vector<16x64xf32>
    %784 = arith.mulf %783, %783 : vector<16x64xf32>
    %cst_217 = arith.constant dense<0.000000e+00> : vector<16xf32>
    %785 = vector.multi_reduction <add>, %784, %cst_217 [1] : vector<16x64xf32> to vector<16xf32>
    %786 = vector.shape_cast %785 : vector<16xf32> to vector<16x1xf32>
    %cst_218 = arith.constant 6.400000e+01 : f32
    %787 = vector.broadcast %cst_218 : f32 to vector<16x1xf32>
    %788 = arith.divf %786, %787 : vector<16x1xf32>
    %cst_219 = arith.constant 9.99999974E-6 : f32
    %789 = vector.broadcast %cst_219 : f32 to vector<16x1xf32>
    %790 = arith.addf %788, %789 : vector<16x1xf32>
    %791 = math.rsqrt %790 : vector<16x1xf32>
    %792 = vector.broadcast %791 : vector<16x1xf32> to vector<16x64xf32>
    %793 = arith.mulf %783, %792 : vector<16x64xf32>
    %794 = vector.broadcast %24 : vector<1x64xf32> to vector<16x64xf32>
    %795 = arith.mulf %793, %794 : vector<16x64xf32>
    %796 = vector.broadcast %25 : vector<1x64xf32> to vector<16x64xf32>
    %797 = arith.addf %795, %796 : vector<16x64xf32>
    %798 = vector.shape_cast %797 : vector<16x64xf32> to vector<2x8x64xf32>
    %c0_220 = arith.constant 0 : index
    %c0_221 = arith.constant 0 : index
    %c0_222 = arith.constant 0 : index
    %799 = vector.load %arg30[%c0_220, %c0_221, %c0_222] : memref<2x8x64xf32, #tpu.memory_space<vmem>>, vector<2x8x64xf32>
    tpu.vector_store %arg30[%c0_220, %c0_221, %c0_222], %798 {strides = array<i32>} : memref<2x8x64xf32, #tpu.memory_space<vmem>>, vector<2x8x64xf32>,
    return
  }
}

module attributes {stable_mosaic.version = 11 : i64} {
  func.func @_pool_classify_kernel(%arg0: memref<2x8x64xf32, #tpu.memory_space<vmem>>, %arg1: memref<64x128xbf16, #tpu.memory_space<vmem>>, %arg2: memref<1x128xf32, #tpu.memory_space<vmem>>, %arg3: memref<2x128xf32, #tpu.memory_space<vmem>>) attributes {dimension_semantics = [], scalar_prefetch = 0 : i64, scratch_operands = 0 : i64, tpu.core_type = #tpu.core_type<tc>} {
    %c0 = arith.constant 0 : index
    %c0_0 = arith.constant 0 : index
    %c0_1 = arith.constant 0 : index
    %0 = vector.load %arg0[%c0, %c0_0, %c0_1] : memref<2x8x64xf32, #tpu.memory_space<vmem>>, vector<2x8x64xf32>
    %cst = arith.constant dense<0.000000e+00> : vector<2x64xf32>
    %1 = vector.multi_reduction <add>, %0, %cst [1] : vector<2x8x64xf32> to vector<2x64xf32>
    %cst_2 = arith.constant 8.000000e+00 : f32
    %2 = vector.broadcast %cst_2 : f32 to vector<2x64xf32>
    %3 = arith.divf %1, %2 : vector<2x64xf32>
    %4 = arith.truncf %3 : vector<2x64xf32> to vector<2x64xbf16>
    %c0_3 = arith.constant 0 : index
    %c0_4 = arith.constant 0 : index
    %5 = vector.load %arg1[%c0_3, %c0_4] : memref<64x128xbf16, #tpu.memory_space<vmem>>, vector<64x128xbf16>
    %cst_5 = arith.constant dense<0.000000e+00> : vector<2x128xf32>
    %6 = tpu.matmul %4, %5, %cst_5 {dimension_numbers = #tpu.dot_dimension_numbers<[1], [0], [0], [1], [0, 0, 1, 1], [], []>} : vector<2x64xbf16>, vector<64x128xbf16>, vector<2x128xf32> -> vector<2x128xf32>
    %c0_6 = arith.constant 0 : index
    %c0_7 = arith.constant 0 : index
    %7 = vector.load %arg2[%c0_6, %c0_7] : memref<1x128xf32, #tpu.memory_space<vmem>>, vector<1x128xf32>
    %8 = vector.broadcast %7 : vector<1x128xf32> to vector<2x128xf32>
    %9 = arith.addf %6, %8 : vector<2x128xf32>
    %c0_8 = arith.constant 0 : index
    %c0_9 = arith.constant 0 : index
    %10 = vector.load %arg3[%c0_8, %c0_9] : memref<2x128xf32, #tpu.memory_space<vmem>>, vector<2x128xf32>
    tpu.vector_store %arg3[%c0_8, %c0_9], %9 {strides = array<i32>} : memref<2x128xf32, #tpu.memory_space<vmem>>, vector<2x128xf32>,
    return
  }
}

</mosaic_0001>

<bundles_post_ra>
// kernel: perceiver_forward.4
= control target key start
LH: loop header
LB: loop body
LE: loop exit
PB: predicated region body
PF: predicated region fallthrough
CT: control target
= control target key end

     0   :  { %vm41_vm0 = vcmask 261120   ;;  %vm67_vm1 = vcmask 523264   ;;  %s144_s1 = inlined_call_operand.vmem [shape: bf16[32,64], index: 1, kind: input, shape index: {}]   ;;  %s145_s0 = inlined_call_operand.vmem [shape: f32[32,32], index: 0, kind: input, shape index: {}]   ;;  %s146_s2 = inlined_call_operand.vmem [shape: f32[1,64], index: 2, kind: input, shape index: {}]   ;;  %s147_s3 = inlined_call_operand.vmem [shape: f32[32,64], index: 3, kind: output, shape index: {}]  }
   0x1   :  { %v87_v0 = vld [vmem:[%s144_s1 + $0x8] sm:$0xff]  ;;  %v86_v1 = vld [vmem:[%s144_s1] sm:$0xff]  ;;  %v17_v4 = vld [vmem:[%s145_s0 + $0x10] sm:$0xff] }
   0x2   :  { %v15_v2 = vld [vmem:[%s145_s0] sm:$0xff]  ;;  %v16_v3 = vld [vmem:[%s145_s0 + $0x8] sm:$0xff]  ;;  %54 = vmatpush.bf16.msra.mxu0 %v87_v0  ;;  %88 = vmatpush.bf16.msra.mxu1 %v87_v0  ;;  %v18_v5 = vld [vmem:[%s145_s0 + $0x18] sm:$0xff] }
   0x3   :  { %v19_v6 = vpack.c.bf16 %v16_v3, %v15_v2  ;;  %v20_v7 = vpack.c.bf16 %v18_v5, %v17_v4  ;;  %v90_v8 = vld [vmem:[%s146_s2] ss:$0 sm:$0xff] }
   0x6   :  { %55 = vmatpush.bf16.msra.mxu0 %v86_v1  ;;  %89 = vmatpush.bf16.msra.mxu1 %v86_v1 }
   0x9   :  { %84 = vmatmul.msk.bf16.vlgmr.msra.gmra.mxu0 %vm41_vm0, %v19_v6  ;;  %85 = vmatmul.msk.bf16.vlgmr.msra.gmra.mxu1 %vm41_vm0, %v20_v7 }
  0x86   :  { %v57_v9 = vpop.f32.mrf.mxu0  ;;  %v62_v10 = vpop.f32.mrf.mxu1 }
  0x87   :  { %v58_v11 = vadd.f32 %v90_v8, %v57_v9  ;;  %v63_v12 = vadd.f32 %v90_v8, %v62_v10 }
  0x89   :  { %68 = vst.msk [vmem:[%s147_s3] sm:$0xff] %vm67_vm1, %v58_v11 }
  0x8a   :  { %70 = vst.msk [vmem:[%s147_s3 + $0x10] sm:$0xff] %vm67_vm1, %v63_v12 }
  0x8e   :  { %v59_v13 = vpop.f32.mrf.mxu0  ;;  %v64_v14 = vpop.f32.mrf.mxu1 }
  0x8f   :  { %v60_v15 = vadd.f32 %v90_v8, %v59_v13  ;;  %v65_v16 = vadd.f32 %v90_v8, %v64_v14 }
  0x91   :  { %69 = vst.msk [vmem:[%s147_s3 + $0x8] sm:$0xff] %vm67_vm1, %v60_v15 }
  0x92   :  { %71 = vst.msk [vmem:[%s147_s3 + $0x18] sm:$0xff] %vm67_vm1, %v65_v16 }

// kernel: perceiver_forward.7
= control target key start
LH: loop header
LB: loop body
LE: loop exit
PB: predicated region body
PF: predicated region fallthrough
CT: control target
= control target key end

     0   :  { %vm18_vm0 = vcmask 523264   ;;  %v172_v3 = vmov 8.0   ;;  %s221_s0 = inlined_call_operand.vmem [shape: f32[2,8,64], index: 0, kind: input, shape index: {}]   ;;  %s222_s1 = inlined_call_operand.vmem [shape: bf16[64,128], index: 1, kind: input, shape index: {}]   ;;  %s223_s2 = inlined_call_operand.vmem [shape: f32[1,128], index: 2, kind: input, shape index: {}]   ;;  %s224_s3 = inlined_call_operand.hbm [shape: f32[2,128], index: 3, kind: output, shape index: {}]  }
   0x1   :  { %v140_v0 = vld [vmem:[%s222_s1 + $0x18] sm:$0xff]  ;;  %v16_v1 = vld [vmem:[%s221_s0] sm:$0xff]  ;;  %v17_v2 = vld [vmem:[%s221_s0 + $0x8] sm:$0xff]  ;;  %144 = vrcp.f32 %v172_v3 }
   0x2   :  { %94 = vmatpush.bf16.msra.mxu0 %v140_v0  ;;  %v139_v4 = vld [vmem:[%s222_s1 + $0x10] sm:$0xff]  ;;  %v19_v5 = vsel %vm18_vm0, %v16_v1, 0.0  ;;  %v26_v6 = vsel %vm18_vm0, %v17_v2, 0.0 }
   0x3   :  { %v20_v7 = vrot.slane %v19_v5, 4  ;;  %v27_v8 = vrot.slane %v26_v6, 4 }
   0x4   :  { %8 = vsyncpa [#allocation3], 0  ;;  %v138_v11 = vld [vmem:[%s222_s1 + $0x8] sm:$0xff]  ;;  %v137_v18 = vld [vmem:[%s222_s1] sm:$0xff]  ;;  %vm60_vm2 = vcmask 1041409   ;;  %s173_s24 = smov [#allocation2]  }
   0x5   :  { %v21_v9 = vadd.f32 %v20_v7, %v19_v5  ;;  %v28_v10 = vadd.f32 %v27_v8, %v26_v6  ;;  %v143_v35 = vld [vmem:[%s223_s2] ss:$0 sm:$0xff]  ;;  %s109_s25 = sshll.u32 %s173_s24, 4  ;;  %s111_s28 = sshll.u32 %s224_s3, 4  ;;  %s110_s25 = int_to_ptr.vmem [resolvable:$true] %s109_s25  ;;  %s112_s28 = int_to_ptr.hbm [resolvable:$true] %s111_s28 }
   0x6   :  { %95 = vmatpush.bf16.msra.mxu0 %v139_v4 }
   0x7   :  { %v145_v12 = vpop.eup %144  ;;  %v22_v13 = vrot.slane %v21_v9, 2  ;;  %v29_v14 = vrot.slane %v28_v10, 2 }
   0x8   :  { %v34_v15 = vmul.f32 8.0, %v145_v12  ;;  %vm38_vm1 = vweird.f32 %v145_v12 }
   0x9   :  { %v23_v16 = vadd.f32 %v22_v13, %v21_v9  ;;  %v30_v17 = vadd.f32 %v29_v14, %v28_v10 }
   0xa   :  { %96 = vmatpush.bf16.msra.mxu0 %v138_v11  ;;  %v35_v19 = vsub.f32 1.0, %v34_v15 }
   0xb   :  { %v24_v20 = vrot.slane %v23_v16, 1  ;;  %v31_v21 = vrot.slane %v30_v17, 1 }
   0xc   :  { %v36_v22 = vmul.f32 %v145_v12, %v35_v19 }
   0xd   :  { %v25_v23 = vadd.f32 %v24_v20, %v23_v16  ;;  %v32_v24 = vadd.f32 %v31_v21, %v30_v17 }
   0xe   :  { %97 = vmatpush.bf16.msra.mxu0 %v137_v18  ;;  %v37_v25 = vadd.f32 %v145_v12, %v36_v22 }
  0x10   :  { %v39_v26 = vsel %vm38_vm1, %v145_v12, %v37_v25 }
  0x11   :  { %v40_v27 = vmul.f32 %v39_v26, %v25_v23  ;;  %v41_v28 = vmul.f32 %v39_v26, %v32_v24 }
  0x13   :  { %v42_v29 = vpack.c.bf16 %v40_v27, %v40_v27  ;;  %v43_v30 = vpack.c.bf16 %v41_v28, %v41_v28 }
  0x15   :  { %v58_v31 = vunpack.c.l.b16 %v42_v29  ;;  %v59_v32 = vunpack.c.l.b16 %v43_v30 }
  0x17   :  { %v61_v33 = vsel %vm60_vm2, %v59_v32, %v58_v31 }
  0x18   :  { %v62_v34 = vpack.c.b16 %v61_v33, %v61_v33 }
  0x1a   :  { %136 = vmatmul.msk.bf16.vlgmr.msra.gmra.mxu0 %vm18_vm0, %v62_v34 }
  0x97   :  { %v99_v36 = vpop.f32.mrf.mxu0 }
  0x98   :  { %v100_v37 = vadd.f32 %v143_v35, %v99_v36 }
  0x9a   :  { %103 = vst [vmem:[#allocation2] sm:$0x3] %v100_v37 }
  0x9b   :  { %114 = dma.vmem_to_hbm [thread:$0]  %s110_s25, 32, %s112_s28, [#allocation3]  }
  0x9f   :  { %v101_v38 = vpop.f32.mrf.mxu0 }
  0xa0   :  { %170 = dma.done.wait [#allocation3], 32  }
  0xa1   :  { %171 = vsyncadd [#allocation3], 4294967264 }
  0xa2   :  { %119 = vsyncpa [#allocation3], 1 }

// kernel: perceiver_forward.5
= control target key start
LH: loop header
LB: loop body
LE: loop exit
PB: predicated region body
PF: predicated region fallthrough
CT: control target
= control target key end

     0   :  { %s8523_s3 = smov 6   ;;  %s8524_s7 = smov 4   ;;  %vm946_vm0 = vcmask 523264   ;;  %vm1065_vm1 = vcmask 64512   ;;  %vm1089_vm2 = vcmask 261120   ;;  %vm1338_vm3 = vcmask 1043456   ;;  %s9782_s0 = inlined_call_operand.smem [shape: u32[31], index: -1, kind: input, shape index: {}] }
   0x1   :  { %s8562_s6 = sld [smem:[%s9782_s0 + %s8523_s3]]   ;;  %s8525_s11 = smov 7   ;;  %vm2937_vm11 = vcmask 130048  }
   0x2   :  { %s8567_s10 = sld [smem:[%s9782_s0 + %s8524_s7]]   ;;  %s8526_s15 = smov 1  }
   0x3   :  { %s8572_s14 = sld [smem:[%s9782_s0 + %s8525_s11]]   ;;  %s8527_s22 = smov 5  }
   0x4   :  { %s6209_s18 = sld [smem:[%s9782_s0 + %s8526_s15]]   ;;  %s8528_s26 = smov 8  }
   0x5   :  { %s8584_s21 = sld [smem:[%s9782_s0]]   ;;  %s8529_s30 = smov 2  }
   0x6   :  { %s8605_s25 = sld [smem:[%s9782_s0 + %s8527_s22]]   ;;  %s8530_s4 = smov 9  }
   0x7   :  { %v7938_v0 = vld [vmem:[%s8562_s6 + $0x18] sm:$0xff]  ;;  %v7937_v1 = vld [vmem:[%s8562_s6 + $0x10] sm:$0xff]  ;;  %v7936_v4 = vld [vmem:[%s8562_s6 + $0x8] sm:$0xff]  ;;  %s8617_s29 = sld [smem:[%s9782_s0 + %s8528_s26]]   ;;  %s8531_s9 = smov 10  }
   0x8   :  { %1001 = vmatpush.bf16.msra.mxu1 %v7938_v0  ;;  %v7906_v2 = vld [vmem:[%s8567_s10 + $0x18] sm:$0xff]  ;;  %v7905_v3 = vld [vmem:[%s8567_s10 + $0x10] sm:$0xff]  ;;  %v7904_v5 = vld [vmem:[%s8567_s10 + $0x8] sm:$0xff]  ;;  %s8625_s3 = sld [smem:[%s9782_s0 + %s8529_s30]]   ;;  %s8533_s16 = smov 12  }
   0x9   :  { %954 = vmatpush.bf16.msra.mxu0 %v7906_v2  ;;  %v7935_v6 = vld [vmem:[%s8562_s6] sm:$0xff]  ;;  %s8645_s8 = sld [smem:[%s9782_s0 + %s8530_s4]]   ;;  %s8534_s20 = smov 13  }
   0xa   :  { %v908_v7 = vld [vmem:[%s6209_s18] sm:$0xff]  ;;  %v909_v8 = vld [vmem:[%s6209_s18 + $0x8] sm:$0xff]  ;;  %v910_v14 = vld [vmem:[%s6209_s18 + $0x10] sm:$0xff]  ;;  %s8706_s13 = sld [smem:[%s9782_s0 + %s8531_s9]]   ;;  %s8537_s28 = smov 14  }
   0xb   :  { %v7903_v9 = vld [vmem:[%s8567_s10] sm:$0xff]  ;;  %v907_v11 = vld [vmem:[%s8584_s21 + $0x8] sm:$0xff]  ;;  %v8592_v12 = vpack.c.bf16 %v909_v8, %v908_v7  ;;  %v911_v15 = vld [vmem:[%s6209_s18 + $0x18] sm:$0xff]  ;;  %s8987_s19 = sld [smem:[%s9782_s0 + %s8533_s16]]   ;;  %s8538_s2 = smov 16  }
   0xc   :  { %1002 = vmatpush.bf16.msra.mxu1 %v7937_v1  ;;  %v906_v10 = vld [vmem:[%s8584_s21] sm:$0xff]  ;;  %v8600_v16 = vpack.c.bf16 %v911_v15, %v910_v14  ;;  %v7940_v7 = vld [vmem:[%s8562_s6 + $0x28] sm:$0xff]  ;;  %s8993_s24 = sld [smem:[%s9782_s0 + %s8534_s20]]   ;;  %s8539_s7 = smov 18  }
   0xd   :  { %955 = vmatpush.bf16.msra.mxu0 %v7905_v3  ;;  %v8594_v13 = vpack.c.bf16 %v907_v11, %v906_v10  ;;  %v8318_v20 = vld [vmem:[%s8572_s14] ss:$0 sm:$0xff]  ;;  %v7970_v36 = vld [vmem:[%s8617_s29 + $0x18] sm:$0xff]  ;;  %v7969_v37 = vld [vmem:[%s8617_s29 + $0x10] sm:$0xff]  ;;  %s9018_s1 = sld [smem:[%s9782_s0 + %s8537_s28]]   ;;  %s8540_s12 = smov 17  }
   0xe   :  { %v8319_v30 = vld [vmem:[%s8605_s25] ss:$0 sm:$0xff]  ;;  %1047 = vmatpush.bf16.msra.mxu2 %v7970_v36  ;;  %v7968_v38 = vld [vmem:[%s8617_s29 + $0x8] sm:$0xff]  ;;  %v7910_v10 = vld [vmem:[%s8567_s10 + $0x38] sm:$0xff]  ;;  %s9023_s5 = sld [smem:[%s9782_s0 + %s8538_s2]]   ;;  %s8542_s18 = smov 3  }
   0xf   :  { %v7967_v39 = vld [vmem:[%s8617_s29] sm:$0xff]  ;;  %v8636_v44 = vld [vmem:[%s8625_s3 + $0x8] sm:$0xff]  ;;  %v7909_v11 = vld [vmem:[%s8567_s10 + $0x30] sm:$0xff]  ;;  %s9028_s11 = sld [smem:[%s9782_s0 + %s8539_s7]]   ;;  %s8543_s23 = smov 20  }
  0x10   :  { %1003 = vmatpush.bf16.msra.mxu1 %v7936_v4  ;;  %v8631_v40 = vld [vmem:[%s8625_s3] sm:$0xff]  ;;  %v7908_v15 = vld [vmem:[%s8567_s10 + $0x28] sm:$0xff]  ;;  %s9100_s22 = sld [smem:[%s9782_s0 + %s8542_s18]]   ;;  %s8544_s26 = smov 21  }
  0x11   :  { %956 = vmatpush.bf16.msra.mxu0 %v7904_v5  ;;  %v8320_v61 = vld [vmem:[%s8645_s8] ss:$0 sm:$0xff]  ;;  %v7942_v5 = vld [vmem:[%s8562_s6 + $0x38] sm:$0xff]  ;;  %s8545_s30 = smov 22   ;;  %s8546_s4 = smov 23  }
  0x12   :  { %1048 = vmatpush.bf16.msra.mxu2 %v7969_v37  ;;  %v7939_v8 = vld [vmem:[%s8562_s6 + $0x20] sm:$0xff]  ;;  %s8547_s9 = smov 24   ;;  %s8549_s16 = smov 27  }
  0x13   :  { %s8550_s20 = smov 25   ;;  %s8552_s28 = smov 29  }
  0x14   :  { %1004 = vmatpush.bf16.msra.mxu1 %v7935_v6  ;;  %v7941_v6 = vld [vmem:[%s8562_s6 + $0x30] sm:$0xff]  ;;  %s8553_s2 = smov 30  }
  0x15   :  { %957 = vmatpush.bf16.msra.mxu0 %v7903_v9 }
  0x16   :  { %1049 = vmatpush.bf16.msra.mxu2 %v7968_v38  ;;  %v8322_v38 = vld [vmem:[%s8605_s25 + $0x1] ss:$0 sm:$0xff] }
  0x17   :  { %6272 = vmatmul.msk.bf16.vlgmr.msra.gmra.mxu1 %vm946_vm0, %v8592_v12 }
  0x18   :  { %6255 = vmatmul.msk.bf16.vlgmr.msra.gmra.mxu0 %vm946_vm0, %v8594_v13 }
  0x1a   :  { %1050 = vmatpush.bf16.msra.mxu2 %v7967_v39 }
  0x1d   :  { %6290 = vmatmul.msk.bf16.vlgmr.msra.gmra.mxu2 %vm946_vm0, %v8592_v12 }
  0x27   :  { %6273 = vmatmul.msk.bf16.gmra.mxu1 %vm946_vm0, %v8600_v16 }
  0x2d   :  { %6291 = vmatmul.msk.bf16.gmra.mxu2 %vm946_vm0, %v8600_v16 }
  0x94   :  { %v1006_v17 = vpop.f32.mrf.mxu1 }
  0x95   :  { %v959_v24 = vpop.f32.mrf.mxu0  ;;  %v1007_v28 = vadd.f32 %v8318_v20, %v1006_v17 }
  0x96   :  { %v960_v33 = vadd.f32 %v8319_v30, %v959_v24 }
  0x9c   :  { %v1008_v18 = vpop.f32.mrf.mxu1 }
  0x9d   :  { %v1009_v26 = vadd.f32 %v8318_v20, %v1008_v18  ;;  %v961_v31 = vpop.f32.mrf.mxu0 }
  0x9e   :  { %v962_v34 = vadd.f32 %v8319_v30, %v961_v31 }
  0x9f   :  { %v1063_v29 = vpack.c.bf16 %v1009_v26, %v1007_v28  ;;  %v8321_v28 = vld [vmem:[%s8572_s14 + $0x1] ss:$0 sm:$0xff] }
  0xa0   :  { %v1062_v35 = vpack.c.bf16 %v962_v34, %v960_v33  ;;  %v1052_v53 = vpop.f32.mrf.mxu2 }
  0xa1   :  { %v1070_v32 = vsel %vm1065_vm1, %v1063_v29, 0  ;;  %v1053_v0 = vadd.f32 %v8320_v61, %v1052_v53 }
  0xa4   :  { %v1011_v19 = vpop.f32.mrf.mxu1 }
  0xa5   :  { %v1012_v22 = vadd.f32 %v8318_v20, %v1011_v19 }
  0xa8   :  { %v1054_v57 = vpop.f32.mrf.mxu2 }
  0xa9   :  { %v1055_v1 = vadd.f32 %v8320_v61, %v1054_v57 }
  0xab   :  { %v1113_v4 = vpack.c.bf16 %v1055_v1, %v1053_v0 }
  0xac   :  { %v1013_v21 = vpop.f32.mrf.mxu1 }
  0xad   :  { %v1014_v23 = vadd.f32 %v8318_v20, %v1013_v21  ;;  %v7907_v21 = vld [vmem:[%s8567_s10 + $0x20] sm:$0xff] }
  0xaf   :  { %v1064_v25 = vpack.c.bf16 %v1014_v23, %v1012_v22 }
  0xb0   :  { %v1057_v60 = vpop.f32.mrf.mxu2 }
  0xb1   :  { %v1073_v27 = vsel %vm1065_vm1, %v1064_v25, 0  ;;  %v1058_v62 = vadd.f32 %v8320_v61, %v1057_v60  ;;  %v7914_v60 = vld [vmem:[%s8567_s10 + $0x58] sm:$0xff] }
  0xb2   :  { %1081 = vmatpush.bf16.xpose.msra.mxu3 %v1073_v27 }
  0xb8   :  { %v1059_v63 = vpop.f32.mrf.mxu2 }
  0xb9   :  { %v1060_v2 = vadd.f32 %v8320_v61, %v1059_v63  ;;  %v7913_v61 = vld [vmem:[%s8567_s10 + $0x50] sm:$0xff]  ;;  %v7911_v63 = vld [vmem:[%s8567_s10 + $0x40] sm:$0xff] }
  0xba   :  { %1082 = vmatpush.bf16.xpose.msra.mxu3 %v1070_v32 }
  0xbb   :  { %v1114_v3 = vpack.c.bf16 %v1060_v2, %v1058_v62  ;;  %v7912_v62 = vld [vmem:[%s8567_s10 + $0x48] sm:$0xff] }
  0xbd   :  { %1124 = vmatpush.bf16.msrb.mxu0 %v1114_v3 }
  0xc1   :  { %6292 = vmatmul.msk.bf16.vlgmr.msra.gmra.mxu3 %vm1065_vm1, %v1062_v35  ;;  %1125 = vmatpush.bf16.msrb.mxu0 %v1113_v4 }
  0xc2   :  { %1164 = vmatpush.bf16.msrb.mxu3 %v7910_v10 }
  0xc5   :  { %1205 = vmatpush.bf16.msra.mxu0 %v7942_v5 }
  0xc6   :  { %1165 = vmatpush.bf16.msrb.mxu3 %v7909_v11 }
  0xc9   :  { %1206 = vmatpush.bf16.msra.mxu0 %v7941_v6 }
  0xca   :  { %1166 = vmatpush.bf16.msrb.mxu3 %v7908_v15  ;;  %v8323_v15 = vld [vmem:[%s8645_s8 + $0x1] ss:$0 sm:$0xff] }
  0xcd   :  { %1207 = vmatpush.bf16.msra.mxu0 %v7940_v7 }
  0xce   :  { %1167 = vmatpush.bf16.msrb.mxu3 %v7907_v21 }
  0xd1   :  { %1208 = vmatpush.bf16.msra.mxu0 %v7939_v8  ;;  %6310 = vmatmul.msk.bf16.vlgmr.msrb.gmra.mxu3 %vm946_vm0, %v8594_v13 }
 0x144   :  { %v1084_v41 = vpop.f32.mrf.mxu3 }
 0x145   :  { %v1085_v42 = vadd.f32 %v1084_v41, %v8631_v40 }
 0x147   :  { %v1090_v43 = vsel %vm1089_vm2, %v1085_v42, -inf }
 0x148   :  { %1091 = vmax.xlane.f32.xlu0 %v1090_v43 }
 0x14c   :  { %v1086_v45 = vpop.f32.mrf.mxu3 }
 0x14d   :  { %v1087_v46 = vadd.f32 %v1086_v45, %v8636_v44 }
 0x14f   :  { %v1093_v47 = vsel %vm1089_vm2, %v1087_v46, -inf }
 0x150   :  { %1094 = vmax.xlane.f32.xlu0 %v1093_v47  ;;  %v7973_v47 = vld [vmem:[%s8617_s29 + $0x30] sm:$0xff] }
 0x154   :  { %v1169_v32 = vpop.f32.mrf.mxu3 }
 0x15c   :  { %v1171_v39 = vpop.f32.mrf.mxu3 }
 0x15d   :  { %v1172_v43 = vadd.f32 %v8322_v38, %v1171_v39 }
 0x1bb   :  { %v1092_v48 = vpop.xlane.xlu0 %1091 }
 0x1bc   :  { %v1096_v49 = vsub.f32 %v1085_v42, %v1092_v48  ;;  %v1170_v42 = vadd.f32 %v8322_v38, %v1169_v32  ;;  %v7972_v48 = vld [vmem:[%s8617_s29 + $0x28] sm:$0xff] }
 0x1be   :  { %v1098_v50 = vmul.f32 1.442695, %v1096_v49  ;;  %v1266_v45 = vpack.c.bf16 %v1172_v43, %v1170_v42  ;;  %v7971_v49 = vld [vmem:[%s8617_s29 + $0x20] sm:$0xff] }
 0x1c0   :  { %8375 = vpow2.f32 %v1098_v50  ;;  %v7946_v50 = vld [vmem:[%s8562_s6 + $0x58] sm:$0xff] }
 0x1c3   :  { %v1095_v51 = vpop.xlane.xlu0 %1094 }
 0x1c4   :  { %v1097_v52 = vsub.f32 %v1087_v46, %v1095_v51  ;;  %v7974_v46 = vld [vmem:[%s8617_s29 + $0x38] sm:$0xff]  ;;  %v7945_v51 = vld [vmem:[%s8562_s6 + $0x50] sm:$0xff] }
 0x1c5   :  { %1251 = vmatpush.bf16.msrb.mxu1 %v7974_v46 }
 0x1c6   :  { %v8376_v54 = vpop.eup %8375  ;;  %v1100_v55 = vmul.f32 1.442695, %v1097_v52  ;;  %v7944_v52 = vld [vmem:[%s8562_s6 + $0x48] sm:$0xff] }
 0x1c7   :  { %v1102_v56 = vsel %vm1089_vm2, %v8376_v54, 0.0 }
 0x1c8   :  { %8377 = vpow2.f32 %v1100_v55  ;;  %1103 = vadd.xlane.f32.xlu1 %v1102_v56  ;;  %v7943_v56 = vld [vmem:[%s8562_s6 + $0x40] sm:$0xff] }
 0x1c9   :  { %1252 = vmatpush.bf16.msrb.mxu1 %v7973_v47 }
 0x1cd   :  { %1253 = vmatpush.bf16.msrb.mxu1 %v7972_v48 }
 0x1ce   :  { %v8378_v58 = vpop.eup %8377 }
 0x1cf   :  { %v1105_v59 = vsel %vm1089_vm2, %v8378_v58, 0.0 }
 0x1d0   :  { %1106 = vadd.xlane.f32.xlu1 %v1105_v59 }
 0x1d1   :  { %1254 = vmatpush.bf16.msrb.mxu1 %v7971_v49 }
 0x1d4   :  { %6345 = vmatmul.msk.bf16.vlgmr.msrb.gmra.mxu1 %vm946_vm0, %v8592_v12 }
 0x1d5   :  { %1448 = vmatpush.bf16.msra.mxu1 %v7946_v50 }
 0x1d9   :  { %1449 = vmatpush.bf16.msra.mxu1 %v7945_v51 }
 0x1dd   :  { %1450 = vmatpush.bf16.msra.mxu1 %v7944_v52  ;;  %v8325_v52 = vld [vmem:[%s8605_s25 + $0x2] ss:$0 sm:$0xff] }
 0x1e1   :  { %1451 = vmatpush.bf16.msra.mxu1 %v7943_v56 }
 0x1e4   :  { %6346 = vmatmul.msk.bf16.gmra.mxu1 %vm946_vm0, %v8600_v16 }
 0x1f4   :  { %6384 = vmatmul.msk.bf16.vlgmr.msra.gmra.mxu1 %vm946_vm0, %v8592_v12 }
 0x204   :  { %6385 = vmatmul.msk.bf16.gmra.mxu1 %vm946_vm0, %v8600_v16 }
 0x23b   :  { %v1104_v9 = vpop.xlane.xlu1 %1103 }
 0x23c   :  { %8379 = vrcp.f32 %v1104_v9 }
 0x242   :  { %v8380_v17 = vpop.eup %8379 }
 0x243   :  { %v1107_v14 = vpop.xlane.xlu1 %1106  ;;  %v1110_v19 = vmul.f32 %v8380_v17, %v8376_v54 }
 0x244   :  { %8381 = vrcp.f32 %v1107_v14 }
 0x24a   :  { %v8382_v18 = vpop.eup %8381 }
 0x24b   :  { %v1111_v20 = vmul.f32 %v8382_v18, %v8378_v58 }
 0x24d   :  { %v1112_v22 = vpack.c.bf16 %v1111_v20, %v1110_v19 }
 0x24f   :  { %6293 = vmatmul.msk.bf16.vlgmr.msrb.gmra.mxu0 %vm1089_vm2, %v1112_v22 }
 0x250   :  { %1407 = vmatpush.bf16.msrb.mxu0 %v7914_v60 }
 0x251   :  { %v1256_v3 = vpop.f32.mrf.mxu1 }
 0x252   :  { %v1257_v19 = vadd.f32 %v8323_v15, %v1256_v3 }
 0x254   :  { %1408 = vmatpush.bf16.msrb.mxu0 %v7913_v61 }
 0x258   :  { %1409 = vmatpush.bf16.msrb.mxu0 %v7912_v62 }
 0x259   :  { %v1258_v8 = vpop.f32.mrf.mxu1 }
 0x25a   :  { %v1259_v20 = vadd.f32 %v8323_v15, %v1258_v8  ;;  %v7950_v8 = vld [vmem:[%s8562_s6 + $0x78] sm:$0xff] }
 0x25b   :  { %1672 = vmatpush.bf16.msrb.mxu1 %v7950_v8  ;;  %v8328_v8 = vld [vmem:[%s8605_s25 + $0x3] ss:$0 sm:$0xff] }
 0x25c   :  { %1410 = vmatpush.bf16.msrb.mxu0 %v7911_v63  ;;  %v7976_v63 = vld [vmem:[%s8617_s29 + $0x48] sm:$0xff] }
 0x25f   :  { %6327 = vmatmul.msk.bf16.vlgmr.msra.gmra.mxu0 %vm946_vm0, %v8592_v12 }
 0x261   :  { %v1261_v11 = vpop.f32.mrf.mxu1 }
 0x262   :  { %v1262_v17 = vadd.f32 %v8323_v15, %v1261_v11  ;;  %v7948_v11 = vld [vmem:[%s8562_s6 + $0x68] sm:$0xff] }
 0x269   :  { %v1263_v18 = vpop.f32.mrf.mxu1 }
 0x26a   :  { %v1264_v21 = vadd.f32 %v8323_v15, %v1263_v18 }
 0x26c   :  { %v1316_v22 = vpack.c.bf16 %v1264_v21, %v1262_v17 }
 0x26e   :  { %1326 = vmatpush.bf16.msra.mxu3 %v1316_v22 }
 0x26f   :  { %6328 = vmatmul.msk.bf16.gmra.mxu0 %vm946_vm0, %v8600_v16 }
 0x27f   :  { %6367 = vmatmul.msk.bf16.vlgmr.msrb.gmra.mxu0 %vm946_vm0, %v8594_v13 }
 0x2cc   :  { %v8665_v23 = vpop.f32.mrf.mxu0 }
 0x2d4   :  { %v8667_v24 = vpop.f32.mrf.mxu0 }
 0x2d5   :  { %v1132_v51 = vpack.c.bf16 %v8667_v24, %v8665_v23  ;;  %v7978_v23 = vld [vmem:[%s8617_s29 + $0x58] sm:$0xff]  ;;  %v7977_v24 = vld [vmem:[%s8617_s29 + $0x50] sm:$0xff] }
 0x2dc   :  { %v1210_v25 = vpop.f32.mrf.mxu0 }
 0x2dd   :  { %v1211_v36 = vadd.f32 %v8321_v28, %v1210_v25  ;;  %v1315_v25 = vpack.c.bf16 %v1259_v20, %v1257_v19 }
 0x2df   :  { %1327 = vmatpush.bf16.msra.mxu3 %v1315_v25 }
 0x2e4   :  { %v1212_v26 = vpop.f32.mrf.mxu0 }
 0x2e5   :  { %v1213_v34 = vadd.f32 %v8321_v28, %v1212_v26  ;;  %v1453_v26 = vpop.f32.mrf.mxu1 }
 0x2e7   :  { %v1267_v37 = vpack.c.bf16 %v1213_v34, %v1211_v36 }
 0x2e9   :  { %v1273_v41 = vsel %vm1065_vm1, %v1267_v37, 0 }
 0x2ec   :  { %v1215_v27 = vpop.f32.mrf.mxu0 }
 0x2ed   :  { %v1216_v30 = vadd.f32 %v8321_v28, %v1215_v27  ;;  %v343_v27 = vld [vmem:[%s8706_s13] sm:$0xf] }
 0x2f4   :  { %v1217_v29 = vpop.f32.mrf.mxu0 }
 0x2f5   :  { %v1218_v31 = vadd.f32 %v8321_v28, %v1217_v29  ;;  %v1360_v28 = vsel %vm1338_vm3, %v343_v27, 0  ;;  %v1455_v29 = vpop.f32.mrf.mxu1 }
 0x2f6   :  { %1369 = vmatpush.bf16.msrb.mxu3 %v1360_v28 }
 0x2f7   :  { %v1268_v33 = vpack.c.bf16 %v1218_v31, %v1216_v30 }
 0x2f9   :  { %v1276_v35 = vsel %vm1065_vm1, %v1268_v33, 0  ;;  %v8324_v33 = vld [vmem:[%s8572_s14 + $0x2] ss:$0 sm:$0xff] }
 0x2fa   :  { %1284 = vmatpush.bf16.xpose.msrb.mxu2 %v1276_v35  ;;  %v1454_v46 = vadd.f32 %v8324_v33, %v1453_v26  ;;  %v1456_v47 = vadd.f32 %v8324_v33, %v1455_v29 }
 0x2fc   :  { %v1510_v48 = vpack.c.bf16 %v1456_v47, %v1454_v46  ;;  %v1412_v50 = vpop.f32.mrf.mxu0 }
 0x2fd   :  { %v1458_v30 = vpop.f32.mrf.mxu1 }
 0x2fe   :  { %v1459_v35 = vadd.f32 %v8324_v33, %v1458_v30  ;;  %v1516_v49 = vsel %vm1065_vm1, %v1510_v48, 0  ;;  %v345_v48 = vld [vmem:[%s8706_s13 + $0x8] sm:$0xf] }
 0x302   :  { %1285 = vmatpush.bf16.xpose.msrb.mxu2 %v1273_v41 }
 0x305   :  { %v1460_v32 = vpop.f32.mrf.mxu1 }
 0x306   :  { %v1461_v36 = vadd.f32 %v8324_v33, %v1460_v32  ;;  %v8326_v32 = vld [vmem:[%s8645_s8 + $0x2] ss:$0 sm:$0xff] }
 0x308   :  { %v1511_v38 = vpack.c.bf16 %v1461_v36, %v1459_v35 }
 0x309   :  { %6347 = vmatmul.msk.bf16.vlgmr.msrb.gmra.mxu2 %vm1065_vm1, %v1266_v45 }
 0x30a   :  { %v1519_v45 = vsel %vm1065_vm1, %v1511_v38, 0 }
 0x38c   :  { %v1287_v53 = vpop.f32.mrf.mxu2 }
 0x38d   :  { %v1288_v54 = vadd.f32 %v1287_v53, %v8631_v40  ;;  %v1414_v53 = vpop.f32.mrf.mxu0 }
 0x38f   :  { %v1292_v55 = vsel %vm1089_vm2, %v1288_v54, -inf }
 0x390   :  { %1293 = vmax.xlane.f32.xlu2 %v1292_v55  ;;  %v1415_v55 = vadd.f32 %v8325_v52, %v1414_v53 }
 0x394   :  { %v1289_v57 = vpop.f32.mrf.mxu2 }
 0x395   :  { %v1290_v58 = vadd.f32 %v1289_v57, %v8636_v44  ;;  %v344_v57 = vld [vmem:[%s8706_s13 + $0x4] sm:$0xf] }
 0x397   :  { %v1295_v59 = vsel %vm1089_vm2, %v1290_v58, -inf }
 0x398   :  { %1296 = vmax.xlane.f32.xlu2 %v1295_v59 }
 0x403   :  { %v1294_v0 = vpop.xlane.xlu2 %1293 }
 0x404   :  { %v1298_v1 = vsub.f32 %v1288_v54, %v1294_v0  ;;  %v1413_v54 = vadd.f32 %v8325_v52, %v1412_v50  ;;  %v7975_v0 = vld [vmem:[%s8617_s29 + $0x40] sm:$0xff] }
 0x406   :  { %v1300_v2 = vmul.f32 1.442695, %v1298_v1  ;;  %v1509_v56 = vpack.c.bf16 %v1415_v55, %v1413_v54 }
 0x408   :  { %8383 = vpow2.f32 %v1300_v2 }
 0x40b   :  { %v1297_v4 = vpop.xlane.xlu2 %1296 }
 0x40c   :  { %v1299_v5 = vsub.f32 %v1290_v58, %v1297_v4  ;;  %v1340_v58 = vsel %vm1338_vm3, %v344_v57, 0 }
 0x40d   :  { %1349 = vmatpush.bf16.msra.mxu2 %v1340_v58  ;;  %v8327_v58 = vld [vmem:[%s8572_s14 + $0x3] ss:$0 sm:$0xff] }
 0x40e   :  { %v8384_v6 = vpop.eup %8383  ;;  %v1302_v7 = vmul.f32 1.442695, %v1299_v5 }
 0x40f   :  { %v1304_v9 = vsel %vm1089_vm2, %v8384_v6, 0.0 }
 0x410   :  { %8385 = vpow2.f32 %v1302_v7  ;;  %1305 = vadd.xlane.f32.xlu0 %v1304_v9 }
 0x411   :  { %1494 = vmatpush.bf16.msrb.mxu2 %v7978_v23 }
 0x415   :  { %1495 = vmatpush.bf16.msrb.mxu2 %v7977_v24 }
 0x416   :  { %v8386_v10 = vpop.eup %8385 }
 0x417   :  { %v1307_v14 = vsel %vm1089_vm2, %v8386_v10, 0.0 }
 0x418   :  { %1308 = vadd.xlane.f32.xlu1 %v1307_v14  ;;  %v7947_v14 = vld [vmem:[%s8562_s6 + $0x60] sm:$0xff] }
 0x419   :  { %1496 = vmatpush.bf16.msrb.mxu2 %v7976_v63 }
 0x41d   :  { %1497 = vmatpush.bf16.msrb.mxu2 %v7975_v0 }
 0x483   :  { %v1306_v31 = vpop.xlane.xlu0 %1305 }
 0x484   :  { %8387 = vrcp.f32 %v1306_v31 }
 0x48a   :  { %v8388_v37 = vpop.eup %8387 }
 0x48b   :  { %v1309_v34 = vpop.xlane.xlu1 %1308  ;;  %v1312_v41 = vmul.f32 %v8388_v37, %v8384_v6 }
 0x48c   :  { %8389 = vrcp.f32 %v1309_v34 }
 0x492   :  { %v8390_v39 = vpop.eup %8389 }
 0x493   :  { %v1313_v42 = vmul.f32 %v8390_v39, %v8386_v10  ;;  %v7949_v10 = vld [vmem:[%s8562_s6 + $0x70] sm:$0xff] }
 0x494   :  { %1673 = vmatpush.bf16.msrb.mxu1 %v7949_v10 }
 0x495   :  { %v1314_v43 = vpack.c.bf16 %v1313_v42, %v1312_v41  ;;  %v7918_v41 = vld [vmem:[%s8567_s10 + $0x78] sm:$0xff]  ;;  %v7917_v42 = vld [vmem:[%s8567_s10 + $0x70] sm:$0xff] }
 0x497   :  { %6348 = vmatmul.msk.bf16.vlgmr.msra.gmra.mxu3 %vm1089_vm2, %v1314_v43  ;;  %v7916_v43 = vld [vmem:[%s8567_s10 + $0x68] sm:$0xff] }
 0x498   :  { %1527 = vmatpush.bf16.xpose.msra.mxu3 %v1519_v45  ;;  %1674 = vmatpush.bf16.msrb.mxu1 %v7948_v11  ;;  %v7915_v45 = vld [vmem:[%s8567_s10 + $0x60] sm:$0xff] }
 0x49c   :  { %1675 = vmatpush.bf16.msrb.mxu1 %v7947_v14 }
 0x49f   :  { %6440 = vmatmul.msk.bf16.vlgmr.msrb.gmra.mxu1 %vm946_vm0, %v8592_v12 }
 0x4a0   :  { %1528 = vmatpush.bf16.xpose.msra.mxu3 %v1516_v49  ;;  %v1582_v49 = vsel %vm1338_vm3, %v345_v48, 0 }
 0x4a7   :  { %6350 = vmatmul.msk.bf16.vlgmr.msrb.gmra.mxu3 %vm1065_vm1, %v1132_v51 }
 0x4a8   :  { %1591 = vmatpush.bf16.msrb.mxu3 %v1582_v49 }
 0x4af   :  { %6441 = vmatmul.msk.bf16.gmra.mxu1 %vm946_vm0, %v8600_v16 }
 0x4b7   :  { %6404 = vmatmul.msk.bf16.vlgmr.msra.gmra.mxu3 %vm1065_vm1, %v1509_v56 }
 0x51a   :  { %v1329_v59 = vpop.f32.mrf.mxu3 }
 0x51c   :  { %v1677_v47 = vpop.f32.mrf.mxu1 }
 0x51d   :  { %v1678_v23 = vadd.f32 %v8327_v58, %v1677_v47 }
 0x522   :  { %v1331_v60 = vpop.f32.mrf.mxu3 }
 0x523   :  { %v1334_v61 = vpack.c.bf16 %v1331_v60, %v1329_v59 }
 0x524   :  { %v1679_v51 = vpop.f32.mrf.mxu1 }
 0x525   :  { %6349 = vmatmul.msk.bf16.vlgmr.msra.gmra.mxu2 %vm1065_vm1, %v1334_v61  ;;  %v1680_v24 = vadd.f32 %v8327_v58, %v1679_v51  ;;  %v8329_v51 = vld [vmem:[%s8645_s8 + $0x3] ss:$0 sm:$0xff] }
 0x52a   :  { %v8724_v62 = vpop.f32.mrf.mxu3 }
 0x52c   :  { %v1682_v57 = vpop.f32.mrf.mxu1 }
 0x52d   :  { %v1683_v59 = vadd.f32 %v8327_v58, %v1682_v57 }
 0x532   :  { %v8728_v1 = vpop.f32.mrf.mxu3 }
 0x534   :  { %v1684_v60 = vpop.f32.mrf.mxu1 }
 0x535   :  { %6402 = vmatmul.msk.bf16.vlgmr.msrb.gmra.mxu2 %vm946_vm0, %v8592_v12  ;;  %v1685_v61 = vadd.f32 %v8327_v58, %v1684_v60  ;;  %v7921_v60 = vld [vmem:[%s8567_s10 + $0x90] sm:$0xff] }
 0x537   :  { %v1735_v63 = vpack.c.bf16 %v1685_v61, %v1683_v59  ;;  %v7922_v59 = vld [vmem:[%s8567_s10 + $0x98] sm:$0xff]  ;;  %v7920_v61 = vld [vmem:[%s8567_s10 + $0x88] sm:$0xff] }
 0x539   :  { %v1743_v0 = vsel %vm1065_vm1, %v1735_v63, 0 }
 0x53a   :  { %v1530_v2 = vpop.f32.mrf.mxu3  ;;  %1751 = vmatpush.bf16.xpose.msra.mxu3 %v1743_v0  ;;  %v346_v0 = vld [vmem:[%s8706_s13 + $0xc] sm:$0xf] }
 0x53b   :  { %v1531_v3 = vadd.f32 %v1530_v2, %v8631_v40  ;;  %v1734_v2 = vpack.c.bf16 %v1680_v24, %v1678_v23  ;;  %v7919_v23 = vld [vmem:[%s8567_s10 + $0x80] sm:$0xff] }
 0x53d   :  { %v1535_v4 = vsel %vm1089_vm2, %v1531_v3, -inf }
 0x53e   :  { %1536 = vmax.xlane.f32.xlu2 %v1535_v4 }
 0x542   :  { %v1532_v5 = vpop.f32.mrf.mxu3 }
 0x543   :  { %v1533_v6 = vadd.f32 %v1532_v5, %v8636_v44 }
 0x545   :  { %v1538_v7 = vsel %vm1089_vm2, %v1533_v6, -inf  ;;  %6403 = vmatmul.msk.bf16.gmra.mxu2 %vm946_vm0, %v8600_v16 }
 0x546   :  { %1539 = vmax.xlane.f32.xlu0 %v1538_v7 }
 0x5a8   :  { %v8739_v9 = vpop.f32.mrf.mxu2 }
 0x5b0   :  { %v8744_v17 = vpop.f32.mrf.mxu2 }
 0x5b1   :  { %v1537_v15 = vpop.xlane.xlu2 %1536 }
 0x5b2   :  { %v1541_v18 = vsub.f32 %v1531_v3, %v1537_v15  ;;  %v1740_v3 = vsel %vm1065_vm1, %v1734_v2, 0  ;;  %v1806_v2 = vsel %vm1338_vm3, %v346_v0, 0 }
 0x5b3   :  { %1752 = vmatpush.bf16.xpose.msra.mxu3 %v1740_v3 }
 0x5b4   :  { %v1543_v19 = vmul.f32 1.442695, %v1541_v18  ;;  %v7982_v18 = vld [vmem:[%s8617_s29 + $0x78] sm:$0xff] }
 0x5b5   :  { %1718 = vmatpush.bf16.msra.mxu2 %v7982_v18 }
 0x5b6   :  { %8391 = vpow2.f32 %v1543_v19  ;;  %v1372_v19 = vadd.f32 %v8724_v62, %v8739_v9 }
 0x5b8   :  { %v1499_v22 = vpop.f32.mrf.mxu2 }
 0x5b9   :  { %v1540_v20 = vpop.xlane.xlu0 %1539  ;;  %v1500_v35 = vadd.f32 %v8326_v32, %v1499_v22 }
 0x5ba   :  { %v1542_v21 = vsub.f32 %v1533_v6, %v1540_v20 }
 0x5bc   :  { %v8392_v25 = vpop.eup %8391  ;;  %v1545_v26 = vmul.f32 1.442695, %v1542_v21  ;;  %v7981_v21 = vld [vmem:[%s8617_s29 + $0x70] sm:$0xff] }
 0x5bd   :  { %v1547_v27 = vsel %vm1089_vm2, %v8392_v25, 0.0  ;;  %1719 = vmatpush.bf16.msra.mxu2 %v7981_v21 }
 0x5be   :  { %8393 = vpow2.f32 %v1545_v26  ;;  %1548 = vadd.xlane.f32.xlu1 %v1547_v27  ;;  %v7979_v26 = vld [vmem:[%s8617_s29 + $0x60] sm:$0xff] }
 0x5c0   :  { %v1501_v28 = vpop.f32.mrf.mxu2 }
 0x5c1   :  { %v1502_v36 = vadd.f32 %v8326_v32, %v1501_v28 }
 0x5c3   :  { %v1558_v39 = vpack.c.bf16 %v1502_v36, %v1500_v35  ;;  %v7951_v35 = vld [vmem:[%s8562_s6 + $0x80] sm:$0xff] }
 0x5c4   :  { %v8394_v29 = vpop.eup %8393 }
 0x5c5   :  { %v1550_v30 = vsel %vm1089_vm2, %v8394_v29, 0.0 }
 0x5c6   :  { %1551 = vadd.xlane.f32.xlu2 %v1550_v30 }
 0x5c8   :  { %v1504_v31 = vpop.f32.mrf.mxu2 }
 0x5c9   :  { %v1505_v33 = vadd.f32 %v8326_v32, %v1504_v31 }
 0x5d0   :  { %v1506_v34 = vpop.f32.mrf.mxu2 }
 0x5d1   :  { %v1507_v37 = vadd.f32 %v8326_v32, %v1506_v34  ;;  %v7954_v32 = vld [vmem:[%s8562_s6 + $0x98] sm:$0xff]  ;;  %v7952_v34 = vld [vmem:[%s8562_s6 + $0x88] sm:$0xff] }
 0x5d2   :  { %1896 = vmatpush.bf16.msra.mxu1 %v7954_v32  ;;  %v8331_v32 = vld [vmem:[%s8605_s25 + $0x4] ss:$0 sm:$0xff] }
 0x5d3   :  { %v1559_v38 = vpack.c.bf16 %v1507_v37, %v1505_v33  ;;  %v7953_v33 = vld [vmem:[%s8562_s6 + $0x90] sm:$0xff] }
 0x5d5   :  { %1569 = vmatpush.bf16.msra.mxu0 %v1559_v38 }
 0x5d6   :  { %1897 = vmatpush.bf16.msra.mxu1 %v7953_v33 }
 0x5d9   :  { %1570 = vmatpush.bf16.msra.mxu0 %v1558_v39 }
 0x5da   :  { %1898 = vmatpush.bf16.msra.mxu1 %v7952_v34 }
 0x5dd   :  { %1631 = vmatpush.bf16.msrb.mxu0 %v7918_v41 }
 0x5de   :  { %1899 = vmatpush.bf16.msra.mxu1 %v7951_v35 }
 0x5e1   :  { %1632 = vmatpush.bf16.msrb.mxu0 %v7917_v42  ;;  %6496 = vmatmul.msk.bf16.vlgmr.msra.gmra.mxu1 %vm946_vm0, %v8592_v12 }
 0x5e5   :  { %1633 = vmatpush.bf16.msrb.mxu0 %v7916_v43 }
 0x5e9   :  { %1634 = vmatpush.bf16.msrb.mxu0 %v7915_v45 }
 0x5f1   :  { %6497 = vmatmul.msk.bf16.gmra.mxu1 %vm946_vm0, %v8600_v16 }
 0x631   :  { %v1549_v46 = vpop.xlane.xlu1 %1548 }
 0x632   :  { %8395 = vrcp.f32 %v1549_v46 }
 0x638   :  { %v8396_v52 = vpop.eup %8395 }
 0x639   :  { %v1552_v50 = vpop.xlane.xlu2 %1551  ;;  %v1555_v54 = vmul.f32 %v8396_v52, %v8392_v25  ;;  %v7980_v25 = vld [vmem:[%s8617_s29 + $0x68] sm:$0xff] }
 0x63a   :  { %8397 = vrcp.f32 %v1552_v50  ;;  %1720 = vmatpush.bf16.msra.mxu2 %v7980_v25 }
 0x63e   :  { %1721 = vmatpush.bf16.msra.mxu2 %v7979_v26 }
 0x640   :  { %v8398_v53 = vpop.eup %8397 }
 0x641   :  { %v1556_v55 = vmul.f32 %v8398_v53, %v8394_v29  ;;  %6458 = vmatmul.msk.bf16.vlgmr.msra.gmra.mxu2 %vm946_vm0, %v8592_v12 }
 0x643   :  { %v1557_v56 = vpack.c.bf16 %v1556_v55, %v1555_v54 }
 0x645   :  { %6405 = vmatmul.msk.bf16.vlgmr.msra.gmra.mxu0 %vm1089_vm2, %v1557_v56 }
 0x651   :  { %6459 = vmatmul.msk.bf16.gmra.mxu2 %vm946_vm0, %v8600_v16 }
 0x655   :  { %6423 = vmatmul.msk.bf16.vlgmr.msrb.gmra.mxu0 %vm946_vm0, %v8594_v13 }
 0x65e   :  { %v1901_v63 = vpop.f32.mrf.mxu1 }
 0x6c2   :  { %v1572_v4 = vpop.f32.mrf.mxu0 }
 0x6c4   :  { %v1723_v42 = vpop.f32.mrf.mxu2 }
 0x6c5   :  { %v1724_v54 = vadd.f32 %v8329_v51, %v1723_v42  ;;  %v7984_v42 = vld [vmem:[%s8617_s29 + $0x88] sm:$0xff] }
 0x6ca   :  { %v1574_v5 = vpop.f32.mrf.mxu0 }
 0x6cb   :  { %v1577_v6 = vpack.c.bf16 %v1574_v5, %v1572_v4  ;;  %v1903_v4 = vpop.f32.mrf.mxu1 }
 0x6cc   :  { %v1725_v47 = vpop.f32.mrf.mxu2 }
 0x6cd   :  { %6406 = vmatmul.msk.bf16.vlgmr.msrb.gmra.mxu3 %vm1065_vm1, %v1577_v6  ;;  %v1726_v55 = vadd.f32 %v8329_v51, %v1725_v47 }
 0x6ce   :  { %1815 = vmatpush.bf16.msrb.mxu3 %v1806_v2  ;;  %v8332_v2 = vld [vmem:[%s8645_s8 + $0x4] ss:$0 sm:$0xff] }
 0x6cf   :  { %v1782_v58 = vpack.c.bf16 %v1726_v55, %v1724_v54  ;;  %v7955_v54 = vld [vmem:[%s8562_s6 + $0xa0] sm:$0xff] }
 0x6d2   :  { %v1636_v7 = vpop.f32.mrf.mxu0 }
 0x6d3   :  { %v1637_v11 = vadd.f32 %v8328_v8, %v1636_v7 }
 0x6d4   :  { %v1728_v50 = vpop.f32.mrf.mxu2 }
 0x6d5   :  { %v1729_v52 = vadd.f32 %v8329_v51, %v1728_v50 }
 0x6da   :  { %v1638_v10 = vpop.f32.mrf.mxu0 }
 0x6db   :  { %v1639_v14 = vadd.f32 %v8328_v8, %v1638_v10 }
 0x6dc   :  { %v1730_v53 = vpop.f32.mrf.mxu2 }
 0x6dd   :  { %v1733_v15 = vpack.c.bf16 %v1639_v14, %v1637_v11  ;;  %v1731_v56 = vadd.f32 %v8329_v51, %v1730_v53  ;;  %v1906_v11 = vpop.f32.mrf.mxu1  ;;  %v8330_v14 = vld [vmem:[%s8572_s14 + $0x4] ss:$0 sm:$0xff]  ;;  %v7958_v51 = vld [vmem:[%s8562_s6 + $0xb8] sm:$0xff]  ;;  %v7956_v53 = vld [vmem:[%s8562_s6 + $0xa8] sm:$0xff] }
 0x6de   :  { %v1904_v21 = vadd.f32 %v8330_v14, %v1903_v4  ;;  %2120 = vmatpush.bf16.msrb.mxu1 %v7958_v51 }
 0x6df   :  { %6460 = vmatmul.msk.bf16.vlgmr.msra.gmra.mxu3 %vm1065_vm1, %v1733_v15  ;;  %v1783_v57 = vpack.c.bf16 %v1731_v56, %v1729_v52  ;;  %v1907_v15 = vadd.f32 %v8330_v14, %v1906_v11  ;;  %v7957_v52 = vld [vmem:[%s8562_s6 + $0xb0] sm:$0xff]  ;;  %v7926_v11 = vld [vmem:[%s8567_s10 + $0xb8] sm:$0xff] }
 0x6e1   :  { %1793 = vmatpush.bf16.msra.mxu0 %v1783_v57 }
 0x6e2   :  { %2121 = vmatpush.bf16.msrb.mxu1 %v7957_v52 }
 0x6e5   :  { %1794 = vmatpush.bf16.msra.mxu0 %v1782_v58  ;;  %v1908_v18 = vpop.f32.mrf.mxu1 }
 0x6e6   :  { %2122 = vmatpush.bf16.msrb.mxu1 %v7956_v53 }
 0x6e9   :  { %1855 = vmatpush.bf16.msrb.mxu0 %v7922_v59 }
 0x6ea   :  { %2123 = vmatpush.bf16.msrb.mxu1 %v7955_v54 }
 0x6ed   :  { %1856 = vmatpush.bf16.msrb.mxu0 %v7921_v60  ;;  %6552 = vmatmul.msk.bf16.vlgmr.msrb.gmra.mxu1 %vm946_vm0, %v8592_v12 }
 0x6f1   :  { %1857 = vmatpush.bf16.msrb.mxu0 %v7920_v61 }
 0x6f5   :  { %1858 = vmatpush.bf16.msrb.mxu0 %v7919_v23 }
 0x6fd   :  { %6553 = vmatmul.msk.bf16.gmra.mxu1 %vm946_vm0, %v8600_v16 }
 0x750   :  { %v1593_v20 = vpop.f32.mrf.mxu3 }
 0x751   :  { %v8772_v22 = vadd.f32 %v1593_v20, %v1372_v19  ;;  %v1909_v19 = vadd.f32 %v8330_v14, %v1908_v18  ;;  %v1902_v20 = vadd.f32 %v8330_v14, %v1901_v63  ;;  %v7925_v14 = vld [vmem:[%s8567_s10 + $0xb0] sm:$0xff]  ;;  %v7923_v18 = vld [vmem:[%s8567_s10 + $0xa0] sm:$0xff] }
 0x753   :  { %v1959_v25 = vpack.c.bf16 %v1909_v19, %v1907_v15  ;;  %v7924_v15 = vld [vmem:[%s8567_s10 + $0xa8] sm:$0xff] }
 0x755   :  { %v1967_v26 = vsel %vm1065_vm1, %v1959_v25, 0 }
 0x756   :  { %1975 = vmatpush.bf16.xpose.msra.mxu3 %v1967_v26 }
 0x758   :  { %v8776_v27 = vpop.f32.mrf.mxu3 }
 0x762   :  { %v1754_v62 = vpop.f32.mrf.mxu3 }
 0x763   :  { %v1755_v9 = vadd.f32 %v1754_v62, %v8631_v40  ;;  %v1958_v62 = vpack.c.bf16 %v1904_v21, %v1902_v20  ;;  %v347_v21 = vld [vmem:[%s8706_s13 + $0x10] sm:$0xf] }
 0x764   :  { %v2030_v25 = vsel %vm1338_vm3, %v347_v21, 0 }
 0x765   :  { %v1759_v28 = vsel %vm1089_vm2, %v1755_v9, -inf }
 0x766   :  { %1760 = vmax.xlane.f32.xlu0 %v1759_v28 }
 0x76a   :  { %v1756_v29 = vpop.f32.mrf.mxu3  ;;  %v2125_v20 = vpop.f32.mrf.mxu1 }
 0x76b   :  { %v1757_v30 = vadd.f32 %v1756_v29, %v8636_v44 }
 0x76d   :  { %v1762_v31 = vsel %vm1089_vm2, %v1757_v30, -inf }
 0x76e   :  { %1763 = vmax.xlane.f32.xlu1 %v1762_v31 }
 0x7d9   :  { %v1761_v36 = vpop.xlane.xlu0 %1760 }
 0x7da   :  { %v1765_v37 = vsub.f32 %v1755_v9, %v1761_v36  ;;  %v1964_v9 = vsel %vm1065_vm1, %v1958_v62, 0  ;;  %v2127_v62 = vpop.f32.mrf.mxu1 }
 0x7db   :  { %1976 = vmatpush.bf16.xpose.msra.mxu3 %v1964_v9 }
 0x7dc   :  { %v1767_v38 = vmul.f32 1.442695, %v1765_v37  ;;  %v7986_v37 = vld [vmem:[%s8617_s29 + $0x98] sm:$0xff] }
 0x7dd   :  { %1942 = vmatpush.bf16.msrb.mxu2 %v7986_v37 }
 0x7de   :  { %8399 = vpow2.f32 %v1767_v38 }
 0x7e1   :  { %v1764_v39 = vpop.xlane.xlu1 %1763 }
 0x7e2   :  { %v1766_v41 = vsub.f32 %v1757_v30, %v1764_v39  ;;  %v7985_v39 = vld [vmem:[%s8617_s29 + $0x90] sm:$0xff] }
 0x7e3   :  { %1943 = vmatpush.bf16.msrb.mxu2 %v7985_v39 }
 0x7e4   :  { %v8400_v43 = vpop.eup %8399  ;;  %v1769_v45 = vmul.f32 1.442695, %v1766_v41 }
 0x7e5   :  { %v1771_v46 = vsel %vm1089_vm2, %v8400_v43, 0.0 }
 0x7e6   :  { %8401 = vpow2.f32 %v1769_v45  ;;  %1772 = vadd.xlane.f32.xlu2 %v1771_v46 }
 0x7e7   :  { %1944 = vmatpush.bf16.msrb.mxu2 %v7984_v42 }
 0x7ec   :  { %v8402_v48 = vpop.eup %8401 }
 0x7ed   :  { %v1774_v49 = vsel %vm1089_vm2, %v8402_v48, 0.0 }
 0x7ee   :  { %1775 = vadd.xlane.f32.xlu0 %v1774_v49 }
 0x859   :  { %v1773_v24 = vpop.xlane.xlu2 %1772 }
 0x85a   :  { %8403 = vrcp.f32 %v1773_v24 }
 0x860   :  { %v8404_v5 = vpop.eup %8403 }
 0x861   :  { %v1776_v3 = vpop.xlane.xlu0 %1775  ;;  %v1779_v7 = vmul.f32 %v8404_v5, %v8400_v43  ;;  %v7983_v43 = vld [vmem:[%s8617_s29 + $0x80] sm:$0xff] }
 0x862   :  { %8405 = vrcp.f32 %v1776_v3  ;;  %1945 = vmatpush.bf16.msrb.mxu2 %v7983_v43 }
 0x865   :  { %6514 = vmatmul.msk.bf16.vlgmr.msrb.gmra.mxu2 %vm946_vm0, %v8592_v12 }
 0x868   :  { %v8406_v6 = vpop.eup %8405 }
 0x869   :  { %v1780_v8 = vmul.f32 %v8406_v6, %v8402_v48 }
 0x86b   :  { %v1781_v10 = vpack.c.bf16 %v1780_v8, %v1779_v7 }
 0x86d   :  { %6461 = vmatmul.msk.bf16.vlgmr.msra.gmra.mxu0 %vm1089_vm2, %v1781_v10 }
 0x875   :  { %6515 = vmatmul.msk.bf16.gmra.mxu2 %vm946_vm0, %v8600_v16 }
 0x87d   :  { %6479 = vmatmul.msk.bf16.vlgmr.msrb.gmra.mxu0 %vm946_vm0, %v8594_v13 }
 0x8e8   :  { %v1947_v58 = vpop.f32.mrf.mxu2 }
 0x8e9   :  { %v1948_v5 = vadd.f32 %v8332_v2, %v1947_v58  ;;  %v7987_v58 = vld [vmem:[%s8617_s29 + $0xa0] sm:$0xff] }
 0x8ea   :  { %v1796_v28 = vpop.f32.mrf.mxu0 }
 0x8f0   :  { %v1949_v23 = vpop.f32.mrf.mxu2 }
 0x8f1   :  { %v1950_v6 = vadd.f32 %v8332_v2, %v1949_v23 }
 0x8f2   :  { %v1798_v29 = vpop.f32.mrf.mxu0 }
 0x8f3   :  { %v1801_v30 = vpack.c.bf16 %v1798_v29, %v1796_v28  ;;  %v2006_v10 = vpack.c.bf16 %v1950_v6, %v1948_v5  ;;  %v7960_v5 = vld [vmem:[%s8562_s6 + $0xc8] sm:$0xff]  ;;  %v7959_v6 = vld [vmem:[%s8562_s6 + $0xc0] sm:$0xff] }
 0x8f5   :  { %6462 = vmatmul.msk.bf16.vlgmr.msrb.gmra.mxu3 %vm1065_vm1, %v1801_v30 }
 0x8f6   :  { %2039 = vmatpush.bf16.msrb.mxu3 %v2030_v25 }
 0x8f8   :  { %v1952_v0 = vpop.f32.mrf.mxu2 }
 0x8f9   :  { %v1953_v3 = vadd.f32 %v8332_v2, %v1952_v0 }
 0x8fa   :  { %v1860_v31 = vpop.f32.mrf.mxu0 }
 0x8fb   :  { %v1861_v34 = vadd.f32 %v8331_v32, %v1860_v31 }
 0x900   :  { %v1954_v4 = vpop.f32.mrf.mxu2 }
 0x901   :  { %v1955_v7 = vadd.f32 %v8332_v2, %v1954_v4  ;;  %v7961_v4 = vld [vmem:[%s8562_s6 + $0xd0] sm:$0xff] }
 0x902   :  { %v1862_v33 = vpop.f32.mrf.mxu0 }
 0x903   :  { %v1863_v35 = vadd.f32 %v8331_v32, %v1862_v33  ;;  %v2007_v8 = vpack.c.bf16 %v1955_v7, %v1953_v3  ;;  %v2130_v32 = vpop.f32.mrf.mxu1  ;;  %v8333_v33 = vld [vmem:[%s8572_s14 + $0x5] ss:$0 sm:$0xff]  ;;  %v7962_v3 = vld [vmem:[%s8562_s6 + $0xd8] sm:$0xff] }
 0x904   :  { %v2126_v37 = vadd.f32 %v8333_v33, %v2125_v20  ;;  %2344 = vmatpush.bf16.msra.mxu1 %v7962_v3 }
 0x905   :  { %v1957_v36 = vpack.c.bf16 %v1863_v35, %v1861_v34  ;;  %2017 = vmatpush.bf16.msra.mxu0 %v2007_v8  ;;  %v2131_v34 = vadd.f32 %v8333_v33, %v2130_v32 }
 0x907   :  { %6516 = vmatmul.msk.bf16.vlgmr.msra.gmra.mxu3 %vm1065_vm1, %v1957_v36 }
 0x908   :  { %2345 = vmatpush.bf16.msra.mxu1 %v7961_v4 }
 0x909   :  { %2018 = vmatpush.bf16.msra.mxu0 %v2006_v10 }
 0x90b   :  { %v2132_v35 = vpop.f32.mrf.mxu1 }
 0x90c   :  { %v2133_v36 = vadd.f32 %v8333_v33, %v2132_v35  ;;  %2346 = vmatpush.bf16.msra.mxu1 %v7960_v5  ;;  %v7930_v35 = vld [vmem:[%s8567_s10 + $0xd8] sm:$0xff]  ;;  %v8337_v5 = vld [vmem:[%s8605_s25 + $0x6] ss:$0 sm:$0xff] }
 0x90d   :  { %2079 = vmatpush.bf16.msrb.mxu0 %v7926_v11 }
 0x90e   :  { %v2183_v39 = vpack.c.bf16 %v2133_v36, %v2131_v34  ;;  %v7929_v36 = vld [vmem:[%s8567_s10 + $0xd0] sm:$0xff] }
 0x910   :  { %v2191_v42 = vsel %vm1065_vm1, %v2183_v39, 0  ;;  %2347 = vmatpush.bf16.msra.mxu1 %v7959_v6 }
 0x911   :  { %2080 = vmatpush.bf16.msrb.mxu0 %v7925_v14  ;;  %2199 = vmatpush.bf16.xpose.msra.mxu3 %v2191_v42 }
 0x913   :  { %6608 = vmatmul.msk.bf16.vlgmr.msra.gmra.mxu1 %vm946_vm0, %v8592_v12 }
 0x915   :  { %2081 = vmatpush.bf16.msrb.mxu0 %v7924_v15 }
 0x919   :  { %2082 = vmatpush.bf16.msrb.mxu0 %v7923_v18 }
 0x923   :  { %6609 = vmatmul.msk.bf16.gmra.mxu1 %vm946_vm0, %v8600_v16 }
 0x978   :  { %v1817_v38 = vpop.f32.mrf.mxu3 }
 0x979   :  { %v8815_v41 = vadd.f32 %v1817_v38, %v8772_v22  ;;  %v2128_v38 = vadd.f32 %v8333_v33, %v2127_v62 }
 0x97b   :  { %v2182_v43 = vpack.c.bf16 %v2128_v38, %v2126_v37  ;;  %v7928_v37 = vld [vmem:[%s8567_s10 + $0xc8] sm:$0xff]  ;;  %v7927_v38 = vld [vmem:[%s8567_s10 + $0xc0] sm:$0xff] }
 0x980   :  { %v8819_v45 = vpop.f32.mrf.mxu3 }
 0x98a   :  { %v1978_v46 = vpop.f32.mrf.mxu3 }
 0x98b   :  { %v1979_v47 = vadd.f32 %v1978_v46, %v8631_v40  ;;  %v2188_v46 = vsel %vm1065_vm1, %v2182_v43, 0  ;;  %v348_v43 = vld [vmem:[%s8706_s13 + $0x14] sm:$0xf] }
 0x98c   :  { %2200 = vmatpush.bf16.xpose.msra.mxu3 %v2188_v46  ;;  %v2254_v46 = vsel %vm1338_vm3, %v348_v43, 0 }
 0x98d   :  { %v1983_v22 = vsel %vm1089_vm2, %v1979_v47, -inf }
 0x98e   :  { %1984 = vmax.xlane.f32.xlu1 %v1983_v22 }
 0x990   :  { %v2349_v42 = vpop.f32.mrf.mxu1 }
 0x992   :  { %v1980_v48 = vpop.f32.mrf.mxu3 }
 0x993   :  { %v1981_v49 = vadd.f32 %v1980_v48, %v8636_v44 }
 0x995   :  { %v1986_v50 = vsel %vm1089_vm2, %v1981_v49, -inf }
 0x996   :  { %1987 = vmax.xlane.f32.xlu2 %v1986_v50  ;;  %v8334_v50 = vld [vmem:[%s8605_s25 + $0x5] ss:$0 sm:$0xff] }
 0xa01   :  { %v1985_v40 = vpop.xlane.xlu1 %1984 }
 0xa02   :  { %v1989_v55 = vsub.f32 %v1979_v47, %v1985_v40  ;;  %v7990_v40 = vld [vmem:[%s8617_s29 + $0xb8] sm:$0xff] }
 0xa03   :  { %2166 = vmatpush.bf16.msra.mxu2 %v7990_v40 }
 0xa04   :  { %v1991_v56 = vmul.f32 1.442695, %v1989_v55 }
 0xa06   :  { %8407 = vpow2.f32 %v1991_v56  ;;  %v7989_v56 = vld [vmem:[%s8617_s29 + $0xb0] sm:$0xff] }
 0xa07   :  { %2167 = vmatpush.bf16.msra.mxu2 %v7989_v56 }
 0xa09   :  { %v1988_v44 = vpop.xlane.xlu2 %1987 }
 0xa0a   :  { %v1990_v57 = vsub.f32 %v1981_v49, %v1988_v44 }
 0xa0c   :  { %v8408_v59 = vpop.eup %8407  ;;  %v1993_v60 = vmul.f32 1.442695, %v1990_v57  ;;  %v7988_v57 = vld [vmem:[%s8617_s29 + $0xa8] sm:$0xff] }
 0xa0d   :  { %v1995_v61 = vsel %vm1089_vm2, %v8408_v59, 0.0  ;;  %2168 = vmatpush.bf16.msra.mxu2 %v7988_v57 }
 0xa0e   :  { %8409 = vpow2.f32 %v1993_v60  ;;  %1996 = vadd.xlane.f32.xlu0 %v1995_v61  ;;  %v8867_v61 = vld [vmem:[%s8625_s3] sm:$0xff] }
 0xa11   :  { %2169 = vmatpush.bf16.msra.mxu2 %v7987_v58 }
 0xa14   :  { %v8410_v24 = vpop.eup %8409  ;;  %6570 = vmatmul.msk.bf16.vlgmr.msra.gmra.mxu2 %vm946_vm0, %v8592_v12 }
 0xa15   :  { %v1998_v63 = vsel %vm1089_vm2, %v8410_v24, 0.0 }
 0xa16   :  { %1999 = vadd.xlane.f32.xlu1 %v1998_v63  ;;  %v8872_v63 = vld [vmem:[%s8625_s3 + $0x8] sm:$0xff]  ;;  %s9384_s3 = sld [smem:[%s9782_s0 + %s8545_s30]]  }
 0xa24   :  { %6571 = vmatmul.msk.bf16.gmra.mxu2 %vm946_vm0, %v8600_v16 }
 0xa81   :  { %v1997_v19 = vpop.xlane.xlu0 %1996 }
 0xa82   :  { %8411 = vrcp.f32 %v1997_v19 }
 0xa88   :  { %v8412_v9 = vpop.eup %8411 }
 0xa89   :  { %v2000_v26 = vpop.xlane.xlu1 %1999  ;;  %v2003_v29 = vmul.f32 %v8412_v9, %v8408_v59  ;;  %v8335_v9 = vld [vmem:[%s8645_s8 + $0x5] ss:$0 sm:$0xff] }
 0xa8a   :  { %8413 = vrcp.f32 %v2000_v26 }
 0xa90   :  { %v8414_v28 = vpop.eup %8413 }
 0xa91   :  { %v2004_v30 = vmul.f32 %v8414_v28, %v8410_v24 }
 0xa93   :  { %v2005_v31 = vpack.c.bf16 %v2004_v30, %v2003_v29 }
 0xa95   :  { %6517 = vmatmul.msk.bf16.vlgmr.msra.gmra.mxu0 %vm1089_vm2, %v2005_v31 }
 0xa97   :  { %v2171_v15 = vpop.f32.mrf.mxu2 }
 0xa98   :  { %v2172_v30 = vadd.f32 %v8335_v9, %v2171_v15  ;;  %v7993_v15 = vld [vmem:[%s8617_s29 + $0xd0] sm:$0xff] }
 0xa9f   :  { %v2173_v21 = vpop.f32.mrf.mxu2 }
 0xaa0   :  { %v2174_v31 = vadd.f32 %v8335_v9, %v2173_v21 }
 0xaa2   :  { %v2230_v34 = vpack.c.bf16 %v2174_v31, %v2172_v30  ;;  %v7965_v30 = vld [vmem:[%s8562_s6 + $0xf0] sm:$0xff]  ;;  %v7964_v31 = vld [vmem:[%s8562_s6 + $0xe8] sm:$0xff] }
 0xaa5   :  { %6535 = vmatmul.msk.bf16.vlgmr.msrb.gmra.mxu0 %vm946_vm0, %v8594_v13 }
 0xaa7   :  { %v2176_v62 = vpop.f32.mrf.mxu2 }
 0xaa8   :  { %v2177_v28 = vadd.f32 %v8335_v9, %v2176_v62 }
 0xaaf   :  { %v2178_v29 = vpop.f32.mrf.mxu2 }
 0xab0   :  { %v2179_v32 = vadd.f32 %v8335_v9, %v2178_v29  ;;  %v7966_v29 = vld [vmem:[%s8562_s6 + $0xf8] sm:$0xff] }
 0xab1   :  { %2568 = vmatpush.bf16.msrb.mxu1 %v7966_v29 }
 0xab2   :  { %v2231_v33 = vpack.c.bf16 %v2179_v32, %v2177_v28  ;;  %v7963_v32 = vld [vmem:[%s8562_s6 + $0xe0] sm:$0xff]  ;;  %s8532_s6 = smov 11  }
 0xab3   :  { %s6219_s15 = sld [smem:[%s9782_s0 + %s8532_s6]]   ;;  %s8548_s6 = smov 26  }
 0xab4   :  { %2241 = vmatpush.bf16.msra.mxu0 %v2231_v33 }
 0xab5   :  { %2569 = vmatpush.bf16.msrb.mxu1 %v7965_v30 }
 0xab8   :  { %2242 = vmatpush.bf16.msra.mxu0 %v2230_v34 }
 0xab9   :  { %2570 = vmatpush.bf16.msrb.mxu1 %v7964_v31 }
 0xabc   :  { %2303 = vmatpush.bf16.msrb.mxu0 %v7930_v35 }
 0xabd   :  { %2571 = vmatpush.bf16.msrb.mxu1 %v7963_v32  ;;  %v8340_v32 = vld [vmem:[%s8605_s25 + $0x7] ss:$0 sm:$0xff]  ;;  %s9127_s25 = sld [smem:[%s9782_s0 + %s8543_s23]]  }
 0xac0   :  { %2304 = vmatpush.bf16.msrb.mxu0 %v7929_v36  ;;  %6664 = vmatmul.msk.bf16.vlgmr.msrb.gmra.mxu1 %vm946_vm0, %v8592_v12 }
 0xac4   :  { %2305 = vmatpush.bf16.msrb.mxu0 %v7928_v37 }
 0xac8   :  { %2306 = vmatpush.bf16.msrb.mxu0 %v7927_v38 }
 0xad0   :  { %6665 = vmatmul.msk.bf16.gmra.mxu1 %vm946_vm0, %v8600_v16 }
 0xb12   :  { %v2020_v47 = vpop.f32.mrf.mxu0 }
 0xb1a   :  { %v2022_v22 = vpop.f32.mrf.mxu0 }
 0xb1b   :  { %v2025_v48 = vpack.c.bf16 %v2022_v22, %v2020_v47  ;;  %v2351_v22 = vpop.f32.mrf.mxu1 }
 0xb1d   :  { %6518 = vmatmul.msk.bf16.vlgmr.msrb.gmra.mxu3 %vm1065_vm1, %v2025_v48 }
 0xb1e   :  { %2263 = vmatpush.bf16.msrb.mxu3 %v2254_v46 }
 0xb22   :  { %v2084_v49 = vpop.f32.mrf.mxu0 }
 0xb23   :  { %v2085_v52 = vadd.f32 %v8334_v50, %v2084_v49 }
 0xb2a   :  { %v2086_v51 = vpop.f32.mrf.mxu0 }
 0xb2b   :  { %v2087_v53 = vadd.f32 %v8334_v50, %v2086_v51 }
 0xb2d   :  { %v2181_v54 = vpack.c.bf16 %v2087_v53, %v2085_v52  ;;  %v2354_v53 = vpop.f32.mrf.mxu1 }
 0xb2f   :  { %6572 = vmatmul.msk.bf16.vlgmr.msra.gmra.mxu3 %vm1065_vm1, %v2181_v54  ;;  %v8336_v54 = vld [vmem:[%s8572_s14 + $0x6] ss:$0 sm:$0xff] }
 0xb30   :  { %v2355_v40 = vadd.f32 %v8336_v54, %v2354_v53  ;;  %v2350_v57 = vadd.f32 %v8336_v54, %v2349_v42  ;;  %v2352_v58 = vadd.f32 %v8336_v54, %v2351_v22 }
 0xba0   :  { %v2041_v55 = vpop.f32.mrf.mxu3 }
 0xba1   :  { %v8858_v44 = vadd.f32 %v2041_v55, %v8815_v41  ;;  %v2356_v55 = vpop.f32.mrf.mxu1 }
 0xba2   :  { %v2357_v56 = vadd.f32 %v8336_v54, %v2356_v55 }
 0xba8   :  { %v8862_v59 = vpop.f32.mrf.mxu3 }
 0xbb2   :  { %v2202_v60 = vpop.f32.mrf.mxu3 }
 0xbb3   :  { %v2203_v41 = vadd.f32 %v8867_v61, %v2202_v60  ;;  %v2407_v60 = vpack.c.bf16 %v2357_v56, %v2355_v40  ;;  %v7934_v56 = vld [vmem:[%s8567_s10 + $0xf8] sm:$0xff] }
 0xbb5   :  { %v2207_v23 = vsel %vm1089_vm2, %v2203_v41, -inf }
 0xbb6   :  { %2208 = vmax.xlane.f32.xlu2 %v2207_v23  ;;  %v2406_v23 = vpack.c.bf16 %v2352_v58, %v2350_v57  ;;  %v7933_v57 = vld [vmem:[%s8567_s10 + $0xf0] sm:$0xff]  ;;  %v7932_v58 = vld [vmem:[%s8567_s10 + $0xe8] sm:$0xff] }
 0xbba   :  { %v2204_v24 = vpop.f32.mrf.mxu3 }
 0xbbb   :  { %v2205_v0 = vadd.f32 %v8872_v63, %v2204_v24  ;;  %v2412_v24 = vsel %vm1065_vm1, %v2406_v23, 0  ;;  %v2573_v23 = vpop.f32.mrf.mxu1 }
 0xbbd   :  { %v2210_v2 = vsel %vm1089_vm2, %v2205_v0, -inf }
 0xbbe   :  { %2211 = vmax.xlane.f32.xlu0 %v2210_v2 }
 0xc29   :  { %v2209_v7 = vpop.xlane.xlu2 %2208 }
 0xc2a   :  { %v2213_v8 = vsub.f32 %v2203_v41, %v2209_v7  ;;  %v2415_v41 = vsel %vm1065_vm1, %v2407_v60, 0  ;;  %v7931_v60 = vld [vmem:[%s8567_s10 + $0xe0] sm:$0xff]  ;;  %s9057_s10 = sld [smem:[%s9782_s0 + %s8540_s12]]  }
 0xc2b   :  { %2423 = vmatpush.bf16.xpose.msra.mxu3 %v2415_v41 }
 0xc2c   :  { %v2215_v10 = vmul.f32 1.442695, %v2213_v8 }
 0xc2e   :  { %8415 = vpow2.f32 %v2215_v10 }
 0xc31   :  { %v2212_v11 = vpop.xlane.xlu0 %2211 }
 0xc32   :  { %v2214_v14 = vsub.f32 %v2205_v0, %v2212_v11  ;;  %v7994_v11 = vld [vmem:[%s8617_s29 + $0xd8] sm:$0xff] }
 0xc33   :  { %2424 = vmatpush.bf16.xpose.msra.mxu3 %v2412_v24  ;;  %2390 = vmatpush.bf16.msrb.mxu2 %v7994_v11  ;;  %v349_v24 = vld [vmem:[%s8706_s13 + $0x18] sm:$0xf]  ;;  %v8339_v11 = vld [vmem:[%s8572_s14 + $0x7] ss:$0 sm:$0xff]  ;;  %s8541_s14 = smov 19  }
 0xc34   :  { %v8416_v18 = vpop.eup %8415  ;;  %v2217_v19 = vmul.f32 1.442695, %v2214_v14  ;;  %s9068_s17 = sld [smem:[%s9782_s0 + %s8541_s14]]  }
 0xc35   :  { %v2219_v20 = vsel %vm1089_vm2, %v8416_v18, 0.0 }
 0xc36   :  { %8417 = vpow2.f32 %v2217_v19  ;;  %2220 = vadd.xlane.f32.xlu1 %v2219_v20  ;;  %v7992_v19 = vld [vmem:[%s8617_s29 + $0xc8] sm:$0xff]  ;;  %v7991_v20 = vld [vmem:[%s8617_s29 + $0xc0] sm:$0xff] }
 0xc37   :  { %2391 = vmatpush.bf16.msrb.mxu2 %v7993_v15 }
 0xc3b   :  { %2392 = vmatpush.bf16.msrb.mxu2 %v7992_v19 }
 0xc3c   :  { %v8418_v25 = vpop.eup %8417 }
 0xc3d   :  { %v2222_v26 = vsel %vm1089_vm2, %v8418_v25, 0.0 }
 0xc3e   :  { %2223 = vadd.xlane.f32.xlu2 %v2222_v26 }
 0xc3f   :  { %2393 = vmatpush.bf16.msrb.mxu2 %v7991_v20  ;;  %v2574_v20 = vadd.f32 %v8339_v11, %v2573_v23 }
 0xc42   :  { %6626 = vmatmul.msk.bf16.vlgmr.msrb.gmra.mxu2 %vm946_vm0, %v8592_v12 }
 0xc52   :  { %6627 = vmatmul.msk.bf16.gmra.mxu2 %vm946_vm0, %v8600_v16 }
 0xca9   :  { %v2221_v39 = vpop.xlane.xlu1 %2220 }
 0xcaa   :  { %8419 = vrcp.f32 %v2221_v39 }
 0xcb0   :  { %v8420_v48 = vpop.eup %8419 }
 0xcb1   :  { %v2224_v47 = vpop.xlane.xlu2 %2223  ;;  %v2227_v50 = vmul.f32 %v8420_v48, %v8416_v18 }
 0xcb2   :  { %8421 = vrcp.f32 %v2224_v47 }
 0xcb8   :  { %v8422_v49 = vpop.eup %8421 }
 0xcb9   :  { %v2228_v51 = vmul.f32 %v8422_v49, %v8418_v25  ;;  %v8338_v49 = vld [vmem:[%s8645_s8 + $0x6] ss:$0 sm:$0xff] }
 0xcbb   :  { %v2229_v52 = vpack.c.bf16 %v2228_v51, %v2227_v50 }
 0xcbd   :  { %6573 = vmatmul.msk.bf16.vlgmr.msra.gmra.mxu0 %vm1089_vm2, %v2229_v52 }
 0xcc5   :  { %v2395_v38 = vpop.f32.mrf.mxu2 }
 0xcc6   :  { %v2396_v52 = vadd.f32 %v8338_v49, %v2395_v38  ;;  %v7997_v38 = vld [vmem:[%s8617_s29 + $0xf0] sm:$0xff] }
 0xccd   :  { %6591 = vmatmul.msk.bf16.vlgmr.msrb.gmra.mxu0 %vm946_vm0, %v8594_v13  ;;  %v2397_v46 = vpop.f32.mrf.mxu2 }
 0xcce   :  { %v2398_v53 = vadd.f32 %v8338_v49, %v2397_v46 }
 0xcd0   :  { %v2454_v55 = vpack.c.bf16 %v2398_v53, %v2396_v52 }
 0xcd5   :  { %v2400_v48 = vpop.f32.mrf.mxu2 }
 0xcd6   :  { %v2401_v50 = vadd.f32 %v8338_v49, %v2400_v48 }
 0xcdd   :  { %v2402_v51 = vpop.f32.mrf.mxu2 }
 0xcde   :  { %v2403_v54 = vadd.f32 %v8338_v49, %v2402_v51 }
 0xce0   :  { %v2455_v40 = vpack.c.bf16 %v2403_v54, %v2401_v50 }
 0xce2   :  { %2465 = vmatpush.bf16.msra.mxu0 %v2455_v40 }
 0xce6   :  { %2466 = vmatpush.bf16.msra.mxu0 %v2454_v55 }
 0xcea   :  { %2527 = vmatpush.bf16.msrb.mxu0 %v7934_v56 }
 0xcee   :  { %2528 = vmatpush.bf16.msrb.mxu0 %v7933_v57 }
 0xcf2   :  { %2529 = vmatpush.bf16.msrb.mxu0 %v7932_v58 }
 0xcf6   :  { %2530 = vmatpush.bf16.msrb.mxu0 %v7931_v60  ;;  %v8341_v60 = vld [vmem:[%s8645_s8 + $0x7] ss:$0 sm:$0xff]  ;;  %s9390_s8 = sld [smem:[%s9782_s0 + %s8546_s4]]  }
 0xd3a   :  { %v2244_v0 = vpop.f32.mrf.mxu0 }
 0xd42   :  { %v2246_v2 = vpop.f32.mrf.mxu0 }
 0xd43   :  { %v2249_v3 = vpack.c.bf16 %v2246_v2, %v2244_v0  ;;  %v2478_v0 = vsel %vm1338_vm3, %v349_v24, 0 }
 0xd45   :  { %6574 = vmatmul.msk.bf16.vlgmr.msrb.gmra.mxu3 %vm1065_vm1, %v2249_v3  ;;  %v2575_v3 = vpop.f32.mrf.mxu1 }
 0xd46   :  { %2487 = vmatpush.bf16.msrb.mxu3 %v2478_v0 }
 0xd4a   :  { %v2308_v4 = vpop.f32.mrf.mxu0 }
 0xd4b   :  { %v2309_v7 = vadd.f32 %v8337_v5, %v2308_v4 }
 0xd52   :  { %v2310_v6 = vpop.f32.mrf.mxu0 }
 0xd53   :  { %v2311_v8 = vadd.f32 %v8337_v5, %v2310_v6 }
 0xd55   :  { %v2405_v10 = vpack.c.bf16 %v2311_v8, %v2309_v7 }
 0xd57   :  { %6628 = vmatmul.msk.bf16.vlgmr.msra.gmra.mxu3 %vm1065_vm1, %v2405_v10  ;;  %v2578_v10 = vpop.f32.mrf.mxu1 }
 0xd5f   :  { %v2580_v15 = vpop.f32.mrf.mxu1 }
 0xd60   :  { %v2581_v19 = vadd.f32 %v8339_v11, %v2580_v15  ;;  %v350_v15 = vld [vmem:[%s8706_s13 + $0x1c] sm:$0xf]  ;;  %s9408_s13 = sld [smem:[%s9782_s0 + %s8547_s9]]  }
 0xdc8   :  { %v2265_v14 = vpop.f32.mrf.mxu3 }
 0xdc9   :  { %v8907_v18 = vadd.f32 %v2265_v14, %v8858_v44  ;;  %v2579_v14 = vadd.f32 %v8339_v11, %v2578_v10 }
 0xdd0   :  { %v8911_v21 = vpop.f32.mrf.mxu3 }
 0xdda   :  { %v2426_v25 = vpop.f32.mrf.mxu3 }
 0xddb   :  { %v2427_v26 = vadd.f32 %v8867_v61, %v2426_v25  ;;  %v2576_v25 = vadd.f32 %v8339_v11, %v2575_v3 }
 0xddd   :  { %v2431_v44 = vsel %vm1089_vm2, %v2427_v26, -inf }
 0xdde   :  { %2432 = vmax.xlane.f32.xlu0 %v2431_v44 }
 0xde2   :  { %v2428_v62 = vpop.f32.mrf.mxu3 }
 0xde3   :  { %v2429_v9 = vadd.f32 %v8872_v63, %v2428_v62  ;;  %v2630_v62 = vpack.c.bf16 %v2576_v25, %v2574_v20 }
 0xde5   :  { %v2434_v28 = vsel %vm1089_vm2, %v2429_v9, -inf }
 0xde6   :  { %2435 = vmax.xlane.f32.xlu1 %v2434_v28 }
 0xe51   :  { %v2433_v33 = vpop.xlane.xlu0 %2432 }
 0xe52   :  { %v2437_v34 = vsub.f32 %v2427_v26, %v2433_v33  ;;  %v2631_v26 = vpack.c.bf16 %v2581_v19, %v2579_v14  ;;  %v2702_v19 = vsel %vm1338_vm3, %v350_v15, 0 }
 0xe54   :  { %v2439_v35 = vmul.f32 1.442695, %v2437_v34  ;;  %v2639_v44 = vsel %vm1065_vm1, %v2631_v26, 0 }
 0xe55   :  { %2647 = vmatpush.bf16.xpose.msra.mxu3 %v2639_v44  ;;  %v1374_v44 = vadd.f32 %v8728_v1, %v8744_v17 }
 0xe56   :  { %8423 = vpow2.f32 %v2439_v35 }
 0xe59   :  { %v2436_v36 = vpop.xlane.xlu1 %2435 }
 0xe5a   :  { %v2438_v37 = vsub.f32 %v2429_v9, %v2436_v36  ;;  %v2636_v9 = vsel %vm1065_vm1, %v2630_v62, 0  ;;  %v1599_v62 = vadd.f32 %v8776_v27, %v1374_v44  ;;  %v8003_v44 = vld [vmem:[%s9018_s1 + $0x20] sm:$0xff] }
 0xe5c   :  { %v8424_v39 = vpop.eup %8423  ;;  %v2441_v42 = vmul.f32 1.442695, %v2438_v37 }
 0xe5d   :  { %v2443_v43 = vsel %vm1089_vm2, %v8424_v39, 0.0  ;;  %2648 = vmatpush.bf16.xpose.msra.mxu3 %v2636_v9  ;;  %v8342_v9 = vld [vmem:[%s6219_s15] ss:$0 sm:$0xff]  ;;  %s9570_s15 = sld [smem:[%s9782_s0 + %s8548_s6]]  }
 0xe5e   :  { %8425 = vpow2.f32 %v2441_v42  ;;  %2444 = vadd.xlane.f32.xlu2 %v2443_v43  ;;  %v7996_v42 = vld [vmem:[%s8617_s29 + $0xe8] sm:$0xff]  ;;  %v7995_v43 = vld [vmem:[%s8617_s29 + $0xe0] sm:$0xff] }
 0xe64   :  { %v8426_v47 = vpop.eup %8425 }
 0xe65   :  { %v2446_v22 = vsel %vm1089_vm2, %v8426_v47, 0.0 }
 0xe66   :  { %2447 = vadd.xlane.f32.xlu0 %v2446_v22 }
 0xed1   :  { %v2445_v41 = vpop.xlane.xlu2 %2444 }
 0xed2   :  { %8427 = vrcp.f32 %v2445_v41 }
 0xed8   :  { %v8428_v4 = vpop.eup %8427 }
 0xed9   :  { %v2448_v2 = vpop.xlane.xlu0 %2447  ;;  %v2451_v6 = vmul.f32 %v8428_v4, %v8424_v39 }
 0xeda   :  { %8429 = vrcp.f32 %v2448_v2 }
 0xee0   :  { %v8430_v5 = vpop.eup %8429 }
 0xee1   :  { %v2452_v7 = vmul.f32 %v8430_v5, %v8426_v47 }
 0xee3   :  { %v2453_v8 = vpack.c.bf16 %v2452_v7, %v2451_v6 }
 0xee5   :  { %6629 = vmatmul.msk.bf16.vlgmr.msra.gmra.mxu0 %vm1089_vm2, %v2453_v8 }
 0xef5   :  { %6647 = vmatmul.msk.bf16.vlgmr.msrb.gmra.mxu0 %vm946_vm0, %v8594_v13  ;;  %v7998_v13 = vld [vmem:[%s8617_s29 + $0xf8] sm:$0xff]  ;;  %s6229_s29 = sld [smem:[%s9782_s0 + %s8544_s26]]  }
 0xef6   :  { %2614 = vmatpush.bf16.msra.mxu2 %v7998_v13 }
 0xefa   :  { %2615 = vmatpush.bf16.msra.mxu2 %v7997_v38 }
 0xefe   :  { %2616 = vmatpush.bf16.msra.mxu2 %v7996_v42 }
 0xf02   :  { %2617 = vmatpush.bf16.msra.mxu2 %v7995_v43 }
 0xf05   :  { %6682 = vmatmul.msk.bf16.vlgmr.msra.gmra.mxu2 %vm946_vm0, %v8592_v12 }
 0xf15   :  { %6683 = vmatmul.msk.bf16.gmra.mxu2 %vm946_vm0, %v8600_v16 }
 0xf62   :  { %v2468_v28 = vpop.f32.mrf.mxu0 }
 0xf6a   :  { %v2470_v29 = vpop.f32.mrf.mxu0 }
 0xf6b   :  { %v2473_v30 = vpack.c.bf16 %v2470_v29, %v2468_v28  ;;  %v1823_v29 = vadd.f32 %v8819_v45, %v1599_v62  ;;  %v8520_v45 = vld [vmem:[%s8584_s21 + $0x8] sm:$0xff]  ;;  %v8035_v62 = vld [vmem:[%s9023_s5 + $0x20] sm:$0xff] }
 0xf6d   :  { %6630 = vmatmul.msk.bf16.vlgmr.msrb.gmra.mxu3 %vm1065_vm1, %v2473_v30 }
 0xf6e   :  { %2711 = vmatpush.bf16.msrb.mxu3 %v2702_v19  ;;  %v8004_v19 = vld [vmem:[%s9018_s1 + $0x28] sm:$0xff] }
 0xf72   :  { %v2532_v31 = vpop.f32.mrf.mxu0 }
 0xf73   :  { %v2533_v34 = vadd.f32 %v8340_v32, %v2532_v31  ;;  %v2047_v31 = vadd.f32 %v8862_v59, %v1823_v29 }
 0xf7a   :  { %v2534_v33 = vpop.f32.mrf.mxu0 }
 0xf7b   :  { %v2535_v35 = vadd.f32 %v8340_v32, %v2534_v33  ;;  %v2271_v33 = vadd.f32 %v8911_v21, %v2047_v31 }
 0xf7d   :  { %v2629_v36 = vpack.c.bf16 %v2535_v35, %v2533_v34  ;;  %v8519_v34 = vld [vmem:[%s8584_s21] sm:$0xff]  ;;  %s8536_s21 = smov 15  }
 0xf7e   :  { %s9013_s27 = sld [smem:[%s9782_s0 + %s8536_s21]]   ;;  %s8551_s21 = smov 28  }
 0xf7f   :  { %6684 = vmatmul.msk.bf16.vlgmr.msra.gmra.mxu3 %vm1065_vm1, %v2629_v36 }
 0xff0   :  { %v2489_v37 = vpop.f32.mrf.mxu3 }
 0xff1   :  { %v8950_v39 = vadd.f32 %v2489_v37, %v8907_v18  ;;  %v8535_v37 = vmov 64.0  }
 0xff8   :  { %v8954_v46 = vpop.f32.mrf.mxu3 }
 0xff9   :  { %v2495_v36 = vadd.f32 %v8954_v46, %v2271_v33 }
0x1002   :  { %v2650_v47 = vpop.f32.mrf.mxu3 }
0x1003   :  { %v2651_v22 = vadd.f32 %v8867_v61, %v2650_v47  ;;  %v2619_v61 = vpop.f32.mrf.mxu2 }
0x1004   :  { %v2620_v24 = vadd.f32 %v8341_v60, %v2619_v61  ;;  %v8002_v61 = vld [vmem:[%s9018_s1 + $0x18] sm:$0xff] }
0x1005   :  { %v2655_v48 = vsel %vm1089_vm2, %v2651_v22, -inf }
0x1006   :  { %2656 = vmax.xlane.f32.xlu1 %v2655_v48 }
0x100a   :  { %v2652_v49 = vpop.f32.mrf.mxu3 }
0x100b   :  { %v2653_v18 = vadd.f32 %v8872_v63, %v2652_v49  ;;  %v2621_v63 = vpop.f32.mrf.mxu2 }
0x100c   :  { %v2622_v0 = vadd.f32 %v8341_v60, %v2621_v63  ;;  %v8033_v63 = vld [vmem:[%s9023_s5 + $0x10] sm:$0xff] }
0x100d   :  { %v2658_v50 = vsel %vm1089_vm2, %v2653_v18, -inf }
0x100e   :  { %2659 = vmax.xlane.f32.xlu2 %v2658_v50  ;;  %v2678_v4 = vpack.c.bf16 %v2622_v0, %v2620_v24  ;;  %v7999_v0 = vld [vmem:[%s9018_s1] sm:$0xff] }
0x1013   :  { %v2624_v16 = vpop.f32.mrf.mxu2 }
0x1014   :  { %v2625_v41 = vadd.f32 %v8341_v60, %v2624_v16  ;;  %v8032_v16 = vld [vmem:[%s9023_s5 + $0x8] sm:$0xff] }
0x101b   :  { %v2626_v23 = vpop.f32.mrf.mxu2 }
0x101c   :  { %v2627_v2 = vadd.f32 %v8341_v60, %v2626_v23  ;;  %v8064_v60 = vld [vmem:[%s9028_s11 + $0x8] sm:$0xff] }
0x101e   :  { %v2679_v3 = vpack.c.bf16 %v2627_v2, %v2625_v41  ;;  %v8031_v2 = vld [vmem:[%s9023_s5] sm:$0xff] }
0x1020   :  { %2689 = vmatpush.bf16.msra.mxu0 %v2679_v3  ;;  %v8063_v3 = vld [vmem:[%s9028_s11] sm:$0xff] }
0x1024   :  { %2690 = vmatpush.bf16.msra.mxu0 %v2678_v4  ;;  %v8006_v4 = vld [vmem:[%s9018_s1 + $0x38] sm:$0xff] }
0x1028   :  { %2823 = vmatpush.bf16.msrb.mxu0 %v8002_v61 }
0x1079   :  { %v2657_v51 = vpop.xlane.xlu1 %2656 }
0x107a   :  { %v2661_v52 = vsub.f32 %v2651_v22, %v2657_v51 }
0x107c   :  { %v2663_v53 = vmul.f32 1.442695, %v2661_v52 }
0x107e   :  { %8431 = vpow2.f32 %v2663_v53 }
0x1081   :  { %v2660_v12 = vpop.xlane.xlu2 %2659 }
0x1082   :  { %v2662_v54 = vsub.f32 %v2653_v18, %v2660_v12 }
0x1084   :  { %v8432_v40 = vpop.eup %8431  ;;  %v2665_v55 = vmul.f32 1.442695, %v2662_v54 }
0x1085   :  { %v2667_v56 = vsel %vm1089_vm2, %v8432_v40, 0.0 }
0x1086   :  { %8433 = vpow2.f32 %v2665_v55  ;;  %2668 = vadd.xlane.f32.xlu0 %v2667_v56  ;;  %v8066_v55 = vld [vmem:[%s9028_s11 + $0x18] sm:$0xff]  ;;  %v8001_v56 = vld [vmem:[%s9018_s1 + $0x10] sm:$0xff] }
0x1087   :  { %2905 = vmatpush.bf16.msrb.mxu2 %v8066_v55  ;;  %2824 = vmatpush.bf16.msrb.mxu0 %v8001_v56 }
0x108c   :  { %v8434_v57 = vpop.eup %8433 }
0x108d   :  { %v2670_v58 = vsel %vm1089_vm2, %v8434_v57, 0.0 }
0x108e   :  { %2671 = vadd.xlane.f32.xlu1 %v2670_v58  ;;  %v8000_v58 = vld [vmem:[%s9018_s1 + $0x8] sm:$0xff] }
0x108f   :  { %2825 = vmatpush.bf16.msrb.mxu0 %v8000_v58 }
0x1093   :  { %2826 = vmatpush.bf16.msrb.mxu0 %v7999_v0 }
0x10f9   :  { %v2669_v5 = vpop.xlane.xlu0 %2668 }
0x10fa   :  { %8435 = vrcp.f32 %v2669_v5  ;;  %v8038_v5 = vld [vmem:[%s9023_s5 + $0x38] sm:$0xff] }
0x1100   :  { %v8436_v7 = vpop.eup %8435 }
0x1101   :  { %v2672_v6 = vpop.xlane.xlu1 %2671  ;;  %v2675_v10 = vmul.f32 %v8436_v7, %v8432_v40  ;;  %v8034_v40 = vld [vmem:[%s9023_s5 + $0x18] sm:$0xff] }
0x1102   :  { %8437 = vrcp.f32 %v2672_v6  ;;  %2864 = vmatpush.bf16.msra.mxu1 %v8034_v40  ;;  %v8069_v40 = vld [vmem:[%s9028_s11 + $0x30] sm:$0xff] }
0x1103   :  { %8439 = vrcp.f32 %v8535_v37 }
0x1106   :  { %2865 = vmatpush.bf16.msra.mxu1 %v8033_v63 }
0x1108   :  { %v8438_v8 = vpop.eup %8437 }
0x1109   :  { %v2676_v11 = vmul.f32 %v8438_v8, %v8434_v57  ;;  %v8440_v38 = vpop.eup %8439  ;;  %v8065_v57 = vld [vmem:[%s9028_s11 + $0x10] sm:$0xff] }
0x110a   :  { %vm2738_vm4 = vweird.f32 %v8440_v38  ;;  %2906 = vmatpush.bf16.msrb.mxu2 %v8065_v57  ;;  %2866 = vmatpush.bf16.msra.mxu1 %v8032_v16  ;;  %v8005_v8 = vld [vmem:[%s9018_s1 + $0x30] sm:$0xff]  ;;  %v8068_v16 = vld [vmem:[%s9028_s11 + $0x28] sm:$0xff] }
0x110b   :  { %v2677_v14 = vpack.c.bf16 %v2676_v11, %v2675_v10  ;;  %v8037_v10 = vld [vmem:[%s9023_s5 + $0x30] sm:$0xff] }
0x110d   :  { %6685 = vmatmul.msk.bf16.vlgmr.msra.gmra.mxu0 %vm1089_vm2, %v2677_v14 }
0x110e   :  { %2907 = vmatpush.bf16.msrb.mxu2 %v8064_v60  ;;  %2867 = vmatpush.bf16.msra.mxu1 %v8031_v2 }
0x1112   :  { %2908 = vmatpush.bf16.msrb.mxu2 %v8063_v3  ;;  %3011 = vmatpush.bf16.msrb.mxu1 %v8006_v4 }
0x1116   :  { %3052 = vmatpush.bf16.msra.mxu2 %v8038_v5  ;;  %3012 = vmatpush.bf16.msrb.mxu1 %v8005_v8  ;;  %v9103_v5 = vld [vmem:[%s9100_s22] sm:$0xff] }
0x111a   :  { %3053 = vmatpush.bf16.msra.mxu2 %v8037_v10  ;;  %3013 = vmatpush.bf16.msrb.mxu1 %v8004_v19  ;;  %v9108_v10 = vld [vmem:[%s9100_s22 + $0x8] sm:$0xff] }
0x111e   :  { %3014 = vmatpush.bf16.msrb.mxu1 %v8003_v44 }
0x118a   :  { %v2692_v20 = vpop.f32.mrf.mxu0 }
0x1192   :  { %v2694_v25 = vpop.f32.mrf.mxu0 }
0x1193   :  { %v2697_v26 = vpack.c.bf16 %v2694_v25, %v2692_v20  ;;  %v8036_v20 = vld [vmem:[%s9023_s5 + $0x28] sm:$0xff] }
0x1194   :  { %3054 = vmatpush.bf16.msra.mxu2 %v8036_v20  ;;  %v8350_v20 = vld [vmem:[%s9068_s17 + $0x1] ss:$0 sm:$0xff] }
0x1195   :  { %6686 = vmatmul.msk.bf16.vlgmr.msrb.gmra.mxu3 %vm1065_vm1, %v2697_v26 }
0x1198   :  { %3055 = vmatpush.bf16.msra.mxu2 %v8035_v62 }
0x1218   :  { %v2713_v28 = vpop.f32.mrf.mxu3 }
0x1219   :  { %v2718_v30 = vadd.f32 %v2713_v28, %v8950_v39  ;;  %v2734_v39 = vmul.f32 64.0, %v8440_v38 }
0x121b   :  { %v2723_v32 = vadd.f32 %v8342_v9, %v2718_v30  ;;  %v2735_v42 = vsub.f32 1.0, %v2734_v39 }
0x121d   :  { %v2725_v35 = vadd.f32 %v8519_v34, %v2723_v32  ;;  %v2736_v43 = vmul.f32 %v8440_v38, %v2735_v42 }
0x121f   :  { %v2727_v1 = vsel %vm946_vm0, %v2725_v35, 0.0  ;;  %v2737_v46 = vadd.f32 %v8440_v38, %v2736_v43  ;;  %v8346_v43 = vld [vmem:[%s9057_s10] ss:$0 sm:$0xff] }
0x1220   :  { %v2715_v17 = vpop.f32.mrf.mxu3  ;;  %2728 = vadd.xlane.f32.xlu2 %v2727_v1 }
0x1221   :  { %v2719_v27 = vadd.f32 %v2715_v17, %v2495_v36  ;;  %v8996_v47 = vsel %vm2738_vm4, %v8440_v38, %v2737_v46 }
0x1223   :  { %v2724_v13 = vadd.f32 %v8342_v9, %v2719_v27  ;;  %v8344_v27 = vld [vmem:[%s8993_s24] ss:$0 sm:$0xff]  ;;  %s9666_s24 = sld [smem:[%s9782_s0 + %s8550_s20]]  }
0x1225   :  { %v2726_v59 = vadd.f32 %v8520_v45, %v2724_v13 }
0x1227   :  { %v2730_v21 = vsel %vm946_vm0, %v2726_v59, 0.0 }
0x1228   :  { %2731 = vadd.xlane.f32.xlu0 %v2730_v21 }
0x1293   :  { %v2729_v22 = vpop.xlane.xlu2 %2728 }
0x1294   :  { %v2740_v48 = vmul.f32 %v8996_v47, %v2729_v22 }
0x1296   :  { %v8999_v49 = vsub.f32 %v2725_v35, %v2740_v48  ;;  %v8343_v35 = vld [vmem:[%s8987_s19] ss:$0 sm:$0xff]  ;;  %s9641_s19 = sld [smem:[%s9782_s0 + %s8549_s16]]  }
0x1298   :  { %v2744_v18 = vmul.f32 %v8999_v49, %v8999_v49 }
0x129a   :  { %v2746_v50 = vsel %vm946_vm0, %v2744_v18, 0.0 }
0x129b   :  { %v2732_v51 = vpop.xlane.xlu0 %2731  ;;  %2747 = vadd.xlane.f32.xlu1 %v2746_v50  ;;  %v8070_v50 = vld [vmem:[%s9028_s11 + $0x38] sm:$0xff] }
0x129c   :  { %v2741_v52 = vmul.f32 %v8996_v47, %v2732_v51  ;;  %v8347_v51 = vld [vmem:[%s9068_s17] ss:$0 sm:$0xff] }
0x129e   :  { %v9005_v53 = vsub.f32 %v2726_v59, %v2741_v52 }
0x12a0   :  { %v2745_v12 = vmul.f32 %v9005_v53, %v9005_v53 }
0x12a2   :  { %v2749_v54 = vsel %vm946_vm0, %v2745_v12, 0.0 }
0x12a3   :  { %2750 = vadd.xlane.f32.xlu2 %v2749_v54 }
0x130e   :  { %v2748_v41 = vpop.xlane.xlu1 %2747 }
0x130f   :  { %v2752_v23 = vmul.f32 %v2748_v41, %v8996_v47  ;;  %v8067_v41 = vld [vmem:[%s9028_s11 + $0x20] sm:$0xff] }
0x1311   :  { %v2754_v24 = vadd.f32 1e-05, %v2752_v23  ;;  %v8349_v23 = vld [vmem:[%s9057_s10 + $0x1] ss:$0 sm:$0xff] }
0x1313   :  { %8441 = vrsqrt.f32 %v2754_v24  ;;  %vm2762_vm6 = vweird.f32 %v2754_v24 }
0x1316   :  { %v2751_v6 = vpop.xlane.xlu2 %2750 }
0x1317   :  { %v2753_v7 = vmul.f32 %v2751_v6, %v8996_v47 }
0x1319   :  { %v8442_v11 = vpop.eup %8441  ;;  %v2755_v14 = vadd.f32 1e-05, %v2753_v7 }
0x131a   :  { %v2757_v15 = vmul.f32 %v8442_v11, %v2754_v24  ;;  %vm2763_vm5 = vweird.f32 %v8442_v11 }
0x131b   :  { %8443 = vrsqrt.f32 %v2755_v14  ;;  %vm2764_vm7 = vmor %vm2762_vm6, %vm2763_vm5  ;;  %vm2772_vm9 = vweird.f32 %v2755_v14 }
0x131c   :  { %v2758_v25 = vmul.f32 %v8442_v11, %v2757_v15 }
0x131e   :  { %v2759_v26 = vmul.f32 0.5, %v2758_v25 }
0x1320   :  { %v2760_v9 = vsub.f32 1.5, %v2759_v26 }
0x1321   :  { %v8444_v28 = vpop.eup %8443 }
0x1322   :  { %v2761_v29 = vmul.f32 %v8442_v11, %v2760_v9  ;;  %v2767_v30 = vmul.f32 %v8444_v28, %v2755_v14  ;;  %vm2773_vm8 = vweird.f32 %v8444_v28 }
0x1323   :  { %vm2774_vm10 = vmor %vm2772_vm9, %vm2773_vm8 }
0x1324   :  { %v2768_v31 = vmul.f32 %v8444_v28, %v2767_v30  ;;  %v2765_v32 = vsel %vm2764_vm7, %v8442_v11, %v2761_v29 }
0x1325   :  { %v2776_v36 = vmul.f32 %v2765_v32, %v8999_v49 }
0x1326   :  { %v2769_v33 = vmul.f32 0.5, %v2768_v31 }
0x1327   :  { %v2781_v13 = vmul.f32 %v8343_v35, %v2776_v36 }
0x1328   :  { %v2770_v34 = vsub.f32 1.5, %v2769_v33 }
0x1329   :  { %v9061_v21 = vadd.f32 %v8344_v27, %v2781_v13 }
0x132a   :  { %v2771_v1 = vmul.f32 %v8444_v28, %v2770_v34 }
0x132c   :  { %v2775_v17 = vsel %vm2774_vm10, %v8444_v28, %v2771_v1 }
0x132d   :  { %v2777_v45 = vmul.f32 %v2775_v17, %v9005_v53  ;;  %v8345_v53 = vld [vmem:[%s9013_s27] ss:$0 sm:$0xff] }
0x132f   :  { %v2782_v59 = vmul.f32 %v8343_v35, %v2777_v45 }
0x1331   :  { %v9063_v37 = vadd.f32 %v8344_v27, %v2782_v59 }
0x1333   :  { %v9072_v38 = vpack.c.bf16 %v9063_v37, %v9061_v21 }
0x1335   :  { %6703 = vmatmul.msk.bf16.vlgmr.msrb.gmra.mxu0 %vm946_vm0, %v9072_v38  ;;  %6720 = vmatmul.msk.bf16.vlgmr.msra.gmra.mxu1 %vm946_vm0, %v9072_v38 }
0x1336   :  { %6737 = vmatmul.msk.bf16.vlgmr.msrb.gmra.mxu2 %vm946_vm0, %v9072_v38 }
0x1345   :  { %6756 = vmatmul.msk.bf16.vlgmr.msrb.gmra.mxu1 %vm946_vm0, %v9072_v38 }
0x1346   :  { %6773 = vmatmul.msk.bf16.vlgmr.msra.gmra.mxu2 %vm946_vm0, %v9072_v38 }
0x13b2   :  { %v2869_v39 = vpop.f32.mrf.mxu1  ;;  %v2828_v42 = vpop.f32.mrf.mxu0 }
0x13b3   :  { %v2870_v48 = vadd.f32 %v8346_v43, %v2869_v39  ;;  %v2829_v63 = vadd.f32 %v8345_v53, %v2828_v42  ;;  %v8010_v42 = vld [vmem:[%s9018_s1 + $0x58] sm:$0xff] }
0x13b9   :  { %v2910_v46 = vpop.f32.mrf.mxu2 }
0x13ba   :  { %v2871_v22 = vpop.f32.mrf.mxu1  ;;  %v2830_v52 = vpop.f32.mrf.mxu0  ;;  %v2911_v55 = vadd.f32 %v8347_v51, %v2910_v46  ;;  %v8009_v46 = vld [vmem:[%s9018_s1 + $0x50] sm:$0xff] }
0x13bb   :  { %v2872_v49 = vadd.f32 %v8346_v43, %v2871_v22  ;;  %v2831_v54 = vadd.f32 %v8345_v53, %v2830_v52  ;;  %v8008_v22 = vld [vmem:[%s9018_s1 + $0x48] sm:$0xff]  ;;  %v570_v53 = vld [vmem:[%s9127_s25] sm:$0xf] }
0x13bd   :  { %v2916_v18 = vpack.c.bf16 %v2872_v49, %v2870_v48  ;;  %v2915_v58 = vpack.c.bf16 %v2831_v54, %v2829_v63  ;;  %v8348_v49 = vld [vmem:[%s9013_s27 + $0x1] ss:$0 sm:$0xff] }
0x13bf   :  { %v2921_v12 = vsel %vm1065_vm1, %v2916_v18, 0  ;;  %v8007_v18 = vld [vmem:[%s9018_s1 + $0x40] sm:$0xff] }
0x13c0   :  { %2930 = vmatpush.bf16.xpose.msra.mxu3 %v2921_v12  ;;  %v3191_v12 = vsel %vm1338_vm3, %v570_v53, 0 }
0x13c1   :  { %v2912_v61 = vpop.f32.mrf.mxu2 }
0x13c2   :  { %v2913_v56 = vadd.f32 %v8347_v51, %v2912_v61  ;;  %v3016_v39 = vpop.f32.mrf.mxu1 }
0x13c3   :  { %v3017_v51 = vadd.f32 %v8348_v49, %v3016_v39  ;;  %v8352_v39 = vld [vmem:[%s9057_s10 + $0x2] ss:$0 sm:$0xff] }
0x13c4   :  { %v2961_v57 = vpack.c.bf16 %v2913_v56, %v2911_v55 }
0x13c6   :  { %2972 = vmatpush.bf16.msra.mxu0 %v2961_v57 }
0x13c7   :  { %6738 = vmatmul.msk.bf16.vlgmr.msra.gmra.mxu3 %vm1065_vm1, %v2915_v58 }
0x13c8   :  { %3093 = vmatpush.bf16.msrb.mxu3 %v8070_v50 }
0x13c9   :  { %v3057_v60 = vpop.f32.mrf.mxu2 }
0x13ca   :  { %v3058_v0 = vadd.f32 %v8349_v23, %v3057_v60  ;;  %v3018_v48 = vpop.f32.mrf.mxu1 }
0x13cb   :  { %v3019_v50 = vadd.f32 %v8348_v49, %v3018_v48  ;;  %v8046_v48 = vld [vmem:[%s9023_s5 + $0x78] sm:$0xff] }
0x13cc   :  { %3094 = vmatpush.bf16.msrb.mxu3 %v8069_v40 }
0x13cd   :  { %v3103_v52 = vpack.c.bf16 %v3019_v50, %v3017_v51 }
0x13d0   :  { %3095 = vmatpush.bf16.msrb.mxu3 %v8068_v16 }
0x13d1   :  { %v3059_v24 = vpop.f32.mrf.mxu2 }
0x13d2   :  { %v3060_v2 = vadd.f32 %v8349_v23, %v3059_v24 }
0x13d4   :  { %3096 = vmatpush.bf16.msrb.mxu3 %v8067_v41  ;;  %v3104_v3 = vpack.c.bf16 %v3060_v2, %v3058_v0 }
0x13d6   :  { %v3109_v4 = vsel %vm1065_vm1, %v3104_v3, 0 }
0x13d7   :  { %3118 = vmatpush.bf16.xpose.msrb.mxu0 %v3109_v4  ;;  %6790 = vmatmul.msk.bf16.vlgmr.msrb.gmra.mxu3 %vm946_vm0, %v9072_v38 }
0x13d8   :  { %3200 = vmatpush.bf16.msra.mxu3 %v3191_v12 }
0x144a   :  { %v2932_v6 = vpop.f32.mrf.mxu3 }
0x144b   :  { %v2933_v7 = vadd.f32 %v2932_v6, %v9103_v5 }
0x144d   :  { %v2938_v8 = vsel %vm2937_vm11, %v2933_v7, -inf }
0x144e   :  { %2939 = vmax.xlane.f32.xlu0 %v2938_v8  ;;  %v8042_v8 = vld [vmem:[%s9023_s5 + $0x58] sm:$0xff] }
0x1452   :  { %v2934_v11 = vpop.f32.mrf.mxu3 }
0x1453   :  { %v2935_v14 = vadd.f32 %v2934_v11, %v9108_v10  ;;  %v8041_v11 = vld [vmem:[%s9023_s5 + $0x50] sm:$0xff] }
0x1455   :  { %v2941_v15 = vsel %vm2937_vm11, %v2935_v14, -inf }
0x1456   :  { %2942 = vmax.xlane.f32.xlu1 %v2941_v15  ;;  %v8039_v15 = vld [vmem:[%s9023_s5 + $0x40] sm:$0xff] }
0x145a   :  { %v3098_v19 = vpop.f32.mrf.mxu3 }
0x145b   :  { %v3099_v26 = vadd.f32 %v8350_v20, %v3098_v19 }
0x1462   :  { %v3100_v25 = vpop.f32.mrf.mxu3 }
0x1463   :  { %v3101_v44 = vadd.f32 %v8350_v20, %v3100_v25 }
0x1465   :  { %v3148_v62 = vpack.c.bf16 %v3101_v44, %v3099_v26 }
0x1467   :  { %3159 = vmatpush.bf16.msra.mxu1 %v3148_v62 }
0x146b   :  { %3279 = vmatpush.bf16.msrb.mxu1 %v8042_v8 }
0x146f   :  { %3280 = vmatpush.bf16.msrb.mxu1 %v8041_v11 }
0x14c1   :  { %v2940_v9 = vpop.xlane.xlu0 %2939 }
0x14c2   :  { %v2944_v28 = vsub.f32 %v2933_v7, %v2940_v9 }
0x14c4   :  { %v2946_v29 = vmul.f32 1.442695, %v2944_v28  ;;  %v571_v28 = vld [vmem:[%s9127_s25 + $0x4] sm:$0xf] }
0x14c6   :  { %8445 = vpow2.f32 %v2946_v29  ;;  %v3171_v29 = vsel %vm1338_vm3, %v571_v28, 0 }
0x14c7   :  { %3180 = vmatpush.bf16.msrb.mxu2 %v3171_v29 }
0x14c9   :  { %v2943_v30 = vpop.xlane.xlu1 %2942 }
0x14ca   :  { %v2945_v31 = vsub.f32 %v2935_v14, %v2943_v30  ;;  %v8040_v14 = vld [vmem:[%s9023_s5 + $0x48] sm:$0xff]  ;;  %v8074_v30 = vld [vmem:[%s9028_s11 + $0x58] sm:$0xff] }
0x14cb   :  { %3281 = vmatpush.bf16.msrb.mxu1 %v8040_v14  ;;  %3320 = vmatpush.bf16.msra.mxu2 %v8074_v30  ;;  %v8355_v14 = vld [vmem:[%s9057_s10 + $0x3] ss:$0 sm:$0xff] }
0x14cc   :  { %v8446_v32 = vpop.eup %8445  ;;  %v2948_v33 = vmul.f32 1.442695, %v2945_v31  ;;  %v8073_v31 = vld [vmem:[%s9028_s11 + $0x50] sm:$0xff] }
0x14cd   :  { %v2950_v34 = vsel %vm2937_vm11, %v8446_v32, 0.0 }
0x14ce   :  { %8447 = vpow2.f32 %v2948_v33  ;;  %2951 = vadd.xlane.f32.xlu2 %v2950_v34  ;;  %v8071_v33 = vld [vmem:[%s9028_s11 + $0x40] sm:$0xff] }
0x14cf   :  { %3282 = vmatpush.bf16.msrb.mxu1 %v8039_v15  ;;  %3321 = vmatpush.bf16.msra.mxu2 %v8073_v31 }
0x14d4   :  { %v8448_v35 = vpop.eup %8447 }
0x14d5   :  { %v2953_v36 = vsel %vm2937_vm11, %v8448_v35, 0.0 }
0x14d6   :  { %2954 = vadd.xlane.f32.xlu0 %v2953_v36  ;;  %v8014_v36 = vld [vmem:[%s9018_s1 + $0x78] sm:$0xff] }
0x1541   :  { %v2952_v1 = vpop.xlane.xlu2 %2951 }
0x1542   :  { %8449 = vrcp.f32 %v2952_v1 }
0x1548   :  { %v8450_v27 = vpop.eup %8449 }
0x1549   :  { %v2955_v17 = vpop.xlane.xlu0 %2954  ;;  %v2958_v45 = vmul.f32 %v8450_v27, %v8446_v32  ;;  %v8072_v32 = vld [vmem:[%s9028_s11 + $0x48] sm:$0xff] }
0x154a   :  { %8451 = vrcp.f32 %v2955_v17  ;;  %3322 = vmatpush.bf16.msra.mxu2 %v8072_v32  ;;  %v8013_v17 = vld [vmem:[%s9018_s1 + $0x70] sm:$0xff] }
0x154e   :  { %3323 = vmatpush.bf16.msra.mxu2 %v8071_v33 }
0x1550   :  { %v8452_v13 = vpop.eup %8451 }
0x1551   :  { %v2959_v59 = vmul.f32 %v8452_v13, %v8448_v35  ;;  %v8012_v13 = vld [vmem:[%s9018_s1 + $0x68] sm:$0xff] }
0x1553   :  { %v2960_v43 = vpack.c.bf16 %v2959_v59, %v2958_v45  ;;  %v8011_v59 = vld [vmem:[%s9018_s1 + $0x60] sm:$0xff] }
0x1555   :  { %6739 = vmatmul.msk.bf16.vlgmr.msra.gmra.mxu0 %vm2937_vm11, %v2960_v43 }
0x1556   :  { %3238 = vmatpush.bf16.msra.mxu0 %v8010_v42 }
0x155a   :  { %3239 = vmatpush.bf16.msra.mxu0 %v8009_v46 }
0x155e   :  { %3240 = vmatpush.bf16.msra.mxu0 %v8008_v22 }
0x1562   :  { %3241 = vmatpush.bf16.msra.mxu0 %v8007_v18  ;;  %v8351_v18 = vld [vmem:[%s9013_s27 + $0x2] ss:$0 sm:$0xff] }
0x1565   :  { %6791 = vmatmul.msk.bf16.vlgmr.msrb.gmra.mxu0 %vm1065_vm1, %v3103_v52  ;;  %v8045_v52 = vld [vmem:[%s9023_s5 + $0x70] sm:$0xff] }
0x1575   :  { %6811 = vmatmul.msk.bf16.vlgmr.msra.gmra.mxu0 %vm946_vm0, %v9072_v38 }
0x15d2   :  { %v2974_v54 = vpop.f32.mrf.mxu0 }
0x15da   :  { %v2976_v61 = vpop.f32.mrf.mxu0 }
0x15db   :  { %v2979_v40 = vpack.c.bf16 %v2976_v61, %v2974_v54  ;;  %v8044_v54 = vld [vmem:[%s9023_s5 + $0x68] sm:$0xff]  ;;  %v8043_v61 = vld [vmem:[%s9023_s5 + $0x60] sm:$0xff] }
0x15dd   :  { %6794 = vmatmul.msk.bf16.vlgmr.msra.gmra.mxu3 %vm1065_vm1, %v2979_v40 }
0x15e2   :  { %v3120_v55 = vpop.f32.mrf.mxu0 }
0x15e3   :  { %v3121_v56 = vadd.f32 %v3120_v55, %v9103_v5 }
0x15e5   :  { %v3125_v63 = vsel %vm2937_vm11, %v3121_v56, -inf }
0x15e6   :  { %3126 = vmax.xlane.f32.xlu1 %v3125_v63 }
0x15ea   :  { %v3122_v57 = vpop.f32.mrf.mxu0 }
0x15eb   :  { %v3123_v58 = vadd.f32 %v3122_v57, %v9108_v10 }
0x15ed   :  { %v3128_v16 = vsel %vm2937_vm11, %v3123_v58, -inf }
0x15ee   :  { %3129 = vmax.xlane.f32.xlu2 %v3128_v16  ;;  %v572_v16 = vld [vmem:[%s9127_s25 + $0x8] sm:$0xf] }
0x15f2   :  { %v3243_v45 = vpop.f32.mrf.mxu0 }
0x15f3   :  { %v3244_v53 = vadd.f32 %v8351_v18, %v3243_v45 }
0x15fa   :  { %v3245_v49 = vpop.f32.mrf.mxu0 }
0x15fb   :  { %v3246_v51 = vadd.f32 %v8351_v18, %v3245_v49  ;;  %v8015_v49 = vld [vmem:[%s9018_s1 + $0x80] sm:$0xff] }
0x15fd   :  { %v3330_v12 = vpack.c.bf16 %v3246_v51, %v3244_v53 }
0x1659   :  { %v3127_v60 = vpop.xlane.xlu1 %3126 }
0x165a   :  { %v3131_v41 = vsub.f32 %v3121_v56, %v3127_v60  ;;  %v3398_v60 = vsel %vm1338_vm3, %v572_v16, 0  ;;  %v8047_v16 = vld [vmem:[%s9023_s5 + $0x80] sm:$0xff] }
0x165c   :  { %v3133_v23 = vmul.f32 1.442695, %v3131_v41 }
0x165e   :  { %8453 = vpow2.f32 %v3133_v23 }
0x1660   :  { %v9172_v55 = vpop.f32.mrf.mxu3 }
0x1661   :  { %v3130_v24 = vpop.xlane.xlu2 %3129 }
0x1662   :  { %v3132_v0 = vsub.f32 %v3123_v58, %v3130_v24  ;;  %v8353_v58 = vld [vmem:[%s9068_s17 + $0x2] ss:$0 sm:$0xff] }
0x1664   :  { %v8454_v2 = vpop.eup %8453  ;;  %v3135_v3 = vmul.f32 1.442695, %v3132_v0 }
0x1665   :  { %v3137_v4 = vsel %vm2937_vm11, %v8454_v2, 0.0 }
0x1666   :  { %8455 = vpow2.f32 %v3135_v3  ;;  %3138 = vadd.xlane.f32.xlu0 %v3137_v4 }
0x1668   :  { %v9176_v57 = vpop.f32.mrf.mxu3 }
0x166c   :  { %v8456_v6 = vpop.eup %8455 }
0x166d   :  { %v3140_v7 = vsel %vm2937_vm11, %v8456_v6, 0.0 }
0x166e   :  { %3141 = vadd.xlane.f32.xlu1 %v3140_v7 }
0x16d9   :  { %v3139_v19 = vpop.xlane.xlu0 %3138 }
0x16da   :  { %8457 = vrcp.f32 %v3139_v19 }
0x16e0   :  { %v8458_v25 = vpop.eup %8457 }
0x16e1   :  { %v3142_v20 = vpop.xlane.xlu1 %3141  ;;  %v3145_v44 = vmul.f32 %v8458_v25, %v8454_v2 }
0x16e2   :  { %8459 = vrcp.f32 %v3142_v20 }
0x16e8   :  { %v8460_v26 = vpop.eup %8459 }
0x16e9   :  { %v3146_v62 = vmul.f32 %v8460_v26, %v8456_v6 }
0x16eb   :  { %v3147_v9 = vpack.c.bf16 %v3146_v62, %v3145_v44 }
0x16ed   :  { %6792 = vmatmul.msk.bf16.vlgmr.msra.gmra.mxu1 %vm2937_vm11, %v3147_v9 }
0x16ee   :  { %3407 = vmatpush.bf16.msra.mxu1 %v3398_v60 }
0x16fd   :  { %6828 = vmatmul.msk.bf16.vlgmr.msrb.gmra.mxu1 %vm946_vm0, %v9072_v38 }
0x176a   :  { %v3161_v34 = vpop.f32.mrf.mxu1 }
0x1772   :  { %v3163_v35 = vpop.f32.mrf.mxu1 }
0x1773   :  { %v3166_v1 = vpack.c.bf16 %v3163_v35, %v3161_v34  ;;  %v8078_v35 = vld [vmem:[%s9028_s11 + $0x78] sm:$0xff] }
0x1775   :  { %6793 = vmatmul.msk.bf16.vlgmr.msrb.gmra.mxu2 %vm1065_vm1, %v3166_v1  ;;  %v8076_v1 = vld [vmem:[%s9028_s11 + $0x68] sm:$0xff] }
0x1776   :  { %3447 = vmatpush.bf16.msrb.mxu2 %v8014_v36  ;;  %v8077_v36 = vld [vmem:[%s9028_s11 + $0x70] sm:$0xff] }
0x177a   :  { %v3284_v27 = vpop.f32.mrf.mxu1  ;;  %3448 = vmatpush.bf16.msrb.mxu2 %v8013_v17  ;;  %v8075_v17 = vld [vmem:[%s9028_s11 + $0x60] sm:$0xff] }
0x177b   :  { %v3285_v43 = vadd.f32 %v8352_v39, %v3284_v27 }
0x177e   :  { %3449 = vmatpush.bf16.msrb.mxu2 %v8012_v13 }
0x1782   :  { %v3286_v42 = vpop.f32.mrf.mxu1  ;;  %3450 = vmatpush.bf16.msrb.mxu2 %v8011_v59 }
0x1783   :  { %v3287_v46 = vadd.f32 %v8352_v39, %v3286_v42 }
0x1785   :  { %v3331_v22 = vpack.c.bf16 %v3287_v46, %v3285_v43  ;;  %6845 = vmatmul.msk.bf16.vlgmr.msra.gmra.mxu2 %vm946_vm0, %v9072_v38  ;;  %v8018_v43 = vld [vmem:[%s9018_s1 + $0x98] sm:$0xff] }
0x1787   :  { %v3336_v50 = vsel %vm1065_vm1, %v3331_v22, 0  ;;  %v8017_v22 = vld [vmem:[%s9018_s1 + $0x90] sm:$0xff] }
0x1788   :  { %3345 = vmatpush.bf16.xpose.msrb.mxu3 %v3336_v50 }
0x178f   :  { %6846 = vmatmul.msk.bf16.vlgmr.msrb.gmra.mxu3 %vm1065_vm1, %v3330_v12  ;;  %v8049_v12 = vld [vmem:[%s9023_s5 + $0x90] sm:$0xff] }
0x1790   :  { %3488 = vmatpush.bf16.msra.mxu3 %v8046_v48  ;;  %v8016_v48 = vld [vmem:[%s9018_s1 + $0x88] sm:$0xff] }
0x1794   :  { %3489 = vmatpush.bf16.msra.mxu3 %v8045_v52  ;;  %v8050_v52 = vld [vmem:[%s9023_s5 + $0x98] sm:$0xff] }
0x1795   :  { %6865 = vmatmul.msk.bf16.vlgmr.msrb.gmra.mxu2 %vm946_vm0, %v9072_v38 }
0x1798   :  { %3490 = vmatpush.bf16.msra.mxu3 %v8044_v54 }
0x179c   :  { %3491 = vmatpush.bf16.msra.mxu3 %v8043_v61  ;;  %v8048_v61 = vld [vmem:[%s9023_s5 + $0x88] sm:$0xff] }
0x179f   :  { %6882 = vmatmul.msk.bf16.vlgmr.msra.gmra.mxu3 %vm946_vm0, %v9072_v38 }
0x17f8   :  { %v9170_v40 = vpop.f32.mrf.mxu2 }
0x1800   :  { %v9174_v56 = vpop.f32.mrf.mxu2 }
0x1808   :  { %v3325_v63 = vpop.f32.mrf.mxu2 }
0x1809   :  { %v3326_v23 = vadd.f32 %v8353_v58, %v3325_v63 }
0x1810   :  { %v3327_v41 = vpop.f32.mrf.mxu2 }
0x1811   :  { %v3328_v24 = vadd.f32 %v8353_v58, %v3327_v41  ;;  %v8354_v58 = vld [vmem:[%s9013_s27 + $0x3] ss:$0 sm:$0xff] }
0x1812   :  { %v3347_v0 = vpop.f32.mrf.mxu3  ;;  %v8356_v41 = vld [vmem:[%s9068_s17 + $0x3] ss:$0 sm:$0xff] }
0x1813   :  { %v3375_v2 = vpack.c.bf16 %v3328_v24, %v3326_v23  ;;  %v3348_v3 = vadd.f32 %v3347_v0, %v9103_v5 }
0x1815   :  { %3386 = vmatpush.bf16.msrb.mxu0 %v3375_v2  ;;  %v3352_v4 = vsel %vm2937_vm11, %v3348_v3, -inf }
0x1816   :  { %3353 = vmax.xlane.f32.xlu2 %v3352_v4 }
0x1818   :  { %v3452_v50 = vpop.f32.mrf.mxu2 }
0x1819   :  { %3529 = vmatpush.bf16.msra.mxu0 %v8078_v35  ;;  %v3453_v23 = vadd.f32 %v8354_v58, %v3452_v50 }
0x181a   :  { %v3349_v6 = vpop.f32.mrf.mxu3 }
0x181b   :  { %v3350_v7 = vadd.f32 %v3349_v6, %v9108_v10  ;;  %v3203_v6 = vadd.f32 %v9172_v55, %v9170_v40 }
0x181d   :  { %v3355_v8 = vsel %vm2937_vm11, %v3350_v7, -inf  ;;  %3530 = vmatpush.bf16.msra.mxu0 %v8077_v36 }
0x181e   :  { %3356 = vmax.xlane.f32.xlu0 %v3355_v8 }
0x1820   :  { %v3454_v63 = vpop.f32.mrf.mxu2 }
0x1821   :  { %3531 = vmatpush.bf16.msra.mxu0 %v8076_v1  ;;  %v3455_v60 = vadd.f32 %v8354_v58, %v3454_v63 }
0x1822   :  { %v3493_v11 = vpop.f32.mrf.mxu3 }
0x1823   :  { %v3494_v19 = vadd.f32 %v8355_v14, %v3493_v11  ;;  %v3539_v0 = vpack.c.bf16 %v3455_v60, %v3453_v23 }
0x1825   :  { %3532 = vmatpush.bf16.msra.mxu0 %v8075_v17 }
0x182a   :  { %v3495_v15 = vpop.f32.mrf.mxu3 }
0x182b   :  { %v3496_v20 = vadd.f32 %v8355_v14, %v3495_v15  ;;  %v573_v14 = vld [vmem:[%s9127_s25 + $0xc] sm:$0xf] }
0x182c   :  { %v3607_v15 = vsel %vm1338_vm3, %v573_v14, 0 }
0x182d   :  { %v3540_v25 = vpack.c.bf16 %v3496_v20, %v3494_v19  ;;  %3616 = vmatpush.bf16.msrb.mxu3 %v3607_v15 }
0x182f   :  { %v3545_v26 = vsel %vm1065_vm1, %v3540_v25, 0 }
0x1830   :  { %3554 = vmatpush.bf16.xpose.msrb.mxu1 %v3545_v26 }
0x1889   :  { %v3354_v44 = vpop.xlane.xlu2 %3353 }
0x188a   :  { %v3358_v62 = vsub.f32 %v3348_v3, %v3354_v44 }
0x188c   :  { %v3360_v9 = vmul.f32 1.442695, %v3358_v62  ;;  %v8358_v62 = vld [vmem:[%s9057_s10 + $0x4] ss:$0 sm:$0xff] }
0x188e   :  { %8461 = vpow2.f32 %v3360_v9 }
0x1891   :  { %v3357_v28 = vpop.xlane.xlu0 %3356 }
0x1892   :  { %v3359_v29 = vsub.f32 %v3350_v7, %v3357_v28 }
0x1894   :  { %v8462_v30 = vpop.eup %8461  ;;  %v3362_v31 = vmul.f32 1.442695, %v3359_v29 }
0x1895   :  { %v3364_v32 = vsel %vm2937_vm11, %v8462_v30, 0.0 }
0x1896   :  { %8463 = vpow2.f32 %v3362_v31  ;;  %3365 = vadd.xlane.f32.xlu1 %v3364_v32 }
0x189c   :  { %v8464_v33 = vpop.eup %8463 }
0x189d   :  { %v3367_v34 = vsel %vm2937_vm11, %v8464_v33, 0.0 }
0x189e   :  { %3368 = vadd.xlane.f32.xlu2 %v3367_v34 }
0x1909   :  { %v3366_v27 = vpop.xlane.xlu1 %3365 }
0x190a   :  { %8465 = vrcp.f32 %v3366_v27 }
0x1910   :  { %v8466_v45 = vpop.eup %8465 }
0x1911   :  { %v3369_v13 = vpop.xlane.xlu2 %3368  ;;  %v3372_v39 = vmul.f32 %v8466_v45, %v8462_v30 }
0x1912   :  { %8467 = vrcp.f32 %v3369_v13 }
0x1918   :  { %v8468_v59 = vpop.eup %8467 }
0x1919   :  { %v3373_v42 = vmul.f32 %v8468_v59, %v8464_v33  ;;  %v8082_v59 = vld [vmem:[%s9028_s11 + $0x98] sm:$0xff] }
0x191b   :  { %v3374_v46 = vpack.c.bf16 %v3373_v42, %v3372_v39  ;;  %v8081_v39 = vld [vmem:[%s9028_s11 + $0x90] sm:$0xff]  ;;  %v8080_v42 = vld [vmem:[%s9028_s11 + $0x88] sm:$0xff] }
0x191d   :  { %6847 = vmatmul.msk.bf16.vlgmr.msrb.gmra.mxu0 %vm2937_vm11, %v3374_v46 }
0x191e   :  { %3656 = vmatpush.bf16.msrb.mxu0 %v8018_v43  ;;  %v8079_v43 = vld [vmem:[%s9028_s11 + $0x80] sm:$0xff] }
0x1922   :  { %3657 = vmatpush.bf16.msrb.mxu0 %v8017_v22 }
0x1926   :  { %3658 = vmatpush.bf16.msrb.mxu0 %v8016_v48 }
0x192a   :  { %3659 = vmatpush.bf16.msrb.mxu0 %v8015_v49 }
0x192d   :  { %6899 = vmatmul.msk.bf16.vlgmr.msra.gmra.mxu0 %vm946_vm0, %v9072_v38 }
0x193d   :  { %6919 = vmatmul.msk.bf16.vlgmr.msrb.gmra.mxu0 %vm946_vm0, %v9072_v38 }
0x199a   :  { %v3388_v18 = vpop.f32.mrf.mxu0 }
0x19a2   :  { %v3390_v51 = vpop.f32.mrf.mxu0 }
0x19a3   :  { %v3393_v53 = vpack.c.bf16 %v3390_v51, %v3388_v18  ;;  %v8022_v51 = vld [vmem:[%s9018_s1 + $0xb8] sm:$0xff] }
0x19a5   :  { %6848 = vmatmul.msk.bf16.vlgmr.msra.gmra.mxu1 %vm1065_vm1, %v3393_v53  ;;  %v8021_v53 = vld [vmem:[%s9018_s1 + $0xb0] sm:$0xff] }
0x19a6   :  { %3697 = vmatpush.bf16.msra.mxu1 %v8050_v52 }
0x19aa   :  { %v3534_v54 = vpop.f32.mrf.mxu0  ;;  %3698 = vmatpush.bf16.msra.mxu1 %v8049_v12  ;;  %v8020_v12 = vld [vmem:[%s9018_s1 + $0xa8] sm:$0xff] }
0x19ab   :  { %v3535_v2 = vadd.f32 %v8356_v41, %v3534_v54  ;;  %v8019_v54 = vld [vmem:[%s9018_s1 + $0xa0] sm:$0xff] }
0x19ae   :  { %3699 = vmatpush.bf16.msra.mxu1 %v8048_v61 }
0x19b2   :  { %v3536_v24 = vpop.f32.mrf.mxu0  ;;  %3700 = vmatpush.bf16.msra.mxu1 %v8047_v16  ;;  %v8054_v16 = vld [vmem:[%s9023_s5 + $0xb8] sm:$0xff] }
0x19b3   :  { %v3537_v3 = vadd.f32 %v8356_v41, %v3536_v24  ;;  %v8053_v41 = vld [vmem:[%s9023_s5 + $0xb0] sm:$0xff]  ;;  %v8052_v24 = vld [vmem:[%s9023_s5 + $0xa8] sm:$0xff] }
0x19b5   :  { %v3584_v4 = vpack.c.bf16 %v3537_v3, %v3535_v2  ;;  %6900 = vmatmul.msk.bf16.vlgmr.msrb.gmra.mxu1 %vm1065_vm1, %v3539_v0  ;;  %v8357_v2 = vld [vmem:[%s9013_s27 + $0x4] ss:$0 sm:$0xff] }
0x19b6   :  { %v8051_v3 = vld [vmem:[%s9023_s5 + $0xa0] sm:$0xff] }
0x19b7   :  { %3595 = vmatpush.bf16.msra.mxu2 %v3584_v4 }
0x19ba   :  { %v3661_v63 = vpop.f32.mrf.mxu0 }
0x19bb   :  { %3738 = vmatpush.bf16.msrb.mxu2 %v8082_v59 }
0x19bf   :  { %3739 = vmatpush.bf16.msrb.mxu2 %v8081_v39 }
0x19c2   :  { %v3663_v0 = vpop.f32.mrf.mxu0 }
0x19c3   :  { %3740 = vmatpush.bf16.msrb.mxu2 %v8080_v42  ;;  %v3664_v4 = vadd.f32 %v8357_v2, %v3663_v0 }
0x19c5   :  { %6936 = vmatmul.msk.bf16.vlgmr.msra.gmra.mxu1 %vm946_vm0, %v9072_v38 }
0x19c7   :  { %3741 = vmatpush.bf16.msrb.mxu2 %v8079_v43 }
0x1a22   :  { %v3409_v7 = vpop.f32.mrf.mxu1 }
0x1a23   :  { %v9214_v8 = vadd.f32 %v3409_v7, %v3203_v6  ;;  %v8359_v6 = vld [vmem:[%s9068_s17 + $0x4] ss:$0 sm:$0xff]  ;;  %v3662_v7 = vadd.f32 %v8357_v2, %v3661_v63 }
0x1a25   :  { %v3748_v15 = vpack.c.bf16 %v3664_v4, %v3662_v7 }
0x1a2a   :  { %v9216_v11 = vpop.f32.mrf.mxu1 }
0x1a32   :  { %v3556_v19 = vpop.f32.mrf.mxu1 }
0x1a33   :  { %v3557_v20 = vadd.f32 %v3556_v19, %v9103_v5 }
0x1a35   :  { %v3561_v25 = vsel %vm2937_vm11, %v3557_v20, -inf }
0x1a36   :  { %3562 = vmax.xlane.f32.xlu0 %v3561_v25 }
0x1a3a   :  { %v3558_v26 = vpop.f32.mrf.mxu1 }
0x1a3b   :  { %v3559_v44 = vadd.f32 %v3558_v26, %v9108_v10 }
0x1a3d   :  { %v3564_v40 = vsel %vm2937_vm11, %v3559_v44, -inf }
0x1a3e   :  { %3565 = vmax.xlane.f32.xlu1 %v3564_v40 }
0x1a42   :  { %v3702_v55 = vpop.f32.mrf.mxu1 }
0x1a43   :  { %v3703_v28 = vadd.f32 %v8358_v62, %v3702_v55  ;;  %v574_v55 = vld [vmem:[%s9127_s25 + $0x10] sm:$0xf] }
0x1a4a   :  { %v3704_v9 = vpop.f32.mrf.mxu1 }
0x1a4b   :  { %v3705_v29 = vadd.f32 %v8358_v62, %v3704_v9  ;;  %v3816_v62 = vsel %vm1338_vm3, %v574_v55, 0 }
0x1a4c   :  { %3825 = vmatpush.bf16.msrb.mxu1 %v3816_v62 }
0x1a4d   :  { %v3749_v30 = vpack.c.bf16 %v3705_v29, %v3703_v28 }
0x1a4f   :  { %v3754_v31 = vsel %vm1065_vm1, %v3749_v30, 0 }
0x1a50   :  { %3763 = vmatpush.bf16.xpose.msra.mxu3 %v3754_v31 }
0x1aa9   :  { %v3563_v32 = vpop.xlane.xlu0 %3562 }
0x1aaa   :  { %v3567_v33 = vsub.f32 %v3557_v20, %v3563_v32 }
0x1aac   :  { %v3569_v34 = vmul.f32 1.442695, %v3567_v33  ;;  %v8361_v33 = vld [vmem:[%s9057_s10 + $0x5] ss:$0 sm:$0xff] }
0x1aae   :  { %8469 = vpow2.f32 %v3569_v34 }
0x1ab1   :  { %v3566_v35 = vpop.xlane.xlu1 %3565 }
0x1ab2   :  { %v3568_v36 = vsub.f32 %v3559_v44, %v3566_v35 }
0x1ab4   :  { %v8470_v1 = vpop.eup %8469  ;;  %v3571_v17 = vmul.f32 1.442695, %v3568_v36 }
0x1ab5   :  { %v3573_v27 = vsel %vm2937_vm11, %v8470_v1, 0.0 }
0x1ab6   :  { %8471 = vpow2.f32 %v3571_v17  ;;  %3574 = vadd.xlane.f32.xlu2 %v3573_v27 }
0x1abc   :  { %v8472_v13 = vpop.eup %8471 }
0x1abd   :  { %v3576_v45 = vsel %vm2937_vm11, %v8472_v13, 0.0 }
0x1abe   :  { %3577 = vadd.xlane.f32.xlu0 %v3576_v45 }
0x1b29   :  { %v3575_v46 = vpop.xlane.xlu2 %3574 }
0x1b2a   :  { %8473 = vrcp.f32 %v3575_v46 }
0x1b30   :  { %v8474_v48 = vpop.eup %8473 }
0x1b31   :  { %v3578_v22 = vpop.xlane.xlu0 %3577  ;;  %v3581_v18 = vmul.f32 %v8474_v48, %v8470_v1 }
0x1b32   :  { %8475 = vrcp.f32 %v3578_v22 }
0x1b38   :  { %v8476_v49 = vpop.eup %8475 }
0x1b39   :  { %v3582_v50 = vmul.f32 %v8476_v49, %v8472_v13  ;;  %v8086_v49 = vld [vmem:[%s9028_s11 + $0xb8] sm:$0xff] }
0x1b3b   :  { %v3583_v52 = vpack.c.bf16 %v3582_v50, %v3581_v18  ;;  %v8085_v18 = vld [vmem:[%s9028_s11 + $0xb0] sm:$0xff]  ;;  %v8084_v50 = vld [vmem:[%s9028_s11 + $0xa8] sm:$0xff] }
0x1b3d   :  { %6901 = vmatmul.msk.bf16.vlgmr.msra.gmra.mxu2 %vm2937_vm11, %v3583_v52 }
0x1b3e   :  { %3865 = vmatpush.bf16.msra.mxu2 %v8022_v51  ;;  %v8083_v51 = vld [vmem:[%s9028_s11 + $0xa0] sm:$0xff] }
0x1b42   :  { %3866 = vmatpush.bf16.msra.mxu2 %v8021_v53 }
0x1b46   :  { %3867 = vmatpush.bf16.msra.mxu2 %v8020_v12 }
0x1b4a   :  { %3868 = vmatpush.bf16.msra.mxu2 %v8019_v54 }
0x1b4d   :  { %6953 = vmatmul.msk.bf16.vlgmr.msrb.gmra.mxu2 %vm946_vm0, %v9072_v38 }
0x1b5d   :  { %6973 = vmatmul.msk.bf16.vlgmr.msra.gmra.mxu2 %vm946_vm0, %v9072_v38 }
0x1bc0   :  { %v3597_v61 = vpop.f32.mrf.mxu2 }
0x1bc8   :  { %v3599_v58 = vpop.f32.mrf.mxu2 }
0x1bc9   :  { %v3602_v60 = vpack.c.bf16 %v3599_v58, %v3597_v61  ;;  %v8026_v58 = vld [vmem:[%s9018_s1 + $0xd8] sm:$0xff] }
0x1bcb   :  { %6902 = vmatmul.msk.bf16.vlgmr.msrb.gmra.mxu3 %vm1065_vm1, %v3602_v60  ;;  %v8025_v60 = vld [vmem:[%s9018_s1 + $0xd0] sm:$0xff] }
0x1bcc   :  { %3906 = vmatpush.bf16.msrb.mxu3 %v8054_v16 }
0x1bd0   :  { %v3743_v23 = vpop.f32.mrf.mxu2  ;;  %3907 = vmatpush.bf16.msrb.mxu3 %v8053_v41  ;;  %v8024_v41 = vld [vmem:[%s9018_s1 + $0xc8] sm:$0xff] }
0x1bd1   :  { %v3744_v19 = vadd.f32 %v8359_v6, %v3743_v23  ;;  %v8023_v23 = vld [vmem:[%s9018_s1 + $0xc0] sm:$0xff] }
0x1bd4   :  { %3908 = vmatpush.bf16.msrb.mxu3 %v8052_v24 }
0x1bd8   :  { %v3745_v14 = vpop.f32.mrf.mxu2  ;;  %3909 = vmatpush.bf16.msrb.mxu3 %v8051_v3  ;;  %v8058_v3 = vld [vmem:[%s9023_s5 + $0xd8] sm:$0xff] }
0x1bd9   :  { %v3746_v20 = vadd.f32 %v8359_v6, %v3745_v14  ;;  %v8057_v6 = vld [vmem:[%s9023_s5 + $0xd0] sm:$0xff]  ;;  %v8056_v14 = vld [vmem:[%s9023_s5 + $0xc8] sm:$0xff] }
0x1bdb   :  { %v3793_v25 = vpack.c.bf16 %v3746_v20, %v3744_v19  ;;  %6954 = vmatmul.msk.bf16.vlgmr.msra.gmra.mxu3 %vm1065_vm1, %v3748_v15  ;;  %v8360_v19 = vld [vmem:[%s9013_s27 + $0x5] ss:$0 sm:$0xff] }
0x1bdc   :  { %v8055_v20 = vld [vmem:[%s9023_s5 + $0xc0] sm:$0xff] }
0x1bdd   :  { %3804 = vmatpush.bf16.msra.mxu0 %v3793_v25 }
0x1be0   :  { %v3870_v0 = vpop.f32.mrf.mxu2 }
0x1be1   :  { %3947 = vmatpush.bf16.msrb.mxu0 %v8086_v49  ;;  %v3871_v55 = vadd.f32 %v8360_v19, %v3870_v0  ;;  %v8030_v0 = vld [vmem:[%s9018_s1 + $0xf8] sm:$0xff] }
0x1be5   :  { %3948 = vmatpush.bf16.msrb.mxu0 %v8085_v18 }
0x1be8   :  { %v3872_v15 = vpop.f32.mrf.mxu2 }
0x1be9   :  { %3949 = vmatpush.bf16.msrb.mxu0 %v8084_v50  ;;  %v3873_v25 = vadd.f32 %v8360_v19, %v3872_v15  ;;  %v8062_v19 = vld [vmem:[%s9023_s5 + $0xf8] sm:$0xff] }
0x1beb   :  { %6990 = vmatmul.msk.bf16.vlgmr.msrb.gmra.mxu3 %vm946_vm0, %v9072_v38 }
0x1bed   :  { %3950 = vmatpush.bf16.msrb.mxu0 %v8083_v51 }
0x1c4e   :  { %v3618_v26 = vpop.f32.mrf.mxu3 }
0x1c4f   :  { %v9252_v44 = vadd.f32 %v3618_v26, %v9214_v8  ;;  %v8362_v26 = vld [vmem:[%s9068_s17 + $0x5] ss:$0 sm:$0xff] }
0x1c56   :  { %v9254_v40 = vpop.f32.mrf.mxu3 }
0x1c5e   :  { %v3765_v9 = vpop.f32.mrf.mxu3 }
0x1c5f   :  { %v3766_v28 = vadd.f32 %v3765_v9, %v9103_v5  ;;  %v3957_v9 = vpack.c.bf16 %v3873_v25, %v3871_v55  ;;  %v8061_v25 = vld [vmem:[%s9023_s5 + $0xf0] sm:$0xff]  ;;  %v8060_v55 = vld [vmem:[%s9023_s5 + $0xe8] sm:$0xff] }
0x1c61   :  { %v3770_v29 = vsel %vm2937_vm11, %v3766_v28, -inf }
0x1c62   :  { %3771 = vmax.xlane.f32.xlu1 %v3770_v29 }
0x1c66   :  { %v3767_v30 = vpop.f32.mrf.mxu3 }
0x1c67   :  { %v3768_v31 = vadd.f32 %v3767_v30, %v9108_v10 }
0x1c69   :  { %v3773_v32 = vsel %vm2937_vm11, %v3768_v31, -inf }
0x1c6a   :  { %3774 = vmax.xlane.f32.xlu2 %v3773_v32 }
0x1c6e   :  { %v3911_v8 = vpop.f32.mrf.mxu3 }
0x1c6f   :  { %v3912_v35 = vadd.f32 %v8361_v33, %v3911_v8 }
0x1c76   :  { %v3913_v34 = vpop.f32.mrf.mxu3 }
0x1c77   :  { %v3914_v36 = vadd.f32 %v8361_v33, %v3913_v34  ;;  %v575_v33 = vld [vmem:[%s9127_s25 + $0x14] sm:$0xf] }
0x1c78   :  { %v4025_v34 = vsel %vm1338_vm3, %v575_v33, 0 }
0x1c79   :  { %v3958_v1 = vpack.c.bf16 %v3914_v36, %v3912_v35  ;;  %4034 = vmatpush.bf16.msra.mxu3 %v4025_v34 }
0x1c7b   :  { %v3963_v17 = vsel %vm1065_vm1, %v3958_v1, 0 }
0x1c7c   :  { %3972 = vmatpush.bf16.xpose.msra.mxu1 %v3963_v17 }
0x1cd5   :  { %v3772_v27 = vpop.xlane.xlu1 %3771 }
0x1cd6   :  { %v3776_v13 = vsub.f32 %v3766_v28, %v3772_v27 }
0x1cd8   :  { %v3778_v45 = vmul.f32 1.442695, %v3776_v13 }
0x1cda   :  { %8477 = vpow2.f32 %v3778_v45  ;;  %v8364_v45 = vld [vmem:[%s9057_s10 + $0x6] ss:$0 sm:$0xff] }
0x1cdd   :  { %v3775_v59 = vpop.xlane.xlu2 %3774 }
0x1cde   :  { %v3777_v39 = vsub.f32 %v3768_v31, %v3775_v59 }
0x1ce0   :  { %v8478_v42 = vpop.eup %8477  ;;  %v3780_v43 = vmul.f32 1.442695, %v3777_v39 }
0x1ce1   :  { %v3782_v46 = vsel %vm2937_vm11, %v8478_v42, 0.0 }
0x1ce2   :  { %8479 = vpow2.f32 %v3780_v43  ;;  %3783 = vadd.xlane.f32.xlu0 %v3782_v46 }
0x1ce8   :  { %v8480_v22 = vpop.eup %8479 }
0x1ce9   :  { %v3785_v48 = vsel %vm2937_vm11, %v8480_v22, 0.0 }
0x1cea   :  { %3786 = vadd.xlane.f32.xlu1 %v3785_v48 }
0x1d55   :  { %v3784_v52 = vpop.xlane.xlu0 %3783 }
0x1d56   :  { %8481 = vrcp.f32 %v3784_v52 }
0x1d5c   :  { %v8482_v12 = vpop.eup %8481 }
0x1d5d   :  { %v3787_v53 = vpop.xlane.xlu1 %3786  ;;  %v3790_v61 = vmul.f32 %v8482_v12, %v8478_v42  ;;  %v8090_v12 = vld [vmem:[%s9028_s11 + $0xd8] sm:$0xff] }
0x1d5e   :  { %8483 = vrcp.f32 %v3787_v53 }
0x1d64   :  { %v8484_v54 = vpop.eup %8483 }
0x1d65   :  { %v3791_v63 = vmul.f32 %v8484_v54, %v8480_v22  ;;  %v8089_v54 = vld [vmem:[%s9028_s11 + $0xd0] sm:$0xff] }
0x1d67   :  { %v3792_v16 = vpack.c.bf16 %v3791_v63, %v3790_v61  ;;  %v8088_v61 = vld [vmem:[%s9028_s11 + $0xc8] sm:$0xff]  ;;  %v8087_v63 = vld [vmem:[%s9028_s11 + $0xc0] sm:$0xff] }
0x1d69   :  { %6955 = vmatmul.msk.bf16.vlgmr.msra.gmra.mxu0 %vm2937_vm11, %v3792_v16 }
0x1d6a   :  { %4074 = vmatpush.bf16.msra.mxu0 %v8026_v58 }
0x1d6e   :  { %4075 = vmatpush.bf16.msra.mxu0 %v8025_v60 }
0x1d72   :  { %4076 = vmatpush.bf16.msra.mxu0 %v8024_v41 }
0x1d76   :  { %4077 = vmatpush.bf16.msra.mxu0 %v8023_v23 }
0x1d79   :  { %7007 = vmatmul.msk.bf16.vlgmr.msrb.gmra.mxu0 %vm946_vm0, %v9072_v38 }
0x1d89   :  { %7027 = vmatmul.msk.bf16.vlgmr.msra.gmra.mxu0 %vm946_vm0, %v9072_v38 }
0x1de6   :  { %v3806_v24 = vpop.f32.mrf.mxu0 }
0x1dee   :  { %v3808_v2 = vpop.f32.mrf.mxu0 }
0x1def   :  { %v3811_v4 = vpack.c.bf16 %v3808_v2, %v3806_v24 }
0x1df1   :  { %6956 = vmatmul.msk.bf16.vlgmr.msrb.gmra.mxu1 %vm1065_vm1, %v3811_v4  ;;  %v8028_v4 = vld [vmem:[%s9018_s1 + $0xe8] sm:$0xff] }
0x1df2   :  { %4115 = vmatpush.bf16.msrb.mxu1 %v8058_v3  ;;  %v8029_v3 = vld [vmem:[%s9018_s1 + $0xf0] sm:$0xff] }
0x1df6   :  { %v3952_v7 = vpop.f32.mrf.mxu0  ;;  %4116 = vmatpush.bf16.msrb.mxu1 %v8057_v6  ;;  %v8027_v6 = vld [vmem:[%s9018_s1 + $0xe0] sm:$0xff]  ;;  %s9766_s1 = sld [smem:[%s9782_s0 + %s8552_s28]]  }
0x1df7   :  { %v3953_v28 = vadd.f32 %v8362_v26, %v3952_v7 }
0x1dfa   :  { %4117 = vmatpush.bf16.msrb.mxu1 %v8056_v14 }
0x1dfe   :  { %v3954_v62 = vpop.f32.mrf.mxu0  ;;  %4118 = vmatpush.bf16.msrb.mxu1 %v8055_v20 }
0x1dff   :  { %v3955_v29 = vadd.f32 %v8362_v26, %v3954_v62 }
0x1e01   :  { %v4002_v30 = vpack.c.bf16 %v3955_v29, %v3953_v28  ;;  %7008 = vmatmul.msk.bf16.vlgmr.msra.gmra.mxu1 %vm1065_vm1, %v3957_v9  ;;  %v8363_v9 = vld [vmem:[%s9013_s27 + $0x6] ss:$0 sm:$0xff] }
0x1e02   :  { %v8059_v28 = vld [vmem:[%s9023_s5 + $0xe0] sm:$0xff]  ;;  %s6238_s5 = sld [smem:[%s9782_s0 + %s8553_s2]]  }
0x1e03   :  { %4013 = vmatpush.bf16.msrb.mxu2 %v4002_v30  ;;  %v8365_v30 = vld [vmem:[%s9068_s17 + $0x6] ss:$0 sm:$0xff] }
0x1e06   :  { %v4079_v14 = vpop.f32.mrf.mxu0 }
0x1e07   :  { %4156 = vmatpush.bf16.msra.mxu2 %v8090_v12 }
0x1e0b   :  { %4157 = vmatpush.bf16.msra.mxu2 %v8089_v54 }
0x1e0e   :  { %v4081_v62 = vpop.f32.mrf.mxu0 }
0x1e0f   :  { %4158 = vmatpush.bf16.msra.mxu2 %v8088_v61  ;;  %v4082_v29 = vadd.f32 %v8363_v9, %v4081_v62 }
0x1e11   :  { %7044 = vmatmul.msk.bf16.vlgmr.msrb.gmra.mxu1 %vm946_vm0, %v9072_v38 }
0x1e13   :  { %4159 = vmatpush.bf16.msra.mxu2 %v8087_v63 }
0x1e6e   :  { %v3827_v31 = vpop.f32.mrf.mxu1 }
0x1e6f   :  { %v9290_v32 = vadd.f32 %v3827_v31, %v9252_v44  ;;  %v4080_v31 = vadd.f32 %v8363_v9, %v4079_v14 }
0x1e71   :  { %v4166_v34 = vpack.c.bf16 %v4082_v29, %v4080_v31  ;;  %v8366_v29 = vld [vmem:[%s9013_s27 + $0x7] ss:$0 sm:$0xff]  ;;  %s9760_s27 = sld [smem:[%s9782_s0 + %s8551_s21]]  }
0x1e72   :  { %v8368_v31 = vld [vmem:[%s9068_s17 + $0x7] ss:$0 sm:$0xff] }
0x1e76   :  { %v9292_v8 = vpop.f32.mrf.mxu1 }
0x1e7e   :  { %v3974_v35 = vpop.f32.mrf.mxu1 }
0x1e7f   :  { %v3975_v36 = vadd.f32 %v3974_v35, %v9103_v5 }
0x1e81   :  { %v3979_v1 = vsel %vm2937_vm11, %v3975_v36, -inf }
0x1e82   :  { %3980 = vmax.xlane.f32.xlu2 %v3979_v1 }
0x1e86   :  { %v3976_v17 = vpop.f32.mrf.mxu1 }
0x1e87   :  { %v3977_v27 = vadd.f32 %v3976_v17, %v9108_v10 }
0x1e89   :  { %v3982_v13 = vsel %vm2937_vm11, %v3977_v27, -inf }
0x1e8a   :  { %3983 = vmax.xlane.f32.xlu0 %v3982_v13 }
0x1e8e   :  { %v4120_v44 = vpop.f32.mrf.mxu1 }
0x1e8f   :  { %v4121_v39 = vadd.f32 %v8364_v45, %v4120_v44  ;;  %v576_v44 = vld [vmem:[%s9127_s25 + $0x18] sm:$0xf] }
0x1e96   :  { %v4122_v59 = vpop.f32.mrf.mxu1 }
0x1e97   :  { %v4123_v42 = vadd.f32 %v8364_v45, %v4122_v59  ;;  %v4234_v45 = vsel %vm1338_vm3, %v576_v44, 0 }
0x1e98   :  { %4243 = vmatpush.bf16.msra.mxu1 %v4234_v45 }
0x1e99   :  { %v4167_v43 = vpack.c.bf16 %v4123_v42, %v4121_v39  ;;  %v9335_v39 = vld [vmem:[%s9100_s22] sm:$0xff] }
0x1e9b   :  { %v4172_v46 = vsel %vm1065_vm1, %v4167_v43, 0 }
0x1e9c   :  { %4181 = vmatpush.bf16.xpose.msrb.mxu3 %v4172_v46 }
0x1ef5   :  { %v3981_v5 = vpop.xlane.xlu2 %3980 }
0x1ef6   :  { %v3985_v22 = vsub.f32 %v3975_v36, %v3981_v5  ;;  %v9340_v5 = vld [vmem:[%s9100_s22 + $0x8] sm:$0xff] }
0x1ef8   :  { %v3987_v48 = vmul.f32 1.442695, %v3985_v22 }
0x1efa   :  { %8485 = vpow2.f32 %v3987_v48 }
0x1efd   :  { %v3984_v10 = vpop.xlane.xlu0 %3983 }
0x1efe   :  { %v3986_v49 = vsub.f32 %v3977_v27, %v3984_v10  ;;  %v8367_v10 = vld [vmem:[%s9057_s10 + $0x7] ss:$0 sm:$0xff] }
0x1f00   :  { %v8486_v18 = vpop.eup %8485  ;;  %v3989_v50 = vmul.f32 1.442695, %v3986_v49 }
0x1f01   :  { %v3991_v51 = vsel %vm2937_vm11, %v8486_v18, 0.0 }
0x1f02   :  { %8487 = vpow2.f32 %v3989_v50  ;;  %3992 = vadd.xlane.f32.xlu1 %v3991_v51 }
0x1f08   :  { %v8488_v52 = vpop.eup %8487 }
0x1f09   :  { %v3994_v53 = vsel %vm2937_vm11, %v8488_v52, 0.0 }
0x1f0a   :  { %3995 = vadd.xlane.f32.xlu2 %v3994_v53 }
0x1f75   :  { %v3993_v58 = vpop.xlane.xlu1 %3992 }
0x1f76   :  { %8489 = vrcp.f32 %v3993_v58 }
0x1f7c   :  { %v8490_v60 = vpop.eup %8489 }
0x1f7d   :  { %v3996_v16 = vpop.xlane.xlu2 %3995  ;;  %v3999_v23 = vmul.f32 %v8490_v60, %v8486_v18 }
0x1f7e   :  { %8491 = vrcp.f32 %v3996_v16 }
0x1f84   :  { %v8492_v41 = vpop.eup %8491 }
0x1f85   :  { %v4000_v24 = vmul.f32 %v8492_v41, %v8488_v52 }
0x1f87   :  { %v4001_v2 = vpack.c.bf16 %v4000_v24, %v3999_v23  ;;  %v8094_v24 = vld [vmem:[%s9028_s11 + $0xf8] sm:$0xff] }
0x1f89   :  { %7009 = vmatmul.msk.bf16.vlgmr.msrb.gmra.mxu2 %vm2937_vm11, %v4001_v2  ;;  %v8092_v2 = vld [vmem:[%s9028_s11 + $0xe8] sm:$0xff] }
0x1f8a   :  { %4283 = vmatpush.bf16.msrb.mxu2 %v8030_v0  ;;  %v8093_v0 = vld [vmem:[%s9028_s11 + $0xf0] sm:$0xff] }
0x1f8e   :  { %4284 = vmatpush.bf16.msrb.mxu2 %v8029_v3  ;;  %v8091_v3 = vld [vmem:[%s9028_s11 + $0xe0] sm:$0xff] }
0x1f92   :  { %4285 = vmatpush.bf16.msrb.mxu2 %v8028_v4 }
0x1f96   :  { %4286 = vmatpush.bf16.msrb.mxu2 %v8027_v6 }
0x1f99   :  { %7061 = vmatmul.msk.bf16.vlgmr.msra.gmra.mxu2 %vm946_vm0, %v9072_v38 }
0x1fa9   :  { %7081 = vmatmul.msk.bf16.vlgmr.msrb.gmra.mxu2 %vm946_vm0, %v9072_v38 }
0x200c   :  { %v4015_v7 = vpop.f32.mrf.mxu2 }
0x2014   :  { %v4017_v15 = vpop.f32.mrf.mxu2 }
0x2015   :  { %v4020_v20 = vpack.c.bf16 %v4017_v15, %v4015_v7 }
0x2017   :  { %7010 = vmatmul.msk.bf16.vlgmr.msra.gmra.mxu3 %vm1065_vm1, %v4020_v20 }
0x2018   :  { %4324 = vmatpush.bf16.msra.mxu3 %v8062_v19 }
0x201c   :  { %v4161_v26 = vpop.f32.mrf.mxu2  ;;  %4325 = vmatpush.bf16.msra.mxu3 %v8061_v25 }
0x201d   :  { %v4162_v35 = vadd.f32 %v8365_v30, %v4161_v26 }
0x2020   :  { %4326 = vmatpush.bf16.msra.mxu3 %v8060_v55 }
0x2024   :  { %v4163_v33 = vpop.f32.mrf.mxu2  ;;  %4327 = vmatpush.bf16.msra.mxu3 %v8059_v28 }
0x2025   :  { %v4164_v36 = vadd.f32 %v8365_v30, %v4163_v33 }
0x2027   :  { %v4211_v1 = vpack.c.bf16 %v4164_v36, %v4162_v35  ;;  %7062 = vmatmul.msk.bf16.vlgmr.msrb.gmra.mxu3 %vm1065_vm1, %v4166_v34 }
0x2029   :  { %4222 = vmatpush.bf16.msrb.mxu0 %v4211_v1 }
0x202c   :  { %v4288_v26 = vpop.f32.mrf.mxu2 }
0x202d   :  { %4365 = vmatpush.bf16.msra.mxu0 %v8094_v24  ;;  %v4289_v33 = vadd.f32 %v8366_v29, %v4288_v26 }
0x2031   :  { %4366 = vmatpush.bf16.msra.mxu0 %v8093_v0 }
0x2034   :  { %v4290_v28 = vpop.f32.mrf.mxu2 }
0x2035   :  { %4367 = vmatpush.bf16.msra.mxu0 %v8092_v2  ;;  %v4291_v30 = vadd.f32 %v8366_v29, %v4290_v28  ;;  %v8369_v2 = vld [vmem:[%s6229_s29] ss:$0 sm:$0xff] }
0x2037   :  { %7098 = vmatmul.msk.bf16.vlgmr.msra.gmra.mxu3 %vm946_vm0, %v9072_v38  ;;  %v4375_v35 = vpack.c.bf16 %v4291_v30, %v4289_v33 }
0x2039   :  { %4368 = vmatpush.bf16.msra.mxu0 %v8091_v3 }
0x209a   :  { %v4036_v17 = vpop.f32.mrf.mxu3 }
0x209b   :  { %v9328_v27 = vadd.f32 %v4036_v17, %v9290_v32 }
0x20a2   :  { %v9330_v13 = vpop.f32.mrf.mxu3 }
0x20aa   :  { %v4183_v59 = vpop.f32.mrf.mxu3 }
0x20ab   :  { %v4184_v42 = vadd.f32 %v9335_v39, %v4183_v59 }
0x20ad   :  { %v4188_v43 = vsel %vm2937_vm11, %v4184_v42, -inf }
0x20ae   :  { %4189 = vmax.xlane.f32.xlu0 %v4188_v43 }
0x20b2   :  { %v4185_v46 = vpop.f32.mrf.mxu3 }
0x20b3   :  { %v4186_v32 = vadd.f32 %v9340_v5, %v4185_v46 }
0x20b5   :  { %v4191_v22 = vsel %vm2937_vm11, %v4186_v32, -inf }
0x20b6   :  { %4192 = vmax.xlane.f32.xlu1 %v4191_v22 }
0x20ba   :  { %v4329_v48 = vpop.f32.mrf.mxu3 }
0x20bb   :  { %v4330_v18 = vadd.f32 %v8367_v10, %v4329_v48 }
0x20c2   :  { %v4331_v49 = vpop.f32.mrf.mxu3 }
0x20c3   :  { %v4332_v50 = vadd.f32 %v8367_v10, %v4331_v49 }
0x20c5   :  { %v4376_v51 = vpack.c.bf16 %v4332_v50, %v4330_v18 }
0x20c7   :  { %v4381_v52 = vsel %vm1065_vm1, %v4376_v51, 0 }
0x20c8   :  { %4390 = vmatpush.bf16.xpose.msrb.mxu1 %v4381_v52 }
0x2121   :  { %v4190_v53 = vpop.xlane.xlu0 %4189 }
0x2122   :  { %v4194_v12 = vsub.f32 %v4184_v42, %v4190_v53 }
0x2124   :  { %v4196_v54 = vmul.f32 1.442695, %v4194_v12 }
0x2126   :  { %8493 = vpow2.f32 %v4196_v54 }
0x2129   :  { %v4193_v61 = vpop.xlane.xlu1 %4192 }
0x212a   :  { %v4195_v63 = vsub.f32 %v4186_v32, %v4193_v61 }
0x212c   :  { %v8494_v58 = vpop.eup %8493  ;;  %v4198_v16 = vmul.f32 1.442695, %v4195_v63 }
0x212d   :  { %v4200_v60 = vsel %vm2937_vm11, %v8494_v58, 0.0 }
0x212e   :  { %8495 = vpow2.f32 %v4198_v16  ;;  %4201 = vadd.xlane.f32.xlu2 %v4200_v60  ;;  %v577_v60 = vld [vmem:[%s9127_s25 + $0x1c] sm:$0xf] }
0x2134   :  { %v8496_v41 = vpop.eup %8495 }
0x2135   :  { %v4203_v23 = vsel %vm2937_vm11, %v8496_v41, 0.0 }
0x2136   :  { %4204 = vadd.xlane.f32.xlu0 %v4203_v23 }
0x21a1   :  { %v4202_v4 = vpop.xlane.xlu2 %4201 }
0x21a2   :  { %8497 = vrcp.f32 %v4202_v4 }
0x21a8   :  { %v8498_v7 = vpop.eup %8497 }
0x21a9   :  { %v4205_v6 = vpop.xlane.xlu0 %4204  ;;  %v4208_v15 = vmul.f32 %v8498_v7, %v8494_v58 }
0x21aa   :  { %8499 = vrcp.f32 %v4205_v6 }
0x21b0   :  { %v8500_v14 = vpop.eup %8499 }
0x21b1   :  { %v4209_v19 = vmul.f32 %v8500_v14, %v8496_v41  ;;  %v4443_v41 = vsel %vm1338_vm3, %v577_v60, 0 }
0x21b2   :  { %4452 = vmatpush.bf16.msrb.mxu3 %v4443_v41  ;;  %v7121_v41 = vld [vmem:[%s9408_s13] sm:$0xf] }
0x21b3   :  { %v4210_v20 = vpack.c.bf16 %v4209_v19, %v4208_v15 }
0x21b5   :  { %7063 = vmatmul.msk.bf16.vlgmr.msrb.gmra.mxu0 %vm2937_vm11, %v4210_v20 }
0x21c5   :  { %7115 = vmatmul.msk.bf16.vlgmr.msra.gmra.mxu0 %vm946_vm0, %v9072_v38  ;;  %v3205_v38 = vadd.f32 %v9176_v57, %v9174_v56 }
0x21c7   :  { %v3415_v45 = vadd.f32 %v9216_v11, %v3205_v38  ;;  %v7321_v38 = vld [vmem:[%s9408_s13 + $0x188] sm:$0xf] }
0x21c9   :  { %v3624_v42 = vadd.f32 %v9254_v40, %v3415_v45 }
0x21cb   :  { %v3833_v43 = vadd.f32 %v9292_v8, %v3624_v42  ;;  %v8144_v42 = vld [vmem:[%s9408_s13 + $0x18c] sm:$0xf] }
0x21cd   :  { %v4042_v46 = vadd.f32 %v9330_v13, %v3833_v43  ;;  %v7323_v43 = vld [vmem:[%s9408_s13 + $0x1c8] sm:$0xf0] }
0x2232   :  { %v4224_v25 = vpop.f32.mrf.mxu0 }
0x223a   :  { %v4226_v55 = vpop.f32.mrf.mxu0 }
0x223b   :  { %v4229_v62 = vpack.c.bf16 %v4226_v55, %v4224_v25 }
0x223d   :  { %7064 = vmatmul.msk.bf16.vlgmr.msra.gmra.mxu1 %vm1065_vm1, %v4229_v62 }
0x2242   :  { %v4370_v9 = vpop.f32.mrf.mxu0 }
0x2243   :  { %v4371_v36 = vadd.f32 %v8368_v31, %v4370_v9 }
0x224a   :  { %v4372_v34 = vpop.f32.mrf.mxu0 }
0x224b   :  { %v4373_v1 = vadd.f32 %v8368_v31, %v4372_v34  ;;  %v7313_v34 = vld [vmem:[%s9408_s13 + $0x180] sm:$0xf] }
0x224d   :  { %v4420_v17 = vpack.c.bf16 %v4373_v1, %v4371_v36  ;;  %7116 = vmatmul.msk.bf16.vlgmr.msrb.gmra.mxu1 %vm1065_vm1, %v4375_v35  ;;  %v8151_v35 = vld [vmem:[%s9408_s13 + $0x1bc] sm:$0xf0]  ;;  %v8143_v36 = vld [vmem:[%s9408_s13 + $0x184] sm:$0xf] }
0x224e   :  { %v7314_v1 = vor.u32 %v8151_v35, %v7313_v34  ;;  %v8146_v34 = vld [vmem:[%s9408_s13 + $0x19c] sm:$0xf] }
0x224f   :  { %4431 = vmatpush.bf16.msra.mxu2 %v4420_v17  ;;  %v7315_v17 = vld [vmem:[%s9408_s13 + $0x1c0] sm:$0xf0]  ;;  %v7339_v35 = vld [vmem:[%s9408_s13 + $0x1d8] sm:$0xf0] }
0x2250   :  { %v7318_v45 = vor.u32 %v8143_v36, %v7315_v17  ;;  %4884 = vmatpush.bf16.msrb.mxu0 %v7314_v1  ;;  %v7265_v36 = vld [vmem:[%s9408_s13 + $0x110] sm:$0xf]  ;;  %v7342_v17 = vor.u32 %v8146_v34, %v7339_v35  ;;  %v7345_v34 = vld [vmem:[%s9408_s13 + $0x1a0] sm:$0xf] }
0x2251   :  { %v8155_v35 = vld [vmem:[%s9408_s13 + $0x1dc] sm:$0xf0] }
0x2252   :  { %4898 = vmatpush.bf16.msra.mxu1 %v7318_v45  ;;  %v7267_v45 = vld [vmem:[%s9408_s13 + $0x150] sm:$0xf0] }
0x22ba   :  { %v4245_v44 = vpop.f32.mrf.mxu1 }
0x22bb   :  { %v4250_v59 = vadd.f32 %v4245_v44, %v9328_v27  ;;  %v8152_v44 = vld [vmem:[%s9408_s13 + $0x1c4] sm:$0xf0] }
0x22c2   :  { %v4247_v32 = vpop.f32.mrf.mxu1 }
0x22c3   :  { %v4251_v22 = vadd.f32 %v4247_v32, %v4042_v46  ;;  %v7326_v46 = vor.u32 %v8144_v42, %v7323_v43  ;;  %v7249_v32 = vld [vmem:[%s9408_s13 + $0x100] sm:$0xf]  ;;  %v7273_v43 = vld [vmem:[%s9408_s13 + $0x118] sm:$0xf] }
0x22c5   :  { %4926 = vmatpush.bf16.msra.mxu3 %v7326_v46  ;;  %v8138_v46 = vld [vmem:[%s9408_s13 + $0x154] sm:$0xf0] }
0x22ca   :  { %v4392_v48 = vpop.f32.mrf.mxu1 }
0x22cb   :  { %v4393_v10 = vadd.f32 %v9335_v39, %v4392_v48  ;;  %v8127_v48 = vld [vmem:[%s9408_s13 + $0x104] sm:$0xf] }
0x22cd   :  { %v4397_v49 = vsel %vm2937_vm11, %v4393_v10, -inf }
0x22ce   :  { %4398 = vmax.xlane.f32.xlu1 %v4397_v49  ;;  %v7251_v49 = vld [vmem:[%s9408_s13 + $0x140] sm:$0xf0] }
0x22d2   :  { %v4394_v56 = vpop.f32.mrf.mxu1 }
0x22d3   :  { %v4395_v57 = vadd.f32 %v9340_v5, %v4394_v56  ;;  %v7257_v56 = vld [vmem:[%s9408_s13 + $0x108] sm:$0xf] }
0x22d5   :  { %v4400_v11 = vsel %vm2937_vm11, %v4395_v57, -inf }
0x22d6   :  { %4401 = vmax.xlane.f32.xlu2 %v4400_v11  ;;  %v7254_v11 = vor.u32 %v8127_v48, %v7251_v49  ;;  %v7275_v49 = vld [vmem:[%s9408_s13 + $0x158] sm:$0xf0] }
0x22d8   :  { %4899 = vmatpush.bf16.msra.mxu1 %v7254_v11 }
0x2341   :  { %v4399_v27 = vpop.xlane.xlu1 %4398 }
0x2342   :  { %v4403_v40 = vsub.f32 %v4393_v10, %v4399_v27 }
0x2344   :  { %v4405_v18 = vmul.f32 1.442695, %v4403_v40  ;;  %v8128_v40 = vld [vmem:[%s9408_s13 + $0x10c] sm:$0xf] }
0x2346   :  { %8501 = vpow2.f32 %v4405_v18  ;;  %v7259_v18 = vld [vmem:[%s9408_s13 + $0x148] sm:$0xf0] }
0x2349   :  { %v4402_v8 = vpop.xlane.xlu2 %4401 }
0x234a   :  { %v4404_v13 = vsub.f32 %v4395_v57, %v4402_v8  ;;  %v8136_v57 = vld [vmem:[%s9408_s13 + $0x144] sm:$0xf0]  ;;  %v7262_v8 = vor.u32 %v8128_v40, %v7259_v18  ;;  %v8113_v40 = vld [vmem:[%s9408_s13 + $0x94] sm:$0xf] }
0x234b   :  { %v7258_v27 = vor.u32 %v8136_v57, %v7257_v56  ;;  %v7201_v56 = vld [vmem:[%s9408_s13 + $0x90] sm:$0xf]  ;;  %v7203_v18 = vld [vmem:[%s9408_s13 + $0xd0] sm:$0xf0] }
0x234c   :  { %v8502_v50 = vpop.eup %8501  ;;  %v4407_v51 = vmul.f32 1.442695, %v4404_v13  ;;  %v7185_v13 = vld [vmem:[%s9408_s13 + $0x80] sm:$0xf]  ;;  %4927 = vmatpush.bf16.msra.mxu3 %v7262_v8 }
0x234d   :  { %v4409_v52 = vsel %vm2937_vm11, %v8502_v50, 0.0 }
0x234e   :  { %8503 = vpow2.f32 %v4407_v51  ;;  %4410 = vadd.xlane.f32.xlu0 %v4409_v52  ;;  %v8111_v51 = vld [vmem:[%s9408_s13 + $0x84] sm:$0xf] }
0x2354   :  { %v8504_v39 = vpop.eup %8503 }
0x2355   :  { %v4412_v53 = vsel %vm2937_vm11, %v8504_v39, 0.0 }
0x2356   :  { %4413 = vadd.xlane.f32.xlu1 %v4412_v53  ;;  %v7193_v53 = vld [vmem:[%s9408_s13 + $0x88] sm:$0xf] }
0x23c1   :  { %v4411_v5 = vpop.xlane.xlu0 %4410 }
0x23c2   :  { %8505 = vrcp.f32 %v4411_v5  ;;  %v8120_v5 = vld [vmem:[%s9408_s13 + $0xc4] sm:$0xf0] }
0x23c8   :  { %v8506_v54 = vpop.eup %8505 }
0x23c9   :  { %v4414_v12 = vpop.xlane.xlu1 %4413  ;;  %v4417_v63 = vmul.f32 %v8506_v54, %v8502_v50  ;;  %v8119_v50 = vld [vmem:[%s9408_s13 + $0xbc] sm:$0xf0] }
0x23ca   :  { %8507 = vrcp.f32 %v4414_v12  ;;  %v7186_v52 = vor.u32 %v8119_v50, %v7185_v13  ;;  %v7209_v13 = vld [vmem:[%s9408_s13 + $0x98] sm:$0xf] }
0x23cb   :  { %v8122_v50 = vld [vmem:[%s9408_s13 + $0xd4] sm:$0xf0] }
0x23d0   :  { %v8508_v61 = vpop.eup %8507 }
0x23d1   :  { %v4418_v58 = vmul.f32 %v8508_v61, %v8504_v39  ;;  %v7187_v39 = vld [vmem:[%s9408_s13 + $0xc0] sm:$0xf0]  ;;  %v7194_v61 = vor.u32 %v8120_v5, %v7193_v53  ;;  %v8114_v53 = vld [vmem:[%s9408_s13 + $0x9c] sm:$0xf] }
0x23d2   :  { %v7190_v54 = vor.u32 %v8111_v51, %v7187_v39  ;;  %v7210_v39 = vor.u32 %v8122_v50, %v7209_v13  ;;  %v7211_v5 = vld [vmem:[%s9408_s13 + $0xd8] sm:$0xf0]  ;;  %v8123_v13 = vld [vmem:[%s9408_s13 + $0xdc] sm:$0xf0] }
0x23d3   :  { %v4419_v16 = vpack.c.bf16 %v4418_v58, %v4417_v63  ;;  %v8112_v63 = vld [vmem:[%s9408_s13 + $0x8c] sm:$0xf] }
0x23d4   :  { %v7195_v58 = vld [vmem:[%s9408_s13 + $0xc8] sm:$0xf0]  ;;  %4900 = vmatpush.bf16.msra.mxu1 %v7190_v54  ;;  %v7214_v54 = vor.u32 %v8114_v53, %v7211_v5  ;;  %v7225_v53 = vld [vmem:[%s9408_s13 + $0xa8] sm:$0xf] }
0x23d5   :  { %7117 = vmatmul.msk.bf16.vlgmr.msra.gmra.mxu2 %vm2937_vm11, %v4419_v16  ;;  %v7198_v60 = vor.u32 %v8112_v63, %v7195_v58  ;;  %v8097_v63 = vld [vmem:[%s9408_s13 + $0x14] sm:$0xf]  ;;  %v8124_v5 = vld [vmem:[%s9408_s13 + $0xe4] sm:$0xf0] }
0x23d6   :  { %v7139_v58 = vld [vmem:[%s9408_s13 + $0x50] sm:$0xf0] }
0x23d7   :  { %4928 = vmatpush.bf16.msra.mxu3 %v7198_v60  ;;  %v7145_v60 = vld [vmem:[%s9408_s13 + $0x18] sm:$0xf] }
0x2458   :  { %v4433_v23 = vpop.f32.mrf.mxu2 }
0x2460   :  { %v4435_v24 = vpop.f32.mrf.mxu2 }
0x2461   :  { %v4438_v0 = vpack.c.bf16 %v4435_v24, %v4433_v23  ;;  %v8103_v23 = vld [vmem:[%s9408_s13 + $0x3c] sm:$0xf0]  ;;  %v8095_v24 = vld [vmem:[%s9408_s13 + $0x4] sm:$0xf] }
0x2463   :  { %7118 = vmatmul.msk.bf16.vlgmr.msrb.gmra.mxu3 %vm1065_vm1, %v4438_v0 }
0x24e6   :  { %v4454_v3 = vpop.f32.mrf.mxu3 }
0x24e7   :  { %v4459_v4 = vadd.f32 %v4454_v3, %v4250_v59  ;;  %v7322_v59 = vor.u32 %v8152_v44, %v7321_v38  ;;  %v7123_v3 = vld [vmem:[%s9408_s13 + $0x40] sm:$0xf0]  ;;  %v8137_v38 = vld [vmem:[%s9408_s13 + $0x14c] sm:$0xf0]  ;;  %v8129_v44 = vld [vmem:[%s9408_s13 + $0x114] sm:$0xf] }
0x24e8   :  { %v7270_v42 = vor.u32 %v8129_v44, %v7267_v45  ;;  %v8156_v44 = vld [vmem:[%s9408_s13 + $0x1e4] sm:$0xf0]  ;;  %v8148_v45 = vld [vmem:[%s9408_s13 + $0x1ac] sm:$0xf] }
0x24e9   :  { %v4464_v6 = vadd.f32 %v8369_v2, %v4459_v4  ;;  %4912 = vmatpush.bf16.msrb.mxu2 %v7322_v59  ;;  %v7129_v4 = vld [vmem:[%s9408_s13 + $0x8] sm:$0xf]  ;;  %v7266_v59 = vor.u32 %v8137_v38, %v7265_v36  ;;  %v8147_v36 = vld [vmem:[%s9408_s13 + $0x1a4] sm:$0xf] }
0x24eb   :  { %v4466_v7 = vadd.f32 %v4464_v6, %v9061_v21  ;;  %v7126_v6 = vor.u32 %v8095_v24, %v7123_v3  ;;  %v8098_v24 = vld [vmem:[%s9408_s13 + $0x1c] sm:$0xf] }
0x24ed   :  { %v4468_v14 = vsel %vm946_vm0, %v4466_v7, 0.0  ;;  %4913 = vmatpush.bf16.msrb.mxu2 %v7258_v27  ;;  %4901 = vmatpush.bf16.msra.mxu1 %v7126_v6  ;;  %v8121_v27 = vld [vmem:[%s9408_s13 + $0xcc] sm:$0xf0] }
0x24ee   :  { %v4456_v15 = vpop.f32.mrf.mxu3  ;;  %4469 = vadd.xlane.f32.xlu2 %v4468_v14  ;;  %v8096_v14 = vld [vmem:[%s9408_s13 + $0xc] sm:$0xf]  ;;  %v7202_v8 = vor.u32 %v8121_v27, %v7201_v56  ;;  %v7289_v56 = vld [vmem:[%s9408_s13 + $0x128] sm:$0xf] }
0x24ef   :  { %v4460_v19 = vadd.f32 %v4456_v15, %v4251_v22  ;;  %v8135_v22 = vld [vmem:[%s9408_s13 + $0x13c] sm:$0xf0]  ;;  %v7131_v15 = vld [vmem:[%s9408_s13 + $0x48] sm:$0xf0] }
0x24f0   :  { %v7250_v10 = vor.u32 %v8135_v22, %v7249_v32  ;;  %v8130_v32 = vld [vmem:[%s9408_s13 + $0x11c] sm:$0xf]  ;;  %v7291_v27 = vld [vmem:[%s9408_s13 + $0x168] sm:$0xf0] }
0x24f1   :  { %v4465_v20 = vadd.f32 %v8369_v2, %v4460_v19  ;;  %4914 = vmatpush.bf16.msrb.mxu2 %v7194_v61  ;;  %v7122_v2 = vor.u32 %v8103_v23, %v7121_v41  ;;  %v7278_v11 = vor.u32 %v8130_v32, %v7275_v49  ;;  %v8105_v61 = vld [vmem:[%s9408_s13 + $0x4c] sm:$0xf0]  ;;  %v8106_v41 = vld [vmem:[%s9408_s13 + $0x54] sm:$0xf0]  ;;  %v8139_v32 = vld [vmem:[%s9408_s13 + $0x15c] sm:$0xf0] }
0x24f2   :  { %4885 = vmatpush.bf16.msrb.mxu0 %v7250_v10  ;;  %v7274_v10 = vor.u32 %v8138_v46, %v7273_v43  ;;  %v7146_v6 = vor.u32 %v8106_v41, %v7145_v60  ;;  %v7281_v46 = vld [vmem:[%s9408_s13 + $0x120] sm:$0xf]  ;;  %v7283_v49 = vld [vmem:[%s9408_s13 + $0x160] sm:$0xf0]  ;;  %v7226_v60 = vor.u32 %v8124_v5, %v7225_v53  ;;  %v7177_v53 = vld [vmem:[%s9408_s13 + $0x38] sm:$0xf] }
0x24f3   :  { %v4467_v25 = vadd.f32 %v4465_v20, %v9063_v37  ;;  %v7134_v20 = vor.u32 %v8096_v14, %v7131_v15  ;;  %v8110_v5 = vld [vmem:[%s9408_s13 + $0x74] sm:$0xf0] }
0x24f5   :  { %v4471_v21 = vsel %vm946_vm0, %v4467_v25, 0.0  ;;  %4929 = vmatpush.bf16.msra.mxu3 %v7134_v20 }
0x24f6   :  { %4472 = vadd.xlane.f32.xlu0 %v4471_v21  ;;  %4886 = vmatpush.bf16.msrb.mxu0 %v7186_v52  ;;  %v8153_v21 = vld [vmem:[%s9408_s13 + $0x1cc] sm:$0xf0]  ;;  %v7206_v52 = vor.u32 %v8113_v40, %v7203_v18  ;;  %v7282_v40 = vor.u32 %v8139_v32, %v7281_v46 }
0x24f7   :  { %v7233_v46 = vld [vmem:[%s9408_s13 + $0xb0] sm:$0xf] }
0x24f8   :  { %v8125_v32 = vld [vmem:[%s9408_s13 + $0xec] sm:$0xf0] }
0x24f9   :  { %4982 = vmatpush.bf16.msrb.mxu3 %v7342_v17 }
0x24fa   :  { %4887 = vmatpush.bf16.msrb.mxu0 %v7122_v2  ;;  %v7147_v2 = vld [vmem:[%s9408_s13 + $0x58] sm:$0xf0] }
0x24fb   :  { %v7150_v14 = vor.u32 %v8098_v24, %v7147_v2  ;;  %v7155_v24 = vld [vmem:[%s9408_s13 + $0x60] sm:$0xf0]  ;;  %v7161_v2 = vld [vmem:[%s9408_s13 + $0x28] sm:$0xf] }
0x24fd   :  { %4983 = vmatpush.bf16.msrb.mxu3 %v7278_v11  ;;  %v8132_v11 = vld [vmem:[%s9408_s13 + $0x12c] sm:$0xf] }
0x2501   :  { %4984 = vmatpush.bf16.msrb.mxu3 %v7214_v54  ;;  %v7227_v54 = vld [vmem:[%s9408_s13 + $0xe8] sm:$0xf0] }
0x2505   :  { %4985 = vmatpush.bf16.msrb.mxu3 %v7150_v14 }
0x2561   :  { %v4470_v26 = vpop.xlane.xlu2 %4469 }
0x2562   :  { %v4474_v55 = vmul.f32 %v4470_v26, %v8996_v47  ;;  %v8145_v26 = vld [vmem:[%s9408_s13 + $0x194] sm:$0xf] }
0x2564   :  { %v9394_v62 = vsub.f32 %v4466_v7, %v4474_v55  ;;  %v8104_v7 = vld [vmem:[%s9408_s13 + $0x44] sm:$0xf0] }
0x2565   :  { %v7130_v19 = vor.u32 %v8104_v7, %v7129_v4  ;;  %v7142_v4 = vor.u32 %v8097_v63, %v7139_v58  ;;  %v7153_v58 = vld [vmem:[%s9408_s13 + $0x20] sm:$0xf] }
0x2566   :  { %v4478_v9 = vmul.f32 %v9394_v62, %v9394_v62 }
0x2567   :  { %4915 = vmatpush.bf16.msrb.mxu2 %v7130_v19 }
0x2568   :  { %v4480_v28 = vsel %vm946_vm0, %v4478_v9, 0.0  ;;  %v7331_v9 = vld [vmem:[%s9408_s13 + $0x1d0] sm:$0xf0] }
0x2569   :  { %v4473_v37 = vpop.xlane.xlu0 %4472  ;;  %4481 = vadd.xlane.f32.xlu1 %v4480_v28  ;;  %v7337_v28 = vld [vmem:[%s9408_s13 + $0x198] sm:$0xf] }
0x256a   :  { %v4475_v29 = vmul.f32 %v4473_v37, %v8996_v47  ;;  %v8154_v37 = vld [vmem:[%s9408_s13 + $0x1d4] sm:$0xf0] }
0x256c   :  { %v9400_v30 = vsub.f32 %v4467_v25, %v4475_v29  ;;  %v7329_v25 = vld [vmem:[%s9408_s13 + $0x190] sm:$0xf] }
0x256d   :  { %v7330_v55 = vor.u32 %v8153_v21, %v7329_v25 }
0x256e   :  { %v4479_v31 = vmul.f32 %v9400_v30, %v9400_v30 }
0x256f   :  { %4940 = vmatpush.bf16.msra.mxu0 %v7330_v55  ;;  %v8370_v55 = vld [vmem:[%s9384_s3] ss:$0 sm:$0xff] }
0x2570   :  { %v4483_v33 = vsel %vm946_vm0, %v4479_v31, 0.0  ;;  %v7334_v31 = vor.u32 %v8145_v26, %v7331_v9 }
0x2571   :  { %4484 = vadd.xlane.f32.xlu2 %v4483_v33  ;;  %v7338_v33 = vor.u32 %v8154_v37, %v7337_v28  ;;  %v8371_v37 = vld [vmem:[%s9390_s8] ss:$0 sm:$0xff] }
0x2572   :  { %4954 = vmatpush.bf16.msrb.mxu1 %v7334_v31 }
0x2573   :  { %4968 = vmatpush.bf16.msra.mxu2 %v7338_v33  ;;  %4941 = vmatpush.bf16.msra.mxu0 %v7266_v59 }
0x2576   :  { %4955 = vmatpush.bf16.msrb.mxu1 %v7270_v42  ;;  %v7346_v42 = vor.u32 %v8155_v35, %v7345_v34 }
0x2577   :  { %4969 = vmatpush.bf16.msra.mxu2 %v7274_v10  ;;  %4942 = vmatpush.bf16.msra.mxu0 %v7202_v8  ;;  %v8131_v10 = vld [vmem:[%s9408_s13 + $0x124] sm:$0xf]  ;;  %v7217_v8 = vld [vmem:[%s9408_s13 + $0xa0] sm:$0xf] }
0x2578   :  { %v7286_v18 = vor.u32 %v8131_v10, %v7283_v49  ;;  %v8117_v10 = vld [vmem:[%s9408_s13 + $0xb4] sm:$0xf] }
0x2579   :  { %v7235_v49 = vld [vmem:[%s9408_s13 + $0xf0] sm:$0xf0] }
0x257a   :  { %4956 = vmatpush.bf16.msrb.mxu1 %v7206_v52  ;;  %v8115_v52 = vld [vmem:[%s9408_s13 + $0xa4] sm:$0xf] }
0x257b   :  { %4970 = vmatpush.bf16.msra.mxu2 %v7210_v39  ;;  %v7219_v39 = vld [vmem:[%s9408_s13 + $0xe0] sm:$0xf0] }
0x257c   :  { %v7222_v63 = vor.u32 %v8115_v52, %v7219_v39  ;;  %v8101_v52 = vld [vmem:[%s9408_s13 + $0x34] sm:$0xf] }
0x257d   :  { %v7171_v39 = vld [vmem:[%s9408_s13 + $0x70] sm:$0xf0] }
0x257e   :  { %4957 = vmatpush.bf16.msrb.mxu1 %v7142_v4  ;;  %v8100_v4 = vld [vmem:[%s9408_s13 + $0x2c] sm:$0xf] }
0x257f   :  { %4971 = vmatpush.bf16.msra.mxu2 %v7146_v6  ;;  %v7163_v6 = vld [vmem:[%s9408_s13 + $0x68] sm:$0xf0] }
0x25dc   :  { %v4482_v12 = vpop.xlane.xlu1 %4481 }
0x25dd   :  { %v4486_v16 = vmul.f32 %v4482_v12, %v8996_v47  ;;  %v7137_v12 = vld [vmem:[%s9408_s13 + $0x10] sm:$0xf] }
0x25de   :  { %v7138_v23 = vor.u32 %v8105_v61, %v7137_v12  ;;  %v8116_v12 = vld [vmem:[%s9408_s13 + $0xac] sm:$0xf]  ;;  %v7218_v61 = vor.u32 %v8123_v13, %v7217_v8  ;;  %v7169_v8 = vld [vmem:[%s9408_s13 + $0x30] sm:$0xf] }
0x25df   :  { %v9438_v0 = vadd.f32 1e-05, %v4486_v16  ;;  %v7230_v41 = vor.u32 %v8116_v12, %v7227_v54  ;;  %v8109_v13 = vld [vmem:[%s9408_s13 + $0x6c] sm:$0xf0]  ;;  %v8102_v12 = vld [vmem:[%s9408_s13 + $0x3c] sm:$0xf] }
0x25e0   :  { %4943 = vmatpush.bf16.msra.mxu0 %v7138_v23  ;;  %v8099_v23 = vld [vmem:[%s9408_s13 + $0x24] sm:$0xf]  ;;  %v7179_v54 = vld [vmem:[%s9408_s13 + $0x78] sm:$0xf0] }
0x25e1   :  { %8509 = vrsqrt.f32 %v9438_v0  ;;  %vm4496_vm13 = vweird.f32 %v9438_v0  ;;  %v7158_v14 = vor.u32 %v8099_v23, %v7155_v24  ;;  %v8182_v23 = vld [vmem:[%s9570_s15 + $0xb8] sm:$0xff] }
0x25e2   :  { %v8190_v24 = vld [vmem:[%s9570_s15 + $0xf8] sm:$0xff] }
0x25e4   :  { %v4485_v29 = vpop.xlane.xlu2 %4484 }
0x25e5   :  { %v4487_v1 = vmul.f32 %v4485_v29, %v8996_v47 }
0x25e7   :  { %v8510_v22 = vpop.eup %8509  ;;  %v4489_v48 = vadd.f32 1e-05, %v4487_v1  ;;  %v7353_v1 = vld [vmem:[%s9408_s13 + $0x1a8] sm:$0xf] }
0x25e8   :  { %v4491_v57 = vmul.f32 %v8510_v22, %v9438_v0  ;;  %vm4497_vm12 = vweird.f32 %v8510_v22 }
0x25e9   :  { %8511 = vrsqrt.f32 %v4489_v48  ;;  %vm4498_vm14 = vmor %vm4496_vm13, %vm4497_vm12  ;;  %vm4506_vm1 = vweird.f32 %v4489_v48 }
0x25ea   :  { %v4492_v51 = vmul.f32 %v8510_v22, %v4491_v57  ;;  %v8140_v57 = vld [vmem:[%s9408_s13 + $0x164] sm:$0xf0] }
0x25eb   :  { %v7290_v50 = vor.u32 %v8140_v57, %v7289_v56  ;;  %v7241_v56 = vld [vmem:[%s9408_s13 + $0xb8] sm:$0xf] }
0x25ec   :  { %v4493_v16 = vmul.f32 0.5, %v4492_v51  ;;  %v7294_v51 = vor.u32 %v8132_v11, %v7291_v27  ;;  %v8126_v57 = vld [vmem:[%s9408_s13 + $0xf4] sm:$0xf0]  ;;  %v8118_v11 = vld [vmem:[%s9408_s13 + $0xbc] sm:$0xf] }
0x25ed   :  { %v7243_v27 = vld [vmem:[%s9408_s13 + $0xf8] sm:$0xf0] }
0x25ee   :  { %v4494_v3 = vsub.f32 1.5, %v4493_v16  ;;  %v8107_v16 = vld [vmem:[%s9408_s13 + $0x5c] sm:$0xf0] }
0x25ef   :  { %v8512_v7 = vpop.eup %8511 }
0x25f0   :  { %v4495_v15 = vmul.f32 %v8510_v22, %v4494_v3  ;;  %v4501_v19 = vmul.f32 %v8512_v7, %v4489_v48  ;;  %vm4507_vm15 = vweird.f32 %v8512_v7  ;;  %v8108_v3 = vld [vmem:[%s9408_s13 + $0x64] sm:$0xf0] }
0x25f1   :  { %vm4508_vm2 = vmor %vm4506_vm1, %vm4507_vm15 }
0x25f2   :  { %v4502_v20 = vmul.f32 %v8512_v7, %v4501_v19  ;;  %v4499_v25 = vsel %vm4498_vm14, %v8510_v22, %v4495_v15  ;;  %v7354_v22 = vor.u32 %v8156_v44, %v7353_v1  ;;  %v7361_v15 = vld [vmem:[%s9408_s13 + $0x1b0] sm:$0xf]  ;;  %v7305_v1 = vld [vmem:[%s9408_s13 + $0x138] sm:$0xf] }
0x25f3   :  { %v4510_v9 = vmul.f32 %v4499_v25, %v9394_v62  ;;  %v7347_v62 = vld [vmem:[%s9408_s13 + $0x1e0] sm:$0xf0]  ;;  %v8157_v19 = vld [vmem:[%s9408_s13 + $0x1ec] sm:$0xf0]  ;;  %v7166_v25 = vor.u32 %v8100_v4, %v7163_v6  ;;  %v8142_v44 = vld [vmem:[%s9408_s13 + $0x174] sm:$0xf0] }
0x25f4   :  { %v4503_v21 = vmul.f32 0.5, %v4502_v20  ;;  %v7350_v43 = vor.u32 %v8147_v36, %v7347_v62  ;;  %v7162_v20 = vor.u32 %v8108_v3, %v7161_v2  ;;  %v8133_v36 = vld [vmem:[%s9408_s13 + $0x134] sm:$0xf] }
0x25f5   :  { %v4515_v29 = vmul.f32 %v8370_v55, %v4510_v9  ;;  %v8158_v9 = vld [vmem:[%s9408_s13 + $0x1f4] sm:$0xf0]  ;;  %v7299_v62 = vld [vmem:[%s9408_s13 + $0x170] sm:$0xf0] }
0x25f6   :  { %v4504_v26 = vsub.f32 1.5, %v4503_v21  ;;  %v8149_v21 = vld [vmem:[%s9408_s13 + $0x1b4] sm:$0xf] }
0x25f7   :  { %v9490_v17 = vadd.f32 %v8371_v37, %v4515_v29  ;;  %v8165_v2 = vld [vmem:[%s9570_s15 + $0x30] sm:$0xff] }
0x25f8   :  { %v4505_v0 = vmul.f32 %v8512_v7, %v4504_v26  ;;  %v7363_v26 = vld [vmem:[%s9408_s13 + $0x1f0] sm:$0xf0] }
0x25f9   :  { %v7366_v29 = vor.u32 %v8149_v21, %v7363_v26  ;;  %v8173_v3 = vld [vmem:[%s9570_s15 + $0x70] sm:$0xff]  ;;  %v8179_v21 = vld [vmem:[%s9570_s15 + $0xa0] sm:$0xff] }
0x25fa   :  { %v4509_v28 = vsel %vm4508_vm2, %v8512_v7, %v4505_v0  ;;  %v7154_v7 = vor.u32 %v8107_v16, %v7153_v58  ;;  %v8150_v0 = vld [vmem:[%s9408_s13 + $0x1bc] sm:$0xf]  ;;  %v7178_v58 = vor.u32 %v8110_v5, %v7177_v53  ;;  %v7182_v16 = vor.u32 %v8102_v12, %v7179_v54  ;;  %v8181_v4 = vld [vmem:[%s9570_s15 + $0xb0] sm:$0xff]  ;;  %v8187_v26 = vld [vmem:[%s9570_s15 + $0xe0] sm:$0xff] }
0x25fb   :  { %v4511_v31 = vmul.f32 %v4509_v28, %v9400_v30  ;;  %v7355_v30 = vld [vmem:[%s9408_s13 + $0x1e8] sm:$0xf0]  ;;  %v7371_v28 = vld [vmem:[%s9408_s13 + $0x1f8] sm:$0xf0]  ;;  %v8189_v6 = vld [vmem:[%s9570_s15 + $0xf0] sm:$0xff] }
0x25fc   :  { %v7358_v48 = vor.u32 %v8148_v45, %v7355_v30  ;;  %v7374_v35 = vor.u32 %v8150_v0, %v7371_v28  ;;  %v8134_v45 = vld [vmem:[%s9408_s13 + $0x13c] sm:$0xf]  ;;  %v8192_v5 = vld [vmem:[%s9570_s15 + $0x108] sm:$0xff]  ;;  %v8209_v54 = vld [vmem:[%s9570_s15 + $0x190] sm:$0xff] }
0x25fd   :  { %v4516_v33 = vmul.f32 %v8370_v55, %v4511_v31  ;;  %v7369_v55 = vld [vmem:[%s9408_s13 + $0x1b8] sm:$0xf]  ;;  %v7297_v31 = vld [vmem:[%s9408_s13 + $0x130] sm:$0xf]  ;;  %v7307_v30 = vld [vmem:[%s9408_s13 + $0x178] sm:$0xf0] }
0x25fe   :  { %v7370_v34 = vor.u32 %v8158_v9, %v7369_v55  ;;  %v8162_v55 = vld [vmem:[%s9570_s15 + $0x18] sm:$0xff]  ;;  %v8200_v12 = vld [vmem:[%s9570_s15 + $0x148] sm:$0xff] }
0x25ff   :  { %v9492_v38 = vadd.f32 %v8371_v37, %v4516_v33  ;;  %v7362_v37 = vor.u32 %v8157_v19, %v7361_v15  ;;  %v8141_v33 = vld [vmem:[%s9408_s13 + $0x16c] sm:$0xf0]  ;;  %v8180_v15 = vld [vmem:[%s9570_s15 + $0xa8] sm:$0xff]  ;;  %v8170_v9 = vld [vmem:[%s9570_s15 + $0x58] sm:$0xff] }
0x2600   :  { %v8188_v19 = vld [vmem:[%s9570_s15 + $0xe8] sm:$0xff]  ;;  %v8178_v0 = vld [vmem:[%s9570_s15 + $0x98] sm:$0xff] }
0x2601   :  { %v9499_v59 = vpack.c.bf16 %v9492_v38, %v9490_v17  ;;  %v8186_v28 = vld [vmem:[%s9570_s15 + $0xd8] sm:$0xff] }
0x2602   :  { %v8218_v53 = vld [vmem:[%s9570_s15 + $0x1d8] sm:$0xff] }
0x2603   :  { %7375 = vmatmul.msk.bf16.vlgmr.msrb.gmra.mxu0 %vm946_vm0, %v9499_v59  ;;  %7376 = vmatmul.msk.bf16.vlgmr.msra.gmra.mxu1 %vm946_vm0, %v9499_v59 }
0x2604   :  { %7377 = vmatmul.msk.bf16.vlgmr.msrb.gmra.mxu2 %vm946_vm0, %v9499_v59  ;;  %7378 = vmatmul.msk.bf16.vlgmr.msra.gmra.mxu3 %vm946_vm0, %v9499_v59 }
0x2605   :  { %4996 = vmatpush.bf16.msrb.mxu0 %v7346_v42  ;;  %5010 = vmatpush.bf16.msra.mxu1 %v7350_v43  ;;  %v7298_v42 = vor.u32 %v8141_v33, %v7297_v31  ;;  %v7302_v43 = vor.u32 %v8133_v36, %v7299_v62  ;;  %v8177_v31 = vld [vmem:[%s9570_s15 + $0x90] sm:$0xff]  ;;  %v8184_v36 = vld [vmem:[%s9570_s15 + $0xc8] sm:$0xff]  ;;  %v8159_v62 = vld [vmem:[%s9570_s15] sm:$0xff] }
0x2606   :  { %5024 = vmatpush.bf16.msrb.mxu2 %v7354_v22  ;;  %5038 = vmatpush.bf16.msra.mxu3 %v7358_v48  ;;  %v7306_v22 = vor.u32 %v8142_v44, %v7305_v1  ;;  %v7310_v48 = vor.u32 %v8134_v45, %v7307_v30  ;;  %v8185_v33 = vld [vmem:[%s9570_s15 + $0xd0] sm:$0xff]  ;;  %v8167_v1 = vld [vmem:[%s9570_s15 + $0x40] sm:$0xff]  ;;  %v8198_v44 = vld [vmem:[%s9570_s15 + $0x138] sm:$0xff] }
0x2607   :  { %v8206_v45 = vld [vmem:[%s9570_s15 + $0x178] sm:$0xff]  ;;  %v8175_v30 = vld [vmem:[%s9570_s15 + $0x80] sm:$0xff] }
0x2609   :  { %4997 = vmatpush.bf16.msrb.mxu0 %v7282_v40  ;;  %5011 = vmatpush.bf16.msra.mxu1 %v7286_v18  ;;  %v7234_v40 = vor.u32 %v8125_v32, %v7233_v46  ;;  %v7238_v18 = vor.u32 %v8117_v10, %v7235_v49  ;;  %v8222_v46 = vld [vmem:[%s9570_s15 + $0x1f8] sm:$0xff]  ;;  %v8197_v32 = vld [vmem:[%s9570_s15 + $0x130] sm:$0xff]  ;;  %v8196_v49 = vld [vmem:[%s9570_s15 + $0x128] sm:$0xff] }
0x260a   :  { %5025 = vmatpush.bf16.msrb.mxu2 %v7290_v50  ;;  %5039 = vmatpush.bf16.msra.mxu3 %v7294_v51  ;;  %v7242_v50 = vor.u32 %v8126_v57, %v7241_v56  ;;  %v7246_v51 = vor.u32 %v8118_v11, %v7243_v27  ;;  %v8221_v10 = vld [vmem:[%s9570_s15 + $0x1f0] sm:$0xff]  ;;  %v8204_v56 = vld [vmem:[%s9570_s15 + $0x168] sm:$0xff]  ;;  %v8195_v57 = vld [vmem:[%s9570_s15 + $0x120] sm:$0xff] }
0x260b   :  { %v8203_v11 = vld [vmem:[%s9570_s15 + $0x160] sm:$0xff]  ;;  %v8212_v27 = vld [vmem:[%s9570_s15 + $0x1a8] sm:$0xff] }
0x260d   :  { %4998 = vmatpush.bf16.msrb.mxu0 %v7218_v61  ;;  %5012 = vmatpush.bf16.msra.mxu1 %v7222_v63  ;;  %v7170_v61 = vor.u32 %v8109_v13, %v7169_v8  ;;  %v7174_v63 = vor.u32 %v8101_v52, %v7171_v39  ;;  %v8202_v8 = vld [vmem:[%s9570_s15 + $0x158] sm:$0xff]  ;;  %v8211_v13 = vld [vmem:[%s9570_s15 + $0x1a0] sm:$0xff]  ;;  %v8201_v52 = vld [vmem:[%s9570_s15 + $0x150] sm:$0xff] }
0x260e   :  { %5026 = vmatpush.bf16.msrb.mxu2 %v7226_v60  ;;  %5040 = vmatpush.bf16.msra.mxu3 %v7230_v41  ;;  %v8166_v60 = vld [vmem:[%s9570_s15 + $0x38] sm:$0xff] }
0x260f   :  { %v8174_v41 = vld [vmem:[%s9570_s15 + $0x78] sm:$0xff] }
0x2610   :  { %v8210_v39 = vld [vmem:[%s9570_s15 + $0x198] sm:$0xff] }
0x2611   :  { %4999 = vmatpush.bf16.msrb.mxu0 %v7154_v7  ;;  %5013 = vmatpush.bf16.msra.mxu1 %v7158_v14  ;;  %v8164_v7 = vld [vmem:[%s9570_s15 + $0x28] sm:$0xff] }
0x2612   :  { %5027 = vmatpush.bf16.msrb.mxu2 %v7162_v20  ;;  %5041 = vmatpush.bf16.msra.mxu3 %v7166_v25  ;;  %v8172_v14 = vld [vmem:[%s9570_s15 + $0x68] sm:$0xff]  ;;  %v8163_v20 = vld [vmem:[%s9570_s15 + $0x20] sm:$0xff] }
0x2613   :  { %7379 = vmatmul.msk.bf16.vlgmr.msra.gmra.mxu0 %vm946_vm0, %v9499_v59  ;;  %7380 = vmatmul.msk.bf16.vlgmr.msrb.gmra.mxu1 %vm946_vm0, %v9499_v59  ;;  %v8171_v25 = vld [vmem:[%s9570_s15 + $0x60] sm:$0xff] }
0x2614   :  { %7381 = vmatmul.msk.bf16.vlgmr.msra.gmra.mxu2 %vm946_vm0, %v9499_v59  ;;  %7382 = vmatmul.msk.bf16.vlgmr.msrb.gmra.mxu3 %vm946_vm0, %v9499_v59 }
0x2615   :  { %5052 = vmatpush.bf16.msra.mxu0 %v7362_v37  ;;  %5066 = vmatpush.bf16.msrb.mxu1 %v7366_v29  ;;  %v8161_v37 = vld [vmem:[%s9570_s15 + $0x10] sm:$0xff] }
0x2616   :  { %5080 = vmatpush.bf16.msra.mxu2 %v7370_v34  ;;  %5094 = vmatpush.bf16.msrb.mxu3 %v7374_v35  ;;  %v8169_v29 = vld [vmem:[%s9570_s15 + $0x50] sm:$0xff]  ;;  %v8160_v34 = vld [vmem:[%s9570_s15 + $0x8] sm:$0xff] }
0x2617   :  { %v8176_v35 = vld [vmem:[%s9570_s15 + $0x88] sm:$0xff] }
0x2619   :  { %5053 = vmatpush.bf16.msra.mxu0 %v7298_v42  ;;  %5067 = vmatpush.bf16.msrb.mxu1 %v7302_v43  ;;  %v8183_v42 = vld [vmem:[%s9570_s15 + $0xc0] sm:$0xff]  ;;  %v8214_v43 = vld [vmem:[%s9570_s15 + $0x1b8] sm:$0xff] }
0x261a   :  { %5081 = vmatpush.bf16.msra.mxu2 %v7306_v22  ;;  %5095 = vmatpush.bf16.msrb.mxu3 %v7310_v48  ;;  %v8205_v22 = vld [vmem:[%s9570_s15 + $0x170] sm:$0xff] }
0x261b   :  { %v8213_v48 = vld [vmem:[%s9570_s15 + $0x1b0] sm:$0xff] }
0x261d   :  { %5054 = vmatpush.bf16.msra.mxu0 %v7234_v40  ;;  %5068 = vmatpush.bf16.msrb.mxu1 %v7238_v18  ;;  %v8220_v40 = vld [vmem:[%s9570_s15 + $0x1e8] sm:$0xff]  ;;  %v8194_v18 = vld [vmem:[%s9570_s15 + $0x118] sm:$0xff] }
0x261e   :  { %5082 = vmatpush.bf16.msra.mxu2 %v7242_v50  ;;  %5096 = vmatpush.bf16.msrb.mxu3 %v7246_v51  ;;  %v8219_v50 = vld [vmem:[%s9570_s15 + $0x1e0] sm:$0xff]  ;;  %v8193_v51 = vld [vmem:[%s9570_s15 + $0x110] sm:$0xff] }
0x2621   :  { %5055 = vmatpush.bf16.msra.mxu0 %v7170_v61  ;;  %5069 = vmatpush.bf16.msrb.mxu1 %v7174_v63  ;;  %v8217_v61 = vld [vmem:[%s9570_s15 + $0x1d0] sm:$0xff]  ;;  %v8191_v63 = vld [vmem:[%s9570_s15 + $0x100] sm:$0xff] }
0x2622   :  { %5083 = vmatpush.bf16.msra.mxu2 %v7178_v58  ;;  %5097 = vmatpush.bf16.msrb.mxu3 %v7182_v16  ;;  %v8199_v58 = vld [vmem:[%s9570_s15 + $0x140] sm:$0xff]  ;;  %v8208_v16 = vld [vmem:[%s9570_s15 + $0x188] sm:$0xff] }
0x2623   :  { %7383 = vmatmul.msk.bf16.vlgmr.msrb.gmra.mxu0 %vm946_vm0, %v9499_v59  ;;  %7384 = vmatmul.msk.bf16.vlgmr.msra.gmra.mxu1 %vm946_vm0, %v9499_v59 }
0x2624   :  { %7385 = vmatmul.msk.bf16.vlgmr.msrb.gmra.mxu2 %vm946_vm0, %v9499_v59  ;;  %7386 = vmatmul.msk.bf16.vlgmr.msra.gmra.mxu3 %vm946_vm0, %v9499_v59 }
0x2625   :  { %5923 = vmatpush.bf16.msrb.mxu0 %v8166_v60  ;;  %5937 = vmatpush.bf16.msra.mxu1 %v8174_v41  ;;  %v8216_v60 = vld [vmem:[%s9570_s15 + $0x1c8] sm:$0xff]  ;;  %v8207_v41 = vld [vmem:[%s9570_s15 + $0x180] sm:$0xff] }
0x2626   :  { %5951 = vmatpush.bf16.msrb.mxu2 %v8182_v23  ;;  %5965 = vmatpush.bf16.msra.mxu3 %v8190_v24  ;;  %v8215_v23 = vld [vmem:[%s9570_s15 + $0x1c0] sm:$0xff] }
0x2627   :  { %v9669_v24 = vld [vmem:[%s9666_s24] sm:$0xff] }
0x2629   :  { %5924 = vmatpush.bf16.msrb.mxu0 %v8165_v2  ;;  %5938 = vmatpush.bf16.msra.mxu1 %v8173_v3 }
0x262a   :  { %5952 = vmatpush.bf16.msrb.mxu2 %v8181_v4  ;;  %5966 = vmatpush.bf16.msra.mxu3 %v8189_v6  ;;  %v4525_v4 = vperm.slane %v9669_v24, 0  ;;  %v4526_v6 = vperm.slane %v9669_v24, 1 }
0x262d   :  { %5925 = vmatpush.bf16.msrb.mxu0 %v8164_v7  ;;  %5939 = vmatpush.bf16.msra.mxu1 %v8172_v14 }
0x262e   :  { %5953 = vmatpush.bf16.msrb.mxu2 %v8180_v15  ;;  %5967 = vmatpush.bf16.msra.mxu3 %v8188_v19 }
0x2631   :  { %5926 = vmatpush.bf16.msrb.mxu0 %v8163_v20  ;;  %5940 = vmatpush.bf16.msra.mxu1 %v8171_v25 }
0x2632   :  { %5954 = vmatpush.bf16.msrb.mxu2 %v8179_v21  ;;  %5968 = vmatpush.bf16.msra.mxu3 %v8187_v26 }
0x2633   :  { %7387 = vmatmul.msk.bf16.vlgmr.msra.gmra.mxu0 %vm946_vm0, %v9499_v59  ;;  %7388 = vmatmul.msk.bf16.vlgmr.msrb.gmra.mxu1 %vm946_vm0, %v9499_v59 }
0x2634   :  { %7389 = vmatmul.msk.bf16.vlgmr.msra.gmra.mxu2 %vm946_vm0, %v9499_v59  ;;  %7390 = vmatmul.msk.bf16.vlgmr.msrb.gmra.mxu3 %vm946_vm0, %v9499_v59  ;;  %v8168_v59 = vld [vmem:[%s9570_s15 + $0x48] sm:$0xff] }
0x2635   :  { %5927 = vmatpush.bf16.msrb.mxu0 %v8162_v55  ;;  %5941 = vmatpush.bf16.msra.mxu1 %v8170_v9  ;;  %v4527_v55 = vperm.slane %v9669_v24, 2  ;;  %v4528_v9 = vperm.slane %v9669_v24, 3 }
0x2636   :  { %5955 = vmatpush.bf16.msrb.mxu2 %v8178_v0  ;;  %5969 = vmatpush.bf16.msra.mxu3 %v8186_v28 }
0x2639   :  { %5928 = vmatpush.bf16.msrb.mxu0 %v8161_v37  ;;  %5942 = vmatpush.bf16.msra.mxu1 %v8169_v29 }
0x263a   :  { %5956 = vmatpush.bf16.msrb.mxu2 %v8177_v31  ;;  %5970 = vmatpush.bf16.msra.mxu3 %v8185_v33  ;;  %v8230_v31 = vld [vmem:[%s9570_s15 + $0x238] sm:$0xff] }
0x263b   :  { %v8238_v33 = vld [vmem:[%s9570_s15 + $0x278] sm:$0xff] }
0x263d   :  { %5929 = vmatpush.bf16.msrb.mxu0 %v8160_v34  ;;  %5943 = vmatpush.bf16.msra.mxu1 %v8168_v59 }
0x263e   :  { %5957 = vmatpush.bf16.msrb.mxu2 %v8176_v35  ;;  %5971 = vmatpush.bf16.msra.mxu3 %v8184_v36 }
0x2641   :  { %5930 = vmatpush.bf16.msrb.mxu0 %v8159_v62  ;;  %5944 = vmatpush.bf16.msra.mxu1 %v8167_v1 }
0x2642   :  { %5958 = vmatpush.bf16.msrb.mxu2 %v8175_v30  ;;  %5972 = vmatpush.bf16.msra.mxu3 %v8183_v42 }
0x2645   :  { %5979 = vmatpush.bf16.msra.mxu0 %v8198_v44  ;;  %5993 = vmatpush.bf16.msrb.mxu1 %v8206_v45 }
0x2646   :  { %6007 = vmatpush.bf16.msra.mxu2 %v8214_v43  ;;  %6021 = vmatpush.bf16.msrb.mxu3 %v8222_v46  ;;  %v8229_v43 = vld [vmem:[%s9570_s15 + $0x230] sm:$0xff] }
0x2647   :  { %v8237_v46 = vld [vmem:[%s9570_s15 + $0x270] sm:$0xff] }
0x2649   :  { %5980 = vmatpush.bf16.msra.mxu0 %v8197_v32  ;;  %5994 = vmatpush.bf16.msrb.mxu1 %v8205_v22 }
0x264a   :  { %6008 = vmatpush.bf16.msra.mxu2 %v8213_v48  ;;  %6022 = vmatpush.bf16.msrb.mxu3 %v8221_v10 }
0x264d   :  { %5981 = vmatpush.bf16.msra.mxu0 %v8196_v49  ;;  %5995 = vmatpush.bf16.msrb.mxu1 %v8204_v56  ;;  %v4529_v49 = vperm.slane %v9669_v24, 4  ;;  %v4530_v56 = vperm.slane %v9669_v24, 5 }
0x264e   :  { %6009 = vmatpush.bf16.msra.mxu2 %v8212_v27  ;;  %6023 = vmatpush.bf16.msrb.mxu3 %v8220_v40 }
0x2651   :  { %5982 = vmatpush.bf16.msra.mxu0 %v8195_v57  ;;  %5996 = vmatpush.bf16.msrb.mxu1 %v8203_v11  ;;  %v8246_v57 = vld [vmem:[%s9570_s15 + $0x2b8] sm:$0xff] }
0x2652   :  { %6010 = vmatpush.bf16.msra.mxu2 %v8211_v13  ;;  %6024 = vmatpush.bf16.msrb.mxu3 %v8219_v50  ;;  %v8254_v11 = vld [vmem:[%s9570_s15 + $0x2f8] sm:$0xff] }
0x2655   :  { %5983 = vmatpush.bf16.msra.mxu0 %v8194_v18  ;;  %5997 = vmatpush.bf16.msrb.mxu1 %v8202_v8  ;;  %v8228_v18 = vld [vmem:[%s9570_s15 + $0x228] sm:$0xff] }
0x2656   :  { %6011 = vmatpush.bf16.msra.mxu2 %v8210_v39  ;;  %6025 = vmatpush.bf16.msrb.mxu3 %v8218_v53  ;;  %v8236_v8 = vld [vmem:[%s9570_s15 + $0x268] sm:$0xff]  ;;  %v8245_v39 = vld [vmem:[%s9570_s15 + $0x2b0] sm:$0xff] }
0x2657   :  { %v8253_v53 = vld [vmem:[%s9570_s15 + $0x2f0] sm:$0xff] }
0x2659   :  { %5984 = vmatpush.bf16.msra.mxu0 %v8193_v51  ;;  %5998 = vmatpush.bf16.msrb.mxu1 %v8201_v52 }
0x265a   :  { %6012 = vmatpush.bf16.msra.mxu2 %v8209_v54  ;;  %6026 = vmatpush.bf16.msrb.mxu3 %v8217_v61  ;;  %v8227_v54 = vld [vmem:[%s9570_s15 + $0x220] sm:$0xff] }
0x265b   :  { %v8235_v61 = vld [vmem:[%s9570_s15 + $0x260] sm:$0xff] }
0x265d   :  { %5985 = vmatpush.bf16.msra.mxu0 %v8192_v5  ;;  %5999 = vmatpush.bf16.msrb.mxu1 %v8200_v12 }
0x265e   :  { %6013 = vmatpush.bf16.msra.mxu2 %v8208_v16  ;;  %6027 = vmatpush.bf16.msrb.mxu3 %v8216_v60  ;;  %v4531_v16 = vperm.slane %v9669_v24, 6  ;;  %v4532_v60 = vperm.slane %v9669_v24, 7 }
0x2661   :  { %5986 = vmatpush.bf16.msra.mxu0 %v8191_v63  ;;  %6000 = vmatpush.bf16.msrb.mxu1 %v8199_v58 }
0x2662   :  { %6014 = vmatpush.bf16.msra.mxu2 %v8207_v41  ;;  %6028 = vmatpush.bf16.msrb.mxu3 %v8215_v23 }
0x2680   :  { %v4889_v2 = vpop.f32.mrf.mxu0  ;;  %v4903_v3 = vpop.f32.mrf.mxu1 }
0x2681   :  { %v4890_v7 = vadd.f32 %v4889_v2, %v4525_v4  ;;  %v4904_v14 = vadd.f32 %v4903_v3, %v4526_v6 }
0x2683   :  { %v5104_v0 = vmax.f32 %v4890_v7, 0.0  ;;  %v5105_v28 = vmax.f32 %v4904_v14, 0.0 }
0x2687   :  { %v4917_v15 = vpop.f32.mrf.mxu2  ;;  %v4931_v19 = vpop.f32.mrf.mxu3 }
0x2688   :  { %v4891_v20 = vpop.f32.mrf.mxu0  ;;  %v4905_v25 = vpop.f32.mrf.mxu1  ;;  %v4918_v35 = vadd.f32 %v4917_v15, %v4527_v55  ;;  %v4932_v36 = vadd.f32 %v4931_v19, %v4528_v9  ;;  %v8226_v15 = vld [vmem:[%s9570_s15 + $0x218] sm:$0xff] }
0x2689   :  { %v4892_v21 = vadd.f32 %v4891_v20, %v4525_v4  ;;  %v4906_v26 = vadd.f32 %v4905_v25, %v4526_v6  ;;  %v8244_v4 = vld [vmem:[%s9570_s15 + $0x2a8] sm:$0xff]  ;;  %v8234_v19 = vld [vmem:[%s9570_s15 + $0x258] sm:$0xff] }
0x268a   :  { %v5106_v32 = vmax.f32 %v4918_v35, 0.0  ;;  %v5107_v22 = vmax.f32 %v4932_v36, 0.0  ;;  %v8252_v6 = vld [vmem:[%s9570_s15 + $0x2e8] sm:$0xff] }
0x268b   :  { %v5120_v37 = vmax.f32 %v4892_v21, 0.0  ;;  %v5121_v29 = vmax.f32 %v4906_v26, 0.0  ;;  %v8243_v26 = vld [vmem:[%s9570_s15 + $0x2a0] sm:$0xff] }
0x268d   :  { %v5136_v34 = vpack.c.bf16 %v5120_v37, %v5104_v0  ;;  %v5137_v59 = vpack.c.bf16 %v5121_v29, %v5105_v28  ;;  %v9698_v28 = vld [vmem:[%s9666_s24 + $0x8] sm:$0xff] }
0x268f   :  { %v4919_v62 = vpop.f32.mrf.mxu2  ;;  %v4933_v1 = vpop.f32.mrf.mxu3  ;;  %5931 = vmatmul.bf16.vlgmr.msrb.gmra.mxu0 %v5136_v34  ;;  %5945 = vmatmul.bf16.vlgmr.msra.gmra.mxu1 %v5137_v59 }
0x2690   :  { %v4920_v44 = vadd.f32 %v4919_v62, %v4527_v55  ;;  %v4934_v45 = vadd.f32 %v4933_v1, %v4528_v9  ;;  %6035 = vmatpush.bf16.msrb.mxu0 %v8230_v31  ;;  %6049 = vmatpush.bf16.msra.mxu1 %v8238_v33  ;;  %v4945_v30 = vpop.f32.mrf.mxu0  ;;  %v4959_v42 = vpop.f32.mrf.mxu1  ;;  %v8251_v55 = vld [vmem:[%s9570_s15 + $0x2e0] sm:$0xff]  ;;  %v8225_v31 = vld [vmem:[%s9570_s15 + $0x210] sm:$0xff]  ;;  %v4533_v62 = vperm.slane %v9698_v28, 0  ;;  %v4534_v1 = vperm.slane %v9698_v28, 1 }
0x2691   :  { %v4946_v13 = vadd.f32 %v4945_v30, %v4529_v49  ;;  %v4960_v50 = vadd.f32 %v4959_v42, %v4530_v56  ;;  %v8233_v33 = vld [vmem:[%s9570_s15 + $0x250] sm:$0xff] }
0x2692   :  { %v5122_v48 = vmax.f32 %v4920_v44, 0.0  ;;  %v5123_v10 = vmax.f32 %v4934_v45, 0.0  ;;  %v8242_v44 = vld [vmem:[%s9570_s15 + $0x298] sm:$0xff] }
0x2693   :  { %v5108_v41 = vmax.f32 %v4946_v13, 0.0  ;;  %v5109_v23 = vmax.f32 %v4960_v50, 0.0  ;;  %v8250_v45 = vld [vmem:[%s9570_s15 + $0x2d8] sm:$0xff]  ;;  %v4535_v13 = vperm.slane %v9698_v28, 2  ;;  %v4536_v50 = vperm.slane %v9698_v28, 3 }
0x2694   :  { %v5138_v27 = vpack.c.bf16 %v5122_v48, %v5106_v32  ;;  %v5139_v40 = vpack.c.bf16 %v5123_v10, %v5107_v22  ;;  %6036 = vmatpush.bf16.msrb.mxu0 %v8229_v43  ;;  %6050 = vmatpush.bf16.msra.mxu1 %v8237_v46  ;;  %v8224_v43 = vld [vmem:[%s9570_s15 + $0x208] sm:$0xff] }
0x2695   :  { %v8232_v46 = vld [vmem:[%s9570_s15 + $0x248] sm:$0xff] }
0x2696   :  { %5959 = vmatmul.bf16.vlgmr.msrb.gmra.mxu2 %v5138_v27  ;;  %5973 = vmatmul.bf16.vlgmr.msra.gmra.mxu3 %v5139_v40 }
0x2697   :  { %6063 = vmatpush.bf16.msrb.mxu2 %v8246_v57  ;;  %6077 = vmatpush.bf16.msra.mxu3 %v8254_v11  ;;  %v4973_v51 = vpop.f32.mrf.mxu2  ;;  %v4987_v52 = vpop.f32.mrf.mxu3 }
0x2698   :  { %6037 = vmatpush.bf16.msrb.mxu0 %v8228_v18  ;;  %6051 = vmatpush.bf16.msra.mxu1 %v8236_v8  ;;  %v4947_v5 = vpop.f32.mrf.mxu0  ;;  %v4961_v12 = vpop.f32.mrf.mxu1  ;;  %v4974_v20 = vadd.f32 %v4973_v51, %v4531_v16  ;;  %v4988_v25 = vadd.f32 %v4987_v52, %v4532_v60  ;;  %v8223_v18 = vld [vmem:[%s9570_s15 + $0x200] sm:$0xff]  ;;  %v8262_v51 = vld [vmem:[%s9570_s15 + $0x338] sm:$0xff] }
0x2699   :  { %v4948_v63 = vadd.f32 %v4947_v5, %v4529_v49  ;;  %v4962_v58 = vadd.f32 %v4961_v12, %v4530_v56  ;;  %v8241_v49 = vld [vmem:[%s9570_s15 + $0x290] sm:$0xff]  ;;  %v8231_v8 = vld [vmem:[%s9570_s15 + $0x240] sm:$0xff]  ;;  %v8270_v52 = vld [vmem:[%s9570_s15 + $0x378] sm:$0xff] }
0x269a   :  { %v5110_v34 = vmax.f32 %v4974_v20, 0.0  ;;  %v5111_v59 = vmax.f32 %v4988_v25, 0.0  ;;  %v8249_v56 = vld [vmem:[%s9570_s15 + $0x2d0] sm:$0xff] }
0x269b   :  { %v5124_v2 = vmax.f32 %v4948_v63, 0.0  ;;  %v5125_v3 = vmax.f32 %v4962_v58, 0.0  ;;  %6064 = vmatpush.bf16.msrb.mxu2 %v8245_v39  ;;  %6078 = vmatpush.bf16.msra.mxu3 %v8253_v53 }
0x269c   :  { %6038 = vmatpush.bf16.msrb.mxu0 %v8227_v54  ;;  %6052 = vmatpush.bf16.msra.mxu1 %v8235_v61  ;;  %v8240_v54 = vld [vmem:[%s9570_s15 + $0x288] sm:$0xff] }
0x269d   :  { %v5140_v7 = vpack.c.bf16 %v5124_v2, %v5108_v41  ;;  %v5141_v14 = vpack.c.bf16 %v5125_v3, %v5109_v23  ;;  %v8248_v61 = vld [vmem:[%s9570_s15 + $0x2c8] sm:$0xff]  ;;  %v8261_v41 = vld [vmem:[%s9570_s15 + $0x330] sm:$0xff] }
0x269e   :  { %v8269_v23 = vld [vmem:[%s9570_s15 + $0x370] sm:$0xff] }
0x269f   :  { %6065 = vmatpush.bf16.msrb.mxu2 %v8244_v4  ;;  %6079 = vmatpush.bf16.msra.mxu3 %v8252_v6  ;;  %v4975_v24 = vpop.f32.mrf.mxu2  ;;  %v4989_v21 = vpop.f32.mrf.mxu3  ;;  %v8239_v4 = vld [vmem:[%s9570_s15 + $0x280] sm:$0xff] }
0x26a0   :  { %v4976_v9 = vadd.f32 %v4975_v24, %v4531_v16  ;;  %v4990_v0 = vadd.f32 %v4989_v21, %v4532_v60  ;;  %5987 = vmatmul.bf16.vlgmr.msra.gmra.mxu0 %v5140_v7  ;;  %6001 = vmatmul.bf16.vlgmr.msrb.gmra.mxu1 %v5141_v14  ;;  %v5001_v37 = vpop.f32.mrf.mxu0  ;;  %v5015_v29 = vpop.f32.mrf.mxu1  ;;  %v8247_v6 = vld [vmem:[%s9570_s15 + $0x2c0] sm:$0xff] }
0x26a1   :  { %6039 = vmatpush.bf16.msrb.mxu0 %v8226_v15  ;;  %6053 = vmatpush.bf16.msra.mxu1 %v8234_v19  ;;  %v5002_v32 = vadd.f32 %v5001_v37, %v4533_v62  ;;  %v5016_v22 = vadd.f32 %v5015_v29, %v4534_v1  ;;  %v8278_v15 = vld [vmem:[%s9570_s15 + $0x3b8] sm:$0xff]  ;;  %v8277_v37 = vld [vmem:[%s9570_s15 + $0x3b0] sm:$0xff] }
0x26a2   :  { %v5126_v35 = vmax.f32 %v4976_v9, 0.0  ;;  %v5127_v36 = vmax.f32 %v4990_v0, 0.0  ;;  %v8286_v19 = vld [vmem:[%s9570_s15 + $0x3f8] sm:$0xff]  ;;  %v8285_v29 = vld [vmem:[%s9570_s15 + $0x3f0] sm:$0xff] }
0x26a3   :  { %6066 = vmatpush.bf16.msrb.mxu2 %v8243_v26  ;;  %6080 = vmatpush.bf16.msra.mxu3 %v8251_v55  ;;  %v5112_v39 = vmax.f32 %v5002_v32, 0.0  ;;  %v5113_v53 = vmax.f32 %v5016_v22, 0.0  ;;  %v8260_v26 = vld [vmem:[%s9570_s15 + $0x328] sm:$0xff] }
0x26a4   :  { %v5142_v30 = vpack.c.bf16 %v5126_v35, %v5110_v34  ;;  %v5143_v42 = vpack.c.bf16 %v5127_v36, %v5111_v59  ;;  %v8268_v55 = vld [vmem:[%s9570_s15 + $0x368] sm:$0xff]  ;;  %v8259_v34 = vld [vmem:[%s9570_s15 + $0x320] sm:$0xff] }
0x26a5   :  { %6040 = vmatpush.bf16.msrb.mxu0 %v8225_v31  ;;  %6054 = vmatpush.bf16.msra.mxu1 %v8233_v33  ;;  %v8267_v59 = vld [vmem:[%s9570_s15 + $0x360] sm:$0xff]  ;;  %v8276_v35 = vld [vmem:[%s9570_s15 + $0x3a8] sm:$0xff] }
0x26a6   :  { %6015 = vmatmul.bf16.vlgmr.msra.gmra.mxu2 %v5142_v30  ;;  %6029 = vmatmul.bf16.vlgmr.msrb.gmra.mxu3 %v5143_v42  ;;  %v8284_v36 = vld [vmem:[%s9570_s15 + $0x3e8] sm:$0xff]  ;;  %v8275_v30 = vld [vmem:[%s9570_s15 + $0x3a0] sm:$0xff] }
0x26a7   :  { %6067 = vmatpush.bf16.msrb.mxu2 %v8242_v44  ;;  %6081 = vmatpush.bf16.msra.mxu3 %v8250_v45  ;;  %v5029_v48 = vpop.f32.mrf.mxu2  ;;  %v5043_v10 = vpop.f32.mrf.mxu3  ;;  %v8283_v42 = vld [vmem:[%s9570_s15 + $0x3e0] sm:$0xff] }
0x26a8   :  { %v5003_v57 = vpop.f32.mrf.mxu0  ;;  %v5017_v11 = vpop.f32.mrf.mxu1  ;;  %v5030_v16 = vadd.f32 %v5029_v48, %v4535_v13  ;;  %v5044_v60 = vadd.f32 %v5043_v10, %v4536_v50  ;;  %v8274_v48 = vld [vmem:[%s9570_s15 + $0x398] sm:$0xff] }
0x26a9   :  { %6041 = vmatpush.bf16.msrb.mxu0 %v8224_v43  ;;  %6055 = vmatpush.bf16.msra.mxu1 %v8232_v46  ;;  %v5004_v27 = vadd.f32 %v5003_v57, %v4533_v62  ;;  %v5018_v40 = vadd.f32 %v5017_v11, %v4534_v1  ;;  %v8258_v62 = vld [vmem:[%s9570_s15 + $0x318] sm:$0xff]  ;;  %v8257_v43 = vld [vmem:[%s9570_s15 + $0x310] sm:$0xff]  ;;  %v8256_v57 = vld [vmem:[%s9570_s15 + $0x308] sm:$0xff] }
0x26aa   :  { %v5114_v20 = vmax.f32 %v5030_v16, 0.0  ;;  %v5115_v25 = vmax.f32 %v5044_v60, 0.0  ;;  %v8266_v1 = vld [vmem:[%s9570_s15 + $0x358] sm:$0xff]  ;;  %v8265_v46 = vld [vmem:[%s9570_s15 + $0x350] sm:$0xff]  ;;  %v8264_v11 = vld [vmem:[%s9570_s15 + $0x348] sm:$0xff] }
0x26ab   :  { %v5128_v5 = vmax.f32 %v5004_v27, 0.0  ;;  %v5129_v12 = vmax.f32 %v5018_v40, 0.0  ;;  %6068 = vmatpush.bf16.msrb.mxu2 %v8241_v49  ;;  %6082 = vmatpush.bf16.msra.mxu3 %v8249_v56  ;;  %v8282_v10 = vld [vmem:[%s9570_s15 + $0x3d8] sm:$0xff]  ;;  %v4537_v49 = vperm.slane %v9698_v28, 4  ;;  %v4538_v56 = vperm.slane %v9698_v28, 5 }
0x26ad   :  { %v5144_v63 = vpack.c.bf16 %v5128_v5, %v5112_v39  ;;  %v5145_v58 = vpack.c.bf16 %v5129_v12, %v5113_v53  ;;  %6042 = vmatpush.bf16.msrb.mxu0 %v8223_v18  ;;  %6056 = vmatpush.bf16.msra.mxu1 %v8231_v8  ;;  %v8273_v18 = vld [vmem:[%s9570_s15 + $0x390] sm:$0xff]  ;;  %v8255_v39 = vld [vmem:[%s9570_s15 + $0x300] sm:$0xff]  ;;  %v4539_v5 = vperm.slane %v9698_v28, 6  ;;  %v4540_v12 = vperm.slane %v9698_v28, 7 }
0x26ae   :  { %v8281_v8 = vld [vmem:[%s9570_s15 + $0x3d0] sm:$0xff]  ;;  %v8263_v53 = vld [vmem:[%s9570_s15 + $0x340] sm:$0xff] }
0x26af   :  { %6069 = vmatpush.bf16.msrb.mxu2 %v8240_v54  ;;  %6083 = vmatpush.bf16.msra.mxu3 %v8248_v61  ;;  %v5031_v2 = vpop.f32.mrf.mxu2  ;;  %v5045_v3 = vpop.f32.mrf.mxu3  ;;  %v8271_v28 = vld [vmem:[%s9570_s15 + $0x380] sm:$0xff] }
0x26b0   :  { %v5032_v7 = vadd.f32 %v5031_v2, %v4535_v13  ;;  %v5046_v14 = vadd.f32 %v5045_v3, %v4536_v50  ;;  %6043 = vmatmul.bf16.vlgmr.msrb.gmra.mxu0 %v5144_v63  ;;  %6057 = vmatmul.bf16.vlgmr.msra.gmra.mxu1 %v5145_v58  ;;  %v5057_v31 = vpop.f32.mrf.mxu0  ;;  %v5071_v33 = vpop.f32.mrf.mxu1  ;;  %v8272_v63 = vld [vmem:[%s9570_s15 + $0x388] sm:$0xff] }
0x26b1   :  { %6091 = vmatpush.bf16.msra.mxu0 %v8262_v51  ;;  %6105 = vmatpush.bf16.msrb.mxu1 %v8270_v52  ;;  %v5058_v13 = vadd.f32 %v5057_v31, %v4537_v49  ;;  %v5072_v50 = vadd.f32 %v5071_v33, %v4538_v56  ;;  %v8280_v58 = vld [vmem:[%s9570_s15 + $0x3c8] sm:$0xff] }
0x26b2   :  { %v5130_v24 = vmax.f32 %v5032_v7, 0.0  ;;  %v5131_v21 = vmax.f32 %v5046_v14, 0.0  ;;  %v8279_v7 = vld [vmem:[%s9570_s15 + $0x3c0] sm:$0xff] }
0x26b3   :  { %6070 = vmatpush.bf16.msrb.mxu2 %v8239_v4  ;;  %6084 = vmatpush.bf16.msra.mxu3 %v8247_v6  ;;  %v5116_v16 = vmax.f32 %v5058_v13, 0.0  ;;  %v5117_v60 = vmax.f32 %v5072_v50, 0.0 }
0x26b4   :  { %v5146_v9 = vpack.c.bf16 %v5130_v24, %v5114_v20  ;;  %v5147_v0 = vpack.c.bf16 %v5131_v21, %v5115_v25 }
0x26b5   :  { %6092 = vmatpush.bf16.msra.mxu0 %v8261_v41  ;;  %6106 = vmatpush.bf16.msrb.mxu1 %v8269_v23 }
0x26b6   :  { %6071 = vmatmul.bf16.vlgmr.msrb.gmra.mxu2 %v5146_v9  ;;  %6085 = vmatmul.bf16.vlgmr.msra.gmra.mxu3 %v5147_v0 }
0x26b7   :  { %6119 = vmatpush.bf16.msra.mxu2 %v8278_v15  ;;  %6133 = vmatpush.bf16.msrb.mxu3 %v8286_v19  ;;  %v5085_v44 = vpop.f32.mrf.mxu2  ;;  %v5099_v45 = vpop.f32.mrf.mxu3 }
0x26b8   :  { %v5059_v32 = vpop.f32.mrf.mxu0  ;;  %v5073_v22 = vpop.f32.mrf.mxu1  ;;  %v5086_v2 = vadd.f32 %v5085_v44, %v4539_v5  ;;  %v5100_v3 = vadd.f32 %v5099_v45, %v4540_v12 }
0x26b9   :  { %6093 = vmatpush.bf16.msra.mxu0 %v8260_v26  ;;  %6107 = vmatpush.bf16.msrb.mxu1 %v8268_v55  ;;  %v5060_v27 = vadd.f32 %v5059_v32, %v4537_v49  ;;  %v5074_v40 = vadd.f32 %v5073_v22, %v4538_v56 }
0x26ba   :  { %v5118_v19 = vmax.f32 %v5086_v2, 0.0  ;;  %v5119_v20 = vmax.f32 %v5100_v3, 0.0 }
0x26bb   :  { %6120 = vmatpush.bf16.msra.mxu2 %v8277_v37  ;;  %6134 = vmatpush.bf16.msrb.mxu3 %v8285_v29  ;;  %v5132_v54 = vmax.f32 %v5060_v27, 0.0  ;;  %v5133_v61 = vmax.f32 %v5074_v40, 0.0  ;;  %v8372_v29 = vld [vmem:[%s9641_s19] ss:$0 sm:$0xff] }
0x26bd   :  { %6094 = vmatpush.bf16.msra.mxu0 %v8259_v34  ;;  %6108 = vmatpush.bf16.msrb.mxu1 %v8267_v59  ;;  %v5148_v4 = vpack.c.bf16 %v5132_v54, %v5116_v16  ;;  %v5149_v6 = vpack.c.bf16 %v5133_v61, %v5117_v60 }
0x26bf   :  { %6121 = vmatpush.bf16.msra.mxu2 %v8276_v35  ;;  %6135 = vmatpush.bf16.msrb.mxu3 %v8284_v36  ;;  %v5087_v51 = vpop.f32.mrf.mxu2  ;;  %v5101_v52 = vpop.f32.mrf.mxu3 }
0x26c0   :  { %v5088_v41 = vadd.f32 %v5087_v51, %v4539_v5  ;;  %v5102_v23 = vadd.f32 %v5101_v52, %v4540_v12 }
0x26c1   :  { %6095 = vmatpush.bf16.msra.mxu0 %v8258_v62  ;;  %6109 = vmatpush.bf16.msrb.mxu1 %v8266_v1 }
0x26c2   :  { %v5134_v14 = vmax.f32 %v5088_v41, 0.0  ;;  %v5135_v15 = vmax.f32 %v5102_v23, 0.0 }
0x26c3   :  { %6122 = vmatpush.bf16.msra.mxu2 %v8275_v30  ;;  %6136 = vmatpush.bf16.msrb.mxu3 %v8283_v42 }
0x26c4   :  { %v5150_v25 = vpack.c.bf16 %v5134_v14, %v5118_v19  ;;  %v5151_v24 = vpack.c.bf16 %v5135_v15, %v5119_v20 }
0x26c5   :  { %6096 = vmatpush.bf16.msra.mxu0 %v8257_v43  ;;  %6110 = vmatpush.bf16.msrb.mxu1 %v8265_v46 }
0x26c7   :  { %6123 = vmatpush.bf16.msra.mxu2 %v8274_v48  ;;  %6137 = vmatpush.bf16.msrb.mxu3 %v8282_v10 }
0x26c9   :  { %6097 = vmatpush.bf16.msra.mxu0 %v8256_v57  ;;  %6111 = vmatpush.bf16.msrb.mxu1 %v8264_v11 }
0x26cb   :  { %6124 = vmatpush.bf16.msra.mxu2 %v8273_v18  ;;  %6138 = vmatpush.bf16.msrb.mxu3 %v8281_v8 }
0x26cd   :  { %6098 = vmatpush.bf16.msra.mxu0 %v8255_v39  ;;  %6112 = vmatpush.bf16.msrb.mxu1 %v8263_v53 }
0x26cf   :  { %6125 = vmatpush.bf16.msra.mxu2 %v8272_v63  ;;  %6139 = vmatpush.bf16.msrb.mxu3 %v8280_v58 }
0x26d0   :  { %6099 = vmatmul.bf16.vlgmr.msra.gmra.mxu0 %v5148_v4  ;;  %6113 = vmatmul.bf16.vlgmr.msrb.gmra.mxu1 %v5149_v6 }
0x26d3   :  { %6126 = vmatpush.bf16.msra.mxu2 %v8271_v28  ;;  %6140 = vmatpush.bf16.msrb.mxu3 %v8279_v7 }
0x26d6   :  { %6127 = vmatmul.bf16.vlgmr.msra.gmra.mxu2 %v5150_v25  ;;  %6141 = vmatmul.bf16.vlgmr.msrb.gmra.mxu3 %v5151_v24 }
0x270c   :  { %v5932_v21 = vpop.f32.mrf.mxu0  ;;  %v5946_v26 = vpop.f32.mrf.mxu1 }
0x270d   :  { %v5933_v59 = vadd.f32 %v8372_v29, %v5932_v21 }
0x270f   :  { %v5947_v36 = vadd.f32 %v5946_v26, %v5933_v59 }
0x2714   :  { %v5934_v55 = vpop.f32.mrf.mxu0  ;;  %v5948_v37 = vpop.f32.mrf.mxu1 }
0x2715   :  { %v5935_v30 = vadd.f32 %v8372_v29, %v5934_v55 }
0x2717   :  { %v5949_v43 = vadd.f32 %v5948_v37, %v5935_v30 }
0x2719   :  { %v5960_v9 = vpop.f32.mrf.mxu2  ;;  %v5974_v0 = vpop.f32.mrf.mxu3 }
0x271a   :  { %v5961_v62 = vadd.f32 %v5960_v9, %v5947_v36 }
0x271c   :  { %v5975_v42 = vadd.f32 %v5974_v0, %v5961_v62 }
0x271d   :  { %v5988_v31 = vpop.f32.mrf.mxu0  ;;  %v6002_v35 = vpop.f32.mrf.mxu1 }
0x271e   :  { %v5989_v32 = vadd.f32 %v5988_v31, %v5975_v42 }
0x2720   :  { %v6003_v56 = vadd.f32 %v6002_v35, %v5989_v32 }
0x2721   :  { %v5962_v33 = vpop.f32.mrf.mxu2  ;;  %v5976_v34 = vpop.f32.mrf.mxu3 }
0x2722   :  { %v5963_v22 = vadd.f32 %v5962_v33, %v5949_v43 }
0x2724   :  { %v5977_v57 = vadd.f32 %v5976_v34, %v5963_v22 }
0x2725   :  { %v5990_v1 = vpop.f32.mrf.mxu0  ;;  %v6004_v46 = vpop.f32.mrf.mxu1 }
0x2726   :  { %v5991_v27 = vadd.f32 %v5990_v1, %v5977_v57 }
0x2728   :  { %v6005_v8 = vadd.f32 %v6004_v46, %v5991_v27 }
0x2729   :  { %v6016_v44 = vpop.f32.mrf.mxu2  ;;  %v6030_v45 = vpop.f32.mrf.mxu3 }
0x272a   :  { %v6017_v11 = vadd.f32 %v6016_v44, %v6003_v56 }
0x272c   :  { %v6031_v18 = vadd.f32 %v6030_v45, %v6017_v11 }
0x272d   :  { %v6044_v48 = vpop.f32.mrf.mxu0  ;;  %v6058_v40 = vpop.f32.mrf.mxu1 }
0x272e   :  { %v6045_v52 = vadd.f32 %v6044_v48, %v6031_v18 }
0x2730   :  { %v6059_v53 = vadd.f32 %v6058_v40, %v6045_v52  ;;  %v8373_v40 = vld [vmem:[%s9760_s27] ss:$0 sm:$0xff] }
0x2731   :  { %v6018_v10 = vpop.f32.mrf.mxu2  ;;  %v6032_v49 = vpop.f32.mrf.mxu3 }
0x2732   :  { %v6019_v39 = vadd.f32 %v6018_v10, %v6005_v8  ;;  %v8374_v8 = vld [vmem:[%s9766_s1] ss:$0 sm:$0xff] }
0x2734   :  { %v6033_v5 = vadd.f32 %v6032_v49, %v6019_v39 }
0x2735   :  { %v6046_v13 = vpop.f32.mrf.mxu0  ;;  %v6060_v12 = vpop.f32.mrf.mxu1 }
0x2736   :  { %v6047_v63 = vadd.f32 %v6046_v13, %v6033_v5 }
0x2738   :  { %v6061_v41 = vadd.f32 %v6060_v12, %v6047_v63 }
0x2739   :  { %v6072_v50 = vpop.f32.mrf.mxu2  ;;  %v6086_v51 = vpop.f32.mrf.mxu3 }
0x273a   :  { %v6073_v54 = vadd.f32 %v6072_v50, %v6059_v53 }
0x273c   :  { %v6087_v60 = vadd.f32 %v6086_v51, %v6073_v54 }
0x2741   :  { %v6074_v58 = vpop.f32.mrf.mxu2  ;;  %v6088_v16 = vpop.f32.mrf.mxu3 }
0x2742   :  { %v6075_v3 = vadd.f32 %v6074_v58, %v6061_v41 }
0x2744   :  { %v6089_v14 = vadd.f32 %v6088_v16, %v6075_v3 }
0x274d   :  { %v6100_v61 = vpop.f32.mrf.mxu0  ;;  %v6114_v2 = vpop.f32.mrf.mxu1 }
0x274e   :  { %v6101_v23 = vadd.f32 %v6100_v61, %v6087_v60 }
0x2750   :  { %v6115_v4 = vadd.f32 %v6114_v2, %v6101_v23 }
0x2755   :  { %v6102_v6 = vpop.f32.mrf.mxu0  ;;  %v6116_v24 = vpop.f32.mrf.mxu1 }
0x2756   :  { %v6103_v19 = vadd.f32 %v6102_v6, %v6089_v14 }
0x2758   :  { %v6117_v21 = vadd.f32 %v6116_v24, %v6103_v19 }
0x2759   :  { %v6128_v28 = vpop.f32.mrf.mxu2  ;;  %v6142_v7 = vpop.f32.mrf.mxu3 }
0x275a   :  { %v6129_v15 = vadd.f32 %v6128_v28, %v6115_v4 }
0x275c   :  { %v6143_v20 = vadd.f32 %v6142_v7, %v6129_v15 }
0x275e   :  { %v6147_v25 = vadd.f32 %v6143_v20, %v9490_v17 }
0x2760   :  { %v6149_v26 = vsel %vm946_vm0, %v6147_v25, 0.0 }
0x2761   :  { %v6130_v55 = vpop.f32.mrf.mxu2  ;;  %6150 = vadd.xlane.f32.xlu0 %v6149_v26  ;;  %v6144_v0 = vpop.f32.mrf.mxu3 }
0x2762   :  { %v6131_v9 = vadd.f32 %v6130_v55, %v6117_v21 }
0x2764   :  { %v6145_v37 = vadd.f32 %v6144_v0, %v6131_v9 }
0x2766   :  { %v6148_v29 = vadd.f32 %v6145_v37, %v9492_v38 }
0x2768   :  { %v6152_v17 = vsel %vm946_vm0, %v6148_v29, 0.0 }
0x2769   :  { %6153 = vadd.xlane.f32.xlu1 %v6152_v17 }
0x27d4   :  { %v6151_v31 = vpop.xlane.xlu0 %6150 }
0x27d5   :  { %v6155_v33 = vmul.f32 %v6151_v31, %v8996_v47 }
0x27d7   :  { %v6157_v34 = vsub.f32 %v6147_v25, %v6155_v33 }
0x27d9   :  { %v6159_v59 = vmul.f32 %v6157_v34, %v6157_v34 }
0x27db   :  { %v6161_v35 = vsel %vm946_vm0, %v6159_v59, 0.0 }
0x27dc   :  { %v6154_v36 = vpop.xlane.xlu1 %6153  ;;  %6162 = vadd.xlane.f32.xlu2 %v6161_v35 }
0x27dd   :  { %v6156_v38 = vmul.f32 %v6154_v36, %v8996_v47 }
0x27df   :  { %v6158_v62 = vsub.f32 %v6148_v29, %v6156_v38 }
0x27e1   :  { %v6160_v1 = vmul.f32 %v6158_v62, %v6158_v62 }
0x27e3   :  { %v6164_v44 = vsel %vm946_vm0, %v6160_v1, 0.0 }
0x27e4   :  { %6165 = vadd.xlane.f32.xlu0 %v6164_v44 }
0x284f   :  { %v6163_v45 = vpop.xlane.xlu2 %6162 }
0x2850   :  { %v6167_v30 = vmul.f32 %v6163_v45, %v8996_v47 }
0x2852   :  { %v6169_v42 = vadd.f32 1e-05, %v6167_v30 }
0x2854   :  { %8513 = vrsqrt.f32 %v6169_v42  ;;  %vm6177_vm4 = vweird.f32 %v6169_v42 }
0x2857   :  { %v6166_v43 = vpop.xlane.xlu0 %6165 }
0x2858   :  { %v6168_v46 = vmul.f32 %v6166_v43, %v8996_v47 }
0x285a   :  { %v8514_v32 = vpop.eup %8513  ;;  %v6170_v22 = vadd.f32 1e-05, %v6168_v46 }
0x285b   :  { %v6172_v48 = vmul.f32 %v8514_v32, %v6169_v42  ;;  %vm6178_vm3 = vweird.f32 %v8514_v32 }
0x285c   :  { %8515 = vrsqrt.f32 %v6170_v22  ;;  %vm6179_vm5 = vmor %vm6177_vm4, %vm6178_vm3  ;;  %vm6187_vm7 = vweird.f32 %v6170_v22 }
0x285d   :  { %v6173_v10 = vmul.f32 %v8514_v32, %v6172_v48 }
0x285f   :  { %v6174_v49 = vmul.f32 0.5, %v6173_v10 }
0x2861   :  { %v6175_v56 = vsub.f32 1.5, %v6174_v49 }
0x2862   :  { %v8516_v57 = vpop.eup %8515 }
0x2863   :  { %v6176_v11 = vmul.f32 %v8514_v32, %v6175_v56  ;;  %v6182_v27 = vmul.f32 %v8516_v57, %v6170_v22  ;;  %vm6188_vm6 = vweird.f32 %v8516_v57 }
0x2864   :  { %vm6189_vm8 = vmor %vm6187_vm7, %vm6188_vm6 }
0x2865   :  { %v6180_v47 = vsel %vm6179_vm5, %v8514_v32, %v6176_v11  ;;  %v6183_v18 = vmul.f32 %v8516_v57, %v6182_v27 }
0x2866   :  { %v6191_v13 = vmul.f32 %v6180_v47, %v6157_v34 }
0x2867   :  { %v6184_v50 = vmul.f32 0.5, %v6183_v18 }
0x2868   :  { %v6196_v51 = vmul.f32 %v8373_v40, %v6191_v13 }
0x2869   :  { %v6185_v52 = vsub.f32 1.5, %v6184_v50 }
0x286a   :  { %v6201_v39 = vadd.f32 %v8374_v8, %v6196_v51 }
0x286b   :  { %v6186_v53 = vmul.f32 %v8516_v57, %v6185_v52 }
0x286c   :  { %6203 = vst.msk [vmem:[%s6238_s5] sm:$0xff] %vm946_vm0, %v6201_v39 }
0x286d   :  { %v6190_v5 = vsel %vm6189_vm8, %v8516_v57, %v6186_v53 }
0x286e   :  { %v6192_v12 = vmul.f32 %v6190_v5, %v6158_v62 }
0x2870   :  { %v6197_v54 = vmul.f32 %v8373_v40, %v6192_v12 }
0x2872   :  { %v6202_v61 = vadd.f32 %v8374_v8, %v6197_v54 }
0x2874   :  { %6204 = vst.msk [vmem:[%s6238_s5 + $0x8] sm:$0xff] %vm946_vm0, %v6202_v61 }

</bundles_post_ra>
